<compile_context>
chip_gen: v7x
topology: tpu7x:2x2x1
jax: 0.10.0
libtpu: 0.0.40
codegen_flags: <defaults>
</compile_context>

<pallas_src>
import functools

import jax
import jax.numpy as jnp
from jax.experimental import pallas as pl
from jax.experimental.pallas import tpu as pltpu

_VMEM_LIMIT = 32 * 1024 * 1024          # <= scoped/physical VMEM on v5e/v6e/v7x
_BLOCK_BUDGET = 2 * 1024 * 1024         # target bytes per activation block


# ----------------------------------------------------------------------------
# Tiling helpers
# ----------------------------------------------------------------------------
def _pick_tile_h(Ho, stride, dil, KH, WpB, K, Wo, Cout):
    """Largest divisor of Ho whose input slab and output block stay <= budget."""
    for d in range(Ho, 0, -1):
        if Ho % d:
            continue
        slab_bytes = (stride * (d - 1) + dil * (KH - 1) + 1) * WpB * K * 2
        out_bytes = d * Wo * Cout * 2
        if slab_bytes <= _BLOCK_BUDGET and out_bytes <= _BLOCK_BUDGET:
            return d
    return 1


def _pick_tile_m(M, target=1024):
    """Row tile for the flattened 1x1-conv matmul: full M or a multiple of 8."""
    if M <= target:
        return M
    for d in range(target, 7, -1):
        if M % d == 0 and d % 8 == 0:
            return d
    return M


# ----------------------------------------------------------------------------
# Generic fused Conv2d + bias + scalar PReLU Pallas kernel (spatial KxK convs)
# ----------------------------------------------------------------------------
def _conv_rows_kernel(x_ref, w_ref, b_ref, o_ref, *, KH, KW, tile_h, Wo,
                      row_stride, dil_h, dil_w, alpha):
    """One (batch, row-tile) block of a KHxKW conv + bias + scalar PReLU.

    x_ref: (slab_rows, WpB, K)   bf16 padded input rows (with halo)
    w_ref: (KH, KW, K, Cout)     bf16
    b_ref: (1, Cout)             f32
    o_ref: (tile_h, Wo, Cout)    bf16
    """
    bias = b_ref[...]                                      # (1, Cout) f32
    Cout = o_ref.shape[-1]

    def row_body(r, carry):
        # Per-output-row accumulator: (Wo, Cout) f32 fits in <= ~16 vregs, so
        # it never spills even across conv0's 49 unrolled taps.
        acc = jnp.zeros((Wo, Cout), jnp.float32)
        for kh in range(KH):
            for kw in range(KW):
                patch = x_ref[row_stride * r + kh * dil_h,
                              pl.ds(kw * dil_w, Wo), :]    # (Wo, K) bf16
                acc = acc + jnp.dot(patch, w_ref[kh, kw],
                                    preferred_element_type=jnp.float32)
        acc = acc + bias
        out = jnp.where(acc >= 0.0, acc, alpha * acc)      # PReLU (f32 epilogue)
        o_ref[r] = out.astype(o_ref.dtype)
        return carry

    jax.lax.fori_loop(0, tile_h, row_body, 0)


def conv2d_prelu(x, w, b, alpha, *, stride=1, dilation=1, padding=0):
    """x: (B,H,W,Cin) bf16 NHWC, w: (KH,KW,Cin,Cout) f32, b: (Cout,) f32."""
    B, H, W, Cin = x.shape
    KH, KW, _, Cout = w.shape
    Ho = (H + 2 * padding - dilation * (KH - 1) - 1) // stride + 1
    Wo = (W + 2 * padding - dilation * (KW - 1) - 1) // stride + 1

    # TODO(synk): zero-padding (and the row-slab halo below) are built
    # wrapper-side; moving them into the kernel via manual DMA would remove
    # one HBM copy of the activation per layer.
    xp = jnp.pad(x, ((0, 0), (padding, padding), (padding, padding), (0, 0)))
    wq = w.astype(jnp.bfloat16)

    if stride == 1:
        KW2, K, dil_w = KW, Cin, dilation
        xq = xp
    elif stride == 2:
        # Rewrite the stride-2 conv as a stride-1 (along W) conv over the
        # width-paired input: free reshape, 2x K, and no strided reads.
        assert dilation == 1 and (W + 2 * padding) % 2 == 0
        KW2, K, dil_w = (KW + 1) // 2, 2 * Cin, 1
        w2 = jnp.zeros((KH, KW2, K, Cout), jnp.bfloat16)
        for kw in range(KW):
            w2 = w2.at[:, kw // 2,
                       (kw % 2) * Cin:(kw % 2 + 1) * Cin, :].set(wq[:, kw])
        wq = w2
        Hp0, Wp0 = xp.shape[1], xp.shape[2]
        xq = xp.reshape(B, Hp0, Wp0 // 2, K)
    else:
        raise NotImplementedError(f"stride={stride}")

    Hp, WpB = xq.shape[1], xq.shape[2]
    assert WpB >= Wo + (KW2 - 1) * dil_w

    tile_h = _pick_tile_h(Ho, stride, dilation, KH, WpB, K, Wo, Cout)
    n_h = Ho // tile_h
    slab_rows = stride * (tile_h - 1) + dilation * (KH - 1) + 1

    if n_h == 1:
        slabs = xq[:, None]                                # (B, 1, Hp, WpB, K)
    else:
        rows = (jnp.arange(n_h) * (stride * tile_h))[:, None] + \
               jnp.arange(slab_rows)[None, :]
        slabs = xq[:, rows]                                # (B, n_h, slab, WpB, K)

    kernel = functools.partial(
        _conv_rows_kernel, KH=KH, KW=KW2, tile_h=tile_h, Wo=Wo,
        row_stride=stride, dil_h=dilation, dil_w=dil_w, alpha=float(alpha))

    flops = 2 * B * Ho * Wo * KH * KW2 * K * Cout
    bytes_accessed = (slabs.size + wq.size + B * Ho * Wo * Cout) * 2 + b.size * 4

    return pl.pallas_call(
        kernel,
        out_shape=jax.ShapeDtypeStruct((B, Ho, Wo, Cout), jnp.bfloat16),
        grid=(B, n_h),
        in_specs=[
            pl.BlockSpec((None, None, slab_rows, WpB, K),
                         lambda bb, hi: (bb, hi, 0, 0, 0)),
            pl.BlockSpec((KH, KW2, K, Cout), lambda bb, hi: (0, 0, 0, 0)),
            pl.BlockSpec((1, Cout), lambda bb, hi: (0, 0)),
        ],
        out_specs=pl.BlockSpec((None, tile_h, Wo, Cout),
                               lambda bb, hi: (bb, hi, 0, 0)),
        compiler_params=pltpu.CompilerParams(
            dimension_semantics=("parallel", "parallel"),
            vmem_limit_bytes=_VMEM_LIMIT),
        cost_estimate=pl.CostEstimate(flops=flops, transcendentals=0,
                                      bytes_accessed=bytes_accessed),
    )(slabs, wq, b.reshape(1, Cout).astype(jnp.float32))


# ----------------------------------------------------------------------------
# 1x1 conv (+PReLU) as a flattened, lane-dense matmul kernel
# ----------------------------------------------------------------------------
def _matmul_prelu_kernel(x_ref, w_ref, b_ref, o_ref, *, alpha):
    acc = jnp.dot(x_ref[...], w_ref[...], preferred_element_type=jnp.float32)
    acc = acc + b_ref[...]
    out = jnp.where(acc >= 0.0, acc, alpha * acc)
    o_ref[...] = out.astype(o_ref.dtype)


def conv1x1_prelu(x, w, b, alpha):
    """x: (B,H,W,Cin) bf16, w: (Cin,Cout) f32, b: (Cout,) f32 -> (B,H,W,Cout).

    For Cout < 128 the wrapper packs `p` neighbouring pixels per matmul row
    with a block-diagonal weight so the stored last dim is >= 128 lanes."""
    B, H, W, Cin = x.shape
    Cout = w.shape[-1]
    npix = B * H * W
    p = 1
    if Cout < 128:
        p = 128 // Cout
        while p > 1 and npix % p:
            p //= 2
    M, Kp, Np = npix // p, p * Cin, p * Cout

    xf = x.reshape(M, Kp)                                  # free (contiguous)
    wq = w.astype(jnp.bfloat16)
    if p > 1:
        wq = jnp.kron(jnp.eye(p, dtype=jnp.bfloat16), wq)  # block-diagonal
        bq = jnp.tile(b, p)
    else:
        bq = b
    bq = bq.reshape(1, Np).astype(jnp.float32)

    tile_m = _pick_tile_m(M)
    flops = 2 * M * Kp * Np
    bytes_accessed = (xf.size + wq.size + M * Np) * 2 + bq.size * 4

    out = pl.pallas_call(
        functools.partial(_matmul_prelu_kernel, alpha=float(alpha)),
        out_shape=jax.ShapeDtypeStruct((M, Np), jnp.bfloat16),
        grid=(M // tile_m,),
        in_specs=[
            pl.BlockSpec((tile_m, Kp), lambda i: (i, 0)),
            pl.BlockSpec((Kp, Np), lambda i: (0, 0)),
            pl.BlockSpec((1, Np), lambda i: (0, 0)),
        ],
        out_specs=pl.BlockSpec((tile_m, Np), lambda i: (i, 0)),
        compiler_params=pltpu.CompilerParams(
            dimension_semantics=("parallel",),
            vmem_limit_bytes=_VMEM_LIMIT),
        cost_estimate=pl.CostEstimate(flops=flops, transcendentals=0,
                                      bytes_accessed=bytes_accessed),
    )(xf, wq, bq)
    return out.reshape(B, H, W, Cout)


# ----------------------------------------------------------------------------
# JAX glue: GradientLayer (cv2 Scharr + cartToPolar) and PixelShuffle
# ----------------------------------------------------------------------------
_SCHARR = [[-3.0, 0.0, 3.0], [-10.0, 0.0, 10.0], [-3.0, 0.0, 3.0]]  # Gx; Gy=Gx^T


def gradient_layer(img):
    """img: (B,H,W) f32.  cv2.Sobel(ksize=-1) == Scharr, BORDER_REFLECT_101,
    then cv2.cartToPolar (magnitude, angle in [0, 2*pi))."""
    # TODO(synk): cv2.cartToPolar uses an approximate fastAtan2; exact atan2 here.
    B, H, W = img.shape
    p = jnp.pad(img, ((0, 0), (1, 1), (1, 1)), mode="reflect")   # reflect-101
    gx = jnp.zeros_like(img)
    gy = jnp.zeros_like(img)
    for u in range(3):
        for v in range(3):
            win = p[:, u:u + H, v:v + W]
            gx = gx + _SCHARR[u][v] * win            # correlation, like cv2
            gy = gy + _SCHARR[v][u] * win
    mag = jnp.sqrt(gx * gx + gy * gy)
    ang = jnp.arctan2(gy, gx)
    ang = jnp.where(ang < 0.0, ang + 2.0 * jnp.pi, ang)
    return mag, ang


def pixel_shuffle_nhwc(x, r):
    """NHWC equivalent of torch.nn.PixelShuffle(r) (NCHW channel ordering)."""
    B, H, W, C = x.shape
    Co = C // (r * r)
    x = x.reshape(B, H, W, Co, r, r)
    x = jnp.transpose(x, (0, 1, 4, 2, 5, 3))
    return x.reshape(B, H * r, W * r, Co)


# ----------------------------------------------------------------------------
# Parameters (deterministic synthetic init; shapes from the module __init__)
# ----------------------------------------------------------------------------
_LAYER_DEFS = {            # name: (KH, KW, Cin, Cout)
    "conv0":   (7, 7, 3, 32),
    "conv1":   (3, 3, 32, 32),
    "conv2":   (3, 3, 32, 64),
    "conv3":   (3, 3, 64, 64),
    "conv4":   (3, 3, 64, 128),
    "conv5":   (3, 3, 128, 128),
    "diconv1": (3, 3, 128, 128),
    "diconv2": (3, 3, 128, 128),
    "diconv3": (3, 3, 128, 128),
    "deconv1": (1, 1, 128, 256),   # UpsampleBLock(128,2): 128 -> 128*4//2
    "conv6":   (1, 1, 64, 64),
    "deconv2": (1, 1, 64, 128),    # UpsampleBLock(64,2)
    "conv7":   (1, 1, 32, 32),
    "deconv3": (1, 1, 32, 64),     # UpsampleBLock(32,2)
    "conv8":   (1, 1, 16, 32),
}


def init_params(key):
    params = {}
    keys = jax.random.split(key, len(_LAYER_DEFS))
    for k, name in zip(keys, _LAYER_DEFS):
        kh, kw, cin, cout = _LAYER_DEFS[name]
        wk, bk = jax.random.split(k)
        scale = 1.0 / float(cin * kh * kw) ** 0.5
        w = jax.random.normal(wk, (kh, kw, cin, cout), jnp.float32) * scale
        b = jax.random.normal(bk, (cout,), jnp.float32) * 0.01
        params[name] = (w, b)
    return params


# ----------------------------------------------------------------------------
# Full forward pass
# ----------------------------------------------------------------------------
def channel_attention_block(x_nchw, params):
    """x_nchw: (B, 1, H, W) float32 (grayscale) -> (B, 32, H, W) float32."""
    img = x_nchw[:, 0].astype(jnp.float32)                   # (B, H, W)
    mag, ang = gradient_layer(img)                           # a, v = convG(x)
    x = jnp.stack([img, mag, ang], axis=-1).astype(jnp.bfloat16)   # (B,H,W,3)

    # TODO(synk): PReLU slope is the fixed nn.PReLU init (0.1 / 0.25), not a
    # learned per-module parameter (fine for synthetic weights).
    x = conv2d_prelu(x, *params["conv0"], 0.1, padding=3)
    x = conv2d_prelu(x, *params["conv1"], 0.1, stride=2, padding=1)
    x = conv2d_prelu(x, *params["conv2"], 0.1, padding=1)
    x = conv2d_prelu(x, *params["conv3"], 0.1, stride=2, padding=1)
    x = conv2d_prelu(x, *params["conv4"], 0.1, padding=1)
    x = conv2d_prelu(x, *params["conv5"], 0.1, stride=2, padding=1)
    x = conv2d_prelu(x, *params["diconv1"], 0.1, dilation=2, padding=2)
    x = conv2d_prelu(x, *params["diconv2"], 0.1, dilation=4, padding=4)
    x = conv2d_prelu(x, *params["diconv3"], 0.1, dilation=8, padding=8)

    # UpsampleBLock = 1x1 conv + PixelShuffle(2) + PReLU(0.25).  The scalar
    # PReLU commutes with the shuffle permutation, so it is fused into the
    # conv kernel.
    # TODO(synk): the pixel-shuffle itself is still an XLA transpose; fusing
    # it into the producing kernel's store would save one HBM round trip each.
    x = conv1x1_prelu(x, params["deconv1"][0][0, 0], params["deconv1"][1], 0.25)
    x = pixel_shuffle_nhwc(x, 2)                              # -> 64 ch
    x = conv1x1_prelu(x, params["conv6"][0][0, 0], params["conv6"][1], 0.1)
    x = conv1x1_prelu(x, params["deconv2"][0][0, 0], params["deconv2"][1], 0.25)
    x = pixel_shuffle_nhwc(x, 2)                              # -> 32 ch
    x = conv1x1_prelu(x, params["conv7"][0][0, 0], params["conv7"][1], 0.1)
    x = conv1x1_prelu(x, params["deconv3"][0][0, 0], params["deconv3"][1], 0.25)
    x = pixel_shuffle_nhwc(x, 2)                              # -> 16 ch
    x = conv1x1_prelu(x, params["conv8"][0][0, 0], params["conv8"][1], 0.1)

    return jnp.transpose(x, (0, 3, 1, 2)).astype(jnp.float32)  # back to NCHW


# ----------------------------------------------------------------------------
if __name__ == "__main__":
    B, H, W = 2, 16, 16                       # H, W must be even (3x stride-2)
    x = jax.random.normal(jax.random.PRNGKey(0), (B, 1, H, W), jnp.float32)
    params = init_params(jax.random.PRNGKey(42))

    fwd = jax.jit(lambda inp: channel_attention_block(inp, params))
    out = jax.block_until_ready(fwd(x))

    assert out.shape == (B, 32, H, W), out.shape
    assert bool(jnp.all(jnp.isfinite(out)))
    print("KERNEL_OK")
</pallas_src>

<mosaic_0001>
module attributes {stable_mosaic.version = 11 : i64} {
  func.func @_conv_rows_kernel(%arg0: i32, %arg1: i32, %arg2: memref<1x1x22x22x3xbf16, #tpu.memory_space<vmem>>, %arg3: memref<7x7x3x32xbf16, #tpu.memory_space<vmem>>, %arg4: memref<1x32xf32, #tpu.memory_space<vmem>>, %arg5: memref<1x16x16x32xbf16, #tpu.memory_space<vmem>>) attributes {dimension_semantics = [#tpu.dimension_semantics<parallel>, #tpu.dimension_semantics<parallel>], iteration_bounds = array<i64: 2, 1>, scalar_prefetch = 0 : i64, scratch_operands = 0 : i64, tpu.core_type = #tpu.core_type<tc>, window_params = [{transform_indices = @transform_0, window_bounds = array<i64: 1, 1, 22, 22, 3>}, {pipeline_mode = #tpu.pipeline_mode<synchronous>, transform_indices = @transform_1, window_bounds = array<i64: 7, 7, 3, 32>}, {pipeline_mode = #tpu.pipeline_mode<synchronous>, transform_indices = @transform_2, window_bounds = array<i64: 1, 32>}, {transform_indices = @transform_3, window_bounds = array<i64: 1, 16, 16, 32>}]} {
    %c0 = arith.constant 0 : index
    %c0_0 = arith.constant 0 : index
    %0 = vector.load %arg4[%c0, %c0_0] : memref<1x32xf32, #tpu.memory_space<vmem>>, vector<1x32xf32>
    %c0_i32 = arith.constant 0 : i32
    %c16_i32 = arith.constant 16 : i32
    %1 = arith.addi %c0_i32, %c16_i32 : i32
    %c1_i32 = arith.constant 1 : i32
    scf.for %arg6 = %c0_i32 to %1 step %c1_i32  : i32 {
      %cst = arith.constant 0.000000e+00 : f32
      %2 = vector.broadcast %cst : f32 to vector<16x32xf32>
      %c1_i32_2 = arith.constant 1 : i32
      %3 = arith.muli %c1_i32_2, %arg6 : i32
      %c0_i32_3 = arith.constant 0 : i32
      %4 = arith.addi %3, %c0_i32_3 : i32
      %c0_4 = arith.constant 0 : index
      %c0_5 = arith.constant 0 : index
      %5 = arith.index_cast %4 : i32 to index
      %c0_6 = arith.constant 0 : index
      %c0_7 = arith.constant 0 : index
      %6 = vector.load %arg2[%c0_4, %c0_5, %5, %c0_6, %c0_7] : memref<1x1x22x22x3xbf16, #tpu.memory_space<vmem>>, vector<1x1x1x16x3xbf16>
      %7 = vector.shape_cast %6 : vector<1x1x1x16x3xbf16> to vector<16x3xbf16>
      %c0_8 = arith.constant 0 : index
      %c0_9 = arith.constant 0 : index
      %c0_10 = arith.constant 0 : index
      %c0_11 = arith.constant 0 : index
      %8 = vector.load %arg3[%c0_8, %c0_9, %c0_10, %c0_11] : memref<7x7x3x32xbf16, #tpu.memory_space<vmem>>, vector<1x1x3x32xbf16>
      %9 = vector.shape_cast %8 : vector<1x1x3x32xbf16> to vector<3x32xbf16>
      %cst_12 = arith.constant dense<0.000000e+00> : vector<16x32xf32>
      %10 = tpu.matmul %7, %9, %cst_12 {dimension_numbers = #tpu.dot_dimension_numbers<[1], [0], [0], [1], [0, 0, 1, 1], [], []>} : vector<16x3xbf16>, vector<3x32xbf16>, vector<16x32xf32> -> vector<16x32xf32>
      %11 = arith.addf %2, %10 : vector<16x32xf32>
      %c1_i32_13 = arith.constant 1 : i32
      %12 = arith.muli %c1_i32_13, %arg6 : i32
      %c0_i32_14 = arith.constant 0 : i32
      %13 = arith.addi %12, %c0_i32_14 : i32
      %c0_15 = arith.constant 0 : index
      %c0_16 = arith.constant 0 : index
      %14 = arith.index_cast %13 : i32 to index
      %c1 = arith.constant 1 : index
      %c0_17 = arith.constant 0 : index
      %15 = vector.load %arg2[%c0_15, %c0_16, %14, %c1, %c0_17] : memref<1x1x22x22x3xbf16, #tpu.memory_space<vmem>>, vector<1x1x1x16x3xbf16>
      %16 = vector.shape_cast %15 : vector<1x1x1x16x3xbf16> to vector<16x3xbf16>
      %c0_18 = arith.constant 0 : index
      %c1_19 = arith.constant 1 : index
      %c0_20 = arith.constant 0 : index
      %c0_21 = arith.constant 0 : index
      %17 = vector.load %arg3[%c0_18, %c1_19, %c0_20, %c0_21] : memref<7x7x3x32xbf16, #tpu.memory_space<vmem>>, vector<1x1x3x32xbf16>
      %18 = vector.shape_cast %17 : vector<1x1x3x32xbf16> to vector<3x32xbf16>
      %cst_22 = arith.constant dense<0.000000e+00> : vector<16x32xf32>
      %19 = tpu.matmul %16, %18, %cst_22 {dimension_numbers = #tpu.dot_dimension_numbers<[1], [0], [0], [1], [0, 0, 1, 1], [], []>} : vector<16x3xbf16>, vector<3x32xbf16>, vector<16x32xf32> -> vector<16x32xf32>
      %20 = arith.addf %11, %19 : vector<16x32xf32>
      %c1_i32_23 = arith.constant 1 : i32
      %21 = arith.muli %c1_i32_23, %arg6 : i32
      %c0_i32_24 = arith.constant 0 : i32
      %22 = arith.addi %21, %c0_i32_24 : i32
      %c0_25 = arith.constant 0 : index
      %c0_26 = arith.constant 0 : index
      %23 = arith.index_cast %22 : i32 to index
      %c2 = arith.constant 2 : index
      %c0_27 = arith.constant 0 : index
      %24 = vector.load %arg2[%c0_25, %c0_26, %23, %c2, %c0_27] : memref<1x1x22x22x3xbf16, #tpu.memory_space<vmem>>, vector<1x1x1x16x3xbf16>
      %25 = vector.shape_cast %24 : vector<1x1x1x16x3xbf16> to vector<16x3xbf16>
      %c0_28 = arith.constant 0 : index
      %c2_29 = arith.constant 2 : index
      %c0_30 = arith.constant 0 : index
      %c0_31 = arith.constant 0 : index
      %26 = vector.load %arg3[%c0_28, %c2_29, %c0_30, %c0_31] : memref<7x7x3x32xbf16, #tpu.memory_space<vmem>>, vector<1x1x3x32xbf16>
      %27 = vector.shape_cast %26 : vector<1x1x3x32xbf16> to vector<3x32xbf16>
      %cst_32 = arith.constant dense<0.000000e+00> : vector<16x32xf32>
      %28 = tpu.matmul %25, %27, %cst_32 {dimension_numbers = #tpu.dot_dimension_numbers<[1], [0], [0], [1], [0, 0, 1, 1], [], []>} : vector<16x3xbf16>, vector<3x32xbf16>, vector<16x32xf32> -> vector<16x32xf32>
      %29 = arith.addf %20, %28 : vector<16x32xf32>
      %c1_i32_33 = arith.constant 1 : i32
      %30 = arith.muli %c1_i32_33, %arg6 : i32
      %c0_i32_34 = arith.constant 0 : i32
      %31 = arith.addi %30, %c0_i32_34 : i32
      %c0_35 = arith.constant 0 : index
      %c0_36 = arith.constant 0 : index
      %32 = arith.index_cast %31 : i32 to index
      %c3 = arith.constant 3 : index
      %c0_37 = arith.constant 0 : index
      %33 = vector.load %arg2[%c0_35, %c0_36, %32, %c3, %c0_37] : memref<1x1x22x22x3xbf16, #tpu.memory_space<vmem>>, vector<1x1x1x16x3xbf16>
      %34 = vector.shape_cast %33 : vector<1x1x1x16x3xbf16> to vector<16x3xbf16>
      %c0_38 = arith.constant 0 : index
      %c3_39 = arith.constant 3 : index
      %c0_40 = arith.constant 0 : index
      %c0_41 = arith.constant 0 : index
      %35 = vector.load %arg3[%c0_38, %c3_39, %c0_40, %c0_41] : memref<7x7x3x32xbf16, #tpu.memory_space<vmem>>, vector<1x1x3x32xbf16>
      %36 = vector.shape_cast %35 : vector<1x1x3x32xbf16> to vector<3x32xbf16>
      %cst_42 = arith.constant dense<0.000000e+00> : vector<16x32xf32>
      %37 = tpu.matmul %34, %36, %cst_42 {dimension_numbers = #tpu.dot_dimension_numbers<[1], [0], [0], [1], [0, 0, 1, 1], [], []>} : vector<16x3xbf16>, vector<3x32xbf16>, vector<16x32xf32> -> vector<16x32xf32>
      %38 = arith.addf %29, %37 : vector<16x32xf32>
      %c1_i32_43 = arith.constant 1 : i32
      %39 = arith.muli %c1_i32_43, %arg6 : i32
      %c0_i32_44 = arith.constant 0 : i32
      %40 = arith.addi %39, %c0_i32_44 : i32
      %c0_45 = arith.constant 0 : index
      %c0_46 = arith.constant 0 : index
      %41 = arith.index_cast %40 : i32 to index
      %c4 = arith.constant 4 : index
      %c0_47 = arith.constant 0 : index
      %42 = vector.load %arg2[%c0_45, %c0_46, %41, %c4, %c0_47] : memref<1x1x22x22x3xbf16, #tpu.memory_space<vmem>>, vector<1x1x1x16x3xbf16>
      %43 = vector.shape_cast %42 : vector<1x1x1x16x3xbf16> to vector<16x3xbf16>
      %c0_48 = arith.constant 0 : index
      %c4_49 = arith.constant 4 : index
      %c0_50 = arith.constant 0 : index
      %c0_51 = arith.constant 0 : index
      %44 = vector.load %arg3[%c0_48, %c4_49, %c0_50, %c0_51] : memref<7x7x3x32xbf16, #tpu.memory_space<vmem>>, vector<1x1x3x32xbf16>
      %45 = vector.shape_cast %44 : vector<1x1x3x32xbf16> to vector<3x32xbf16>
      %cst_52 = arith.constant dense<0.000000e+00> : vector<16x32xf32>
      %46 = tpu.matmul %43, %45, %cst_52 {dimension_numbers = #tpu.dot_dimension_numbers<[1], [0], [0], [1], [0, 0, 1, 1], [], []>} : vector<16x3xbf16>, vector<3x32xbf16>, vector<16x32xf32> -> vector<16x32xf32>
      %47 = arith.addf %38, %46 : vector<16x32xf32>
      %c1_i32_53 = arith.constant 1 : i32
      %48 = arith.muli %c1_i32_53, %arg6 : i32
      %c0_i32_54 = arith.constant 0 : i32
      %49 = arith.addi %48, %c0_i32_54 : i32
      %c0_55 = arith.constant 0 : index
      %c0_56 = arith.constant 0 : index
      %50 = arith.index_cast %49 : i32 to index
      %c5 = arith.constant 5 : index
      %c0_57 = arith.constant 0 : index
      %51 = vector.load %arg2[%c0_55, %c0_56, %50, %c5, %c0_57] : memref<1x1x22x22x3xbf16, #tpu.memory_space<vmem>>, vector<1x1x1x16x3xbf16>
      %52 = vector.shape_cast %51 : vector<1x1x1x16x3xbf16> to vector<16x3xbf16>
      %c0_58 = arith.constant 0 : index
      %c5_59 = arith.constant 5 : index
      %c0_60 = arith.constant 0 : index
      %c0_61 = arith.constant 0 : index
      %53 = vector.load %arg3[%c0_58, %c5_59, %c0_60, %c0_61] : memref<7x7x3x32xbf16, #tpu.memory_space<vmem>>, vector<1x1x3x32xbf16>
      %54 = vector.shape_cast %53 : vector<1x1x3x32xbf16> to vector<3x32xbf16>
      %cst_62 = arith.constant dense<0.000000e+00> : vector<16x32xf32>
      %55 = tpu.matmul %52, %54, %cst_62 {dimension_numbers = #tpu.dot_dimension_numbers<[1], [0], [0], [1], [0, 0, 1, 1], [], []>} : vector<16x3xbf16>, vector<3x32xbf16>, vector<16x32xf32> -> vector<16x32xf32>
      %56 = arith.addf %47, %55 : vector<16x32xf32>
      %c1_i32_63 = arith.constant 1 : i32
      %57 = arith.muli %c1_i32_63, %arg6 : i32
      %c0_i32_64 = arith.constant 0 : i32
      %58 = arith.addi %57, %c0_i32_64 : i32
      %c0_65 = arith.constant 0 : index
      %c0_66 = arith.constant 0 : index
      %59 = arith.index_cast %58 : i32 to index
      %c6 = arith.constant 6 : index
      %c0_67 = arith.constant 0 : index
      %60 = vector.load %arg2[%c0_65, %c0_66, %59, %c6, %c0_67] : memref<1x1x22x22x3xbf16, #tpu.memory_space<vmem>>, vector<1x1x1x16x3xbf16>
      %61 = vector.shape_cast %60 : vector<1x1x1x16x3xbf16> to vector<16x3xbf16>
      %c0_68 = arith.constant 0 : index
      %c6_69 = arith.constant 6 : index
      %c0_70 = arith.constant 0 : index
      %c0_71 = arith.constant 0 : index
      %62 = vector.load %arg3[%c0_68, %c6_69, %c0_70, %c0_71] : memref<7x7x3x32xbf16, #tpu.memory_space<vmem>>, vector<1x1x3x32xbf16>
      %63 = vector.shape_cast %62 : vector<1x1x3x32xbf16> to vector<3x32xbf16>
      %cst_72 = arith.constant dense<0.000000e+00> : vector<16x32xf32>
      %64 = tpu.matmul %61, %63, %cst_72 {dimension_numbers = #tpu.dot_dimension_numbers<[1], [0], [0], [1], [0, 0, 1, 1], [], []>} : vector<16x3xbf16>, vector<3x32xbf16>, vector<16x32xf32> -> vector<16x32xf32>
      %65 = arith.addf %56, %64 : vector<16x32xf32>
      %c1_i32_73 = arith.constant 1 : i32
      %66 = arith.muli %c1_i32_73, %arg6 : i32
      %c1_i32_74 = arith.constant 1 : i32
      %67 = arith.addi %66, %c1_i32_74 : i32
      %c0_75 = arith.constant 0 : index
      %c0_76 = arith.constant 0 : index
      %68 = arith.index_cast %67 : i32 to index
      %c0_77 = arith.constant 0 : index
      %c0_78 = arith.constant 0 : index
      %69 = vector.load %arg2[%c0_75, %c0_76, %68, %c0_77, %c0_78] : memref<1x1x22x22x3xbf16, #tpu.memory_space<vmem>>, vector<1x1x1x16x3xbf16>
      %70 = vector.shape_cast %69 : vector<1x1x1x16x3xbf16> to vector<16x3xbf16>
      %c1_79 = arith.constant 1 : index
      %c0_80 = arith.constant 0 : index
      %c0_81 = arith.constant 0 : index
      %c0_82 = arith.constant 0 : index
      %71 = vector.load %arg3[%c1_79, %c0_80, %c0_81, %c0_82] : memref<7x7x3x32xbf16, #tpu.memory_space<vmem>>, vector<1x1x3x32xbf16>
      %72 = vector.shape_cast %71 : vector<1x1x3x32xbf16> to vector<3x32xbf16>
      %cst_83 = arith.constant dense<0.000000e+00> : vector<16x32xf32>
      %73 = tpu.matmul %70, %72, %cst_83 {dimension_numbers = #tpu.dot_dimension_numbers<[1], [0], [0], [1], [0, 0, 1, 1], [], []>} : vector<16x3xbf16>, vector<3x32xbf16>, vector<16x32xf32> -> vector<16x32xf32>
      %74 = arith.addf %65, %73 : vector<16x32xf32>
      %c1_i32_84 = arith.constant 1 : i32
      %75 = arith.muli %c1_i32_84, %arg6 : i32
      %c1_i32_85 = arith.constant 1 : i32
      %76 = arith.addi %75, %c1_i32_85 : i32
      %c0_86 = arith.constant 0 : index
      %c0_87 = arith.constant 0 : index
      %77 = arith.index_cast %76 : i32 to index
      %c1_88 = arith.constant 1 : index
      %c0_89 = arith.constant 0 : index
      %78 = vector.load %arg2[%c0_86, %c0_87, %77, %c1_88, %c0_89] : memref<1x1x22x22x3xbf16, #tpu.memory_space<vmem>>, vector<1x1x1x16x3xbf16>
      %79 = vector.shape_cast %78 : vector<1x1x1x16x3xbf16> to vector<16x3xbf16>
      %c1_90 = arith.constant 1 : index
      %c1_91 = arith.constant 1 : index
      %c0_92 = arith.constant 0 : index
      %c0_93 = arith.constant 0 : index
      %80 = vector.load %arg3[%c1_90, %c1_91, %c0_92, %c0_93] : memref<7x7x3x32xbf16, #tpu.memory_space<vmem>>, vector<1x1x3x32xbf16>
      %81 = vector.shape_cast %80 : vector<1x1x3x32xbf16> to vector<3x32xbf16>
      %cst_94 = arith.constant dense<0.000000e+00> : vector<16x32xf32>
      %82 = tpu.matmul %79, %81, %cst_94 {dimension_numbers = #tpu.dot_dimension_numbers<[1], [0], [0], [1], [0, 0, 1, 1], [], []>} : vector<16x3xbf16>, vector<3x32xbf16>, vector<16x32xf32> -> vector<16x32xf32>
      %83 = arith.addf %74, %82 : vector<16x32xf32>
      %c1_i32_95 = arith.constant 1 : i32
      %84 = arith.muli %c1_i32_95, %arg6 : i32
      %c1_i32_96 = arith.constant 1 : i32
      %85 = arith.addi %84, %c1_i32_96 : i32
      %c0_97 = arith.constant 0 : index
      %c0_98 = arith.constant 0 : index
      %86 = arith.index_cast %85 : i32 to index
      %c2_99 = arith.constant 2 : index
      %c0_100 = arith.constant 0 : index
      %87 = vector.load %arg2[%c0_97, %c0_98, %86, %c2_99, %c0_100] : memref<1x1x22x22x3xbf16, #tpu.memory_space<vmem>>, vector<1x1x1x16x3xbf16>
      %88 = vector.shape_cast %87 : vector<1x1x1x16x3xbf16> to vector<16x3xbf16>
      %c1_101 = arith.constant 1 : index
      %c2_102 = arith.constant 2 : index
      %c0_103 = arith.constant 0 : index
      %c0_104 = arith.constant 0 : index
      %89 = vector.load %arg3[%c1_101, %c2_102, %c0_103, %c0_104] : memref<7x7x3x32xbf16, #tpu.memory_space<vmem>>, vector<1x1x3x32xbf16>
      %90 = vector.shape_cast %89 : vector<1x1x3x32xbf16> to vector<3x32xbf16>
      %cst_105 = arith.constant dense<0.000000e+00> : vector<16x32xf32>
      %91 = tpu.matmul %88, %90, %cst_105 {dimension_numbers = #tpu.dot_dimension_numbers<[1], [0], [0], [1], [0, 0, 1, 1], [], []>} : vector<16x3xbf16>, vector<3x32xbf16>, vector<16x32xf32> -> vector<16x32xf32>
      %92 = arith.addf %83, %91 : vector<16x32xf32>
      %c1_i32_106 = arith.constant 1 : i32
      %93 = arith.muli %c1_i32_106, %arg6 : i32
      %c1_i32_107 = arith.constant 1 : i32
      %94 = arith.addi %93, %c1_i32_107 : i32
      %c0_108 = arith.constant 0 : index
      %c0_109 = arith.constant 0 : index
      %95 = arith.index_cast %94 : i32 to index
      %c3_110 = arith.constant 3 : index
      %c0_111 = arith.constant 0 : index
      %96 = vector.load %arg2[%c0_108, %c0_109, %95, %c3_110, %c0_111] : memref<1x1x22x22x3xbf16, #tpu.memory_space<vmem>>, vector<1x1x1x16x3xbf16>
      %97 = vector.shape_cast %96 : vector<1x1x1x16x3xbf16> to vector<16x3xbf16>
      %c1_112 = arith.constant 1 : index
      %c3_113 = arith.constant 3 : index
      %c0_114 = arith.constant 0 : index
      %c0_115 = arith.constant 0 : index
      %98 = vector.load %arg3[%c1_112, %c3_113, %c0_114, %c0_115] : memref<7x7x3x32xbf16, #tpu.memory_space<vmem>>, vector<1x1x3x32xbf16>
      %99 = vector.shape_cast %98 : vector<1x1x3x32xbf16> to vector<3x32xbf16>
      %cst_116 = arith.constant dense<0.000000e+00> : vector<16x32xf32>
      %100 = tpu.matmul %97, %99, %cst_116 {dimension_numbers = #tpu.dot_dimension_numbers<[1], [0], [0], [1], [0, 0, 1, 1], [], []>} : vector<16x3xbf16>, vector<3x32xbf16>, vector<16x32xf32> -> vector<16x32xf32>
      %101 = arith.addf %92, %100 : vector<16x32xf32>
      %c1_i32_117 = arith.constant 1 : i32
      %102 = arith.muli %c1_i32_117, %arg6 : i32
      %c1_i32_118 = arith.constant 1 : i32
      %103 = arith.addi %102, %c1_i32_118 : i32
      %c0_119 = arith.constant 0 : index
      %c0_120 = arith.constant 0 : index
      %104 = arith.index_cast %103 : i32 to index
      %c4_121 = arith.constant 4 : index
      %c0_122 = arith.constant 0 : index
      %105 = vector.load %arg2[%c0_119, %c0_120, %104, %c4_121, %c0_122] : memref<1x1x22x22x3xbf16, #tpu.memory_space<vmem>>, vector<1x1x1x16x3xbf16>
      %106 = vector.shape_cast %105 : vector<1x1x1x16x3xbf16> to vector<16x3xbf16>
      %c1_123 = arith.constant 1 : index
      %c4_124 = arith.constant 4 : index
      %c0_125 = arith.constant 0 : index
      %c0_126 = arith.constant 0 : index
      %107 = vector.load %arg3[%c1_123, %c4_124, %c0_125, %c0_126] : memref<7x7x3x32xbf16, #tpu.memory_space<vmem>>, vector<1x1x3x32xbf16>
      %108 = vector.shape_cast %107 : vector<1x1x3x32xbf16> to vector<3x32xbf16>
      %cst_127 = arith.constant dense<0.000000e+00> : vector<16x32xf32>
      %109 = tpu.matmul %106, %108, %cst_127 {dimension_numbers = #tpu.dot_dimension_numbers<[1], [0], [0], [1], [0, 0, 1, 1], [], []>} : vector<16x3xbf16>, vector<3x32xbf16>, vector<16x32xf32> -> vector<16x32xf32>
      %110 = arith.addf %101, %109 : vector<16x32xf32>
      %c1_i32_128 = arith.constant 1 : i32
      %111 = arith.muli %c1_i32_128, %arg6 : i32
      %c1_i32_129 = arith.constant 1 : i32
      %112 = arith.addi %111, %c1_i32_129 : i32
      %c0_130 = arith.constant 0 : index
      %c0_131 = arith.constant 0 : index
      %113 = arith.index_cast %112 : i32 to index
      %c5_132 = arith.constant 5 : index
      %c0_133 = arith.constant 0 : index
      %114 = vector.load %arg2[%c0_130, %c0_131, %113, %c5_132, %c0_133] : memref<1x1x22x22x3xbf16, #tpu.memory_space<vmem>>, vector<1x1x1x16x3xbf16>
      %115 = vector.shape_cast %114 : vector<1x1x1x16x3xbf16> to vector<16x3xbf16>
      %c1_134 = arith.constant 1 : index
      %c5_135 = arith.constant 5 : index
      %c0_136 = arith.constant 0 : index
      %c0_137 = arith.constant 0 : index
      %116 = vector.load %arg3[%c1_134, %c5_135, %c0_136, %c0_137] : memref<7x7x3x32xbf16, #tpu.memory_space<vmem>>, vector<1x1x3x32xbf16>
      %117 = vector.shape_cast %116 : vector<1x1x3x32xbf16> to vector<3x32xbf16>
      %cst_138 = arith.constant dense<0.000000e+00> : vector<16x32xf32>
      %118 = tpu.matmul %115, %117, %cst_138 {dimension_numbers = #tpu.dot_dimension_numbers<[1], [0], [0], [1], [0, 0, 1, 1], [], []>} : vector<16x3xbf16>, vector<3x32xbf16>, vector<16x32xf32> -> vector<16x32xf32>
      %119 = arith.addf %110, %118 : vector<16x32xf32>
      %c1_i32_139 = arith.constant 1 : i32
      %120 = arith.muli %c1_i32_139, %arg6 : i32
      %c1_i32_140 = arith.constant 1 : i32
      %121 = arith.addi %120, %c1_i32_140 : i32
      %c0_141 = arith.constant 0 : index
      %c0_142 = arith.constant 0 : index
      %122 = arith.index_cast %121 : i32 to index
      %c6_143 = arith.constant 6 : index
      %c0_144 = arith.constant 0 : index
      %123 = vector.load %arg2[%c0_141, %c0_142, %122, %c6_143, %c0_144] : memref<1x1x22x22x3xbf16, #tpu.memory_space<vmem>>, vector<1x1x1x16x3xbf16>
      %124 = vector.shape_cast %123 : vector<1x1x1x16x3xbf16> to vector<16x3xbf16>
      %c1_145 = arith.constant 1 : index
      %c6_146 = arith.constant 6 : index
      %c0_147 = arith.constant 0 : index
      %c0_148 = arith.constant 0 : index
      %125 = vector.load %arg3[%c1_145, %c6_146, %c0_147, %c0_148] : memref<7x7x3x32xbf16, #tpu.memory_space<vmem>>, vector<1x1x3x32xbf16>
      %126 = vector.shape_cast %125 : vector<1x1x3x32xbf16> to vector<3x32xbf16>
      %cst_149 = arith.constant dense<0.000000e+00> : vector<16x32xf32>
      %127 = tpu.matmul %124, %126, %cst_149 {dimension_numbers = #tpu.dot_dimension_numbers<[1], [0], [0], [1], [0, 0, 1, 1], [], []>} : vector<16x3xbf16>, vector<3x32xbf16>, vector<16x32xf32> -> vector<16x32xf32>
      %128 = arith.addf %119, %127 : vector<16x32xf32>
      %c1_i32_150 = arith.constant 1 : i32
      %129 = arith.muli %c1_i32_150, %arg6 : i32
      %c2_i32 = arith.constant 2 : i32
      %130 = arith.addi %129, %c2_i32 : i32
      %c0_151 = arith.constant 0 : index
      %c0_152 = arith.constant 0 : index
      %131 = arith.index_cast %130 : i32 to index
      %c0_153 = arith.constant 0 : index
      %c0_154 = arith.constant 0 : index
      %132 = vector.load %arg2[%c0_151, %c0_152, %131, %c0_153, %c0_154] : memref<1x1x22x22x3xbf16, #tpu.memory_space<vmem>>, vector<1x1x1x16x3xbf16>
      %133 = vector.shape_cast %132 : vector<1x1x1x16x3xbf16> to vector<16x3xbf16>
      %c2_155 = arith.constant 2 : index
      %c0_156 = arith.constant 0 : index
      %c0_157 = arith.constant 0 : index
      %c0_158 = arith.constant 0 : index
      %134 = vector.load %arg3[%c2_155, %c0_156, %c0_157, %c0_158] : memref<7x7x3x32xbf16, #tpu.memory_space<vmem>>, vector<1x1x3x32xbf16>
      %135 = vector.shape_cast %134 : vector<1x1x3x32xbf16> to vector<3x32xbf16>
      %cst_159 = arith.constant dense<0.000000e+00> : vector<16x32xf32>
      %136 = tpu.matmul %133, %135, %cst_159 {dimension_numbers = #tpu.dot_dimension_numbers<[1], [0], [0], [1], [0, 0, 1, 1], [], []>} : vector<16x3xbf16>, vector<3x32xbf16>, vector<16x32xf32> -> vector<16x32xf32>
      %137 = arith.addf %128, %136 : vector<16x32xf32>
      %c1_i32_160 = arith.constant 1 : i32
      %138 = arith.muli %c1_i32_160, %arg6 : i32
      %c2_i32_161 = arith.constant 2 : i32
      %139 = arith.addi %138, %c2_i32_161 : i32
      %c0_162 = arith.constant 0 : index
      %c0_163 = arith.constant 0 : index
      %140 = arith.index_cast %139 : i32 to index
      %c1_164 = arith.constant 1 : index
      %c0_165 = arith.constant 0 : index
      %141 = vector.load %arg2[%c0_162, %c0_163, %140, %c1_164, %c0_165] : memref<1x1x22x22x3xbf16, #tpu.memory_space<vmem>>, vector<1x1x1x16x3xbf16>
      %142 = vector.shape_cast %141 : vector<1x1x1x16x3xbf16> to vector<16x3xbf16>
      %c2_166 = arith.constant 2 : index
      %c1_167 = arith.constant 1 : index
      %c0_168 = arith.constant 0 : index
      %c0_169 = arith.constant 0 : index
      %143 = vector.load %arg3[%c2_166, %c1_167, %c0_168, %c0_169] : memref<7x7x3x32xbf16, #tpu.memory_space<vmem>>, vector<1x1x3x32xbf16>
      %144 = vector.shape_cast %143 : vector<1x1x3x32xbf16> to vector<3x32xbf16>
      %cst_170 = arith.constant dense<0.000000e+00> : vector<16x32xf32>
      %145 = tpu.matmul %142, %144, %cst_170 {dimension_numbers = #tpu.dot_dimension_numbers<[1], [0], [0], [1], [0, 0, 1, 1], [], []>} : vector<16x3xbf16>, vector<3x32xbf16>, vector<16x32xf32> -> vector<16x32xf32>
      %146 = arith.addf %137, %145 : vector<16x32xf32>
      %c1_i32_171 = arith.constant 1 : i32
      %147 = arith.muli %c1_i32_171, %arg6 : i32
      %c2_i32_172 = arith.constant 2 : i32
      %148 = arith.addi %147, %c2_i32_172 : i32
      %c0_173 = arith.constant 0 : index
      %c0_174 = arith.constant 0 : index
      %149 = arith.index_cast %148 : i32 to index
      %c2_175 = arith.constant 2 : index
      %c0_176 = arith.constant 0 : index
      %150 = vector.load %arg2[%c0_173, %c0_174, %149, %c2_175, %c0_176] : memref<1x1x22x22x3xbf16, #tpu.memory_space<vmem>>, vector<1x1x1x16x3xbf16>
      %151 = vector.shape_cast %150 : vector<1x1x1x16x3xbf16> to vector<16x3xbf16>
      %c2_177 = arith.constant 2 : index
      %c2_178 = arith.constant 2 : index
      %c0_179 = arith.constant 0 : index
      %c0_180 = arith.constant 0 : index
      %152 = vector.load %arg3[%c2_177, %c2_178, %c0_179, %c0_180] : memref<7x7x3x32xbf16, #tpu.memory_space<vmem>>, vector<1x1x3x32xbf16>
      %153 = vector.shape_cast %152 : vector<1x1x3x32xbf16> to vector<3x32xbf16>
      %cst_181 = arith.constant dense<0.000000e+00> : vector<16x32xf32>
      %154 = tpu.matmul %151, %153, %cst_181 {dimension_numbers = #tpu.dot_dimension_numbers<[1], [0], [0], [1], [0, 0, 1, 1], [], []>} : vector<16x3xbf16>, vector<3x32xbf16>, vector<16x32xf32> -> vector<16x32xf32>
      %155 = arith.addf %146, %154 : vector<16x32xf32>
      %c1_i32_182 = arith.constant 1 : i32
      %156 = arith.muli %c1_i32_182, %arg6 : i32
      %c2_i32_183 = arith.constant 2 : i32
      %157 = arith.addi %156, %c2_i32_183 : i32
      %c0_184 = arith.constant 0 : index
      %c0_185 = arith.constant 0 : index
      %158 = arith.index_cast %157 : i32 to index
      %c3_186 = arith.constant 3 : index
      %c0_187 = arith.constant 0 : index
      %159 = vector.load %arg2[%c0_184, %c0_185, %158, %c3_186, %c0_187] : memref<1x1x22x22x3xbf16, #tpu.memory_space<vmem>>, vector<1x1x1x16x3xbf16>
      %160 = vector.shape_cast %159 : vector<1x1x1x16x3xbf16> to vector<16x3xbf16>
      %c2_188 = arith.constant 2 : index
      %c3_189 = arith.constant 3 : index
      %c0_190 = arith.constant 0 : index
      %c0_191 = arith.constant 0 : index
      %161 = vector.load %arg3[%c2_188, %c3_189, %c0_190, %c0_191] : memref<7x7x3x32xbf16, #tpu.memory_space<vmem>>, vector<1x1x3x32xbf16>
      %162 = vector.shape_cast %161 : vector<1x1x3x32xbf16> to vector<3x32xbf16>
      %cst_192 = arith.constant dense<0.000000e+00> : vector<16x32xf32>
      %163 = tpu.matmul %160, %162, %cst_192 {dimension_numbers = #tpu.dot_dimension_numbers<[1], [0], [0], [1], [0, 0, 1, 1], [], []>} : vector<16x3xbf16>, vector<3x32xbf16>, vector<16x32xf32> -> vector<16x32xf32>
      %164 = arith.addf %155, %163 : vector<16x32xf32>
      %c1_i32_193 = arith.constant 1 : i32
      %165 = arith.muli %c1_i32_193, %arg6 : i32
      %c2_i32_194 = arith.constant 2 : i32
      %166 = arith.addi %165, %c2_i32_194 : i32
      %c0_195 = arith.constant 0 : index
      %c0_196 = arith.constant 0 : index
      %167 = arith.index_cast %166 : i32 to index
      %c4_197 = arith.constant 4 : index
      %c0_198 = arith.constant 0 : index
      %168 = vector.load %arg2[%c0_195, %c0_196, %167, %c4_197, %c0_198] : memref<1x1x22x22x3xbf16, #tpu.memory_space<vmem>>, vector<1x1x1x16x3xbf16>
      %169 = vector.shape_cast %168 : vector<1x1x1x16x3xbf16> to vector<16x3xbf16>
      %c2_199 = arith.constant 2 : index
      %c4_200 = arith.constant 4 : index
      %c0_201 = arith.constant 0 : index
      %c0_202 = arith.constant 0 : index
      %170 = vector.load %arg3[%c2_199, %c4_200, %c0_201, %c0_202] : memref<7x7x3x32xbf16, #tpu.memory_space<vmem>>, vector<1x1x3x32xbf16>
      %171 = vector.shape_cast %170 : vector<1x1x3x32xbf16> to vector<3x32xbf16>
      %cst_203 = arith.constant dense<0.000000e+00> : vector<16x32xf32>
      %172 = tpu.matmul %169, %171, %cst_203 {dimension_numbers = #tpu.dot_dimension_numbers<[1], [0], [0], [1], [0, 0, 1, 1], [], []>} : vector<16x3xbf16>, vector<3x32xbf16>, vector<16x32xf32> -> vector<16x32xf32>
      %173 = arith.addf %164, %172 : vector<16x32xf32>
      %c1_i32_204 = arith.constant 1 : i32
      %174 = arith.muli %c1_i32_204, %arg6 : i32
      %c2_i32_205 = arith.constant 2 : i32
      %175 = arith.addi %174, %c2_i32_205 : i32
      %c0_206 = arith.constant 0 : index
      %c0_207 = arith.constant 0 : index
      %176 = arith.index_cast %175 : i32 to index
      %c5_208 = arith.constant 5 : index
      %c0_209 = arith.constant 0 : index
      %177 = vector.load %arg2[%c0_206, %c0_207, %176, %c5_208, %c0_209] : memref<1x1x22x22x3xbf16, #tpu.memory_space<vmem>>, vector<1x1x1x16x3xbf16>
      %178 = vector.shape_cast %177 : vector<1x1x1x16x3xbf16> to vector<16x3xbf16>
      %c2_210 = arith.constant 2 : index
      %c5_211 = arith.constant 5 : index
      %c0_212 = arith.constant 0 : index
      %c0_213 = arith.constant 0 : index
      %179 = vector.load %arg3[%c2_210, %c5_211, %c0_212, %c0_213] : memref<7x7x3x32xbf16, #tpu.memory_space<vmem>>, vector<1x1x3x32xbf16>
      %180 = vector.shape_cast %179 : vector<1x1x3x32xbf16> to vector<3x32xbf16>
      %cst_214 = arith.constant dense<0.000000e+00> : vector<16x32xf32>
      %181 = tpu.matmul %178, %180, %cst_214 {dimension_numbers = #tpu.dot_dimension_numbers<[1], [0], [0], [1], [0, 0, 1, 1], [], []>} : vector<16x3xbf16>, vector<3x32xbf16>, vector<16x32xf32> -> vector<16x32xf32>
      %182 = arith.addf %173, %181 : vector<16x32xf32>
      %c1_i32_215 = arith.constant 1 : i32
      %183 = arith.muli %c1_i32_215, %arg6 : i32
      %c2_i32_216 = arith.constant 2 : i32
      %184 = arith.addi %183, %c2_i32_216 : i32
      %c0_217 = arith.constant 0 : index
      %c0_218 = arith.constant 0 : index
      %185 = arith.index_cast %184 : i32 to index
      %c6_219 = arith.constant 6 : index
      %c0_220 = arith.constant 0 : index
      %186 = vector.load %arg2[%c0_217, %c0_218, %185, %c6_219, %c0_220] : memref<1x1x22x22x3xbf16, #tpu.memory_space<vmem>>, vector<1x1x1x16x3xbf16>
      %187 = vector.shape_cast %186 : vector<1x1x1x16x3xbf16> to vector<16x3xbf16>
      %c2_221 = arith.constant 2 : index
      %c6_222 = arith.constant 6 : index
      %c0_223 = arith.constant 0 : index
      %c0_224 = arith.constant 0 : index
      %188 = vector.load %arg3[%c2_221, %c6_222, %c0_223, %c0_224] : memref<7x7x3x32xbf16, #tpu.memory_space<vmem>>, vector<1x1x3x32xbf16>
      %189 = vector.shape_cast %188 : vector<1x1x3x32xbf16> to vector<3x32xbf16>
      %cst_225 = arith.constant dense<0.000000e+00> : vector<16x32xf32>
      %190 = tpu.matmul %187, %189, %cst_225 {dimension_numbers = #tpu.dot_dimension_numbers<[1], [0], [0], [1], [0, 0, 1, 1], [], []>} : vector<16x3xbf16>, vector<3x32xbf16>, vector<16x32xf32> -> vector<16x32xf32>
      %191 = arith.addf %182, %190 : vector<16x32xf32>
      %c1_i32_226 = arith.constant 1 : i32
      %192 = arith.muli %c1_i32_226, %arg6 : i32
      %c3_i32 = arith.constant 3 : i32
      %193 = arith.addi %192, %c3_i32 : i32
      %c0_227 = arith.constant 0 : index
      %c0_228 = arith.constant 0 : index
      %194 = arith.index_cast %193 : i32 to index
      %c0_229 = arith.constant 0 : index
      %c0_230 = arith.constant 0 : index
      %195 = vector.load %arg2[%c0_227, %c0_228, %194, %c0_229, %c0_230] : memref<1x1x22x22x3xbf16, #tpu.memory_space<vmem>>, vector<1x1x1x16x3xbf16>
      %196 = vector.shape_cast %195 : vector<1x1x1x16x3xbf16> to vector<16x3xbf16>
      %c3_231 = arith.constant 3 : index
      %c0_232 = arith.constant 0 : index
      %c0_233 = arith.constant 0 : index
      %c0_234 = arith.constant 0 : index
      %197 = vector.load %arg3[%c3_231, %c0_232, %c0_233, %c0_234] : memref<7x7x3x32xbf16, #tpu.memory_space<vmem>>, vector<1x1x3x32xbf16>
      %198 = vector.shape_cast %197 : vector<1x1x3x32xbf16> to vector<3x32xbf16>
      %cst_235 = arith.constant dense<0.000000e+00> : vector<16x32xf32>
      %199 = tpu.matmul %196, %198, %cst_235 {dimension_numbers = #tpu.dot_dimension_numbers<[1], [0], [0], [1], [0, 0, 1, 1], [], []>} : vector<16x3xbf16>, vector<3x32xbf16>, vector<16x32xf32> -> vector<16x32xf32>
      %200 = arith.addf %191, %199 : vector<16x32xf32>
      %c1_i32_236 = arith.constant 1 : i32
      %201 = arith.muli %c1_i32_236, %arg6 : i32
      %c3_i32_237 = arith.constant 3 : i32
      %202 = arith.addi %201, %c3_i32_237 : i32
      %c0_238 = arith.constant 0 : index
      %c0_239 = arith.constant 0 : index
      %203 = arith.index_cast %202 : i32 to index
      %c1_240 = arith.constant 1 : index
      %c0_241 = arith.constant 0 : index
      %204 = vector.load %arg2[%c0_238, %c0_239, %203, %c1_240, %c0_241] : memref<1x1x22x22x3xbf16, #tpu.memory_space<vmem>>, vector<1x1x1x16x3xbf16>
      %205 = vector.shape_cast %204 : vector<1x1x1x16x3xbf16> to vector<16x3xbf16>
      %c3_242 = arith.constant 3 : index
      %c1_243 = arith.constant 1 : index
      %c0_244 = arith.constant 0 : index
      %c0_245 = arith.constant 0 : index
      %206 = vector.load %arg3[%c3_242, %c1_243, %c0_244, %c0_245] : memref<7x7x3x32xbf16, #tpu.memory_space<vmem>>, vector<1x1x3x32xbf16>
      %207 = vector.shape_cast %206 : vector<1x1x3x32xbf16> to vector<3x32xbf16>
      %cst_246 = arith.constant dense<0.000000e+00> : vector<16x32xf32>
      %208 = tpu.matmul %205, %207, %cst_246 {dimension_numbers = #tpu.dot_dimension_numbers<[1], [0], [0], [1], [0, 0, 1, 1], [], []>} : vector<16x3xbf16>, vector<3x32xbf16>, vector<16x32xf32> -> vector<16x32xf32>
      %209 = arith.addf %200, %208 : vector<16x32xf32>
      %c1_i32_247 = arith.constant 1 : i32
      %210 = arith.muli %c1_i32_247, %arg6 : i32
      %c3_i32_248 = arith.constant 3 : i32
      %211 = arith.addi %210, %c3_i32_248 : i32
      %c0_249 = arith.constant 0 : index
      %c0_250 = arith.constant 0 : index
      %212 = arith.index_cast %211 : i32 to index
      %c2_251 = arith.constant 2 : index
      %c0_252 = arith.constant 0 : index
      %213 = vector.load %arg2[%c0_249, %c0_250, %212, %c2_251, %c0_252] : memref<1x1x22x22x3xbf16, #tpu.memory_space<vmem>>, vector<1x1x1x16x3xbf16>
      %214 = vector.shape_cast %213 : vector<1x1x1x16x3xbf16> to vector<16x3xbf16>
      %c3_253 = arith.constant 3 : index
      %c2_254 = arith.constant 2 : index
      %c0_255 = arith.constant 0 : index
      %c0_256 = arith.constant 0 : index
      %215 = vector.load %arg3[%c3_253, %c2_254, %c0_255, %c0_256] : memref<7x7x3x32xbf16, #tpu.memory_space<vmem>>, vector<1x1x3x32xbf16>
      %216 = vector.shape_cast %215 : vector<1x1x3x32xbf16> to vector<3x32xbf16>
      %cst_257 = arith.constant dense<0.000000e+00> : vector<16x32xf32>
      %217 = tpu.matmul %214, %216, %cst_257 {dimension_numbers = #tpu.dot_dimension_numbers<[1], [0], [0], [1], [0, 0, 1, 1], [], []>} : vector<16x3xbf16>, vector<3x32xbf16>, vector<16x32xf32> -> vector<16x32xf32>
      %218 = arith.addf %209, %217 : vector<16x32xf32>
      %c1_i32_258 = arith.constant 1 : i32
      %219 = arith.muli %c1_i32_258, %arg6 : i32
      %c3_i32_259 = arith.constant 3 : i32
      %220 = arith.addi %219, %c3_i32_259 : i32
      %c0_260 = arith.constant 0 : index
      %c0_261 = arith.constant 0 : index
      %221 = arith.index_cast %220 : i32 to index
      %c3_262 = arith.constant 3 : index
      %c0_263 = arith.constant 0 : index
      %222 = vector.load %arg2[%c0_260, %c0_261, %221, %c3_262, %c0_263] : memref<1x1x22x22x3xbf16, #tpu.memory_space<vmem>>, vector<1x1x1x16x3xbf16>
      %223 = vector.shape_cast %222 : vector<1x1x1x16x3xbf16> to vector<16x3xbf16>
      %c3_264 = arith.constant 3 : index
      %c3_265 = arith.constant 3 : index
      %c0_266 = arith.constant 0 : index
      %c0_267 = arith.constant 0 : index
      %224 = vector.load %arg3[%c3_264, %c3_265, %c0_266, %c0_267] : memref<7x7x3x32xbf16, #tpu.memory_space<vmem>>, vector<1x1x3x32xbf16>
      %225 = vector.shape_cast %224 : vector<1x1x3x32xbf16> to vector<3x32xbf16>
      %cst_268 = arith.constant dense<0.000000e+00> : vector<16x32xf32>
      %226 = tpu.matmul %223, %225, %cst_268 {dimension_numbers = #tpu.dot_dimension_numbers<[1], [0], [0], [1], [0, 0, 1, 1], [], []>} : vector<16x3xbf16>, vector<3x32xbf16>, vector<16x32xf32> -> vector<16x32xf32>
      %227 = arith.addf %218, %226 : vector<16x32xf32>
      %c1_i32_269 = arith.constant 1 : i32
      %228 = arith.muli %c1_i32_269, %arg6 : i32
      %c3_i32_270 = arith.constant 3 : i32
      %229 = arith.addi %228, %c3_i32_270 : i32
      %c0_271 = arith.constant 0 : index
      %c0_272 = arith.constant 0 : index
      %230 = arith.index_cast %229 : i32 to index
      %c4_273 = arith.constant 4 : index
      %c0_274 = arith.constant 0 : index
      %231 = vector.load %arg2[%c0_271, %c0_272, %230, %c4_273, %c0_274] : memref<1x1x22x22x3xbf16, #tpu.memory_space<vmem>>, vector<1x1x1x16x3xbf16>
      %232 = vector.shape_cast %231 : vector<1x1x1x16x3xbf16> to vector<16x3xbf16>
      %c3_275 = arith.constant 3 : index
      %c4_276 = arith.constant 4 : index
      %c0_277 = arith.constant 0 : index
      %c0_278 = arith.constant 0 : index
      %233 = vector.load %arg3[%c3_275, %c4_276, %c0_277, %c0_278] : memref<7x7x3x32xbf16, #tpu.memory_space<vmem>>, vector<1x1x3x32xbf16>
      %234 = vector.shape_cast %233 : vector<1x1x3x32xbf16> to vector<3x32xbf16>
      %cst_279 = arith.constant dense<0.000000e+00> : vector<16x32xf32>
      %235 = tpu.matmul %232, %234, %cst_279 {dimension_numbers = #tpu.dot_dimension_numbers<[1], [0], [0], [1], [0, 0, 1, 1], [], []>} : vector<16x3xbf16>, vector<3x32xbf16>, vector<16x32xf32> -> vector<16x32xf32>
      %236 = arith.addf %227, %235 : vector<16x32xf32>
      %c1_i32_280 = arith.constant 1 : i32
      %237 = arith.muli %c1_i32_280, %arg6 : i32
      %c3_i32_281 = arith.constant 3 : i32
      %238 = arith.addi %237, %c3_i32_281 : i32
      %c0_282 = arith.constant 0 : index
      %c0_283 = arith.constant 0 : index
      %239 = arith.index_cast %238 : i32 to index
      %c5_284 = arith.constant 5 : index
      %c0_285 = arith.constant 0 : index
      %240 = vector.load %arg2[%c0_282, %c0_283, %239, %c5_284, %c0_285] : memref<1x1x22x22x3xbf16, #tpu.memory_space<vmem>>, vector<1x1x1x16x3xbf16>
      %241 = vector.shape_cast %240 : vector<1x1x1x16x3xbf16> to vector<16x3xbf16>
      %c3_286 = arith.constant 3 : index
      %c5_287 = arith.constant 5 : index
      %c0_288 = arith.constant 0 : index
      %c0_289 = arith.constant 0 : index
      %242 = vector.load %arg3[%c3_286, %c5_287, %c0_288, %c0_289] : memref<7x7x3x32xbf16, #tpu.memory_space<vmem>>, vector<1x1x3x32xbf16>
      %243 = vector.shape_cast %242 : vector<1x1x3x32xbf16> to vector<3x32xbf16>
      %cst_290 = arith.constant dense<0.000000e+00> : vector<16x32xf32>
      %244 = tpu.matmul %241, %243, %cst_290 {dimension_numbers = #tpu.dot_dimension_numbers<[1], [0], [0], [1], [0, 0, 1, 1], [], []>} : vector<16x3xbf16>, vector<3x32xbf16>, vector<16x32xf32> -> vector<16x32xf32>
      %245 = arith.addf %236, %244 : vector<16x32xf32>
      %c1_i32_291 = arith.constant 1 : i32
      %246 = arith.muli %c1_i32_291, %arg6 : i32
      %c3_i32_292 = arith.constant 3 : i32
      %247 = arith.addi %246, %c3_i32_292 : i32
      %c0_293 = arith.constant 0 : index
      %c0_294 = arith.constant 0 : index
      %248 = arith.index_cast %247 : i32 to index
      %c6_295 = arith.constant 6 : index
      %c0_296 = arith.constant 0 : index
      %249 = vector.load %arg2[%c0_293, %c0_294, %248, %c6_295, %c0_296] : memref<1x1x22x22x3xbf16, #tpu.memory_space<vmem>>, vector<1x1x1x16x3xbf16>
      %250 = vector.shape_cast %249 : vector<1x1x1x16x3xbf16> to vector<16x3xbf16>
      %c3_297 = arith.constant 3 : index
      %c6_298 = arith.constant 6 : index
      %c0_299 = arith.constant 0 : index
      %c0_300 = arith.constant 0 : index
      %251 = vector.load %arg3[%c3_297, %c6_298, %c0_299, %c0_300] : memref<7x7x3x32xbf16, #tpu.memory_space<vmem>>, vector<1x1x3x32xbf16>
      %252 = vector.shape_cast %251 : vector<1x1x3x32xbf16> to vector<3x32xbf16>
      %cst_301 = arith.constant dense<0.000000e+00> : vector<16x32xf32>
      %253 = tpu.matmul %250, %252, %cst_301 {dimension_numbers = #tpu.dot_dimension_numbers<[1], [0], [0], [1], [0, 0, 1, 1], [], []>} : vector<16x3xbf16>, vector<3x32xbf16>, vector<16x32xf32> -> vector<16x32xf32>
      %254 = arith.addf %245, %253 : vector<16x32xf32>
      %c1_i32_302 = arith.constant 1 : i32
      %255 = arith.muli %c1_i32_302, %arg6 : i32
      %c4_i32 = arith.constant 4 : i32
      %256 = arith.addi %255, %c4_i32 : i32
      %c0_303 = arith.constant 0 : index
      %c0_304 = arith.constant 0 : index
      %257 = arith.index_cast %256 : i32 to index
      %c0_305 = arith.constant 0 : index
      %c0_306 = arith.constant 0 : index
      %258 = vector.load %arg2[%c0_303, %c0_304, %257, %c0_305, %c0_306] : memref<1x1x22x22x3xbf16, #tpu.memory_space<vmem>>, vector<1x1x1x16x3xbf16>
      %259 = vector.shape_cast %258 : vector<1x1x1x16x3xbf16> to vector<16x3xbf16>
      %c4_307 = arith.constant 4 : index
      %c0_308 = arith.constant 0 : index
      %c0_309 = arith.constant 0 : index
      %c0_310 = arith.constant 0 : index
      %260 = vector.load %arg3[%c4_307, %c0_308, %c0_309, %c0_310] : memref<7x7x3x32xbf16, #tpu.memory_space<vmem>>, vector<1x1x3x32xbf16>
      %261 = vector.shape_cast %260 : vector<1x1x3x32xbf16> to vector<3x32xbf16>
      %cst_311 = arith.constant dense<0.000000e+00> : vector<16x32xf32>
      %262 = tpu.matmul %259, %261, %cst_311 {dimension_numbers = #tpu.dot_dimension_numbers<[1], [0], [0], [1], [0, 0, 1, 1], [], []>} : vector<16x3xbf16>, vector<3x32xbf16>, vector<16x32xf32> -> vector<16x32xf32>
      %263 = arith.addf %254, %262 : vector<16x32xf32>
      %c1_i32_312 = arith.constant 1 : i32
      %264 = arith.muli %c1_i32_312, %arg6 : i32
      %c4_i32_313 = arith.constant 4 : i32
      %265 = arith.addi %264, %c4_i32_313 : i32
      %c0_314 = arith.constant 0 : index
      %c0_315 = arith.constant 0 : index
      %266 = arith.index_cast %265 : i32 to index
      %c1_316 = arith.constant 1 : index
      %c0_317 = arith.constant 0 : index
      %267 = vector.load %arg2[%c0_314, %c0_315, %266, %c1_316, %c0_317] : memref<1x1x22x22x3xbf16, #tpu.memory_space<vmem>>, vector<1x1x1x16x3xbf16>
      %268 = vector.shape_cast %267 : vector<1x1x1x16x3xbf16> to vector<16x3xbf16>
      %c4_318 = arith.constant 4 : index
      %c1_319 = arith.constant 1 : index
      %c0_320 = arith.constant 0 : index
      %c0_321 = arith.constant 0 : index
      %269 = vector.load %arg3[%c4_318, %c1_319, %c0_320, %c0_321] : memref<7x7x3x32xbf16, #tpu.memory_space<vmem>>, vector<1x1x3x32xbf16>
      %270 = vector.shape_cast %269 : vector<1x1x3x32xbf16> to vector<3x32xbf16>
      %cst_322 = arith.constant dense<0.000000e+00> : vector<16x32xf32>
      %271 = tpu.matmul %268, %270, %cst_322 {dimension_numbers = #tpu.dot_dimension_numbers<[1], [0], [0], [1], [0, 0, 1, 1], [], []>} : vector<16x3xbf16>, vector<3x32xbf16>, vector<16x32xf32> -> vector<16x32xf32>
      %272 = arith.addf %263, %271 : vector<16x32xf32>
      %c1_i32_323 = arith.constant 1 : i32
      %273 = arith.muli %c1_i32_323, %arg6 : i32
      %c4_i32_324 = arith.constant 4 : i32
      %274 = arith.addi %273, %c4_i32_324 : i32
      %c0_325 = arith.constant 0 : index
      %c0_326 = arith.constant 0 : index
      %275 = arith.index_cast %274 : i32 to index
      %c2_327 = arith.constant 2 : index
      %c0_328 = arith.constant 0 : index
      %276 = vector.load %arg2[%c0_325, %c0_326, %275, %c2_327, %c0_328] : memref<1x1x22x22x3xbf16, #tpu.memory_space<vmem>>, vector<1x1x1x16x3xbf16>
      %277 = vector.shape_cast %276 : vector<1x1x1x16x3xbf16> to vector<16x3xbf16>
      %c4_329 = arith.constant 4 : index
      %c2_330 = arith.constant 2 : index
      %c0_331 = arith.constant 0 : index
      %c0_332 = arith.constant 0 : index
      %278 = vector.load %arg3[%c4_329, %c2_330, %c0_331, %c0_332] : memref<7x7x3x32xbf16, #tpu.memory_space<vmem>>, vector<1x1x3x32xbf16>
      %279 = vector.shape_cast %278 : vector<1x1x3x32xbf16> to vector<3x32xbf16>
      %cst_333 = arith.constant dense<0.000000e+00> : vector<16x32xf32>
      %280 = tpu.matmul %277, %279, %cst_333 {dimension_numbers = #tpu.dot_dimension_numbers<[1], [0], [0], [1], [0, 0, 1, 1], [], []>} : vector<16x3xbf16>, vector<3x32xbf16>, vector<16x32xf32> -> vector<16x32xf32>
      %281 = arith.addf %272, %280 : vector<16x32xf32>
      %c1_i32_334 = arith.constant 1 : i32
      %282 = arith.muli %c1_i32_334, %arg6 : i32
      %c4_i32_335 = arith.constant 4 : i32
      %283 = arith.addi %282, %c4_i32_335 : i32
      %c0_336 = arith.constant 0 : index
      %c0_337 = arith.constant 0 : index
      %284 = arith.index_cast %283 : i32 to index
      %c3_338 = arith.constant 3 : index
      %c0_339 = arith.constant 0 : index
      %285 = vector.load %arg2[%c0_336, %c0_337, %284, %c3_338, %c0_339] : memref<1x1x22x22x3xbf16, #tpu.memory_space<vmem>>, vector<1x1x1x16x3xbf16>
      %286 = vector.shape_cast %285 : vector<1x1x1x16x3xbf16> to vector<16x3xbf16>
      %c4_340 = arith.constant 4 : index
      %c3_341 = arith.constant 3 : index
      %c0_342 = arith.constant 0 : index
      %c0_343 = arith.constant 0 : index
      %287 = vector.load %arg3[%c4_340, %c3_341, %c0_342, %c0_343] : memref<7x7x3x32xbf16, #tpu.memory_space<vmem>>, vector<1x1x3x32xbf16>
      %288 = vector.shape_cast %287 : vector<1x1x3x32xbf16> to vector<3x32xbf16>
      %cst_344 = arith.constant dense<0.000000e+00> : vector<16x32xf32>
      %289 = tpu.matmul %286, %288, %cst_344 {dimension_numbers = #tpu.dot_dimension_numbers<[1], [0], [0], [1], [0, 0, 1, 1], [], []>} : vector<16x3xbf16>, vector<3x32xbf16>, vector<16x32xf32> -> vector<16x32xf32>
      %290 = arith.addf %281, %289 : vector<16x32xf32>
      %c1_i32_345 = arith.constant 1 : i32
      %291 = arith.muli %c1_i32_345, %arg6 : i32
      %c4_i32_346 = arith.constant 4 : i32
      %292 = arith.addi %291, %c4_i32_346 : i32
      %c0_347 = arith.constant 0 : index
      %c0_348 = arith.constant 0 : index
      %293 = arith.index_cast %292 : i32 to index
      %c4_349 = arith.constant 4 : index
      %c0_350 = arith.constant 0 : index
      %294 = vector.load %arg2[%c0_347, %c0_348, %293, %c4_349, %c0_350] : memref<1x1x22x22x3xbf16, #tpu.memory_space<vmem>>, vector<1x1x1x16x3xbf16>
      %295 = vector.shape_cast %294 : vector<1x1x1x16x3xbf16> to vector<16x3xbf16>
      %c4_351 = arith.constant 4 : index
      %c4_352 = arith.constant 4 : index
      %c0_353 = arith.constant 0 : index
      %c0_354 = arith.constant 0 : index
      %296 = vector.load %arg3[%c4_351, %c4_352, %c0_353, %c0_354] : memref<7x7x3x32xbf16, #tpu.memory_space<vmem>>, vector<1x1x3x32xbf16>
      %297 = vector.shape_cast %296 : vector<1x1x3x32xbf16> to vector<3x32xbf16>
      %cst_355 = arith.constant dense<0.000000e+00> : vector<16x32xf32>
      %298 = tpu.matmul %295, %297, %cst_355 {dimension_numbers = #tpu.dot_dimension_numbers<[1], [0], [0], [1], [0, 0, 1, 1], [], []>} : vector<16x3xbf16>, vector<3x32xbf16>, vector<16x32xf32> -> vector<16x32xf32>
      %299 = arith.addf %290, %298 : vector<16x32xf32>
      %c1_i32_356 = arith.constant 1 : i32
      %300 = arith.muli %c1_i32_356, %arg6 : i32
      %c4_i32_357 = arith.constant 4 : i32
      %301 = arith.addi %300, %c4_i32_357 : i32
      %c0_358 = arith.constant 0 : index
      %c0_359 = arith.constant 0 : index
      %302 = arith.index_cast %301 : i32 to index
      %c5_360 = arith.constant 5 : index
      %c0_361 = arith.constant 0 : index
      %303 = vector.load %arg2[%c0_358, %c0_359, %302, %c5_360, %c0_361] : memref<1x1x22x22x3xbf16, #tpu.memory_space<vmem>>, vector<1x1x1x16x3xbf16>
      %304 = vector.shape_cast %303 : vector<1x1x1x16x3xbf16> to vector<16x3xbf16>
      %c4_362 = arith.constant 4 : index
      %c5_363 = arith.constant 5 : index
      %c0_364 = arith.constant 0 : index
      %c0_365 = arith.constant 0 : index
      %305 = vector.load %arg3[%c4_362, %c5_363, %c0_364, %c0_365] : memref<7x7x3x32xbf16, #tpu.memory_space<vmem>>, vector<1x1x3x32xbf16>
      %306 = vector.shape_cast %305 : vector<1x1x3x32xbf16> to vector<3x32xbf16>
      %cst_366 = arith.constant dense<0.000000e+00> : vector<16x32xf32>
      %307 = tpu.matmul %304, %306, %cst_366 {dimension_numbers = #tpu.dot_dimension_numbers<[1], [0], [0], [1], [0, 0, 1, 1], [], []>} : vector<16x3xbf16>, vector<3x32xbf16>, vector<16x32xf32> -> vector<16x32xf32>
      %308 = arith.addf %299, %307 : vector<16x32xf32>
      %c1_i32_367 = arith.constant 1 : i32
      %309 = arith.muli %c1_i32_367, %arg6 : i32
      %c4_i32_368 = arith.constant 4 : i32
      %310 = arith.addi %309, %c4_i32_368 : i32
      %c0_369 = arith.constant 0 : index
      %c0_370 = arith.constant 0 : index
      %311 = arith.index_cast %310 : i32 to index
      %c6_371 = arith.constant 6 : index
      %c0_372 = arith.constant 0 : index
      %312 = vector.load %arg2[%c0_369, %c0_370, %311, %c6_371, %c0_372] : memref<1x1x22x22x3xbf16, #tpu.memory_space<vmem>>, vector<1x1x1x16x3xbf16>
      %313 = vector.shape_cast %312 : vector<1x1x1x16x3xbf16> to vector<16x3xbf16>
      %c4_373 = arith.constant 4 : index
      %c6_374 = arith.constant 6 : index
      %c0_375 = arith.constant 0 : index
      %c0_376 = arith.constant 0 : index
      %314 = vector.load %arg3[%c4_373, %c6_374, %c0_375, %c0_376] : memref<7x7x3x32xbf16, #tpu.memory_space<vmem>>, vector<1x1x3x32xbf16>
      %315 = vector.shape_cast %314 : vector<1x1x3x32xbf16> to vector<3x32xbf16>
      %cst_377 = arith.constant dense<0.000000e+00> : vector<16x32xf32>
      %316 = tpu.matmul %313, %315, %cst_377 {dimension_numbers = #tpu.dot_dimension_numbers<[1], [0], [0], [1], [0, 0, 1, 1], [], []>} : vector<16x3xbf16>, vector<3x32xbf16>, vector<16x32xf32> -> vector<16x32xf32>
      %317 = arith.addf %308, %316 : vector<16x32xf32>
      %c1_i32_378 = arith.constant 1 : i32
      %318 = arith.muli %c1_i32_378, %arg6 : i32
      %c5_i32 = arith.constant 5 : i32
      %319 = arith.addi %318, %c5_i32 : i32
      %c0_379 = arith.constant 0 : index
      %c0_380 = arith.constant 0 : index
      %320 = arith.index_cast %319 : i32 to index
      %c0_381 = arith.constant 0 : index
      %c0_382 = arith.constant 0 : index
      %321 = vector.load %arg2[%c0_379, %c0_380, %320, %c0_381, %c0_382] : memref<1x1x22x22x3xbf16, #tpu.memory_space<vmem>>, vector<1x1x1x16x3xbf16>
      %322 = vector.shape_cast %321 : vector<1x1x1x16x3xbf16> to vector<16x3xbf16>
      %c5_383 = arith.constant 5 : index
      %c0_384 = arith.constant 0 : index
      %c0_385 = arith.constant 0 : index
      %c0_386 = arith.constant 0 : index
      %323 = vector.load %arg3[%c5_383, %c0_384, %c0_385, %c0_386] : memref<7x7x3x32xbf16, #tpu.memory_space<vmem>>, vector<1x1x3x32xbf16>
      %324 = vector.shape_cast %323 : vector<1x1x3x32xbf16> to vector<3x32xbf16>
      %cst_387 = arith.constant dense<0.000000e+00> : vector<16x32xf32>
      %325 = tpu.matmul %322, %324, %cst_387 {dimension_numbers = #tpu.dot_dimension_numbers<[1], [0], [0], [1], [0, 0, 1, 1], [], []>} : vector<16x3xbf16>, vector<3x32xbf16>, vector<16x32xf32> -> vector<16x32xf32>
      %326 = arith.addf %317, %325 : vector<16x32xf32>
      %c1_i32_388 = arith.constant 1 : i32
      %327 = arith.muli %c1_i32_388, %arg6 : i32
      %c5_i32_389 = arith.constant 5 : i32
      %328 = arith.addi %327, %c5_i32_389 : i32
      %c0_390 = arith.constant 0 : index
      %c0_391 = arith.constant 0 : index
      %329 = arith.index_cast %328 : i32 to index
      %c1_392 = arith.constant 1 : index
      %c0_393 = arith.constant 0 : index
      %330 = vector.load %arg2[%c0_390, %c0_391, %329, %c1_392, %c0_393] : memref<1x1x22x22x3xbf16, #tpu.memory_space<vmem>>, vector<1x1x1x16x3xbf16>
      %331 = vector.shape_cast %330 : vector<1x1x1x16x3xbf16> to vector<16x3xbf16>
      %c5_394 = arith.constant 5 : index
      %c1_395 = arith.constant 1 : index
      %c0_396 = arith.constant 0 : index
      %c0_397 = arith.constant 0 : index
      %332 = vector.load %arg3[%c5_394, %c1_395, %c0_396, %c0_397] : memref<7x7x3x32xbf16, #tpu.memory_space<vmem>>, vector<1x1x3x32xbf16>
      %333 = vector.shape_cast %332 : vector<1x1x3x32xbf16> to vector<3x32xbf16>
      %cst_398 = arith.constant dense<0.000000e+00> : vector<16x32xf32>
      %334 = tpu.matmul %331, %333, %cst_398 {dimension_numbers = #tpu.dot_dimension_numbers<[1], [0], [0], [1], [0, 0, 1, 1], [], []>} : vector<16x3xbf16>, vector<3x32xbf16>, vector<16x32xf32> -> vector<16x32xf32>
      %335 = arith.addf %326, %334 : vector<16x32xf32>
      %c1_i32_399 = arith.constant 1 : i32
      %336 = arith.muli %c1_i32_399, %arg6 : i32
      %c5_i32_400 = arith.constant 5 : i32
      %337 = arith.addi %336, %c5_i32_400 : i32
      %c0_401 = arith.constant 0 : index
      %c0_402 = arith.constant 0 : index
      %338 = arith.index_cast %337 : i32 to index
      %c2_403 = arith.constant 2 : index
      %c0_404 = arith.constant 0 : index
      %339 = vector.load %arg2[%c0_401, %c0_402, %338, %c2_403, %c0_404] : memref<1x1x22x22x3xbf16, #tpu.memory_space<vmem>>, vector<1x1x1x16x3xbf16>
      %340 = vector.shape_cast %339 : vector<1x1x1x16x3xbf16> to vector<16x3xbf16>
      %c5_405 = arith.constant 5 : index
      %c2_406 = arith.constant 2 : index
      %c0_407 = arith.constant 0 : index
      %c0_408 = arith.constant 0 : index
      %341 = vector.load %arg3[%c5_405, %c2_406, %c0_407, %c0_408] : memref<7x7x3x32xbf16, #tpu.memory_space<vmem>>, vector<1x1x3x32xbf16>
      %342 = vector.shape_cast %341 : vector<1x1x3x32xbf16> to vector<3x32xbf16>
      %cst_409 = arith.constant dense<0.000000e+00> : vector<16x32xf32>
      %343 = tpu.matmul %340, %342, %cst_409 {dimension_numbers = #tpu.dot_dimension_numbers<[1], [0], [0], [1], [0, 0, 1, 1], [], []>} : vector<16x3xbf16>, vector<3x32xbf16>, vector<16x32xf32> -> vector<16x32xf32>
      %344 = arith.addf %335, %343 : vector<16x32xf32>
      %c1_i32_410 = arith.constant 1 : i32
      %345 = arith.muli %c1_i32_410, %arg6 : i32
      %c5_i32_411 = arith.constant 5 : i32
      %346 = arith.addi %345, %c5_i32_411 : i32
      %c0_412 = arith.constant 0 : index
      %c0_413 = arith.constant 0 : index
      %347 = arith.index_cast %346 : i32 to index
      %c3_414 = arith.constant 3 : index
      %c0_415 = arith.constant 0 : index
      %348 = vector.load %arg2[%c0_412, %c0_413, %347, %c3_414, %c0_415] : memref<1x1x22x22x3xbf16, #tpu.memory_space<vmem>>, vector<1x1x1x16x3xbf16>
      %349 = vector.shape_cast %348 : vector<1x1x1x16x3xbf16> to vector<16x3xbf16>
      %c5_416 = arith.constant 5 : index
      %c3_417 = arith.constant 3 : index
      %c0_418 = arith.constant 0 : index
      %c0_419 = arith.constant 0 : index
      %350 = vector.load %arg3[%c5_416, %c3_417, %c0_418, %c0_419] : memref<7x7x3x32xbf16, #tpu.memory_space<vmem>>, vector<1x1x3x32xbf16>
      %351 = vector.shape_cast %350 : vector<1x1x3x32xbf16> to vector<3x32xbf16>
      %cst_420 = arith.constant dense<0.000000e+00> : vector<16x32xf32>
      %352 = tpu.matmul %349, %351, %cst_420 {dimension_numbers = #tpu.dot_dimension_numbers<[1], [0], [0], [1], [0, 0, 1, 1], [], []>} : vector<16x3xbf16>, vector<3x32xbf16>, vector<16x32xf32> -> vector<16x32xf32>
      %353 = arith.addf %344, %352 : vector<16x32xf32>
      %c1_i32_421 = arith.constant 1 : i32
      %354 = arith.muli %c1_i32_421, %arg6 : i32
      %c5_i32_422 = arith.constant 5 : i32
      %355 = arith.addi %354, %c5_i32_422 : i32
      %c0_423 = arith.constant 0 : index
      %c0_424 = arith.constant 0 : index
      %356 = arith.index_cast %355 : i32 to index
      %c4_425 = arith.constant 4 : index
      %c0_426 = arith.constant 0 : index
      %357 = vector.load %arg2[%c0_423, %c0_424, %356, %c4_425, %c0_426] : memref<1x1x22x22x3xbf16, #tpu.memory_space<vmem>>, vector<1x1x1x16x3xbf16>
      %358 = vector.shape_cast %357 : vector<1x1x1x16x3xbf16> to vector<16x3xbf16>
      %c5_427 = arith.constant 5 : index
      %c4_428 = arith.constant 4 : index
      %c0_429 = arith.constant 0 : index
      %c0_430 = arith.constant 0 : index
      %359 = vector.load %arg3[%c5_427, %c4_428, %c0_429, %c0_430] : memref<7x7x3x32xbf16, #tpu.memory_space<vmem>>, vector<1x1x3x32xbf16>
      %360 = vector.shape_cast %359 : vector<1x1x3x32xbf16> to vector<3x32xbf16>
      %cst_431 = arith.constant dense<0.000000e+00> : vector<16x32xf32>
      %361 = tpu.matmul %358, %360, %cst_431 {dimension_numbers = #tpu.dot_dimension_numbers<[1], [0], [0], [1], [0, 0, 1, 1], [], []>} : vector<16x3xbf16>, vector<3x32xbf16>, vector<16x32xf32> -> vector<16x32xf32>
      %362 = arith.addf %353, %361 : vector<16x32xf32>
      %c1_i32_432 = arith.constant 1 : i32
      %363 = arith.muli %c1_i32_432, %arg6 : i32
      %c5_i32_433 = arith.constant 5 : i32
      %364 = arith.addi %363, %c5_i32_433 : i32
      %c0_434 = arith.constant 0 : index
      %c0_435 = arith.constant 0 : index
      %365 = arith.index_cast %364 : i32 to index
      %c5_436 = arith.constant 5 : index
      %c0_437 = arith.constant 0 : index
      %366 = vector.load %arg2[%c0_434, %c0_435, %365, %c5_436, %c0_437] : memref<1x1x22x22x3xbf16, #tpu.memory_space<vmem>>, vector<1x1x1x16x3xbf16>
      %367 = vector.shape_cast %366 : vector<1x1x1x16x3xbf16> to vector<16x3xbf16>
      %c5_438 = arith.constant 5 : index
      %c5_439 = arith.constant 5 : index
      %c0_440 = arith.constant 0 : index
      %c0_441 = arith.constant 0 : index
      %368 = vector.load %arg3[%c5_438, %c5_439, %c0_440, %c0_441] : memref<7x7x3x32xbf16, #tpu.memory_space<vmem>>, vector<1x1x3x32xbf16>
      %369 = vector.shape_cast %368 : vector<1x1x3x32xbf16> to vector<3x32xbf16>
      %cst_442 = arith.constant dense<0.000000e+00> : vector<16x32xf32>
      %370 = tpu.matmul %367, %369, %cst_442 {dimension_numbers = #tpu.dot_dimension_numbers<[1], [0], [0], [1], [0, 0, 1, 1], [], []>} : vector<16x3xbf16>, vector<3x32xbf16>, vector<16x32xf32> -> vector<16x32xf32>
      %371 = arith.addf %362, %370 : vector<16x32xf32>
      %c1_i32_443 = arith.constant 1 : i32
      %372 = arith.muli %c1_i32_443, %arg6 : i32
      %c5_i32_444 = arith.constant 5 : i32
      %373 = arith.addi %372, %c5_i32_444 : i32
      %c0_445 = arith.constant 0 : index
      %c0_446 = arith.constant 0 : index
      %374 = arith.index_cast %373 : i32 to index
      %c6_447 = arith.constant 6 : index
      %c0_448 = arith.constant 0 : index
      %375 = vector.load %arg2[%c0_445, %c0_446, %374, %c6_447, %c0_448] : memref<1x1x22x22x3xbf16, #tpu.memory_space<vmem>>, vector<1x1x1x16x3xbf16>
      %376 = vector.shape_cast %375 : vector<1x1x1x16x3xbf16> to vector<16x3xbf16>
      %c5_449 = arith.constant 5 : index
      %c6_450 = arith.constant 6 : index
      %c0_451 = arith.constant 0 : index
      %c0_452 = arith.constant 0 : index
      %377 = vector.load %arg3[%c5_449, %c6_450, %c0_451, %c0_452] : memref<7x7x3x32xbf16, #tpu.memory_space<vmem>>, vector<1x1x3x32xbf16>
      %378 = vector.shape_cast %377 : vector<1x1x3x32xbf16> to vector<3x32xbf16>
      %cst_453 = arith.constant dense<0.000000e+00> : vector<16x32xf32>
      %379 = tpu.matmul %376, %378, %cst_453 {dimension_numbers = #tpu.dot_dimension_numbers<[1], [0], [0], [1], [0, 0, 1, 1], [], []>} : vector<16x3xbf16>, vector<3x32xbf16>, vector<16x32xf32> -> vector<16x32xf32>
      %380 = arith.addf %371, %379 : vector<16x32xf32>
      %c1_i32_454 = arith.constant 1 : i32
      %381 = arith.muli %c1_i32_454, %arg6 : i32
      %c6_i32 = arith.constant 6 : i32
      %382 = arith.addi %381, %c6_i32 : i32
      %c0_455 = arith.constant 0 : index
      %c0_456 = arith.constant 0 : index
      %383 = arith.index_cast %382 : i32 to index
      %c0_457 = arith.constant 0 : index
      %c0_458 = arith.constant 0 : index
      %384 = vector.load %arg2[%c0_455, %c0_456, %383, %c0_457, %c0_458] : memref<1x1x22x22x3xbf16, #tpu.memory_space<vmem>>, vector<1x1x1x16x3xbf16>
      %385 = vector.shape_cast %384 : vector<1x1x1x16x3xbf16> to vector<16x3xbf16>
      %c6_459 = arith.constant 6 : index
      %c0_460 = arith.constant 0 : index
      %c0_461 = arith.constant 0 : index
      %c0_462 = arith.constant 0 : index
      %386 = vector.load %arg3[%c6_459, %c0_460, %c0_461, %c0_462] : memref<7x7x3x32xbf16, #tpu.memory_space<vmem>>, vector<1x1x3x32xbf16>
      %387 = vector.shape_cast %386 : vector<1x1x3x32xbf16> to vector<3x32xbf16>
      %cst_463 = arith.constant dense<0.000000e+00> : vector<16x32xf32>
      %388 = tpu.matmul %385, %387, %cst_463 {dimension_numbers = #tpu.dot_dimension_numbers<[1], [0], [0], [1], [0, 0, 1, 1], [], []>} : vector<16x3xbf16>, vector<3x32xbf16>, vector<16x32xf32> -> vector<16x32xf32>
      %389 = arith.addf %380, %388 : vector<16x32xf32>
      %c1_i32_464 = arith.constant 1 : i32
      %390 = arith.muli %c1_i32_464, %arg6 : i32
      %c6_i32_465 = arith.constant 6 : i32
      %391 = arith.addi %390, %c6_i32_465 : i32
      %c0_466 = arith.constant 0 : index
      %c0_467 = arith.constant 0 : index
      %392 = arith.index_cast %391 : i32 to index
      %c1_468 = arith.constant 1 : index
      %c0_469 = arith.constant 0 : index
      %393 = vector.load %arg2[%c0_466, %c0_467, %392, %c1_468, %c0_469] : memref<1x1x22x22x3xbf16, #tpu.memory_space<vmem>>, vector<1x1x1x16x3xbf16>
      %394 = vector.shape_cast %393 : vector<1x1x1x16x3xbf16> to vector<16x3xbf16>
      %c6_470 = arith.constant 6 : index
      %c1_471 = arith.constant 1 : index
      %c0_472 = arith.constant 0 : index
      %c0_473 = arith.constant 0 : index
      %395 = vector.load %arg3[%c6_470, %c1_471, %c0_472, %c0_473] : memref<7x7x3x32xbf16, #tpu.memory_space<vmem>>, vector<1x1x3x32xbf16>
      %396 = vector.shape_cast %395 : vector<1x1x3x32xbf16> to vector<3x32xbf16>
      %cst_474 = arith.constant dense<0.000000e+00> : vector<16x32xf32>
      %397 = tpu.matmul %394, %396, %cst_474 {dimension_numbers = #tpu.dot_dimension_numbers<[1], [0], [0], [1], [0, 0, 1, 1], [], []>} : vector<16x3xbf16>, vector<3x32xbf16>, vector<16x32xf32> -> vector<16x32xf32>
      %398 = arith.addf %389, %397 : vector<16x32xf32>
      %c1_i32_475 = arith.constant 1 : i32
      %399 = arith.muli %c1_i32_475, %arg6 : i32
      %c6_i32_476 = arith.constant 6 : i32
      %400 = arith.addi %399, %c6_i32_476 : i32
      %c0_477 = arith.constant 0 : index
      %c0_478 = arith.constant 0 : index
      %401 = arith.index_cast %400 : i32 to index
      %c2_479 = arith.constant 2 : index
      %c0_480 = arith.constant 0 : index
      %402 = vector.load %arg2[%c0_477, %c0_478, %401, %c2_479, %c0_480] : memref<1x1x22x22x3xbf16, #tpu.memory_space<vmem>>, vector<1x1x1x16x3xbf16>
      %403 = vector.shape_cast %402 : vector<1x1x1x16x3xbf16> to vector<16x3xbf16>
      %c6_481 = arith.constant 6 : index
      %c2_482 = arith.constant 2 : index
      %c0_483 = arith.constant 0 : index
      %c0_484 = arith.constant 0 : index
      %404 = vector.load %arg3[%c6_481, %c2_482, %c0_483, %c0_484] : memref<7x7x3x32xbf16, #tpu.memory_space<vmem>>, vector<1x1x3x32xbf16>
      %405 = vector.shape_cast %404 : vector<1x1x3x32xbf16> to vector<3x32xbf16>
      %cst_485 = arith.constant dense<0.000000e+00> : vector<16x32xf32>
      %406 = tpu.matmul %403, %405, %cst_485 {dimension_numbers = #tpu.dot_dimension_numbers<[1], [0], [0], [1], [0, 0, 1, 1], [], []>} : vector<16x3xbf16>, vector<3x32xbf16>, vector<16x32xf32> -> vector<16x32xf32>
      %407 = arith.addf %398, %406 : vector<16x32xf32>
      %c1_i32_486 = arith.constant 1 : i32
      %408 = arith.muli %c1_i32_486, %arg6 : i32
      %c6_i32_487 = arith.constant 6 : i32
      %409 = arith.addi %408, %c6_i32_487 : i32
      %c0_488 = arith.constant 0 : index
      %c0_489 = arith.constant 0 : index
      %410 = arith.index_cast %409 : i32 to index
      %c3_490 = arith.constant 3 : index
      %c0_491 = arith.constant 0 : index
      %411 = vector.load %arg2[%c0_488, %c0_489, %410, %c3_490, %c0_491] : memref<1x1x22x22x3xbf16, #tpu.memory_space<vmem>>, vector<1x1x1x16x3xbf16>
      %412 = vector.shape_cast %411 : vector<1x1x1x16x3xbf16> to vector<16x3xbf16>
      %c6_492 = arith.constant 6 : index
      %c3_493 = arith.constant 3 : index
      %c0_494 = arith.constant 0 : index
      %c0_495 = arith.constant 0 : index
      %413 = vector.load %arg3[%c6_492, %c3_493, %c0_494, %c0_495] : memref<7x7x3x32xbf16, #tpu.memory_space<vmem>>, vector<1x1x3x32xbf16>
      %414 = vector.shape_cast %413 : vector<1x1x3x32xbf16> to vector<3x32xbf16>
      %cst_496 = arith.constant dense<0.000000e+00> : vector<16x32xf32>
      %415 = tpu.matmul %412, %414, %cst_496 {dimension_numbers = #tpu.dot_dimension_numbers<[1], [0], [0], [1], [0, 0, 1, 1], [], []>} : vector<16x3xbf16>, vector<3x32xbf16>, vector<16x32xf32> -> vector<16x32xf32>
      %416 = arith.addf %407, %415 : vector<16x32xf32>
      %c1_i32_497 = arith.constant 1 : i32
      %417 = arith.muli %c1_i32_497, %arg6 : i32
      %c6_i32_498 = arith.constant 6 : i32
      %418 = arith.addi %417, %c6_i32_498 : i32
      %c0_499 = arith.constant 0 : index
      %c0_500 = arith.constant 0 : index
      %419 = arith.index_cast %418 : i32 to index
      %c4_501 = arith.constant 4 : index
      %c0_502 = arith.constant 0 : index
      %420 = vector.load %arg2[%c0_499, %c0_500, %419, %c4_501, %c0_502] : memref<1x1x22x22x3xbf16, #tpu.memory_space<vmem>>, vector<1x1x1x16x3xbf16>
      %421 = vector.shape_cast %420 : vector<1x1x1x16x3xbf16> to vector<16x3xbf16>
      %c6_503 = arith.constant 6 : index
      %c4_504 = arith.constant 4 : index
      %c0_505 = arith.constant 0 : index
      %c0_506 = arith.constant 0 : index
      %422 = vector.load %arg3[%c6_503, %c4_504, %c0_505, %c0_506] : memref<7x7x3x32xbf16, #tpu.memory_space<vmem>>, vector<1x1x3x32xbf16>
      %423 = vector.shape_cast %422 : vector<1x1x3x32xbf16> to vector<3x32xbf16>
      %cst_507 = arith.constant dense<0.000000e+00> : vector<16x32xf32>
      %424 = tpu.matmul %421, %423, %cst_507 {dimension_numbers = #tpu.dot_dimension_numbers<[1], [0], [0], [1], [0, 0, 1, 1], [], []>} : vector<16x3xbf16>, vector<3x32xbf16>, vector<16x32xf32> -> vector<16x32xf32>
      %425 = arith.addf %416, %424 : vector<16x32xf32>
      %c1_i32_508 = arith.constant 1 : i32
      %426 = arith.muli %c1_i32_508, %arg6 : i32
      %c6_i32_509 = arith.constant 6 : i32
      %427 = arith.addi %426, %c6_i32_509 : i32
      %c0_510 = arith.constant 0 : index
      %c0_511 = arith.constant 0 : index
      %428 = arith.index_cast %427 : i32 to index
      %c5_512 = arith.constant 5 : index
      %c0_513 = arith.constant 0 : index
      %429 = vector.load %arg2[%c0_510, %c0_511, %428, %c5_512, %c0_513] : memref<1x1x22x22x3xbf16, #tpu.memory_space<vmem>>, vector<1x1x1x16x3xbf16>
      %430 = vector.shape_cast %429 : vector<1x1x1x16x3xbf16> to vector<16x3xbf16>
      %c6_514 = arith.constant 6 : index
      %c5_515 = arith.constant 5 : index
      %c0_516 = arith.constant 0 : index
      %c0_517 = arith.constant 0 : index
      %431 = vector.load %arg3[%c6_514, %c5_515, %c0_516, %c0_517] : memref<7x7x3x32xbf16, #tpu.memory_space<vmem>>, vector<1x1x3x32xbf16>
      %432 = vector.shape_cast %431 : vector<1x1x3x32xbf16> to vector<3x32xbf16>
      %cst_518 = arith.constant dense<0.000000e+00> : vector<16x32xf32>
      %433 = tpu.matmul %430, %432, %cst_518 {dimension_numbers = #tpu.dot_dimension_numbers<[1], [0], [0], [1], [0, 0, 1, 1], [], []>} : vector<16x3xbf16>, vector<3x32xbf16>, vector<16x32xf32> -> vector<16x32xf32>
      %434 = arith.addf %425, %433 : vector<16x32xf32>
      %c1_i32_519 = arith.constant 1 : i32
      %435 = arith.muli %c1_i32_519, %arg6 : i32
      %c6_i32_520 = arith.constant 6 : i32
      %436 = arith.addi %435, %c6_i32_520 : i32
      %c0_521 = arith.constant 0 : index
      %c0_522 = arith.constant 0 : index
      %437 = arith.index_cast %436 : i32 to index
      %c6_523 = arith.constant 6 : index
      %c0_524 = arith.constant 0 : index
      %438 = vector.load %arg2[%c0_521, %c0_522, %437, %c6_523, %c0_524] : memref<1x1x22x22x3xbf16, #tpu.memory_space<vmem>>, vector<1x1x1x16x3xbf16>
      %439 = vector.shape_cast %438 : vector<1x1x1x16x3xbf16> to vector<16x3xbf16>
      %c6_525 = arith.constant 6 : index
      %c6_526 = arith.constant 6 : index
      %c0_527 = arith.constant 0 : index
      %c0_528 = arith.constant 0 : index
      %440 = vector.load %arg3[%c6_525, %c6_526, %c0_527, %c0_528] : memref<7x7x3x32xbf16, #tpu.memory_space<vmem>>, vector<1x1x3x32xbf16>
      %441 = vector.shape_cast %440 : vector<1x1x3x32xbf16> to vector<3x32xbf16>
      %cst_529 = arith.constant dense<0.000000e+00> : vector<16x32xf32>
      %442 = tpu.matmul %439, %441, %cst_529 {dimension_numbers = #tpu.dot_dimension_numbers<[1], [0], [0], [1], [0, 0, 1, 1], [], []>} : vector<16x3xbf16>, vector<3x32xbf16>, vector<16x32xf32> -> vector<16x32xf32>
      %443 = arith.addf %434, %442 : vector<16x32xf32>
      %444 = vector.broadcast %0 : vector<1x32xf32> to vector<16x32xf32>
      %445 = arith.addf %443, %444 : vector<16x32xf32>
      %cst_530 = arith.constant 0.000000e+00 : f32
      %446 = vector.broadcast %cst_530 : f32 to vector<16x32xf32>
      %447 = arith.cmpf oge, %445, %446 : vector<16x32xf32>
      %cst_531 = arith.constant 1.000000e-01 : f32
      %448 = vector.broadcast %cst_531 : f32 to vector<16x32xf32>
      %449 = arith.mulf %448, %445 : vector<16x32xf32>
      %450 = arith.select %447, %445, %449 : vector<16x32xi1>, vector<16x32xf32>
      %451 = arith.truncf %450 : vector<16x32xf32> to vector<16x32xbf16>
      %c0_532 = arith.constant 0 : index
      %452 = arith.index_cast %arg6 : i32 to index
      %c0_533 = arith.constant 0 : index
      %c0_534 = arith.constant 0 : index
      %453 = vector.load %arg5[%c0_532, %452, %c0_533, %c0_534] : memref<1x16x16x32xbf16, #tpu.memory_space<vmem>>, vector<1x1x16x32xbf16>
      %454 = vector.shape_cast %453 : vector<1x1x16x32xbf16> to vector<16x32xbf16>
      %455 = vector.shape_cast %451 : vector<16x32xbf16> to vector<1x1x16x32xbf16>
      tpu.vector_store %arg5[%c0_532, %452, %c0_533, %c0_534], %455 {strides = array<i32>} : memref<1x16x16x32xbf16, #tpu.memory_space<vmem>>, vector<1x1x16x32xbf16>,
    }
    %c16_i32_1 = arith.constant 16 : i32
    return
  }
  func.func @transform_0(%arg0: i32, %arg1: i32) -> (i32, i32, i32, i32, i32) {
    %c0_i32 = arith.constant 0 : i32
    %c0_i32_0 = arith.constant 0 : i32
    %c0_i32_1 = arith.constant 0 : i32
    %c0_i32_2 = arith.constant 0 : i32
    return %arg0, %arg1, %c0_i32, %c0_i32_0, %c0_i32_1 : i32, i32, i32, i32, i32
  }
  func.func @transform_1(%arg0: i32, %arg1: i32) -> (i32, i32, i32, i32) {
    %c0_i32 = arith.constant 0 : i32
    %c0_i32_0 = arith.constant 0 : i32
    %c0_i32_1 = arith.constant 0 : i32
    %c0_i32_2 = arith.constant 0 : i32
    %c0_i32_3 = arith.constant 0 : i32
    return %c0_i32, %c0_i32_0, %c0_i32_1, %c0_i32_2 : i32, i32, i32, i32
  }
  func.func @transform_2(%arg0: i32, %arg1: i32) -> (i32, i32) {
    %c0_i32 = arith.constant 0 : i32
    %c0_i32_0 = arith.constant 0 : i32
    %c0_i32_1 = arith.constant 0 : i32
    return %c0_i32, %c0_i32_0 : i32, i32
  }
  func.func @transform_3(%arg0: i32, %arg1: i32) -> (i32, i32, i32, i32) {
    %c0_i32 = arith.constant 0 : i32
    %c0_i32_0 = arith.constant 0 : i32
    %c0_i32_1 = arith.constant 0 : i32
    return %arg0, %arg1, %c0_i32, %c0_i32_0 : i32, i32, i32, i32
  }
}

module attributes {stable_mosaic.version = 11 : i64} {
  func.func @_conv_rows_kernel(%arg0: i32, %arg1: i32, %arg2: memref<1x1x17x9x64xbf16, #tpu.memory_space<vmem>>, %arg3: memref<3x2x64x32xbf16, #tpu.memory_space<vmem>>, %arg4: memref<1x32xf32, #tpu.memory_space<vmem>>, %arg5: memref<1x8x8x32xbf16, #tpu.memory_space<vmem>>) attributes {dimension_semantics = [#tpu.dimension_semantics<parallel>, #tpu.dimension_semantics<parallel>], iteration_bounds = array<i64: 2, 1>, scalar_prefetch = 0 : i64, scratch_operands = 0 : i64, tpu.core_type = #tpu.core_type<tc>, window_params = [{transform_indices = @transform_0, window_bounds = array<i64: 1, 1, 17, 9, 64>}, {pipeline_mode = #tpu.pipeline_mode<synchronous>, transform_indices = @transform_1, window_bounds = array<i64: 3, 2, 64, 32>}, {pipeline_mode = #tpu.pipeline_mode<synchronous>, transform_indices = @transform_2, window_bounds = array<i64: 1, 32>}, {transform_indices = @transform_3, window_bounds = array<i64: 1, 8, 8, 32>}]} {
    %c0 = arith.constant 0 : index
    %c0_0 = arith.constant 0 : index
    %0 = vector.load %arg4[%c0, %c0_0] : memref<1x32xf32, #tpu.memory_space<vmem>>, vector<1x32xf32>
    %c0_i32 = arith.constant 0 : i32
    %c8_i32 = arith.constant 8 : i32
    %1 = arith.addi %c0_i32, %c8_i32 : i32
    %c1_i32 = arith.constant 1 : i32
    scf.for %arg6 = %c0_i32 to %1 step %c1_i32  : i32 {
      %cst = arith.constant 0.000000e+00 : f32
      %2 = vector.broadcast %cst : f32 to vector<8x32xf32>
      %c2_i32 = arith.constant 2 : i32
      %3 = arith.muli %c2_i32, %arg6 : i32
      %c0_i32_2 = arith.constant 0 : i32
      %4 = arith.addi %3, %c0_i32_2 : i32
      %c0_3 = arith.constant 0 : index
      %c0_4 = arith.constant 0 : index
      %5 = arith.index_cast %4 : i32 to index
      %c0_5 = arith.constant 0 : index
      %c0_6 = arith.constant 0 : index
      %6 = vector.load %arg2[%c0_3, %c0_4, %5, %c0_5, %c0_6] : memref<1x1x17x9x64xbf16, #tpu.memory_space<vmem>>, vector<1x1x1x8x64xbf16>
      %7 = vector.shape_cast %6 : vector<1x1x1x8x64xbf16> to vector<8x64xbf16>
      %c0_7 = arith.constant 0 : index
      %c0_8 = arith.constant 0 : index
      %c0_9 = arith.constant 0 : index
      %c0_10 = arith.constant 0 : index
      %8 = vector.load %arg3[%c0_7, %c0_8, %c0_9, %c0_10] : memref<3x2x64x32xbf16, #tpu.memory_space<vmem>>, vector<1x1x64x32xbf16>
      %9 = vector.shape_cast %8 : vector<1x1x64x32xbf16> to vector<64x32xbf16>
      %cst_11 = arith.constant dense<0.000000e+00> : vector<8x32xf32>
      %10 = tpu.matmul %7, %9, %cst_11 {dimension_numbers = #tpu.dot_dimension_numbers<[1], [0], [0], [1], [0, 0, 1, 1], [], []>} : vector<8x64xbf16>, vector<64x32xbf16>, vector<8x32xf32> -> vector<8x32xf32>
      %11 = arith.addf %2, %10 : vector<8x32xf32>
      %c2_i32_12 = arith.constant 2 : i32
      %12 = arith.muli %c2_i32_12, %arg6 : i32
      %c0_i32_13 = arith.constant 0 : i32
      %13 = arith.addi %12, %c0_i32_13 : i32
      %c0_14 = arith.constant 0 : index
      %c0_15 = arith.constant 0 : index
      %14 = arith.index_cast %13 : i32 to index
      %c1 = arith.constant 1 : index
      %c0_16 = arith.constant 0 : index
      %15 = vector.load %arg2[%c0_14, %c0_15, %14, %c1, %c0_16] : memref<1x1x17x9x64xbf16, #tpu.memory_space<vmem>>, vector<1x1x1x8x64xbf16>
      %16 = vector.shape_cast %15 : vector<1x1x1x8x64xbf16> to vector<8x64xbf16>
      %c0_17 = arith.constant 0 : index
      %c1_18 = arith.constant 1 : index
      %c0_19 = arith.constant 0 : index
      %c0_20 = arith.constant 0 : index
      %17 = vector.load %arg3[%c0_17, %c1_18, %c0_19, %c0_20] : memref<3x2x64x32xbf16, #tpu.memory_space<vmem>>, vector<1x1x64x32xbf16>
      %18 = vector.shape_cast %17 : vector<1x1x64x32xbf16> to vector<64x32xbf16>
      %cst_21 = arith.constant dense<0.000000e+00> : vector<8x32xf32>
      %19 = tpu.matmul %16, %18, %cst_21 {dimension_numbers = #tpu.dot_dimension_numbers<[1], [0], [0], [1], [0, 0, 1, 1], [], []>} : vector<8x64xbf16>, vector<64x32xbf16>, vector<8x32xf32> -> vector<8x32xf32>
      %20 = arith.addf %11, %19 : vector<8x32xf32>
      %c2_i32_22 = arith.constant 2 : i32
      %21 = arith.muli %c2_i32_22, %arg6 : i32
      %c1_i32_23 = arith.constant 1 : i32
      %22 = arith.addi %21, %c1_i32_23 : i32
      %c0_24 = arith.constant 0 : index
      %c0_25 = arith.constant 0 : index
      %23 = arith.index_cast %22 : i32 to index
      %c0_26 = arith.constant 0 : index
      %c0_27 = arith.constant 0 : index
      %24 = vector.load %arg2[%c0_24, %c0_25, %23, %c0_26, %c0_27] : memref<1x1x17x9x64xbf16, #tpu.memory_space<vmem>>, vector<1x1x1x8x64xbf16>
      %25 = vector.shape_cast %24 : vector<1x1x1x8x64xbf16> to vector<8x64xbf16>
      %c1_28 = arith.constant 1 : index
      %c0_29 = arith.constant 0 : index
      %c0_30 = arith.constant 0 : index
      %c0_31 = arith.constant 0 : index
      %26 = vector.load %arg3[%c1_28, %c0_29, %c0_30, %c0_31] : memref<3x2x64x32xbf16, #tpu.memory_space<vmem>>, vector<1x1x64x32xbf16>
      %27 = vector.shape_cast %26 : vector<1x1x64x32xbf16> to vector<64x32xbf16>
      %cst_32 = arith.constant dense<0.000000e+00> : vector<8x32xf32>
      %28 = tpu.matmul %25, %27, %cst_32 {dimension_numbers = #tpu.dot_dimension_numbers<[1], [0], [0], [1], [0, 0, 1, 1], [], []>} : vector<8x64xbf16>, vector<64x32xbf16>, vector<8x32xf32> -> vector<8x32xf32>
      %29 = arith.addf %20, %28 : vector<8x32xf32>
      %c2_i32_33 = arith.constant 2 : i32
      %30 = arith.muli %c2_i32_33, %arg6 : i32
      %c1_i32_34 = arith.constant 1 : i32
      %31 = arith.addi %30, %c1_i32_34 : i32
      %c0_35 = arith.constant 0 : index
      %c0_36 = arith.constant 0 : index
      %32 = arith.index_cast %31 : i32 to index
      %c1_37 = arith.constant 1 : index
      %c0_38 = arith.constant 0 : index
      %33 = vector.load %arg2[%c0_35, %c0_36, %32, %c1_37, %c0_38] : memref<1x1x17x9x64xbf16, #tpu.memory_space<vmem>>, vector<1x1x1x8x64xbf16>
      %34 = vector.shape_cast %33 : vector<1x1x1x8x64xbf16> to vector<8x64xbf16>
      %c1_39 = arith.constant 1 : index
      %c1_40 = arith.constant 1 : index
      %c0_41 = arith.constant 0 : index
      %c0_42 = arith.constant 0 : index
      %35 = vector.load %arg3[%c1_39, %c1_40, %c0_41, %c0_42] : memref<3x2x64x32xbf16, #tpu.memory_space<vmem>>, vector<1x1x64x32xbf16>
      %36 = vector.shape_cast %35 : vector<1x1x64x32xbf16> to vector<64x32xbf16>
      %cst_43 = arith.constant dense<0.000000e+00> : vector<8x32xf32>
      %37 = tpu.matmul %34, %36, %cst_43 {dimension_numbers = #tpu.dot_dimension_numbers<[1], [0], [0], [1], [0, 0, 1, 1], [], []>} : vector<8x64xbf16>, vector<64x32xbf16>, vector<8x32xf32> -> vector<8x32xf32>
      %38 = arith.addf %29, %37 : vector<8x32xf32>
      %c2_i32_44 = arith.constant 2 : i32
      %39 = arith.muli %c2_i32_44, %arg6 : i32
      %c2_i32_45 = arith.constant 2 : i32
      %40 = arith.addi %39, %c2_i32_45 : i32
      %c0_46 = arith.constant 0 : index
      %c0_47 = arith.constant 0 : index
      %41 = arith.index_cast %40 : i32 to index
      %c0_48 = arith.constant 0 : index
      %c0_49 = arith.constant 0 : index
      %42 = vector.load %arg2[%c0_46, %c0_47, %41, %c0_48, %c0_49] : memref<1x1x17x9x64xbf16, #tpu.memory_space<vmem>>, vector<1x1x1x8x64xbf16>
      %43 = vector.shape_cast %42 : vector<1x1x1x8x64xbf16> to vector<8x64xbf16>
      %c2 = arith.constant 2 : index
      %c0_50 = arith.constant 0 : index
      %c0_51 = arith.constant 0 : index
      %c0_52 = arith.constant 0 : index
      %44 = vector.load %arg3[%c2, %c0_50, %c0_51, %c0_52] : memref<3x2x64x32xbf16, #tpu.memory_space<vmem>>, vector<1x1x64x32xbf16>
      %45 = vector.shape_cast %44 : vector<1x1x64x32xbf16> to vector<64x32xbf16>
      %cst_53 = arith.constant dense<0.000000e+00> : vector<8x32xf32>
      %46 = tpu.matmul %43, %45, %cst_53 {dimension_numbers = #tpu.dot_dimension_numbers<[1], [0], [0], [1], [0, 0, 1, 1], [], []>} : vector<8x64xbf16>, vector<64x32xbf16>, vector<8x32xf32> -> vector<8x32xf32>
      %47 = arith.addf %38, %46 : vector<8x32xf32>
      %c2_i32_54 = arith.constant 2 : i32
      %48 = arith.muli %c2_i32_54, %arg6 : i32
      %c2_i32_55 = arith.constant 2 : i32
      %49 = arith.addi %48, %c2_i32_55 : i32
      %c0_56 = arith.constant 0 : index
      %c0_57 = arith.constant 0 : index
      %50 = arith.index_cast %49 : i32 to index
      %c1_58 = arith.constant 1 : index
      %c0_59 = arith.constant 0 : index
      %51 = vector.load %arg2[%c0_56, %c0_57, %50, %c1_58, %c0_59] : memref<1x1x17x9x64xbf16, #tpu.memory_space<vmem>>, vector<1x1x1x8x64xbf16>
      %52 = vector.shape_cast %51 : vector<1x1x1x8x64xbf16> to vector<8x64xbf16>
      %c2_60 = arith.constant 2 : index
      %c1_61 = arith.constant 1 : index
      %c0_62 = arith.constant 0 : index
      %c0_63 = arith.constant 0 : index
      %53 = vector.load %arg3[%c2_60, %c1_61, %c0_62, %c0_63] : memref<3x2x64x32xbf16, #tpu.memory_space<vmem>>, vector<1x1x64x32xbf16>
      %54 = vector.shape_cast %53 : vector<1x1x64x32xbf16> to vector<64x32xbf16>
      %cst_64 = arith.constant dense<0.000000e+00> : vector<8x32xf32>
      %55 = tpu.matmul %52, %54, %cst_64 {dimension_numbers = #tpu.dot_dimension_numbers<[1], [0], [0], [1], [0, 0, 1, 1], [], []>} : vector<8x64xbf16>, vector<64x32xbf16>, vector<8x32xf32> -> vector<8x32xf32>
      %56 = arith.addf %47, %55 : vector<8x32xf32>
      %57 = vector.broadcast %0 : vector<1x32xf32> to vector<8x32xf32>
      %58 = arith.addf %56, %57 : vector<8x32xf32>
      %cst_65 = arith.constant 0.000000e+00 : f32
      %59 = vector.broadcast %cst_65 : f32 to vector<8x32xf32>
      %60 = arith.cmpf oge, %58, %59 : vector<8x32xf32>
      %cst_66 = arith.constant 1.000000e-01 : f32
      %61 = vector.broadcast %cst_66 : f32 to vector<8x32xf32>
      %62 = arith.mulf %61, %58 : vector<8x32xf32>
      %63 = arith.select %60, %58, %62 : vector<8x32xi1>, vector<8x32xf32>
      %64 = arith.truncf %63 : vector<8x32xf32> to vector<8x32xbf16>
      %c0_67 = arith.constant 0 : index
      %65 = arith.index_cast %arg6 : i32 to index
      %c0_68 = arith.constant 0 : index
      %c0_69 = arith.constant 0 : index
      %66 = vector.load %arg5[%c0_67, %65, %c0_68, %c0_69] : memref<1x8x8x32xbf16, #tpu.memory_space<vmem>>, vector<1x1x8x32xbf16>
      %67 = vector.shape_cast %66 : vector<1x1x8x32xbf16> to vector<8x32xbf16>
      %68 = vector.shape_cast %64 : vector<8x32xbf16> to vector<1x1x8x32xbf16>
      tpu.vector_store %arg5[%c0_67, %65, %c0_68, %c0_69], %68 {strides = array<i32>} : memref<1x8x8x32xbf16, #tpu.memory_space<vmem>>, vector<1x1x8x32xbf16>,
    }
    %c8_i32_1 = arith.constant 8 : i32
    return
  }
  func.func @transform_0(%arg0: i32, %arg1: i32) -> (i32, i32, i32, i32, i32) {
    %c0_i32 = arith.constant 0 : i32
    %c0_i32_0 = arith.constant 0 : i32
    %c0_i32_1 = arith.constant 0 : i32
    %c0_i32_2 = arith.constant 0 : i32
    return %arg0, %arg1, %c0_i32, %c0_i32_0, %c0_i32_1 : i32, i32, i32, i32, i32
  }
  func.func @transform_1(%arg0: i32, %arg1: i32) -> (i32, i32, i32, i32) {
    %c0_i32 = arith.constant 0 : i32
    %c0_i32_0 = arith.constant 0 : i32
    %c0_i32_1 = arith.constant 0 : i32
    %c0_i32_2 = arith.constant 0 : i32
    %c0_i32_3 = arith.constant 0 : i32
    return %c0_i32, %c0_i32_0, %c0_i32_1, %c0_i32_2 : i32, i32, i32, i32
  }
  func.func @transform_2(%arg0: i32, %arg1: i32) -> (i32, i32) {
    %c0_i32 = arith.constant 0 : i32
    %c0_i32_0 = arith.constant 0 : i32
    %c0_i32_1 = arith.constant 0 : i32
    return %c0_i32, %c0_i32_0 : i32, i32
  }
  func.func @transform_3(%arg0: i32, %arg1: i32) -> (i32, i32, i32, i32) {
    %c0_i32 = arith.constant 0 : i32
    %c0_i32_0 = arith.constant 0 : i32
    %c0_i32_1 = arith.constant 0 : i32
    return %arg0, %arg1, %c0_i32, %c0_i32_0 : i32, i32, i32, i32
  }
}

module attributes {stable_mosaic.version = 11 : i64} {
  func.func @_conv_rows_kernel(%arg0: i32, %arg1: i32, %arg2: memref<1x1x10x10x32xbf16, #tpu.memory_space<vmem>>, %arg3: memref<3x3x32x64xbf16, #tpu.memory_space<vmem>>, %arg4: memref<1x64xf32, #tpu.memory_space<vmem>>, %arg5: memref<1x8x8x64xbf16, #tpu.memory_space<vmem>>) attributes {dimension_semantics = [#tpu.dimension_semantics<parallel>, #tpu.dimension_semantics<parallel>], iteration_bounds = array<i64: 2, 1>, scalar_prefetch = 0 : i64, scratch_operands = 0 : i64, tpu.core_type = #tpu.core_type<tc>, window_params = [{transform_indices = @transform_0, window_bounds = array<i64: 1, 1, 10, 10, 32>}, {pipeline_mode = #tpu.pipeline_mode<synchronous>, transform_indices = @transform_1, window_bounds = array<i64: 3, 3, 32, 64>}, {pipeline_mode = #tpu.pipeline_mode<synchronous>, transform_indices = @transform_2, window_bounds = array<i64: 1, 64>}, {transform_indices = @transform_3, window_bounds = array<i64: 1, 8, 8, 64>}]} {
    %c0 = arith.constant 0 : index
    %c0_0 = arith.constant 0 : index
    %0 = vector.load %arg4[%c0, %c0_0] : memref<1x64xf32, #tpu.memory_space<vmem>>, vector<1x64xf32>
    %c0_i32 = arith.constant 0 : i32
    %c8_i32 = arith.constant 8 : i32
    %1 = arith.addi %c0_i32, %c8_i32 : i32
    %c1_i32 = arith.constant 1 : i32
    scf.for %arg6 = %c0_i32 to %1 step %c1_i32  : i32 {
      %cst = arith.constant 0.000000e+00 : f32
      %2 = vector.broadcast %cst : f32 to vector<8x64xf32>
      %c1_i32_2 = arith.constant 1 : i32
      %3 = arith.muli %c1_i32_2, %arg6 : i32
      %c0_i32_3 = arith.constant 0 : i32
      %4 = arith.addi %3, %c0_i32_3 : i32
      %c0_4 = arith.constant 0 : index
      %c0_5 = arith.constant 0 : index
      %5 = arith.index_cast %4 : i32 to index
      %c0_6 = arith.constant 0 : index
      %c0_7 = arith.constant 0 : index
      %6 = vector.load %arg2[%c0_4, %c0_5, %5, %c0_6, %c0_7] : memref<1x1x10x10x32xbf16, #tpu.memory_space<vmem>>, vector<1x1x1x8x32xbf16>
      %7 = vector.shape_cast %6 : vector<1x1x1x8x32xbf16> to vector<8x32xbf16>
      %c0_8 = arith.constant 0 : index
      %c0_9 = arith.constant 0 : index
      %c0_10 = arith.constant 0 : index
      %c0_11 = arith.constant 0 : index
      %8 = vector.load %arg3[%c0_8, %c0_9, %c0_10, %c0_11] : memref<3x3x32x64xbf16, #tpu.memory_space<vmem>>, vector<1x1x32x64xbf16>
      %9 = vector.shape_cast %8 : vector<1x1x32x64xbf16> to vector<32x64xbf16>
      %cst_12 = arith.constant dense<0.000000e+00> : vector<8x64xf32>
      %10 = tpu.matmul %7, %9, %cst_12 {dimension_numbers = #tpu.dot_dimension_numbers<[1], [0], [0], [1], [0, 0, 1, 1], [], []>} : vector<8x32xbf16>, vector<32x64xbf16>, vector<8x64xf32> -> vector<8x64xf32>
      %11 = arith.addf %2, %10 : vector<8x64xf32>
      %c1_i32_13 = arith.constant 1 : i32
      %12 = arith.muli %c1_i32_13, %arg6 : i32
      %c0_i32_14 = arith.constant 0 : i32
      %13 = arith.addi %12, %c0_i32_14 : i32
      %c0_15 = arith.constant 0 : index
      %c0_16 = arith.constant 0 : index
      %14 = arith.index_cast %13 : i32 to index
      %c1 = arith.constant 1 : index
      %c0_17 = arith.constant 0 : index
      %15 = vector.load %arg2[%c0_15, %c0_16, %14, %c1, %c0_17] : memref<1x1x10x10x32xbf16, #tpu.memory_space<vmem>>, vector<1x1x1x8x32xbf16>
      %16 = vector.shape_cast %15 : vector<1x1x1x8x32xbf16> to vector<8x32xbf16>
      %c0_18 = arith.constant 0 : index
      %c1_19 = arith.constant 1 : index
      %c0_20 = arith.constant 0 : index
      %c0_21 = arith.constant 0 : index
      %17 = vector.load %arg3[%c0_18, %c1_19, %c0_20, %c0_21] : memref<3x3x32x64xbf16, #tpu.memory_space<vmem>>, vector<1x1x32x64xbf16>
      %18 = vector.shape_cast %17 : vector<1x1x32x64xbf16> to vector<32x64xbf16>
      %cst_22 = arith.constant dense<0.000000e+00> : vector<8x64xf32>
      %19 = tpu.matmul %16, %18, %cst_22 {dimension_numbers = #tpu.dot_dimension_numbers<[1], [0], [0], [1], [0, 0, 1, 1], [], []>} : vector<8x32xbf16>, vector<32x64xbf16>, vector<8x64xf32> -> vector<8x64xf32>
      %20 = arith.addf %11, %19 : vector<8x64xf32>
      %c1_i32_23 = arith.constant 1 : i32
      %21 = arith.muli %c1_i32_23, %arg6 : i32
      %c0_i32_24 = arith.constant 0 : i32
      %22 = arith.addi %21, %c0_i32_24 : i32
      %c0_25 = arith.constant 0 : index
      %c0_26 = arith.constant 0 : index
      %23 = arith.index_cast %22 : i32 to index
      %c2 = arith.constant 2 : index
      %c0_27 = arith.constant 0 : index
      %24 = vector.load %arg2[%c0_25, %c0_26, %23, %c2, %c0_27] : memref<1x1x10x10x32xbf16, #tpu.memory_space<vmem>>, vector<1x1x1x8x32xbf16>
      %25 = vector.shape_cast %24 : vector<1x1x1x8x32xbf16> to vector<8x32xbf16>
      %c0_28 = arith.constant 0 : index
      %c2_29 = arith.constant 2 : index
      %c0_30 = arith.constant 0 : index
      %c0_31 = arith.constant 0 : index
      %26 = vector.load %arg3[%c0_28, %c2_29, %c0_30, %c0_31] : memref<3x3x32x64xbf16, #tpu.memory_space<vmem>>, vector<1x1x32x64xbf16>
      %27 = vector.shape_cast %26 : vector<1x1x32x64xbf16> to vector<32x64xbf16>
      %cst_32 = arith.constant dense<0.000000e+00> : vector<8x64xf32>
      %28 = tpu.matmul %25, %27, %cst_32 {dimension_numbers = #tpu.dot_dimension_numbers<[1], [0], [0], [1], [0, 0, 1, 1], [], []>} : vector<8x32xbf16>, vector<32x64xbf16>, vector<8x64xf32> -> vector<8x64xf32>
      %29 = arith.addf %20, %28 : vector<8x64xf32>
      %c1_i32_33 = arith.constant 1 : i32
      %30 = arith.muli %c1_i32_33, %arg6 : i32
      %c1_i32_34 = arith.constant 1 : i32
      %31 = arith.addi %30, %c1_i32_34 : i32
      %c0_35 = arith.constant 0 : index
      %c0_36 = arith.constant 0 : index
      %32 = arith.index_cast %31 : i32 to index
      %c0_37 = arith.constant 0 : index
      %c0_38 = arith.constant 0 : index
      %33 = vector.load %arg2[%c0_35, %c0_36, %32, %c0_37, %c0_38] : memref<1x1x10x10x32xbf16, #tpu.memory_space<vmem>>, vector<1x1x1x8x32xbf16>
      %34 = vector.shape_cast %33 : vector<1x1x1x8x32xbf16> to vector<8x32xbf16>
      %c1_39 = arith.constant 1 : index
      %c0_40 = arith.constant 0 : index
      %c0_41 = arith.constant 0 : index
      %c0_42 = arith.constant 0 : index
      %35 = vector.load %arg3[%c1_39, %c0_40, %c0_41, %c0_42] : memref<3x3x32x64xbf16, #tpu.memory_space<vmem>>, vector<1x1x32x64xbf16>
      %36 = vector.shape_cast %35 : vector<1x1x32x64xbf16> to vector<32x64xbf16>
      %cst_43 = arith.constant dense<0.000000e+00> : vector<8x64xf32>
      %37 = tpu.matmul %34, %36, %cst_43 {dimension_numbers = #tpu.dot_dimension_numbers<[1], [0], [0], [1], [0, 0, 1, 1], [], []>} : vector<8x32xbf16>, vector<32x64xbf16>, vector<8x64xf32> -> vector<8x64xf32>
      %38 = arith.addf %29, %37 : vector<8x64xf32>
      %c1_i32_44 = arith.constant 1 : i32
      %39 = arith.muli %c1_i32_44, %arg6 : i32
      %c1_i32_45 = arith.constant 1 : i32
      %40 = arith.addi %39, %c1_i32_45 : i32
      %c0_46 = arith.constant 0 : index
      %c0_47 = arith.constant 0 : index
      %41 = arith.index_cast %40 : i32 to index
      %c1_48 = arith.constant 1 : index
      %c0_49 = arith.constant 0 : index
      %42 = vector.load %arg2[%c0_46, %c0_47, %41, %c1_48, %c0_49] : memref<1x1x10x10x32xbf16, #tpu.memory_space<vmem>>, vector<1x1x1x8x32xbf16>
      %43 = vector.shape_cast %42 : vector<1x1x1x8x32xbf16> to vector<8x32xbf16>
      %c1_50 = arith.constant 1 : index
      %c1_51 = arith.constant 1 : index
      %c0_52 = arith.constant 0 : index
      %c0_53 = arith.constant 0 : index
      %44 = vector.load %arg3[%c1_50, %c1_51, %c0_52, %c0_53] : memref<3x3x32x64xbf16, #tpu.memory_space<vmem>>, vector<1x1x32x64xbf16>
      %45 = vector.shape_cast %44 : vector<1x1x32x64xbf16> to vector<32x64xbf16>
      %cst_54 = arith.constant dense<0.000000e+00> : vector<8x64xf32>
      %46 = tpu.matmul %43, %45, %cst_54 {dimension_numbers = #tpu.dot_dimension_numbers<[1], [0], [0], [1], [0, 0, 1, 1], [], []>} : vector<8x32xbf16>, vector<32x64xbf16>, vector<8x64xf32> -> vector<8x64xf32>
      %47 = arith.addf %38, %46 : vector<8x64xf32>
      %c1_i32_55 = arith.constant 1 : i32
      %48 = arith.muli %c1_i32_55, %arg6 : i32
      %c1_i32_56 = arith.constant 1 : i32
      %49 = arith.addi %48, %c1_i32_56 : i32
      %c0_57 = arith.constant 0 : index
      %c0_58 = arith.constant 0 : index
      %50 = arith.index_cast %49 : i32 to index
      %c2_59 = arith.constant 2 : index
      %c0_60 = arith.constant 0 : index
      %51 = vector.load %arg2[%c0_57, %c0_58, %50, %c2_59, %c0_60] : memref<1x1x10x10x32xbf16, #tpu.memory_space<vmem>>, vector<1x1x1x8x32xbf16>
      %52 = vector.shape_cast %51 : vector<1x1x1x8x32xbf16> to vector<8x32xbf16>
      %c1_61 = arith.constant 1 : index
      %c2_62 = arith.constant 2 : index
      %c0_63 = arith.constant 0 : index
      %c0_64 = arith.constant 0 : index
      %53 = vector.load %arg3[%c1_61, %c2_62, %c0_63, %c0_64] : memref<3x3x32x64xbf16, #tpu.memory_space<vmem>>, vector<1x1x32x64xbf16>
      %54 = vector.shape_cast %53 : vector<1x1x32x64xbf16> to vector<32x64xbf16>
      %cst_65 = arith.constant dense<0.000000e+00> : vector<8x64xf32>
      %55 = tpu.matmul %52, %54, %cst_65 {dimension_numbers = #tpu.dot_dimension_numbers<[1], [0], [0], [1], [0, 0, 1, 1], [], []>} : vector<8x32xbf16>, vector<32x64xbf16>, vector<8x64xf32> -> vector<8x64xf32>
      %56 = arith.addf %47, %55 : vector<8x64xf32>
      %c1_i32_66 = arith.constant 1 : i32
      %57 = arith.muli %c1_i32_66, %arg6 : i32
      %c2_i32 = arith.constant 2 : i32
      %58 = arith.addi %57, %c2_i32 : i32
      %c0_67 = arith.constant 0 : index
      %c0_68 = arith.constant 0 : index
      %59 = arith.index_cast %58 : i32 to index
      %c0_69 = arith.constant 0 : index
      %c0_70 = arith.constant 0 : index
      %60 = vector.load %arg2[%c0_67, %c0_68, %59, %c0_69, %c0_70] : memref<1x1x10x10x32xbf16, #tpu.memory_space<vmem>>, vector<1x1x1x8x32xbf16>
      %61 = vector.shape_cast %60 : vector<1x1x1x8x32xbf16> to vector<8x32xbf16>
      %c2_71 = arith.constant 2 : index
      %c0_72 = arith.constant 0 : index
      %c0_73 = arith.constant 0 : index
      %c0_74 = arith.constant 0 : index
      %62 = vector.load %arg3[%c2_71, %c0_72, %c0_73, %c0_74] : memref<3x3x32x64xbf16, #tpu.memory_space<vmem>>, vector<1x1x32x64xbf16>
      %63 = vector.shape_cast %62 : vector<1x1x32x64xbf16> to vector<32x64xbf16>
      %cst_75 = arith.constant dense<0.000000e+00> : vector<8x64xf32>
      %64 = tpu.matmul %61, %63, %cst_75 {dimension_numbers = #tpu.dot_dimension_numbers<[1], [0], [0], [1], [0, 0, 1, 1], [], []>} : vector<8x32xbf16>, vector<32x64xbf16>, vector<8x64xf32> -> vector<8x64xf32>
      %65 = arith.addf %56, %64 : vector<8x64xf32>
      %c1_i32_76 = arith.constant 1 : i32
      %66 = arith.muli %c1_i32_76, %arg6 : i32
      %c2_i32_77 = arith.constant 2 : i32
      %67 = arith.addi %66, %c2_i32_77 : i32
      %c0_78 = arith.constant 0 : index
      %c0_79 = arith.constant 0 : index
      %68 = arith.index_cast %67 : i32 to index
      %c1_80 = arith.constant 1 : index
      %c0_81 = arith.constant 0 : index
      %69 = vector.load %arg2[%c0_78, %c0_79, %68, %c1_80, %c0_81] : memref<1x1x10x10x32xbf16, #tpu.memory_space<vmem>>, vector<1x1x1x8x32xbf16>
      %70 = vector.shape_cast %69 : vector<1x1x1x8x32xbf16> to vector<8x32xbf16>
      %c2_82 = arith.constant 2 : index
      %c1_83 = arith.constant 1 : index
      %c0_84 = arith.constant 0 : index
      %c0_85 = arith.constant 0 : index
      %71 = vector.load %arg3[%c2_82, %c1_83, %c0_84, %c0_85] : memref<3x3x32x64xbf16, #tpu.memory_space<vmem>>, vector<1x1x32x64xbf16>
      %72 = vector.shape_cast %71 : vector<1x1x32x64xbf16> to vector<32x64xbf16>
      %cst_86 = arith.constant dense<0.000000e+00> : vector<8x64xf32>
      %73 = tpu.matmul %70, %72, %cst_86 {dimension_numbers = #tpu.dot_dimension_numbers<[1], [0], [0], [1], [0, 0, 1, 1], [], []>} : vector<8x32xbf16>, vector<32x64xbf16>, vector<8x64xf32> -> vector<8x64xf32>
      %74 = arith.addf %65, %73 : vector<8x64xf32>
      %c1_i32_87 = arith.constant 1 : i32
      %75 = arith.muli %c1_i32_87, %arg6 : i32
      %c2_i32_88 = arith.constant 2 : i32
      %76 = arith.addi %75, %c2_i32_88 : i32
      %c0_89 = arith.constant 0 : index
      %c0_90 = arith.constant 0 : index
      %77 = arith.index_cast %76 : i32 to index
      %c2_91 = arith.constant 2 : index
      %c0_92 = arith.constant 0 : index
      %78 = vector.load %arg2[%c0_89, %c0_90, %77, %c2_91, %c0_92] : memref<1x1x10x10x32xbf16, #tpu.memory_space<vmem>>, vector<1x1x1x8x32xbf16>
      %79 = vector.shape_cast %78 : vector<1x1x1x8x32xbf16> to vector<8x32xbf16>
      %c2_93 = arith.constant 2 : index
      %c2_94 = arith.constant 2 : index
      %c0_95 = arith.constant 0 : index
      %c0_96 = arith.constant 0 : index
      %80 = vector.load %arg3[%c2_93, %c2_94, %c0_95, %c0_96] : memref<3x3x32x64xbf16, #tpu.memory_space<vmem>>, vector<1x1x32x64xbf16>
      %81 = vector.shape_cast %80 : vector<1x1x32x64xbf16> to vector<32x64xbf16>
      %cst_97 = arith.constant dense<0.000000e+00> : vector<8x64xf32>
      %82 = tpu.matmul %79, %81, %cst_97 {dimension_numbers = #tpu.dot_dimension_numbers<[1], [0], [0], [1], [0, 0, 1, 1], [], []>} : vector<8x32xbf16>, vector<32x64xbf16>, vector<8x64xf32> -> vector<8x64xf32>
      %83 = arith.addf %74, %82 : vector<8x64xf32>
      %84 = vector.broadcast %0 : vector<1x64xf32> to vector<8x64xf32>
      %85 = arith.addf %83, %84 : vector<8x64xf32>
      %cst_98 = arith.constant 0.000000e+00 : f32
      %86 = vector.broadcast %cst_98 : f32 to vector<8x64xf32>
      %87 = arith.cmpf oge, %85, %86 : vector<8x64xf32>
      %cst_99 = arith.constant 1.000000e-01 : f32
      %88 = vector.broadcast %cst_99 : f32 to vector<8x64xf32>
      %89 = arith.mulf %88, %85 : vector<8x64xf32>
      %90 = arith.select %87, %85, %89 : vector<8x64xi1>, vector<8x64xf32>
      %91 = arith.truncf %90 : vector<8x64xf32> to vector<8x64xbf16>
      %c0_100 = arith.constant 0 : index
      %92 = arith.index_cast %arg6 : i32 to index
      %c0_101 = arith.constant 0 : index
      %c0_102 = arith.constant 0 : index
      %93 = vector.load %arg5[%c0_100, %92, %c0_101, %c0_102] : memref<1x8x8x64xbf16, #tpu.memory_space<vmem>>, vector<1x1x8x64xbf16>
      %94 = vector.shape_cast %93 : vector<1x1x8x64xbf16> to vector<8x64xbf16>
      %95 = vector.shape_cast %91 : vector<8x64xbf16> to vector<1x1x8x64xbf16>
      tpu.vector_store %arg5[%c0_100, %92, %c0_101, %c0_102], %95 {strides = array<i32>} : memref<1x8x8x64xbf16, #tpu.memory_space<vmem>>, vector<1x1x8x64xbf16>,
    }
    %c8_i32_1 = arith.constant 8 : i32
    return
  }
  func.func @transform_0(%arg0: i32, %arg1: i32) -> (i32, i32, i32, i32, i32) {
    %c0_i32 = arith.constant 0 : i32
    %c0_i32_0 = arith.constant 0 : i32
    %c0_i32_1 = arith.constant 0 : i32
    %c0_i32_2 = arith.constant 0 : i32
    return %arg0, %arg1, %c0_i32, %c0_i32_0, %c0_i32_1 : i32, i32, i32, i32, i32
  }
  func.func @transform_1(%arg0: i32, %arg1: i32) -> (i32, i32, i32, i32) {
    %c0_i32 = arith.constant 0 : i32
    %c0_i32_0 = arith.constant 0 : i32
    %c0_i32_1 = arith.constant 0 : i32
    %c0_i32_2 = arith.constant 0 : i32
    %c0_i32_3 = arith.constant 0 : i32
    return %c0_i32, %c0_i32_0, %c0_i32_1, %c0_i32_2 : i32, i32, i32, i32
  }
  func.func @transform_2(%arg0: i32, %arg1: i32) -> (i32, i32) {
    %c0_i32 = arith.constant 0 : i32
    %c0_i32_0 = arith.constant 0 : i32
    %c0_i32_1 = arith.constant 0 : i32
    return %c0_i32, %c0_i32_0 : i32, i32
  }
  func.func @transform_3(%arg0: i32, %arg1: i32) -> (i32, i32, i32, i32) {
    %c0_i32 = arith.constant 0 : i32
    %c0_i32_0 = arith.constant 0 : i32
    %c0_i32_1 = arith.constant 0 : i32
    return %arg0, %arg1, %c0_i32, %c0_i32_0 : i32, i32, i32, i32
  }
}

module attributes {stable_mosaic.version = 11 : i64} {
  func.func @_conv_rows_kernel(%arg0: i32, %arg1: i32, %arg2: memref<1x1x9x5x128xbf16, #tpu.memory_space<vmem>>, %arg3: memref<3x2x128x64xbf16, #tpu.memory_space<vmem>>, %arg4: memref<1x64xf32, #tpu.memory_space<vmem>>, %arg5: memref<1x4x4x64xbf16, #tpu.memory_space<vmem>>) attributes {dimension_semantics = [#tpu.dimension_semantics<parallel>, #tpu.dimension_semantics<parallel>], iteration_bounds = array<i64: 2, 1>, scalar_prefetch = 0 : i64, scratch_operands = 0 : i64, tpu.core_type = #tpu.core_type<tc>, window_params = [{transform_indices = @transform_0, window_bounds = array<i64: 1, 1, 9, 5, 128>}, {pipeline_mode = #tpu.pipeline_mode<synchronous>, transform_indices = @transform_1, window_bounds = array<i64: 3, 2, 128, 64>}, {pipeline_mode = #tpu.pipeline_mode<synchronous>, transform_indices = @transform_2, window_bounds = array<i64: 1, 64>}, {transform_indices = @transform_3, window_bounds = array<i64: 1, 4, 4, 64>}]} {
    %c0 = arith.constant 0 : index
    %c0_0 = arith.constant 0 : index
    %0 = vector.load %arg4[%c0, %c0_0] : memref<1x64xf32, #tpu.memory_space<vmem>>, vector<1x64xf32>
    %c0_i32 = arith.constant 0 : i32
    %c4_i32 = arith.constant 4 : i32
    %1 = arith.addi %c0_i32, %c4_i32 : i32
    %c1_i32 = arith.constant 1 : i32
    scf.for %arg6 = %c0_i32 to %1 step %c1_i32  : i32 {
      %cst = arith.constant 0.000000e+00 : f32
      %2 = vector.broadcast %cst : f32 to vector<4x64xf32>
      %c2_i32 = arith.constant 2 : i32
      %3 = arith.muli %c2_i32, %arg6 : i32
      %c0_i32_2 = arith.constant 0 : i32
      %4 = arith.addi %3, %c0_i32_2 : i32
      %c0_3 = arith.constant 0 : index
      %c0_4 = arith.constant 0 : index
      %5 = arith.index_cast %4 : i32 to index
      %c0_5 = arith.constant 0 : index
      %c0_6 = arith.constant 0 : index
      %6 = vector.load %arg2[%c0_3, %c0_4, %5, %c0_5, %c0_6] : memref<1x1x9x5x128xbf16, #tpu.memory_space<vmem>>, vector<1x1x1x4x128xbf16>
      %7 = vector.shape_cast %6 : vector<1x1x1x4x128xbf16> to vector<4x128xbf16>
      %c0_7 = arith.constant 0 : index
      %c0_8 = arith.constant 0 : index
      %c0_9 = arith.constant 0 : index
      %c0_10 = arith.constant 0 : index
      %8 = vector.load %arg3[%c0_7, %c0_8, %c0_9, %c0_10] : memref<3x2x128x64xbf16, #tpu.memory_space<vmem>>, vector<1x1x128x64xbf16>
      %9 = vector.shape_cast %8 : vector<1x1x128x64xbf16> to vector<128x64xbf16>
      %cst_11 = arith.constant dense<0.000000e+00> : vector<4x64xf32>
      %10 = tpu.matmul %7, %9, %cst_11 {dimension_numbers = #tpu.dot_dimension_numbers<[1], [0], [0], [1], [0, 0, 1, 1], [], []>} : vector<4x128xbf16>, vector<128x64xbf16>, vector<4x64xf32> -> vector<4x64xf32>
      %11 = arith.addf %2, %10 : vector<4x64xf32>
      %c2_i32_12 = arith.constant 2 : i32
      %12 = arith.muli %c2_i32_12, %arg6 : i32
      %c0_i32_13 = arith.constant 0 : i32
      %13 = arith.addi %12, %c0_i32_13 : i32
      %c0_14 = arith.constant 0 : index
      %c0_15 = arith.constant 0 : index
      %14 = arith.index_cast %13 : i32 to index
      %c1 = arith.constant 1 : index
      %c0_16 = arith.constant 0 : index
      %15 = vector.load %arg2[%c0_14, %c0_15, %14, %c1, %c0_16] : memref<1x1x9x5x128xbf16, #tpu.memory_space<vmem>>, vector<1x1x1x4x128xbf16>
      %16 = vector.shape_cast %15 : vector<1x1x1x4x128xbf16> to vector<4x128xbf16>
      %c0_17 = arith.constant 0 : index
      %c1_18 = arith.constant 1 : index
      %c0_19 = arith.constant 0 : index
      %c0_20 = arith.constant 0 : index
      %17 = vector.load %arg3[%c0_17, %c1_18, %c0_19, %c0_20] : memref<3x2x128x64xbf16, #tpu.memory_space<vmem>>, vector<1x1x128x64xbf16>
      %18 = vector.shape_cast %17 : vector<1x1x128x64xbf16> to vector<128x64xbf16>
      %cst_21 = arith.constant dense<0.000000e+00> : vector<4x64xf32>
      %19 = tpu.matmul %16, %18, %cst_21 {dimension_numbers = #tpu.dot_dimension_numbers<[1], [0], [0], [1], [0, 0, 1, 1], [], []>} : vector<4x128xbf16>, vector<128x64xbf16>, vector<4x64xf32> -> vector<4x64xf32>
      %20 = arith.addf %11, %19 : vector<4x64xf32>
      %c2_i32_22 = arith.constant 2 : i32
      %21 = arith.muli %c2_i32_22, %arg6 : i32
      %c1_i32_23 = arith.constant 1 : i32
      %22 = arith.addi %21, %c1_i32_23 : i32
      %c0_24 = arith.constant 0 : index
      %c0_25 = arith.constant 0 : index
      %23 = arith.index_cast %22 : i32 to index
      %c0_26 = arith.constant 0 : index
      %c0_27 = arith.constant 0 : index
      %24 = vector.load %arg2[%c0_24, %c0_25, %23, %c0_26, %c0_27] : memref<1x1x9x5x128xbf16, #tpu.memory_space<vmem>>, vector<1x1x1x4x128xbf16>
      %25 = vector.shape_cast %24 : vector<1x1x1x4x128xbf16> to vector<4x128xbf16>
      %c1_28 = arith.constant 1 : index
      %c0_29 = arith.constant 0 : index
      %c0_30 = arith.constant 0 : index
      %c0_31 = arith.constant 0 : index
      %26 = vector.load %arg3[%c1_28, %c0_29, %c0_30, %c0_31] : memref<3x2x128x64xbf16, #tpu.memory_space<vmem>>, vector<1x1x128x64xbf16>
      %27 = vector.shape_cast %26 : vector<1x1x128x64xbf16> to vector<128x64xbf16>
      %cst_32 = arith.constant dense<0.000000e+00> : vector<4x64xf32>
      %28 = tpu.matmul %25, %27, %cst_32 {dimension_numbers = #tpu.dot_dimension_numbers<[1], [0], [0], [1], [0, 0, 1, 1], [], []>} : vector<4x128xbf16>, vector<128x64xbf16>, vector<4x64xf32> -> vector<4x64xf32>
      %29 = arith.addf %20, %28 : vector<4x64xf32>
      %c2_i32_33 = arith.constant 2 : i32
      %30 = arith.muli %c2_i32_33, %arg6 : i32
      %c1_i32_34 = arith.constant 1 : i32
      %31 = arith.addi %30, %c1_i32_34 : i32
      %c0_35 = arith.constant 0 : index
      %c0_36 = arith.constant 0 : index
      %32 = arith.index_cast %31 : i32 to index
      %c1_37 = arith.constant 1 : index
      %c0_38 = arith.constant 0 : index
      %33 = vector.load %arg2[%c0_35, %c0_36, %32, %c1_37, %c0_38] : memref<1x1x9x5x128xbf16, #tpu.memory_space<vmem>>, vector<1x1x1x4x128xbf16>
      %34 = vector.shape_cast %33 : vector<1x1x1x4x128xbf16> to vector<4x128xbf16>
      %c1_39 = arith.constant 1 : index
      %c1_40 = arith.constant 1 : index
      %c0_41 = arith.constant 0 : index
      %c0_42 = arith.constant 0 : index
      %35 = vector.load %arg3[%c1_39, %c1_40, %c0_41, %c0_42] : memref<3x2x128x64xbf16, #tpu.memory_space<vmem>>, vector<1x1x128x64xbf16>
      %36 = vector.shape_cast %35 : vector<1x1x128x64xbf16> to vector<128x64xbf16>
      %cst_43 = arith.constant dense<0.000000e+00> : vector<4x64xf32>
      %37 = tpu.matmul %34, %36, %cst_43 {dimension_numbers = #tpu.dot_dimension_numbers<[1], [0], [0], [1], [0, 0, 1, 1], [], []>} : vector<4x128xbf16>, vector<128x64xbf16>, vector<4x64xf32> -> vector<4x64xf32>
      %38 = arith.addf %29, %37 : vector<4x64xf32>
      %c2_i32_44 = arith.constant 2 : i32
      %39 = arith.muli %c2_i32_44, %arg6 : i32
      %c2_i32_45 = arith.constant 2 : i32
      %40 = arith.addi %39, %c2_i32_45 : i32
      %c0_46 = arith.constant 0 : index
      %c0_47 = arith.constant 0 : index
      %41 = arith.index_cast %40 : i32 to index
      %c0_48 = arith.constant 0 : index
      %c0_49 = arith.constant 0 : index
      %42 = vector.load %arg2[%c0_46, %c0_47, %41, %c0_48, %c0_49] : memref<1x1x9x5x128xbf16, #tpu.memory_space<vmem>>, vector<1x1x1x4x128xbf16>
      %43 = vector.shape_cast %42 : vector<1x1x1x4x128xbf16> to vector<4x128xbf16>
      %c2 = arith.constant 2 : index
      %c0_50 = arith.constant 0 : index
      %c0_51 = arith.constant 0 : index
      %c0_52 = arith.constant 0 : index
      %44 = vector.load %arg3[%c2, %c0_50, %c0_51, %c0_52] : memref<3x2x128x64xbf16, #tpu.memory_space<vmem>>, vector<1x1x128x64xbf16>
      %45 = vector.shape_cast %44 : vector<1x1x128x64xbf16> to vector<128x64xbf16>
      %cst_53 = arith.constant dense<0.000000e+00> : vector<4x64xf32>
      %46 = tpu.matmul %43, %45, %cst_53 {dimension_numbers = #tpu.dot_dimension_numbers<[1], [0], [0], [1], [0, 0, 1, 1], [], []>} : vector<4x128xbf16>, vector<128x64xbf16>, vector<4x64xf32> -> vector<4x64xf32>
      %47 = arith.addf %38, %46 : vector<4x64xf32>
      %c2_i32_54 = arith.constant 2 : i32
      %48 = arith.muli %c2_i32_54, %arg6 : i32
      %c2_i32_55 = arith.constant 2 : i32
      %49 = arith.addi %48, %c2_i32_55 : i32
      %c0_56 = arith.constant 0 : index
      %c0_57 = arith.constant 0 : index
      %50 = arith.index_cast %49 : i32 to index
      %c1_58 = arith.constant 1 : index
      %c0_59 = arith.constant 0 : index
      %51 = vector.load %arg2[%c0_56, %c0_57, %50, %c1_58, %c0_59] : memref<1x1x9x5x128xbf16, #tpu.memory_space<vmem>>, vector<1x1x1x4x128xbf16>
      %52 = vector.shape_cast %51 : vector<1x1x1x4x128xbf16> to vector<4x128xbf16>
      %c2_60 = arith.constant 2 : index
      %c1_61 = arith.constant 1 : index
      %c0_62 = arith.constant 0 : index
      %c0_63 = arith.constant 0 : index
      %53 = vector.load %arg3[%c2_60, %c1_61, %c0_62, %c0_63] : memref<3x2x128x64xbf16, #tpu.memory_space<vmem>>, vector<1x1x128x64xbf16>
      %54 = vector.shape_cast %53 : vector<1x1x128x64xbf16> to vector<128x64xbf16>
      %cst_64 = arith.constant dense<0.000000e+00> : vector<4x64xf32>
      %55 = tpu.matmul %52, %54, %cst_64 {dimension_numbers = #tpu.dot_dimension_numbers<[1], [0], [0], [1], [0, 0, 1, 1], [], []>} : vector<4x128xbf16>, vector<128x64xbf16>, vector<4x64xf32> -> vector<4x64xf32>
      %56 = arith.addf %47, %55 : vector<4x64xf32>
      %57 = vector.broadcast %0 : vector<1x64xf32> to vector<4x64xf32>
      %58 = arith.addf %56, %57 : vector<4x64xf32>
      %cst_65 = arith.constant 0.000000e+00 : f32
      %59 = vector.broadcast %cst_65 : f32 to vector<4x64xf32>
      %60 = arith.cmpf oge, %58, %59 : vector<4x64xf32>
      %cst_66 = arith.constant 1.000000e-01 : f32
      %61 = vector.broadcast %cst_66 : f32 to vector<4x64xf32>
      %62 = arith.mulf %61, %58 : vector<4x64xf32>
      %63 = arith.select %60, %58, %62 : vector<4x64xi1>, vector<4x64xf32>
      %64 = arith.truncf %63 : vector<4x64xf32> to vector<4x64xbf16>
      %c0_67 = arith.constant 0 : index
      %65 = arith.index_cast %arg6 : i32 to index
      %c0_68 = arith.constant 0 : index
      %c0_69 = arith.constant 0 : index
      %66 = vector.load %arg5[%c0_67, %65, %c0_68, %c0_69] : memref<1x4x4x64xbf16, #tpu.memory_space<vmem>>, vector<1x1x4x64xbf16>
      %67 = vector.shape_cast %66 : vector<1x1x4x64xbf16> to vector<4x64xbf16>
      %68 = vector.shape_cast %64 : vector<4x64xbf16> to vector<1x1x4x64xbf16>
      tpu.vector_store %arg5[%c0_67, %65, %c0_68, %c0_69], %68 {strides = array<i32>} : memref<1x4x4x64xbf16, #tpu.memory_space<vmem>>, vector<1x1x4x64xbf16>,
    }
    %c4_i32_1 = arith.constant 4 : i32
    return
  }
  func.func @transform_0(%arg0: i32, %arg1: i32) -> (i32, i32, i32, i32, i32) {
    %c0_i32 = arith.constant 0 : i32
    %c0_i32_0 = arith.constant 0 : i32
    %c0_i32_1 = arith.constant 0 : i32
    %c0_i32_2 = arith.constant 0 : i32
    return %arg0, %arg1, %c0_i32, %c0_i32_0, %c0_i32_1 : i32, i32, i32, i32, i32
  }
  func.func @transform_1(%arg0: i32, %arg1: i32) -> (i32, i32, i32, i32) {
    %c0_i32 = arith.constant 0 : i32
    %c0_i32_0 = arith.constant 0 : i32
    %c0_i32_1 = arith.constant 0 : i32
    %c0_i32_2 = arith.constant 0 : i32
    %c0_i32_3 = arith.constant 0 : i32
    return %c0_i32, %c0_i32_0, %c0_i32_1, %c0_i32_2 : i32, i32, i32, i32
  }
  func.func @transform_2(%arg0: i32, %arg1: i32) -> (i32, i32) {
    %c0_i32 = arith.constant 0 : i32
    %c0_i32_0 = arith.constant 0 : i32
    %c0_i32_1 = arith.constant 0 : i32
    return %c0_i32, %c0_i32_0 : i32, i32
  }
  func.func @transform_3(%arg0: i32, %arg1: i32) -> (i32, i32, i32, i32) {
    %c0_i32 = arith.constant 0 : i32
    %c0_i32_0 = arith.constant 0 : i32
    %c0_i32_1 = arith.constant 0 : i32
    return %arg0, %arg1, %c0_i32, %c0_i32_0 : i32, i32, i32, i32
  }
}

module attributes {stable_mosaic.version = 11 : i64} {
  func.func @_conv_rows_kernel(%arg0: i32, %arg1: i32, %arg2: memref<1x1x6x6x64xbf16, #tpu.memory_space<vmem>>, %arg3: memref<3x3x64x128xbf16, #tpu.memory_space<vmem>>, %arg4: memref<1x128xf32, #tpu.memory_space<vmem>>, %arg5: memref<1x4x4x128xbf16, #tpu.memory_space<vmem>>) attributes {dimension_semantics = [#tpu.dimension_semantics<parallel>, #tpu.dimension_semantics<parallel>], iteration_bounds = array<i64: 2, 1>, scalar_prefetch = 0 : i64, scratch_operands = 0 : i64, tpu.core_type = #tpu.core_type<tc>, window_params = [{transform_indices = @transform_0, window_bounds = array<i64: 1, 1, 6, 6, 64>}, {pipeline_mode = #tpu.pipeline_mode<synchronous>, transform_indices = @transform_1, window_bounds = array<i64: 3, 3, 64, 128>}, {pipeline_mode = #tpu.pipeline_mode<synchronous>, transform_indices = @transform_2, window_bounds = array<i64: 1, 128>}, {transform_indices = @transform_3, window_bounds = array<i64: 1, 4, 4, 128>}]} {
    %c0 = arith.constant 0 : index
    %c0_0 = arith.constant 0 : index
    %0 = vector.load %arg4[%c0, %c0_0] : memref<1x128xf32, #tpu.memory_space<vmem>>, vector<1x128xf32>
    %c0_i32 = arith.constant 0 : i32
    %c4_i32 = arith.constant 4 : i32
    %1 = arith.addi %c0_i32, %c4_i32 : i32
    %c1_i32 = arith.constant 1 : i32
    scf.for %arg6 = %c0_i32 to %1 step %c1_i32  : i32 {
      %cst = arith.constant 0.000000e+00 : f32
      %2 = vector.broadcast %cst : f32 to vector<4x128xf32>
      %c1_i32_2 = arith.constant 1 : i32
      %3 = arith.muli %c1_i32_2, %arg6 : i32
      %c0_i32_3 = arith.constant 0 : i32
      %4 = arith.addi %3, %c0_i32_3 : i32
      %c0_4 = arith.constant 0 : index
      %c0_5 = arith.constant 0 : index
      %5 = arith.index_cast %4 : i32 to index
      %c0_6 = arith.constant 0 : index
      %c0_7 = arith.constant 0 : index
      %6 = vector.load %arg2[%c0_4, %c0_5, %5, %c0_6, %c0_7] : memref<1x1x6x6x64xbf16, #tpu.memory_space<vmem>>, vector<1x1x1x4x64xbf16>
      %7 = vector.shape_cast %6 : vector<1x1x1x4x64xbf16> to vector<4x64xbf16>
      %c0_8 = arith.constant 0 : index
      %c0_9 = arith.constant 0 : index
      %c0_10 = arith.constant 0 : index
      %c0_11 = arith.constant 0 : index
      %8 = vector.load %arg3[%c0_8, %c0_9, %c0_10, %c0_11] : memref<3x3x64x128xbf16, #tpu.memory_space<vmem>>, vector<1x1x64x128xbf16>
      %9 = vector.shape_cast %8 : vector<1x1x64x128xbf16> to vector<64x128xbf16>
      %cst_12 = arith.constant dense<0.000000e+00> : vector<4x128xf32>
      %10 = tpu.matmul %7, %9, %cst_12 {dimension_numbers = #tpu.dot_dimension_numbers<[1], [0], [0], [1], [0, 0, 1, 1], [], []>} : vector<4x64xbf16>, vector<64x128xbf16>, vector<4x128xf32> -> vector<4x128xf32>
      %11 = arith.addf %2, %10 : vector<4x128xf32>
      %c1_i32_13 = arith.constant 1 : i32
      %12 = arith.muli %c1_i32_13, %arg6 : i32
      %c0_i32_14 = arith.constant 0 : i32
      %13 = arith.addi %12, %c0_i32_14 : i32
      %c0_15 = arith.constant 0 : index
      %c0_16 = arith.constant 0 : index
      %14 = arith.index_cast %13 : i32 to index
      %c1 = arith.constant 1 : index
      %c0_17 = arith.constant 0 : index
      %15 = vector.load %arg2[%c0_15, %c0_16, %14, %c1, %c0_17] : memref<1x1x6x6x64xbf16, #tpu.memory_space<vmem>>, vector<1x1x1x4x64xbf16>
      %16 = vector.shape_cast %15 : vector<1x1x1x4x64xbf16> to vector<4x64xbf16>
      %c0_18 = arith.constant 0 : index
      %c1_19 = arith.constant 1 : index
      %c0_20 = arith.constant 0 : index
      %c0_21 = arith.constant 0 : index
      %17 = vector.load %arg3[%c0_18, %c1_19, %c0_20, %c0_21] : memref<3x3x64x128xbf16, #tpu.memory_space<vmem>>, vector<1x1x64x128xbf16>
      %18 = vector.shape_cast %17 : vector<1x1x64x128xbf16> to vector<64x128xbf16>
      %cst_22 = arith.constant dense<0.000000e+00> : vector<4x128xf32>
      %19 = tpu.matmul %16, %18, %cst_22 {dimension_numbers = #tpu.dot_dimension_numbers<[1], [0], [0], [1], [0, 0, 1, 1], [], []>} : vector<4x64xbf16>, vector<64x128xbf16>, vector<4x128xf32> -> vector<4x128xf32>
      %20 = arith.addf %11, %19 : vector<4x128xf32>
      %c1_i32_23 = arith.constant 1 : i32
      %21 = arith.muli %c1_i32_23, %arg6 : i32
      %c0_i32_24 = arith.constant 0 : i32
      %22 = arith.addi %21, %c0_i32_24 : i32
      %c0_25 = arith.constant 0 : index
      %c0_26 = arith.constant 0 : index
      %23 = arith.index_cast %22 : i32 to index
      %c2 = arith.constant 2 : index
      %c0_27 = arith.constant 0 : index
      %24 = vector.load %arg2[%c0_25, %c0_26, %23, %c2, %c0_27] : memref<1x1x6x6x64xbf16, #tpu.memory_space<vmem>>, vector<1x1x1x4x64xbf16>
      %25 = vector.shape_cast %24 : vector<1x1x1x4x64xbf16> to vector<4x64xbf16>
      %c0_28 = arith.constant 0 : index
      %c2_29 = arith.constant 2 : index
      %c0_30 = arith.constant 0 : index
      %c0_31 = arith.constant 0 : index
      %26 = vector.load %arg3[%c0_28, %c2_29, %c0_30, %c0_31] : memref<3x3x64x128xbf16, #tpu.memory_space<vmem>>, vector<1x1x64x128xbf16>
      %27 = vector.shape_cast %26 : vector<1x1x64x128xbf16> to vector<64x128xbf16>
      %cst_32 = arith.constant dense<0.000000e+00> : vector<4x128xf32>
      %28 = tpu.matmul %25, %27, %cst_32 {dimension_numbers = #tpu.dot_dimension_numbers<[1], [0], [0], [1], [0, 0, 1, 1], [], []>} : vector<4x64xbf16>, vector<64x128xbf16>, vector<4x128xf32> -> vector<4x128xf32>
      %29 = arith.addf %20, %28 : vector<4x128xf32>
      %c1_i32_33 = arith.constant 1 : i32
      %30 = arith.muli %c1_i32_33, %arg6 : i32
      %c1_i32_34 = arith.constant 1 : i32
      %31 = arith.addi %30, %c1_i32_34 : i32
      %c0_35 = arith.constant 0 : index
      %c0_36 = arith.constant 0 : index
      %32 = arith.index_cast %31 : i32 to index
      %c0_37 = arith.constant 0 : index
      %c0_38 = arith.constant 0 : index
      %33 = vector.load %arg2[%c0_35, %c0_36, %32, %c0_37, %c0_38] : memref<1x1x6x6x64xbf16, #tpu.memory_space<vmem>>, vector<1x1x1x4x64xbf16>
      %34 = vector.shape_cast %33 : vector<1x1x1x4x64xbf16> to vector<4x64xbf16>
      %c1_39 = arith.constant 1 : index
      %c0_40 = arith.constant 0 : index
      %c0_41 = arith.constant 0 : index
      %c0_42 = arith.constant 0 : index
      %35 = vector.load %arg3[%c1_39, %c0_40, %c0_41, %c0_42] : memref<3x3x64x128xbf16, #tpu.memory_space<vmem>>, vector<1x1x64x128xbf16>
      %36 = vector.shape_cast %35 : vector<1x1x64x128xbf16> to vector<64x128xbf16>
      %cst_43 = arith.constant dense<0.000000e+00> : vector<4x128xf32>
      %37 = tpu.matmul %34, %36, %cst_43 {dimension_numbers = #tpu.dot_dimension_numbers<[1], [0], [0], [1], [0, 0, 1, 1], [], []>} : vector<4x64xbf16>, vector<64x128xbf16>, vector<4x128xf32> -> vector<4x128xf32>
      %38 = arith.addf %29, %37 : vector<4x128xf32>
      %c1_i32_44 = arith.constant 1 : i32
      %39 = arith.muli %c1_i32_44, %arg6 : i32
      %c1_i32_45 = arith.constant 1 : i32
      %40 = arith.addi %39, %c1_i32_45 : i32
      %c0_46 = arith.constant 0 : index
      %c0_47 = arith.constant 0 : index
      %41 = arith.index_cast %40 : i32 to index
      %c1_48 = arith.constant 1 : index
      %c0_49 = arith.constant 0 : index
      %42 = vector.load %arg2[%c0_46, %c0_47, %41, %c1_48, %c0_49] : memref<1x1x6x6x64xbf16, #tpu.memory_space<vmem>>, vector<1x1x1x4x64xbf16>
      %43 = vector.shape_cast %42 : vector<1x1x1x4x64xbf16> to vector<4x64xbf16>
      %c1_50 = arith.constant 1 : index
      %c1_51 = arith.constant 1 : index
      %c0_52 = arith.constant 0 : index
      %c0_53 = arith.constant 0 : index
      %44 = vector.load %arg3[%c1_50, %c1_51, %c0_52, %c0_53] : memref<3x3x64x128xbf16, #tpu.memory_space<vmem>>, vector<1x1x64x128xbf16>
      %45 = vector.shape_cast %44 : vector<1x1x64x128xbf16> to vector<64x128xbf16>
      %cst_54 = arith.constant dense<0.000000e+00> : vector<4x128xf32>
      %46 = tpu.matmul %43, %45, %cst_54 {dimension_numbers = #tpu.dot_dimension_numbers<[1], [0], [0], [1], [0, 0, 1, 1], [], []>} : vector<4x64xbf16>, vector<64x128xbf16>, vector<4x128xf32> -> vector<4x128xf32>
      %47 = arith.addf %38, %46 : vector<4x128xf32>
      %c1_i32_55 = arith.constant 1 : i32
      %48 = arith.muli %c1_i32_55, %arg6 : i32
      %c1_i32_56 = arith.constant 1 : i32
      %49 = arith.addi %48, %c1_i32_56 : i32
      %c0_57 = arith.constant 0 : index
      %c0_58 = arith.constant 0 : index
      %50 = arith.index_cast %49 : i32 to index
      %c2_59 = arith.constant 2 : index
      %c0_60 = arith.constant 0 : index
      %51 = vector.load %arg2[%c0_57, %c0_58, %50, %c2_59, %c0_60] : memref<1x1x6x6x64xbf16, #tpu.memory_space<vmem>>, vector<1x1x1x4x64xbf16>
      %52 = vector.shape_cast %51 : vector<1x1x1x4x64xbf16> to vector<4x64xbf16>
      %c1_61 = arith.constant 1 : index
      %c2_62 = arith.constant 2 : index
      %c0_63 = arith.constant 0 : index
      %c0_64 = arith.constant 0 : index
      %53 = vector.load %arg3[%c1_61, %c2_62, %c0_63, %c0_64] : memref<3x3x64x128xbf16, #tpu.memory_space<vmem>>, vector<1x1x64x128xbf16>
      %54 = vector.shape_cast %53 : vector<1x1x64x128xbf16> to vector<64x128xbf16>
      %cst_65 = arith.constant dense<0.000000e+00> : vector<4x128xf32>
      %55 = tpu.matmul %52, %54, %cst_65 {dimension_numbers = #tpu.dot_dimension_numbers<[1], [0], [0], [1], [0, 0, 1, 1], [], []>} : vector<4x64xbf16>, vector<64x128xbf16>, vector<4x128xf32> -> vector<4x128xf32>
      %56 = arith.addf %47, %55 : vector<4x128xf32>
      %c1_i32_66 = arith.constant 1 : i32
      %57 = arith.muli %c1_i32_66, %arg6 : i32
      %c2_i32 = arith.constant 2 : i32
      %58 = arith.addi %57, %c2_i32 : i32
      %c0_67 = arith.constant 0 : index
      %c0_68 = arith.constant 0 : index
      %59 = arith.index_cast %58 : i32 to index
      %c0_69 = arith.constant 0 : index
      %c0_70 = arith.constant 0 : index
      %60 = vector.load %arg2[%c0_67, %c0_68, %59, %c0_69, %c0_70] : memref<1x1x6x6x64xbf16, #tpu.memory_space<vmem>>, vector<1x1x1x4x64xbf16>
      %61 = vector.shape_cast %60 : vector<1x1x1x4x64xbf16> to vector<4x64xbf16>
      %c2_71 = arith.constant 2 : index
      %c0_72 = arith.constant 0 : index
      %c0_73 = arith.constant 0 : index
      %c0_74 = arith.constant 0 : index
      %62 = vector.load %arg3[%c2_71, %c0_72, %c0_73, %c0_74] : memref<3x3x64x128xbf16, #tpu.memory_space<vmem>>, vector<1x1x64x128xbf16>
      %63 = vector.shape_cast %62 : vector<1x1x64x128xbf16> to vector<64x128xbf16>
      %cst_75 = arith.constant dense<0.000000e+00> : vector<4x128xf32>
      %64 = tpu.matmul %61, %63, %cst_75 {dimension_numbers = #tpu.dot_dimension_numbers<[1], [0], [0], [1], [0, 0, 1, 1], [], []>} : vector<4x64xbf16>, vector<64x128xbf16>, vector<4x128xf32> -> vector<4x128xf32>
      %65 = arith.addf %56, %64 : vector<4x128xf32>
      %c1_i32_76 = arith.constant 1 : i32
      %66 = arith.muli %c1_i32_76, %arg6 : i32
      %c2_i32_77 = arith.constant 2 : i32
      %67 = arith.addi %66, %c2_i32_77 : i32
      %c0_78 = arith.constant 0 : index
      %c0_79 = arith.constant 0 : index
      %68 = arith.index_cast %67 : i32 to index
      %c1_80 = arith.constant 1 : index
      %c0_81 = arith.constant 0 : index
      %69 = vector.load %arg2[%c0_78, %c0_79, %68, %c1_80, %c0_81] : memref<1x1x6x6x64xbf16, #tpu.memory_space<vmem>>, vector<1x1x1x4x64xbf16>
      %70 = vector.shape_cast %69 : vector<1x1x1x4x64xbf16> to vector<4x64xbf16>
      %c2_82 = arith.constant 2 : index
      %c1_83 = arith.constant 1 : index
      %c0_84 = arith.constant 0 : index
      %c0_85 = arith.constant 0 : index
      %71 = vector.load %arg3[%c2_82, %c1_83, %c0_84, %c0_85] : memref<3x3x64x128xbf16, #tpu.memory_space<vmem>>, vector<1x1x64x128xbf16>
      %72 = vector.shape_cast %71 : vector<1x1x64x128xbf16> to vector<64x128xbf16>
      %cst_86 = arith.constant dense<0.000000e+00> : vector<4x128xf32>
      %73 = tpu.matmul %70, %72, %cst_86 {dimension_numbers = #tpu.dot_dimension_numbers<[1], [0], [0], [1], [0, 0, 1, 1], [], []>} : vector<4x64xbf16>, vector<64x128xbf16>, vector<4x128xf32> -> vector<4x128xf32>
      %74 = arith.addf %65, %73 : vector<4x128xf32>
      %c1_i32_87 = arith.constant 1 : i32
      %75 = arith.muli %c1_i32_87, %arg6 : i32
      %c2_i32_88 = arith.constant 2 : i32
      %76 = arith.addi %75, %c2_i32_88 : i32
      %c0_89 = arith.constant 0 : index
      %c0_90 = arith.constant 0 : index
      %77 = arith.index_cast %76 : i32 to index
      %c2_91 = arith.constant 2 : index
      %c0_92 = arith.constant 0 : index
      %78 = vector.load %arg2[%c0_89, %c0_90, %77, %c2_91, %c0_92] : memref<1x1x6x6x64xbf16, #tpu.memory_space<vmem>>, vector<1x1x1x4x64xbf16>
      %79 = vector.shape_cast %78 : vector<1x1x1x4x64xbf16> to vector<4x64xbf16>
      %c2_93 = arith.constant 2 : index
      %c2_94 = arith.constant 2 : index
      %c0_95 = arith.constant 0 : index
      %c0_96 = arith.constant 0 : index
      %80 = vector.load %arg3[%c2_93, %c2_94, %c0_95, %c0_96] : memref<3x3x64x128xbf16, #tpu.memory_space<vmem>>, vector<1x1x64x128xbf16>
      %81 = vector.shape_cast %80 : vector<1x1x64x128xbf16> to vector<64x128xbf16>
      %cst_97 = arith.constant dense<0.000000e+00> : vector<4x128xf32>
      %82 = tpu.matmul %79, %81, %cst_97 {dimension_numbers = #tpu.dot_dimension_numbers<[1], [0], [0], [1], [0, 0, 1, 1], [], []>} : vector<4x64xbf16>, vector<64x128xbf16>, vector<4x128xf32> -> vector<4x128xf32>
      %83 = arith.addf %74, %82 : vector<4x128xf32>
      %84 = vector.broadcast %0 : vector<1x128xf32> to vector<4x128xf32>
      %85 = arith.addf %83, %84 : vector<4x128xf32>
      %cst_98 = arith.constant 0.000000e+00 : f32
      %86 = vector.broadcast %cst_98 : f32 to vector<4x128xf32>
      %87 = arith.cmpf oge, %85, %86 : vector<4x128xf32>
      %cst_99 = arith.constant 1.000000e-01 : f32
      %88 = vector.broadcast %cst_99 : f32 to vector<4x128xf32>
      %89 = arith.mulf %88, %85 : vector<4x128xf32>
      %90 = arith.select %87, %85, %89 : vector<4x128xi1>, vector<4x128xf32>
      %91 = arith.truncf %90 : vector<4x128xf32> to vector<4x128xbf16>
      %c0_100 = arith.constant 0 : index
      %92 = arith.index_cast %arg6 : i32 to index
      %c0_101 = arith.constant 0 : index
      %c0_102 = arith.constant 0 : index
      %93 = vector.load %arg5[%c0_100, %92, %c0_101, %c0_102] : memref<1x4x4x128xbf16, #tpu.memory_space<vmem>>, vector<1x1x4x128xbf16>
      %94 = vector.shape_cast %93 : vector<1x1x4x128xbf16> to vector<4x128xbf16>
      %95 = vector.shape_cast %91 : vector<4x128xbf16> to vector<1x1x4x128xbf16>
      tpu.vector_store %arg5[%c0_100, %92, %c0_101, %c0_102], %95 {strides = array<i32>} : memref<1x4x4x128xbf16, #tpu.memory_space<vmem>>, vector<1x1x4x128xbf16>,
    }
    %c4_i32_1 = arith.constant 4 : i32
    return
  }
  func.func @transform_0(%arg0: i32, %arg1: i32) -> (i32, i32, i32, i32, i32) {
    %c0_i32 = arith.constant 0 : i32
    %c0_i32_0 = arith.constant 0 : i32
    %c0_i32_1 = arith.constant 0 : i32
    %c0_i32_2 = arith.constant 0 : i32
    return %arg0, %arg1, %c0_i32, %c0_i32_0, %c0_i32_1 : i32, i32, i32, i32, i32
  }
  func.func @transform_1(%arg0: i32, %arg1: i32) -> (i32, i32, i32, i32) {
    %c0_i32 = arith.constant 0 : i32
    %c0_i32_0 = arith.constant 0 : i32
    %c0_i32_1 = arith.constant 0 : i32
    %c0_i32_2 = arith.constant 0 : i32
    %c0_i32_3 = arith.constant 0 : i32
    return %c0_i32, %c0_i32_0, %c0_i32_1, %c0_i32_2 : i32, i32, i32, i32
  }
  func.func @transform_2(%arg0: i32, %arg1: i32) -> (i32, i32) {
    %c0_i32 = arith.constant 0 : i32
    %c0_i32_0 = arith.constant 0 : i32
    %c0_i32_1 = arith.constant 0 : i32
    return %c0_i32, %c0_i32_0 : i32, i32
  }
  func.func @transform_3(%arg0: i32, %arg1: i32) -> (i32, i32, i32, i32) {
    %c0_i32 = arith.constant 0 : i32
    %c0_i32_0 = arith.constant 0 : i32
    %c0_i32_1 = arith.constant 0 : i32
    return %arg0, %arg1, %c0_i32, %c0_i32_0 : i32, i32, i32, i32
  }
}

module attributes {stable_mosaic.version = 11 : i64} {
  func.func @_conv_rows_kernel(%arg0: i32, %arg1: i32, %arg2: memref<1x1x6x6x128xbf16, #tpu.memory_space<vmem>>, %arg3: memref<3x3x128x128xbf16, #tpu.memory_space<vmem>>, %arg4: memref<1x128xf32, #tpu.memory_space<vmem>>, %arg5: memref<1x2x2x128xbf16, #tpu.memory_space<vmem>>) attributes {dimension_semantics = [#tpu.dimension_semantics<parallel>, #tpu.dimension_semantics<parallel>], iteration_bounds = array<i64: 2, 1>, scalar_prefetch = 0 : i64, scratch_operands = 0 : i64, tpu.core_type = #tpu.core_type<tc>, window_params = [{transform_indices = @transform_0, window_bounds = array<i64: 1, 1, 6, 6, 128>}, {pipeline_mode = #tpu.pipeline_mode<synchronous>, transform_indices = @transform_1, window_bounds = array<i64: 3, 3, 128, 128>}, {pipeline_mode = #tpu.pipeline_mode<synchronous>, transform_indices = @transform_2, window_bounds = array<i64: 1, 128>}, {transform_indices = @transform_3, window_bounds = array<i64: 1, 2, 2, 128>}]} {
    %c0 = arith.constant 0 : index
    %c0_0 = arith.constant 0 : index
    %0 = vector.load %arg4[%c0, %c0_0] : memref<1x128xf32, #tpu.memory_space<vmem>>, vector<1x128xf32>
    %c0_i32 = arith.constant 0 : i32
    %c2_i32 = arith.constant 2 : i32
    %1 = arith.addi %c0_i32, %c2_i32 : i32
    %c1_i32 = arith.constant 1 : i32
    scf.for %arg6 = %c0_i32 to %1 step %c1_i32  : i32 {
      %cst = arith.constant 0.000000e+00 : f32
      %2 = vector.broadcast %cst : f32 to vector<2x128xf32>
      %c1_i32_2 = arith.constant 1 : i32
      %3 = arith.muli %c1_i32_2, %arg6 : i32
      %c0_i32_3 = arith.constant 0 : i32
      %4 = arith.addi %3, %c0_i32_3 : i32
      %c0_4 = arith.constant 0 : index
      %c0_5 = arith.constant 0 : index
      %5 = arith.index_cast %4 : i32 to index
      %c0_6 = arith.constant 0 : index
      %c0_7 = arith.constant 0 : index
      %6 = vector.load %arg2[%c0_4, %c0_5, %5, %c0_6, %c0_7] : memref<1x1x6x6x128xbf16, #tpu.memory_space<vmem>>, vector<1x1x1x2x128xbf16>
      %7 = vector.shape_cast %6 : vector<1x1x1x2x128xbf16> to vector<2x128xbf16>
      %c0_8 = arith.constant 0 : index
      %c0_9 = arith.constant 0 : index
      %c0_10 = arith.constant 0 : index
      %c0_11 = arith.constant 0 : index
      %8 = vector.load %arg3[%c0_8, %c0_9, %c0_10, %c0_11] : memref<3x3x128x128xbf16, #tpu.memory_space<vmem>>, vector<1x1x128x128xbf16>
      %9 = vector.shape_cast %8 : vector<1x1x128x128xbf16> to vector<128x128xbf16>
      %cst_12 = arith.constant dense<0.000000e+00> : vector<2x128xf32>
      %10 = tpu.matmul %7, %9, %cst_12 {dimension_numbers = #tpu.dot_dimension_numbers<[1], [0], [0], [1], [0, 0, 1, 1], [], []>} : vector<2x128xbf16>, vector<128x128xbf16>, vector<2x128xf32> -> vector<2x128xf32>
      %11 = arith.addf %2, %10 : vector<2x128xf32>
      %c1_i32_13 = arith.constant 1 : i32
      %12 = arith.muli %c1_i32_13, %arg6 : i32
      %c0_i32_14 = arith.constant 0 : i32
      %13 = arith.addi %12, %c0_i32_14 : i32
      %c0_15 = arith.constant 0 : index
      %c0_16 = arith.constant 0 : index
      %14 = arith.index_cast %13 : i32 to index
      %c2 = arith.constant 2 : index
      %c0_17 = arith.constant 0 : index
      %15 = vector.load %arg2[%c0_15, %c0_16, %14, %c2, %c0_17] : memref<1x1x6x6x128xbf16, #tpu.memory_space<vmem>>, vector<1x1x1x2x128xbf16>
      %16 = vector.shape_cast %15 : vector<1x1x1x2x128xbf16> to vector<2x128xbf16>
      %c0_18 = arith.constant 0 : index
      %c1 = arith.constant 1 : index
      %c0_19 = arith.constant 0 : index
      %c0_20 = arith.constant 0 : index
      %17 = vector.load %arg3[%c0_18, %c1, %c0_19, %c0_20] : memref<3x3x128x128xbf16, #tpu.memory_space<vmem>>, vector<1x1x128x128xbf16>
      %18 = vector.shape_cast %17 : vector<1x1x128x128xbf16> to vector<128x128xbf16>
      %cst_21 = arith.constant dense<0.000000e+00> : vector<2x128xf32>
      %19 = tpu.matmul %16, %18, %cst_21 {dimension_numbers = #tpu.dot_dimension_numbers<[1], [0], [0], [1], [0, 0, 1, 1], [], []>} : vector<2x128xbf16>, vector<128x128xbf16>, vector<2x128xf32> -> vector<2x128xf32>
      %20 = arith.addf %11, %19 : vector<2x128xf32>
      %c1_i32_22 = arith.constant 1 : i32
      %21 = arith.muli %c1_i32_22, %arg6 : i32
      %c0_i32_23 = arith.constant 0 : i32
      %22 = arith.addi %21, %c0_i32_23 : i32
      %c0_24 = arith.constant 0 : index
      %c0_25 = arith.constant 0 : index
      %23 = arith.index_cast %22 : i32 to index
      %c4 = arith.constant 4 : index
      %c0_26 = arith.constant 0 : index
      %24 = vector.load %arg2[%c0_24, %c0_25, %23, %c4, %c0_26] : memref<1x1x6x6x128xbf16, #tpu.memory_space<vmem>>, vector<1x1x1x2x128xbf16>
      %25 = vector.shape_cast %24 : vector<1x1x1x2x128xbf16> to vector<2x128xbf16>
      %c0_27 = arith.constant 0 : index
      %c2_28 = arith.constant 2 : index
      %c0_29 = arith.constant 0 : index
      %c0_30 = arith.constant 0 : index
      %26 = vector.load %arg3[%c0_27, %c2_28, %c0_29, %c0_30] : memref<3x3x128x128xbf16, #tpu.memory_space<vmem>>, vector<1x1x128x128xbf16>
      %27 = vector.shape_cast %26 : vector<1x1x128x128xbf16> to vector<128x128xbf16>
      %cst_31 = arith.constant dense<0.000000e+00> : vector<2x128xf32>
      %28 = tpu.matmul %25, %27, %cst_31 {dimension_numbers = #tpu.dot_dimension_numbers<[1], [0], [0], [1], [0, 0, 1, 1], [], []>} : vector<2x128xbf16>, vector<128x128xbf16>, vector<2x128xf32> -> vector<2x128xf32>
      %29 = arith.addf %20, %28 : vector<2x128xf32>
      %c1_i32_32 = arith.constant 1 : i32
      %30 = arith.muli %c1_i32_32, %arg6 : i32
      %c2_i32_33 = arith.constant 2 : i32
      %31 = arith.addi %30, %c2_i32_33 : i32
      %c0_34 = arith.constant 0 : index
      %c0_35 = arith.constant 0 : index
      %32 = arith.index_cast %31 : i32 to index
      %c0_36 = arith.constant 0 : index
      %c0_37 = arith.constant 0 : index
      %33 = vector.load %arg2[%c0_34, %c0_35, %32, %c0_36, %c0_37] : memref<1x1x6x6x128xbf16, #tpu.memory_space<vmem>>, vector<1x1x1x2x128xbf16>
      %34 = vector.shape_cast %33 : vector<1x1x1x2x128xbf16> to vector<2x128xbf16>
      %c1_38 = arith.constant 1 : index
      %c0_39 = arith.constant 0 : index
      %c0_40 = arith.constant 0 : index
      %c0_41 = arith.constant 0 : index
      %35 = vector.load %arg3[%c1_38, %c0_39, %c0_40, %c0_41] : memref<3x3x128x128xbf16, #tpu.memory_space<vmem>>, vector<1x1x128x128xbf16>
      %36 = vector.shape_cast %35 : vector<1x1x128x128xbf16> to vector<128x128xbf16>
      %cst_42 = arith.constant dense<0.000000e+00> : vector<2x128xf32>
      %37 = tpu.matmul %34, %36, %cst_42 {dimension_numbers = #tpu.dot_dimension_numbers<[1], [0], [0], [1], [0, 0, 1, 1], [], []>} : vector<2x128xbf16>, vector<128x128xbf16>, vector<2x128xf32> -> vector<2x128xf32>
      %38 = arith.addf %29, %37 : vector<2x128xf32>
      %c1_i32_43 = arith.constant 1 : i32
      %39 = arith.muli %c1_i32_43, %arg6 : i32
      %c2_i32_44 = arith.constant 2 : i32
      %40 = arith.addi %39, %c2_i32_44 : i32
      %c0_45 = arith.constant 0 : index
      %c0_46 = arith.constant 0 : index
      %41 = arith.index_cast %40 : i32 to index
      %c2_47 = arith.constant 2 : index
      %c0_48 = arith.constant 0 : index
      %42 = vector.load %arg2[%c0_45, %c0_46, %41, %c2_47, %c0_48] : memref<1x1x6x6x128xbf16, #tpu.memory_space<vmem>>, vector<1x1x1x2x128xbf16>
      %43 = vector.shape_cast %42 : vector<1x1x1x2x128xbf16> to vector<2x128xbf16>
      %c1_49 = arith.constant 1 : index
      %c1_50 = arith.constant 1 : index
      %c0_51 = arith.constant 0 : index
      %c0_52 = arith.constant 0 : index
      %44 = vector.load %arg3[%c1_49, %c1_50, %c0_51, %c0_52] : memref<3x3x128x128xbf16, #tpu.memory_space<vmem>>, vector<1x1x128x128xbf16>
      %45 = vector.shape_cast %44 : vector<1x1x128x128xbf16> to vector<128x128xbf16>
      %cst_53 = arith.constant dense<0.000000e+00> : vector<2x128xf32>
      %46 = tpu.matmul %43, %45, %cst_53 {dimension_numbers = #tpu.dot_dimension_numbers<[1], [0], [0], [1], [0, 0, 1, 1], [], []>} : vector<2x128xbf16>, vector<128x128xbf16>, vector<2x128xf32> -> vector<2x128xf32>
      %47 = arith.addf %38, %46 : vector<2x128xf32>
      %c1_i32_54 = arith.constant 1 : i32
      %48 = arith.muli %c1_i32_54, %arg6 : i32
      %c2_i32_55 = arith.constant 2 : i32
      %49 = arith.addi %48, %c2_i32_55 : i32
      %c0_56 = arith.constant 0 : index
      %c0_57 = arith.constant 0 : index
      %50 = arith.index_cast %49 : i32 to index
      %c4_58 = arith.constant 4 : index
      %c0_59 = arith.constant 0 : index
      %51 = vector.load %arg2[%c0_56, %c0_57, %50, %c4_58, %c0_59] : memref<1x1x6x6x128xbf16, #tpu.memory_space<vmem>>, vector<1x1x1x2x128xbf16>
      %52 = vector.shape_cast %51 : vector<1x1x1x2x128xbf16> to vector<2x128xbf16>
      %c1_60 = arith.constant 1 : index
      %c2_61 = arith.constant 2 : index
      %c0_62 = arith.constant 0 : index
      %c0_63 = arith.constant 0 : index
      %53 = vector.load %arg3[%c1_60, %c2_61, %c0_62, %c0_63] : memref<3x3x128x128xbf16, #tpu.memory_space<vmem>>, vector<1x1x128x128xbf16>
      %54 = vector.shape_cast %53 : vector<1x1x128x128xbf16> to vector<128x128xbf16>
      %cst_64 = arith.constant dense<0.000000e+00> : vector<2x128xf32>
      %55 = tpu.matmul %52, %54, %cst_64 {dimension_numbers = #tpu.dot_dimension_numbers<[1], [0], [0], [1], [0, 0, 1, 1], [], []>} : vector<2x128xbf16>, vector<128x128xbf16>, vector<2x128xf32> -> vector<2x128xf32>
      %56 = arith.addf %47, %55 : vector<2x128xf32>
      %c1_i32_65 = arith.constant 1 : i32
      %57 = arith.muli %c1_i32_65, %arg6 : i32
      %c4_i32 = arith.constant 4 : i32
      %58 = arith.addi %57, %c4_i32 : i32
      %c0_66 = arith.constant 0 : index
      %c0_67 = arith.constant 0 : index
      %59 = arith.index_cast %58 : i32 to index
      %c0_68 = arith.constant 0 : index
      %c0_69 = arith.constant 0 : index
      %60 = vector.load %arg2[%c0_66, %c0_67, %59, %c0_68, %c0_69] : memref<1x1x6x6x128xbf16, #tpu.memory_space<vmem>>, vector<1x1x1x2x128xbf16>
      %61 = vector.shape_cast %60 : vector<1x1x1x2x128xbf16> to vector<2x128xbf16>
      %c2_70 = arith.constant 2 : index
      %c0_71 = arith.constant 0 : index
      %c0_72 = arith.constant 0 : index
      %c0_73 = arith.constant 0 : index
      %62 = vector.load %arg3[%c2_70, %c0_71, %c0_72, %c0_73] : memref<3x3x128x128xbf16, #tpu.memory_space<vmem>>, vector<1x1x128x128xbf16>
      %63 = vector.shape_cast %62 : vector<1x1x128x128xbf16> to vector<128x128xbf16>
      %cst_74 = arith.constant dense<0.000000e+00> : vector<2x128xf32>
      %64 = tpu.matmul %61, %63, %cst_74 {dimension_numbers = #tpu.dot_dimension_numbers<[1], [0], [0], [1], [0, 0, 1, 1], [], []>} : vector<2x128xbf16>, vector<128x128xbf16>, vector<2x128xf32> -> vector<2x128xf32>
      %65 = arith.addf %56, %64 : vector<2x128xf32>
      %c1_i32_75 = arith.constant 1 : i32
      %66 = arith.muli %c1_i32_75, %arg6 : i32
      %c4_i32_76 = arith.constant 4 : i32
      %67 = arith.addi %66, %c4_i32_76 : i32
      %c0_77 = arith.constant 0 : index
      %c0_78 = arith.constant 0 : index
      %68 = arith.index_cast %67 : i32 to index
      %c2_79 = arith.constant 2 : index
      %c0_80 = arith.constant 0 : index
      %69 = vector.load %arg2[%c0_77, %c0_78, %68, %c2_79, %c0_80] : memref<1x1x6x6x128xbf16, #tpu.memory_space<vmem>>, vector<1x1x1x2x128xbf16>
      %70 = vector.shape_cast %69 : vector<1x1x1x2x128xbf16> to vector<2x128xbf16>
      %c2_81 = arith.constant 2 : index
      %c1_82 = arith.constant 1 : index
      %c0_83 = arith.constant 0 : index
      %c0_84 = arith.constant 0 : index
      %71 = vector.load %arg3[%c2_81, %c1_82, %c0_83, %c0_84] : memref<3x3x128x128xbf16, #tpu.memory_space<vmem>>, vector<1x1x128x128xbf16>
      %72 = vector.shape_cast %71 : vector<1x1x128x128xbf16> to vector<128x128xbf16>
      %cst_85 = arith.constant dense<0.000000e+00> : vector<2x128xf32>
      %73 = tpu.matmul %70, %72, %cst_85 {dimension_numbers = #tpu.dot_dimension_numbers<[1], [0], [0], [1], [0, 0, 1, 1], [], []>} : vector<2x128xbf16>, vector<128x128xbf16>, vector<2x128xf32> -> vector<2x128xf32>
      %74 = arith.addf %65, %73 : vector<2x128xf32>
      %c1_i32_86 = arith.constant 1 : i32
      %75 = arith.muli %c1_i32_86, %arg6 : i32
      %c4_i32_87 = arith.constant 4 : i32
      %76 = arith.addi %75, %c4_i32_87 : i32
      %c0_88 = arith.constant 0 : index
      %c0_89 = arith.constant 0 : index
      %77 = arith.index_cast %76 : i32 to index
      %c4_90 = arith.constant 4 : index
      %c0_91 = arith.constant 0 : index
      %78 = vector.load %arg2[%c0_88, %c0_89, %77, %c4_90, %c0_91] : memref<1x1x6x6x128xbf16, #tpu.memory_space<vmem>>, vector<1x1x1x2x128xbf16>
      %79 = vector.shape_cast %78 : vector<1x1x1x2x128xbf16> to vector<2x128xbf16>
      %c2_92 = arith.constant 2 : index
      %c2_93 = arith.constant 2 : index
      %c0_94 = arith.constant 0 : index
      %c0_95 = arith.constant 0 : index
      %80 = vector.load %arg3[%c2_92, %c2_93, %c0_94, %c0_95] : memref<3x3x128x128xbf16, #tpu.memory_space<vmem>>, vector<1x1x128x128xbf16>
      %81 = vector.shape_cast %80 : vector<1x1x128x128xbf16> to vector<128x128xbf16>
      %cst_96 = arith.constant dense<0.000000e+00> : vector<2x128xf32>
      %82 = tpu.matmul %79, %81, %cst_96 {dimension_numbers = #tpu.dot_dimension_numbers<[1], [0], [0], [1], [0, 0, 1, 1], [], []>} : vector<2x128xbf16>, vector<128x128xbf16>, vector<2x128xf32> -> vector<2x128xf32>
      %83 = arith.addf %74, %82 : vector<2x128xf32>
      %84 = vector.broadcast %0 : vector<1x128xf32> to vector<2x128xf32>
      %85 = arith.addf %83, %84 : vector<2x128xf32>
      %cst_97 = arith.constant 0.000000e+00 : f32
      %86 = vector.broadcast %cst_97 : f32 to vector<2x128xf32>
      %87 = arith.cmpf oge, %85, %86 : vector<2x128xf32>
      %cst_98 = arith.constant 1.000000e-01 : f32
      %88 = vector.broadcast %cst_98 : f32 to vector<2x128xf32>
      %89 = arith.mulf %88, %85 : vector<2x128xf32>
      %90 = arith.select %87, %85, %89 : vector<2x128xi1>, vector<2x128xf32>
      %91 = arith.truncf %90 : vector<2x128xf32> to vector<2x128xbf16>
      %c0_99 = arith.constant 0 : index
      %92 = arith.index_cast %arg6 : i32 to index
      %c0_100 = arith.constant 0 : index
      %c0_101 = arith.constant 0 : index
      %93 = vector.load %arg5[%c0_99, %92, %c0_100, %c0_101] : memref<1x2x2x128xbf16, #tpu.memory_space<vmem>>, vector<1x1x2x128xbf16>
      %94 = vector.shape_cast %93 : vector<1x1x2x128xbf16> to vector<2x128xbf16>
      %95 = vector.shape_cast %91 : vector<2x128xbf16> to vector<1x1x2x128xbf16>
      tpu.vector_store %arg5[%c0_99, %92, %c0_100, %c0_101], %95 {strides = array<i32>} : memref<1x2x2x128xbf16, #tpu.memory_space<vmem>>, vector<1x1x2x128xbf16>,
    }
    %c2_i32_1 = arith.constant 2 : i32
    return
  }
  func.func @transform_0(%arg0: i32, %arg1: i32) -> (i32, i32, i32, i32, i32) {
    %c0_i32 = arith.constant 0 : i32
    %c0_i32_0 = arith.constant 0 : i32
    %c0_i32_1 = arith.constant 0 : i32
    %c0_i32_2 = arith.constant 0 : i32
    return %arg0, %arg1, %c0_i32, %c0_i32_0, %c0_i32_1 : i32, i32, i32, i32, i32
  }
  func.func @transform_1(%arg0: i32, %arg1: i32) -> (i32, i32, i32, i32) {
    %c0_i32 = arith.constant 0 : i32
    %c0_i32_0 = arith.constant 0 : i32
    %c0_i32_1 = arith.constant 0 : i32
    %c0_i32_2 = arith.constant 0 : i32
    %c0_i32_3 = arith.constant 0 : i32
    return %c0_i32, %c0_i32_0, %c0_i32_1, %c0_i32_2 : i32, i32, i32, i32
  }
  func.func @transform_2(%arg0: i32, %arg1: i32) -> (i32, i32) {
    %c0_i32 = arith.constant 0 : i32
    %c0_i32_0 = arith.constant 0 : i32
    %c0_i32_1 = arith.constant 0 : i32
    return %c0_i32, %c0_i32_0 : i32, i32
  }
  func.func @transform_3(%arg0: i32, %arg1: i32) -> (i32, i32, i32, i32) {
    %c0_i32 = arith.constant 0 : i32
    %c0_i32_0 = arith.constant 0 : i32
    %c0_i32_1 = arith.constant 0 : i32
    return %arg0, %arg1, %c0_i32, %c0_i32_0 : i32, i32, i32, i32
  }
}

module attributes {stable_mosaic.version = 11 : i64} {
  func.func @_conv_rows_kernel(%arg0: i32, %arg1: i32, %arg2: memref<1x1x5x3x256xbf16, #tpu.memory_space<vmem>>, %arg3: memref<3x2x256x128xbf16, #tpu.memory_space<vmem>>, %arg4: memref<1x128xf32, #tpu.memory_space<vmem>>, %arg5: memref<1x2x2x128xbf16, #tpu.memory_space<vmem>>) attributes {dimension_semantics = [#tpu.dimension_semantics<parallel>, #tpu.dimension_semantics<parallel>], iteration_bounds = array<i64: 2, 1>, scalar_prefetch = 0 : i64, scratch_operands = 0 : i64, tpu.core_type = #tpu.core_type<tc>, window_params = [{transform_indices = @transform_0, window_bounds = array<i64: 1, 1, 5, 3, 256>}, {pipeline_mode = #tpu.pipeline_mode<synchronous>, transform_indices = @transform_1, window_bounds = array<i64: 3, 2, 256, 128>}, {pipeline_mode = #tpu.pipeline_mode<synchronous>, transform_indices = @transform_2, window_bounds = array<i64: 1, 128>}, {transform_indices = @transform_3, window_bounds = array<i64: 1, 2, 2, 128>}]} {
    %c0 = arith.constant 0 : index
    %c0_0 = arith.constant 0 : index
    %0 = vector.load %arg4[%c0, %c0_0] : memref<1x128xf32, #tpu.memory_space<vmem>>, vector<1x128xf32>
    %c0_i32 = arith.constant 0 : i32
    %c2_i32 = arith.constant 2 : i32
    %1 = arith.addi %c0_i32, %c2_i32 : i32
    %c1_i32 = arith.constant 1 : i32
    scf.for %arg6 = %c0_i32 to %1 step %c1_i32  : i32 {
      %cst = arith.constant 0.000000e+00 : f32
      %2 = vector.broadcast %cst : f32 to vector<2x128xf32>
      %c2_i32_2 = arith.constant 2 : i32
      %3 = arith.muli %c2_i32_2, %arg6 : i32
      %c0_i32_3 = arith.constant 0 : i32
      %4 = arith.addi %3, %c0_i32_3 : i32
      %c0_4 = arith.constant 0 : index
      %c0_5 = arith.constant 0 : index
      %5 = arith.index_cast %4 : i32 to index
      %c0_6 = arith.constant 0 : index
      %c0_7 = arith.constant 0 : index
      %6 = vector.load %arg2[%c0_4, %c0_5, %5, %c0_6, %c0_7] : memref<1x1x5x3x256xbf16, #tpu.memory_space<vmem>>, vector<1x1x1x2x256xbf16>
      %7 = vector.shape_cast %6 : vector<1x1x1x2x256xbf16> to vector<2x256xbf16>
      %c0_8 = arith.constant 0 : index
      %c0_9 = arith.constant 0 : index
      %c0_10 = arith.constant 0 : index
      %c0_11 = arith.constant 0 : index
      %8 = vector.load %arg3[%c0_8, %c0_9, %c0_10, %c0_11] : memref<3x2x256x128xbf16, #tpu.memory_space<vmem>>, vector<1x1x256x128xbf16>
      %9 = vector.shape_cast %8 : vector<1x1x256x128xbf16> to vector<256x128xbf16>
      %cst_12 = arith.constant dense<0.000000e+00> : vector<2x128xf32>
      %10 = tpu.matmul %7, %9, %cst_12 {dimension_numbers = #tpu.dot_dimension_numbers<[1], [0], [0], [1], [0, 0, 1, 1], [], []>} : vector<2x256xbf16>, vector<256x128xbf16>, vector<2x128xf32> -> vector<2x128xf32>
      %11 = arith.addf %2, %10 : vector<2x128xf32>
      %c2_i32_13 = arith.constant 2 : i32
      %12 = arith.muli %c2_i32_13, %arg6 : i32
      %c0_i32_14 = arith.constant 0 : i32
      %13 = arith.addi %12, %c0_i32_14 : i32
      %c0_15 = arith.constant 0 : index
      %c0_16 = arith.constant 0 : index
      %14 = arith.index_cast %13 : i32 to index
      %c1 = arith.constant 1 : index
      %c0_17 = arith.constant 0 : index
      %15 = vector.load %arg2[%c0_15, %c0_16, %14, %c1, %c0_17] : memref<1x1x5x3x256xbf16, #tpu.memory_space<vmem>>, vector<1x1x1x2x256xbf16>
      %16 = vector.shape_cast %15 : vector<1x1x1x2x256xbf16> to vector<2x256xbf16>
      %c0_18 = arith.constant 0 : index
      %c1_19 = arith.constant 1 : index
      %c0_20 = arith.constant 0 : index
      %c0_21 = arith.constant 0 : index
      %17 = vector.load %arg3[%c0_18, %c1_19, %c0_20, %c0_21] : memref<3x2x256x128xbf16, #tpu.memory_space<vmem>>, vector<1x1x256x128xbf16>
      %18 = vector.shape_cast %17 : vector<1x1x256x128xbf16> to vector<256x128xbf16>
      %cst_22 = arith.constant dense<0.000000e+00> : vector<2x128xf32>
      %19 = tpu.matmul %16, %18, %cst_22 {dimension_numbers = #tpu.dot_dimension_numbers<[1], [0], [0], [1], [0, 0, 1, 1], [], []>} : vector<2x256xbf16>, vector<256x128xbf16>, vector<2x128xf32> -> vector<2x128xf32>
      %20 = arith.addf %11, %19 : vector<2x128xf32>
      %c2_i32_23 = arith.constant 2 : i32
      %21 = arith.muli %c2_i32_23, %arg6 : i32
      %c1_i32_24 = arith.constant 1 : i32
      %22 = arith.addi %21, %c1_i32_24 : i32
      %c0_25 = arith.constant 0 : index
      %c0_26 = arith.constant 0 : index
      %23 = arith.index_cast %22 : i32 to index
      %c0_27 = arith.constant 0 : index
      %c0_28 = arith.constant 0 : index
      %24 = vector.load %arg2[%c0_25, %c0_26, %23, %c0_27, %c0_28] : memref<1x1x5x3x256xbf16, #tpu.memory_space<vmem>>, vector<1x1x1x2x256xbf16>
      %25 = vector.shape_cast %24 : vector<1x1x1x2x256xbf16> to vector<2x256xbf16>
      %c1_29 = arith.constant 1 : index
      %c0_30 = arith.constant 0 : index
      %c0_31 = arith.constant 0 : index
      %c0_32 = arith.constant 0 : index
      %26 = vector.load %arg3[%c1_29, %c0_30, %c0_31, %c0_32] : memref<3x2x256x128xbf16, #tpu.memory_space<vmem>>, vector<1x1x256x128xbf16>
      %27 = vector.shape_cast %26 : vector<1x1x256x128xbf16> to vector<256x128xbf16>
      %cst_33 = arith.constant dense<0.000000e+00> : vector<2x128xf32>
      %28 = tpu.matmul %25, %27, %cst_33 {dimension_numbers = #tpu.dot_dimension_numbers<[1], [0], [0], [1], [0, 0, 1, 1], [], []>} : vector<2x256xbf16>, vector<256x128xbf16>, vector<2x128xf32> -> vector<2x128xf32>
      %29 = arith.addf %20, %28 : vector<2x128xf32>
      %c2_i32_34 = arith.constant 2 : i32
      %30 = arith.muli %c2_i32_34, %arg6 : i32
      %c1_i32_35 = arith.constant 1 : i32
      %31 = arith.addi %30, %c1_i32_35 : i32
      %c0_36 = arith.constant 0 : index
      %c0_37 = arith.constant 0 : index
      %32 = arith.index_cast %31 : i32 to index
      %c1_38 = arith.constant 1 : index
      %c0_39 = arith.constant 0 : index
      %33 = vector.load %arg2[%c0_36, %c0_37, %32, %c1_38, %c0_39] : memref<1x1x5x3x256xbf16, #tpu.memory_space<vmem>>, vector<1x1x1x2x256xbf16>
      %34 = vector.shape_cast %33 : vector<1x1x1x2x256xbf16> to vector<2x256xbf16>
      %c1_40 = arith.constant 1 : index
      %c1_41 = arith.constant 1 : index
      %c0_42 = arith.constant 0 : index
      %c0_43 = arith.constant 0 : index
      %35 = vector.load %arg3[%c1_40, %c1_41, %c0_42, %c0_43] : memref<3x2x256x128xbf16, #tpu.memory_space<vmem>>, vector<1x1x256x128xbf16>
      %36 = vector.shape_cast %35 : vector<1x1x256x128xbf16> to vector<256x128xbf16>
      %cst_44 = arith.constant dense<0.000000e+00> : vector<2x128xf32>
      %37 = tpu.matmul %34, %36, %cst_44 {dimension_numbers = #tpu.dot_dimension_numbers<[1], [0], [0], [1], [0, 0, 1, 1], [], []>} : vector<2x256xbf16>, vector<256x128xbf16>, vector<2x128xf32> -> vector<2x128xf32>
      %38 = arith.addf %29, %37 : vector<2x128xf32>
      %c2_i32_45 = arith.constant 2 : i32
      %39 = arith.muli %c2_i32_45, %arg6 : i32
      %c2_i32_46 = arith.constant 2 : i32
      %40 = arith.addi %39, %c2_i32_46 : i32
      %c0_47 = arith.constant 0 : index
      %c0_48 = arith.constant 0 : index
      %41 = arith.index_cast %40 : i32 to index
      %c0_49 = arith.constant 0 : index
      %c0_50 = arith.constant 0 : index
      %42 = vector.load %arg2[%c0_47, %c0_48, %41, %c0_49, %c0_50] : memref<1x1x5x3x256xbf16, #tpu.memory_space<vmem>>, vector<1x1x1x2x256xbf16>
      %43 = vector.shape_cast %42 : vector<1x1x1x2x256xbf16> to vector<2x256xbf16>
      %c2 = arith.constant 2 : index
      %c0_51 = arith.constant 0 : index
      %c0_52 = arith.constant 0 : index
      %c0_53 = arith.constant 0 : index
      %44 = vector.load %arg3[%c2, %c0_51, %c0_52, %c0_53] : memref<3x2x256x128xbf16, #tpu.memory_space<vmem>>, vector<1x1x256x128xbf16>
      %45 = vector.shape_cast %44 : vector<1x1x256x128xbf16> to vector<256x128xbf16>
      %cst_54 = arith.constant dense<0.000000e+00> : vector<2x128xf32>
      %46 = tpu.matmul %43, %45, %cst_54 {dimension_numbers = #tpu.dot_dimension_numbers<[1], [0], [0], [1], [0, 0, 1, 1], [], []>} : vector<2x256xbf16>, vector<256x128xbf16>, vector<2x128xf32> -> vector<2x128xf32>
      %47 = arith.addf %38, %46 : vector<2x128xf32>
      %c2_i32_55 = arith.constant 2 : i32
      %48 = arith.muli %c2_i32_55, %arg6 : i32
      %c2_i32_56 = arith.constant 2 : i32
      %49 = arith.addi %48, %c2_i32_56 : i32
      %c0_57 = arith.constant 0 : index
      %c0_58 = arith.constant 0 : index
      %50 = arith.index_cast %49 : i32 to index
      %c1_59 = arith.constant 1 : index
      %c0_60 = arith.constant 0 : index
      %51 = vector.load %arg2[%c0_57, %c0_58, %50, %c1_59, %c0_60] : memref<1x1x5x3x256xbf16, #tpu.memory_space<vmem>>, vector<1x1x1x2x256xbf16>
      %52 = vector.shape_cast %51 : vector<1x1x1x2x256xbf16> to vector<2x256xbf16>
      %c2_61 = arith.constant 2 : index
      %c1_62 = arith.constant 1 : index
      %c0_63 = arith.constant 0 : index
      %c0_64 = arith.constant 0 : index
      %53 = vector.load %arg3[%c2_61, %c1_62, %c0_63, %c0_64] : memref<3x2x256x128xbf16, #tpu.memory_space<vmem>>, vector<1x1x256x128xbf16>
      %54 = vector.shape_cast %53 : vector<1x1x256x128xbf16> to vector<256x128xbf16>
      %cst_65 = arith.constant dense<0.000000e+00> : vector<2x128xf32>
      %55 = tpu.matmul %52, %54, %cst_65 {dimension_numbers = #tpu.dot_dimension_numbers<[1], [0], [0], [1], [0, 0, 1, 1], [], []>} : vector<2x256xbf16>, vector<256x128xbf16>, vector<2x128xf32> -> vector<2x128xf32>
      %56 = arith.addf %47, %55 : vector<2x128xf32>
      %57 = vector.broadcast %0 : vector<1x128xf32> to vector<2x128xf32>
      %58 = arith.addf %56, %57 : vector<2x128xf32>
      %cst_66 = arith.constant 0.000000e+00 : f32
      %59 = vector.broadcast %cst_66 : f32 to vector<2x128xf32>
      %60 = arith.cmpf oge, %58, %59 : vector<2x128xf32>
      %cst_67 = arith.constant 1.000000e-01 : f32
      %61 = vector.broadcast %cst_67 : f32 to vector<2x128xf32>
      %62 = arith.mulf %61, %58 : vector<2x128xf32>
      %63 = arith.select %60, %58, %62 : vector<2x128xi1>, vector<2x128xf32>
      %64 = arith.truncf %63 : vector<2x128xf32> to vector<2x128xbf16>
      %c0_68 = arith.constant 0 : index
      %65 = arith.index_cast %arg6 : i32 to index
      %c0_69 = arith.constant 0 : index
      %c0_70 = arith.constant 0 : index
      %66 = vector.load %arg5[%c0_68, %65, %c0_69, %c0_70] : memref<1x2x2x128xbf16, #tpu.memory_space<vmem>>, vector<1x1x2x128xbf16>
      %67 = vector.shape_cast %66 : vector<1x1x2x128xbf16> to vector<2x128xbf16>
      %68 = vector.shape_cast %64 : vector<2x128xbf16> to vector<1x1x2x128xbf16>
      tpu.vector_store %arg5[%c0_68, %65, %c0_69, %c0_70], %68 {strides = array<i32>} : memref<1x2x2x128xbf16, #tpu.memory_space<vmem>>, vector<1x1x2x128xbf16>,
    }
    %c2_i32_1 = arith.constant 2 : i32
    return
  }
  func.func @transform_0(%arg0: i32, %arg1: i32) -> (i32, i32, i32, i32, i32) {
    %c0_i32 = arith.constant 0 : i32
    %c0_i32_0 = arith.constant 0 : i32
    %c0_i32_1 = arith.constant 0 : i32
    %c0_i32_2 = arith.constant 0 : i32
    return %arg0, %arg1, %c0_i32, %c0_i32_0, %c0_i32_1 : i32, i32, i32, i32, i32
  }
  func.func @transform_1(%arg0: i32, %arg1: i32) -> (i32, i32, i32, i32) {
    %c0_i32 = arith.constant 0 : i32
    %c0_i32_0 = arith.constant 0 : i32
    %c0_i32_1 = arith.constant 0 : i32
    %c0_i32_2 = arith.constant 0 : i32
    %c0_i32_3 = arith.constant 0 : i32
    return %c0_i32, %c0_i32_0, %c0_i32_1, %c0_i32_2 : i32, i32, i32, i32
  }
  func.func @transform_2(%arg0: i32, %arg1: i32) -> (i32, i32) {
    %c0_i32 = arith.constant 0 : i32
    %c0_i32_0 = arith.constant 0 : i32
    %c0_i32_1 = arith.constant 0 : i32
    return %c0_i32, %c0_i32_0 : i32, i32
  }
  func.func @transform_3(%arg0: i32, %arg1: i32) -> (i32, i32, i32, i32) {
    %c0_i32 = arith.constant 0 : i32
    %c0_i32_0 = arith.constant 0 : i32
    %c0_i32_1 = arith.constant 0 : i32
    return %arg0, %arg1, %c0_i32, %c0_i32_0 : i32, i32, i32, i32
  }
}

module attributes {stable_mosaic.version = 11 : i64} {
  func.func @_conv_rows_kernel(%arg0: i32, %arg1: i32, %arg2: memref<1x1x10x10x128xbf16, #tpu.memory_space<vmem>>, %arg3: memref<3x3x128x128xbf16, #tpu.memory_space<vmem>>, %arg4: memref<1x128xf32, #tpu.memory_space<vmem>>, %arg5: memref<1x2x2x128xbf16, #tpu.memory_space<vmem>>) attributes {dimension_semantics = [#tpu.dimension_semantics<parallel>, #tpu.dimension_semantics<parallel>], iteration_bounds = array<i64: 2, 1>, scalar_prefetch = 0 : i64, scratch_operands = 0 : i64, tpu.core_type = #tpu.core_type<tc>, window_params = [{transform_indices = @transform_0, window_bounds = array<i64: 1, 1, 10, 10, 128>}, {pipeline_mode = #tpu.pipeline_mode<synchronous>, transform_indices = @transform_1, window_bounds = array<i64: 3, 3, 128, 128>}, {pipeline_mode = #tpu.pipeline_mode<synchronous>, transform_indices = @transform_2, window_bounds = array<i64: 1, 128>}, {transform_indices = @transform_3, window_bounds = array<i64: 1, 2, 2, 128>}]} {
    %c0 = arith.constant 0 : index
    %c0_0 = arith.constant 0 : index
    %0 = vector.load %arg4[%c0, %c0_0] : memref<1x128xf32, #tpu.memory_space<vmem>>, vector<1x128xf32>
    %c0_i32 = arith.constant 0 : i32
    %c2_i32 = arith.constant 2 : i32
    %1 = arith.addi %c0_i32, %c2_i32 : i32
    %c1_i32 = arith.constant 1 : i32
    scf.for %arg6 = %c0_i32 to %1 step %c1_i32  : i32 {
      %cst = arith.constant 0.000000e+00 : f32
      %2 = vector.broadcast %cst : f32 to vector<2x128xf32>
      %c1_i32_2 = arith.constant 1 : i32
      %3 = arith.muli %c1_i32_2, %arg6 : i32
      %c0_i32_3 = arith.constant 0 : i32
      %4 = arith.addi %3, %c0_i32_3 : i32
      %c0_4 = arith.constant 0 : index
      %c0_5 = arith.constant 0 : index
      %5 = arith.index_cast %4 : i32 to index
      %c0_6 = arith.constant 0 : index
      %c0_7 = arith.constant 0 : index
      %6 = vector.load %arg2[%c0_4, %c0_5, %5, %c0_6, %c0_7] : memref<1x1x10x10x128xbf16, #tpu.memory_space<vmem>>, vector<1x1x1x2x128xbf16>
      %7 = vector.shape_cast %6 : vector<1x1x1x2x128xbf16> to vector<2x128xbf16>
      %c0_8 = arith.constant 0 : index
      %c0_9 = arith.constant 0 : index
      %c0_10 = arith.constant 0 : index
      %c0_11 = arith.constant 0 : index
      %8 = vector.load %arg3[%c0_8, %c0_9, %c0_10, %c0_11] : memref<3x3x128x128xbf16, #tpu.memory_space<vmem>>, vector<1x1x128x128xbf16>
      %9 = vector.shape_cast %8 : vector<1x1x128x128xbf16> to vector<128x128xbf16>
      %cst_12 = arith.constant dense<0.000000e+00> : vector<2x128xf32>
      %10 = tpu.matmul %7, %9, %cst_12 {dimension_numbers = #tpu.dot_dimension_numbers<[1], [0], [0], [1], [0, 0, 1, 1], [], []>} : vector<2x128xbf16>, vector<128x128xbf16>, vector<2x128xf32> -> vector<2x128xf32>
      %11 = arith.addf %2, %10 : vector<2x128xf32>
      %c1_i32_13 = arith.constant 1 : i32
      %12 = arith.muli %c1_i32_13, %arg6 : i32
      %c0_i32_14 = arith.constant 0 : i32
      %13 = arith.addi %12, %c0_i32_14 : i32
      %c0_15 = arith.constant 0 : index
      %c0_16 = arith.constant 0 : index
      %14 = arith.index_cast %13 : i32 to index
      %c4 = arith.constant 4 : index
      %c0_17 = arith.constant 0 : index
      %15 = vector.load %arg2[%c0_15, %c0_16, %14, %c4, %c0_17] : memref<1x1x10x10x128xbf16, #tpu.memory_space<vmem>>, vector<1x1x1x2x128xbf16>
      %16 = vector.shape_cast %15 : vector<1x1x1x2x128xbf16> to vector<2x128xbf16>
      %c0_18 = arith.constant 0 : index
      %c1 = arith.constant 1 : index
      %c0_19 = arith.constant 0 : index
      %c0_20 = arith.constant 0 : index
      %17 = vector.load %arg3[%c0_18, %c1, %c0_19, %c0_20] : memref<3x3x128x128xbf16, #tpu.memory_space<vmem>>, vector<1x1x128x128xbf16>
      %18 = vector.shape_cast %17 : vector<1x1x128x128xbf16> to vector<128x128xbf16>
      %cst_21 = arith.constant dense<0.000000e+00> : vector<2x128xf32>
      %19 = tpu.matmul %16, %18, %cst_21 {dimension_numbers = #tpu.dot_dimension_numbers<[1], [0], [0], [1], [0, 0, 1, 1], [], []>} : vector<2x128xbf16>, vector<128x128xbf16>, vector<2x128xf32> -> vector<2x128xf32>
      %20 = arith.addf %11, %19 : vector<2x128xf32>
      %c1_i32_22 = arith.constant 1 : i32
      %21 = arith.muli %c1_i32_22, %arg6 : i32
      %c0_i32_23 = arith.constant 0 : i32
      %22 = arith.addi %21, %c0_i32_23 : i32
      %c0_24 = arith.constant 0 : index
      %c0_25 = arith.constant 0 : index
      %23 = arith.index_cast %22 : i32 to index
      %c8 = arith.constant 8 : index
      %c0_26 = arith.constant 0 : index
      %24 = vector.load %arg2[%c0_24, %c0_25, %23, %c8, %c0_26] : memref<1x1x10x10x128xbf16, #tpu.memory_space<vmem>>, vector<1x1x1x2x128xbf16>
      %25 = vector.shape_cast %24 : vector<1x1x1x2x128xbf16> to vector<2x128xbf16>
      %c0_27 = arith.constant 0 : index
      %c2 = arith.constant 2 : index
      %c0_28 = arith.constant 0 : index
      %c0_29 = arith.constant 0 : index
      %26 = vector.load %arg3[%c0_27, %c2, %c0_28, %c0_29] : memref<3x3x128x128xbf16, #tpu.memory_space<vmem>>, vector<1x1x128x128xbf16>
      %27 = vector.shape_cast %26 : vector<1x1x128x128xbf16> to vector<128x128xbf16>
      %cst_30 = arith.constant dense<0.000000e+00> : vector<2x128xf32>
      %28 = tpu.matmul %25, %27, %cst_30 {dimension_numbers = #tpu.dot_dimension_numbers<[1], [0], [0], [1], [0, 0, 1, 1], [], []>} : vector<2x128xbf16>, vector<128x128xbf16>, vector<2x128xf32> -> vector<2x128xf32>
      %29 = arith.addf %20, %28 : vector<2x128xf32>
      %c1_i32_31 = arith.constant 1 : i32
      %30 = arith.muli %c1_i32_31, %arg6 : i32
      %c4_i32 = arith.constant 4 : i32
      %31 = arith.addi %30, %c4_i32 : i32
      %c0_32 = arith.constant 0 : index
      %c0_33 = arith.constant 0 : index
      %32 = arith.index_cast %31 : i32 to index
      %c0_34 = arith.constant 0 : index
      %c0_35 = arith.constant 0 : index
      %33 = vector.load %arg2[%c0_32, %c0_33, %32, %c0_34, %c0_35] : memref<1x1x10x10x128xbf16, #tpu.memory_space<vmem>>, vector<1x1x1x2x128xbf16>
      %34 = vector.shape_cast %33 : vector<1x1x1x2x128xbf16> to vector<2x128xbf16>
      %c1_36 = arith.constant 1 : index
      %c0_37 = arith.constant 0 : index
      %c0_38 = arith.constant 0 : index
      %c0_39 = arith.constant 0 : index
      %35 = vector.load %arg3[%c1_36, %c0_37, %c0_38, %c0_39] : memref<3x3x128x128xbf16, #tpu.memory_space<vmem>>, vector<1x1x128x128xbf16>
      %36 = vector.shape_cast %35 : vector<1x1x128x128xbf16> to vector<128x128xbf16>
      %cst_40 = arith.constant dense<0.000000e+00> : vector<2x128xf32>
      %37 = tpu.matmul %34, %36, %cst_40 {dimension_numbers = #tpu.dot_dimension_numbers<[1], [0], [0], [1], [0, 0, 1, 1], [], []>} : vector<2x128xbf16>, vector<128x128xbf16>, vector<2x128xf32> -> vector<2x128xf32>
      %38 = arith.addf %29, %37 : vector<2x128xf32>
      %c1_i32_41 = arith.constant 1 : i32
      %39 = arith.muli %c1_i32_41, %arg6 : i32
      %c4_i32_42 = arith.constant 4 : i32
      %40 = arith.addi %39, %c4_i32_42 : i32
      %c0_43 = arith.constant 0 : index
      %c0_44 = arith.constant 0 : index
      %41 = arith.index_cast %40 : i32 to index
      %c4_45 = arith.constant 4 : index
      %c0_46 = arith.constant 0 : index
      %42 = vector.load %arg2[%c0_43, %c0_44, %41, %c4_45, %c0_46] : memref<1x1x10x10x128xbf16, #tpu.memory_space<vmem>>, vector<1x1x1x2x128xbf16>
      %43 = vector.shape_cast %42 : vector<1x1x1x2x128xbf16> to vector<2x128xbf16>
      %c1_47 = arith.constant 1 : index
      %c1_48 = arith.constant 1 : index
      %c0_49 = arith.constant 0 : index
      %c0_50 = arith.constant 0 : index
      %44 = vector.load %arg3[%c1_47, %c1_48, %c0_49, %c0_50] : memref<3x3x128x128xbf16, #tpu.memory_space<vmem>>, vector<1x1x128x128xbf16>
      %45 = vector.shape_cast %44 : vector<1x1x128x128xbf16> to vector<128x128xbf16>
      %cst_51 = arith.constant dense<0.000000e+00> : vector<2x128xf32>
      %46 = tpu.matmul %43, %45, %cst_51 {dimension_numbers = #tpu.dot_dimension_numbers<[1], [0], [0], [1], [0, 0, 1, 1], [], []>} : vector<2x128xbf16>, vector<128x128xbf16>, vector<2x128xf32> -> vector<2x128xf32>
      %47 = arith.addf %38, %46 : vector<2x128xf32>
      %c1_i32_52 = arith.constant 1 : i32
      %48 = arith.muli %c1_i32_52, %arg6 : i32
      %c4_i32_53 = arith.constant 4 : i32
      %49 = arith.addi %48, %c4_i32_53 : i32
      %c0_54 = arith.constant 0 : index
      %c0_55 = arith.constant 0 : index
      %50 = arith.index_cast %49 : i32 to index
      %c8_56 = arith.constant 8 : index
      %c0_57 = arith.constant 0 : index
      %51 = vector.load %arg2[%c0_54, %c0_55, %50, %c8_56, %c0_57] : memref<1x1x10x10x128xbf16, #tpu.memory_space<vmem>>, vector<1x1x1x2x128xbf16>
      %52 = vector.shape_cast %51 : vector<1x1x1x2x128xbf16> to vector<2x128xbf16>
      %c1_58 = arith.constant 1 : index
      %c2_59 = arith.constant 2 : index
      %c0_60 = arith.constant 0 : index
      %c0_61 = arith.constant 0 : index
      %53 = vector.load %arg3[%c1_58, %c2_59, %c0_60, %c0_61] : memref<3x3x128x128xbf16, #tpu.memory_space<vmem>>, vector<1x1x128x128xbf16>
      %54 = vector.shape_cast %53 : vector<1x1x128x128xbf16> to vector<128x128xbf16>
      %cst_62 = arith.constant dense<0.000000e+00> : vector<2x128xf32>
      %55 = tpu.matmul %52, %54, %cst_62 {dimension_numbers = #tpu.dot_dimension_numbers<[1], [0], [0], [1], [0, 0, 1, 1], [], []>} : vector<2x128xbf16>, vector<128x128xbf16>, vector<2x128xf32> -> vector<2x128xf32>
      %56 = arith.addf %47, %55 : vector<2x128xf32>
      %c1_i32_63 = arith.constant 1 : i32
      %57 = arith.muli %c1_i32_63, %arg6 : i32
      %c8_i32 = arith.constant 8 : i32
      %58 = arith.addi %57, %c8_i32 : i32
      %c0_64 = arith.constant 0 : index
      %c0_65 = arith.constant 0 : index
      %59 = arith.index_cast %58 : i32 to index
      %c0_66 = arith.constant 0 : index
      %c0_67 = arith.constant 0 : index
      %60 = vector.load %arg2[%c0_64, %c0_65, %59, %c0_66, %c0_67] : memref<1x1x10x10x128xbf16, #tpu.memory_space<vmem>>, vector<1x1x1x2x128xbf16>
      %61 = vector.shape_cast %60 : vector<1x1x1x2x128xbf16> to vector<2x128xbf16>
      %c2_68 = arith.constant 2 : index
      %c0_69 = arith.constant 0 : index
      %c0_70 = arith.constant 0 : index
      %c0_71 = arith.constant 0 : index
      %62 = vector.load %arg3[%c2_68, %c0_69, %c0_70, %c0_71] : memref<3x3x128x128xbf16, #tpu.memory_space<vmem>>, vector<1x1x128x128xbf16>
      %63 = vector.shape_cast %62 : vector<1x1x128x128xbf16> to vector<128x128xbf16>
      %cst_72 = arith.constant dense<0.000000e+00> : vector<2x128xf32>
      %64 = tpu.matmul %61, %63, %cst_72 {dimension_numbers = #tpu.dot_dimension_numbers<[1], [0], [0], [1], [0, 0, 1, 1], [], []>} : vector<2x128xbf16>, vector<128x128xbf16>, vector<2x128xf32> -> vector<2x128xf32>
      %65 = arith.addf %56, %64 : vector<2x128xf32>
      %c1_i32_73 = arith.constant 1 : i32
      %66 = arith.muli %c1_i32_73, %arg6 : i32
      %c8_i32_74 = arith.constant 8 : i32
      %67 = arith.addi %66, %c8_i32_74 : i32
      %c0_75 = arith.constant 0 : index
      %c0_76 = arith.constant 0 : index
      %68 = arith.index_cast %67 : i32 to index
      %c4_77 = arith.constant 4 : index
      %c0_78 = arith.constant 0 : index
      %69 = vector.load %arg2[%c0_75, %c0_76, %68, %c4_77, %c0_78] : memref<1x1x10x10x128xbf16, #tpu.memory_space<vmem>>, vector<1x1x1x2x128xbf16>
      %70 = vector.shape_cast %69 : vector<1x1x1x2x128xbf16> to vector<2x128xbf16>
      %c2_79 = arith.constant 2 : index
      %c1_80 = arith.constant 1 : index
      %c0_81 = arith.constant 0 : index
      %c0_82 = arith.constant 0 : index
      %71 = vector.load %arg3[%c2_79, %c1_80, %c0_81, %c0_82] : memref<3x3x128x128xbf16, #tpu.memory_space<vmem>>, vector<1x1x128x128xbf16>
      %72 = vector.shape_cast %71 : vector<1x1x128x128xbf16> to vector<128x128xbf16>
      %cst_83 = arith.constant dense<0.000000e+00> : vector<2x128xf32>
      %73 = tpu.matmul %70, %72, %cst_83 {dimension_numbers = #tpu.dot_dimension_numbers<[1], [0], [0], [1], [0, 0, 1, 1], [], []>} : vector<2x128xbf16>, vector<128x128xbf16>, vector<2x128xf32> -> vector<2x128xf32>
      %74 = arith.addf %65, %73 : vector<2x128xf32>
      %c1_i32_84 = arith.constant 1 : i32
      %75 = arith.muli %c1_i32_84, %arg6 : i32
      %c8_i32_85 = arith.constant 8 : i32
      %76 = arith.addi %75, %c8_i32_85 : i32
      %c0_86 = arith.constant 0 : index
      %c0_87 = arith.constant 0 : index
      %77 = arith.index_cast %76 : i32 to index
      %c8_88 = arith.constant 8 : index
      %c0_89 = arith.constant 0 : index
      %78 = vector.load %arg2[%c0_86, %c0_87, %77, %c8_88, %c0_89] : memref<1x1x10x10x128xbf16, #tpu.memory_space<vmem>>, vector<1x1x1x2x128xbf16>
      %79 = vector.shape_cast %78 : vector<1x1x1x2x128xbf16> to vector<2x128xbf16>
      %c2_90 = arith.constant 2 : index
      %c2_91 = arith.constant 2 : index
      %c0_92 = arith.constant 0 : index
      %c0_93 = arith.constant 0 : index
      %80 = vector.load %arg3[%c2_90, %c2_91, %c0_92, %c0_93] : memref<3x3x128x128xbf16, #tpu.memory_space<vmem>>, vector<1x1x128x128xbf16>
      %81 = vector.shape_cast %80 : vector<1x1x128x128xbf16> to vector<128x128xbf16>
      %cst_94 = arith.constant dense<0.000000e+00> : vector<2x128xf32>
      %82 = tpu.matmul %79, %81, %cst_94 {dimension_numbers = #tpu.dot_dimension_numbers<[1], [0], [0], [1], [0, 0, 1, 1], [], []>} : vector<2x128xbf16>, vector<128x128xbf16>, vector<2x128xf32> -> vector<2x128xf32>
      %83 = arith.addf %74, %82 : vector<2x128xf32>
      %84 = vector.broadcast %0 : vector<1x128xf32> to vector<2x128xf32>
      %85 = arith.addf %83, %84 : vector<2x128xf32>
      %cst_95 = arith.constant 0.000000e+00 : f32
      %86 = vector.broadcast %cst_95 : f32 to vector<2x128xf32>
      %87 = arith.cmpf oge, %85, %86 : vector<2x128xf32>
      %cst_96 = arith.constant 1.000000e-01 : f32
      %88 = vector.broadcast %cst_96 : f32 to vector<2x128xf32>
      %89 = arith.mulf %88, %85 : vector<2x128xf32>
      %90 = arith.select %87, %85, %89 : vector<2x128xi1>, vector<2x128xf32>
      %91 = arith.truncf %90 : vector<2x128xf32> to vector<2x128xbf16>
      %c0_97 = arith.constant 0 : index
      %92 = arith.index_cast %arg6 : i32 to index
      %c0_98 = arith.constant 0 : index
      %c0_99 = arith.constant 0 : index
      %93 = vector.load %arg5[%c0_97, %92, %c0_98, %c0_99] : memref<1x2x2x128xbf16, #tpu.memory_space<vmem>>, vector<1x1x2x128xbf16>
      %94 = vector.shape_cast %93 : vector<1x1x2x128xbf16> to vector<2x128xbf16>
      %95 = vector.shape_cast %91 : vector<2x128xbf16> to vector<1x1x2x128xbf16>
      tpu.vector_store %arg5[%c0_97, %92, %c0_98, %c0_99], %95 {strides = array<i32>} : memref<1x2x2x128xbf16, #tpu.memory_space<vmem>>, vector<1x1x2x128xbf16>,
    }
    %c2_i32_1 = arith.constant 2 : i32
    return
  }
  func.func @transform_0(%arg0: i32, %arg1: i32) -> (i32, i32, i32, i32, i32) {
    %c0_i32 = arith.constant 0 : i32
    %c0_i32_0 = arith.constant 0 : i32
    %c0_i32_1 = arith.constant 0 : i32
    %c0_i32_2 = arith.constant 0 : i32
    return %arg0, %arg1, %c0_i32, %c0_i32_0, %c0_i32_1 : i32, i32, i32, i32, i32
  }
  func.func @transform_1(%arg0: i32, %arg1: i32) -> (i32, i32, i32, i32) {
    %c0_i32 = arith.constant 0 : i32
    %c0_i32_0 = arith.constant 0 : i32
    %c0_i32_1 = arith.constant 0 : i32
    %c0_i32_2 = arith.constant 0 : i32
    %c0_i32_3 = arith.constant 0 : i32
    return %c0_i32, %c0_i32_0, %c0_i32_1, %c0_i32_2 : i32, i32, i32, i32
  }
  func.func @transform_2(%arg0: i32, %arg1: i32) -> (i32, i32) {
    %c0_i32 = arith.constant 0 : i32
    %c0_i32_0 = arith.constant 0 : i32
    %c0_i32_1 = arith.constant 0 : i32
    return %c0_i32, %c0_i32_0 : i32, i32
  }
  func.func @transform_3(%arg0: i32, %arg1: i32) -> (i32, i32, i32, i32) {
    %c0_i32 = arith.constant 0 : i32
    %c0_i32_0 = arith.constant 0 : i32
    %c0_i32_1 = arith.constant 0 : i32
    return %arg0, %arg1, %c0_i32, %c0_i32_0 : i32, i32, i32, i32
  }
}

module attributes {stable_mosaic.version = 11 : i64} {
  func.func @_conv_rows_kernel(%arg0: i32, %arg1: i32, %arg2: memref<1x1x18x18x128xbf16, #tpu.memory_space<vmem>>, %arg3: memref<3x3x128x128xbf16, #tpu.memory_space<vmem>>, %arg4: memref<1x128xf32, #tpu.memory_space<vmem>>, %arg5: memref<1x2x2x128xbf16, #tpu.memory_space<vmem>>) attributes {dimension_semantics = [#tpu.dimension_semantics<parallel>, #tpu.dimension_semantics<parallel>], iteration_bounds = array<i64: 2, 1>, scalar_prefetch = 0 : i64, scratch_operands = 0 : i64, tpu.core_type = #tpu.core_type<tc>, window_params = [{transform_indices = @transform_0, window_bounds = array<i64: 1, 1, 18, 18, 128>}, {pipeline_mode = #tpu.pipeline_mode<synchronous>, transform_indices = @transform_1, window_bounds = array<i64: 3, 3, 128, 128>}, {pipeline_mode = #tpu.pipeline_mode<synchronous>, transform_indices = @transform_2, window_bounds = array<i64: 1, 128>}, {transform_indices = @transform_3, window_bounds = array<i64: 1, 2, 2, 128>}]} {
    %c0 = arith.constant 0 : index
    %c0_0 = arith.constant 0 : index
    %0 = vector.load %arg4[%c0, %c0_0] : memref<1x128xf32, #tpu.memory_space<vmem>>, vector<1x128xf32>
    %c0_i32 = arith.constant 0 : i32
    %c2_i32 = arith.constant 2 : i32
    %1 = arith.addi %c0_i32, %c2_i32 : i32
    %c1_i32 = arith.constant 1 : i32
    scf.for %arg6 = %c0_i32 to %1 step %c1_i32  : i32 {
      %cst = arith.constant 0.000000e+00 : f32
      %2 = vector.broadcast %cst : f32 to vector<2x128xf32>
      %c1_i32_2 = arith.constant 1 : i32
      %3 = arith.muli %c1_i32_2, %arg6 : i32
      %c0_i32_3 = arith.constant 0 : i32
      %4 = arith.addi %3, %c0_i32_3 : i32
      %c0_4 = arith.constant 0 : index
      %c0_5 = arith.constant 0 : index
      %5 = arith.index_cast %4 : i32 to index
      %c0_6 = arith.constant 0 : index
      %c0_7 = arith.constant 0 : index
      %6 = vector.load %arg2[%c0_4, %c0_5, %5, %c0_6, %c0_7] : memref<1x1x18x18x128xbf16, #tpu.memory_space<vmem>>, vector<1x1x1x2x128xbf16>
      %7 = vector.shape_cast %6 : vector<1x1x1x2x128xbf16> to vector<2x128xbf16>
      %c0_8 = arith.constant 0 : index
      %c0_9 = arith.constant 0 : index
      %c0_10 = arith.constant 0 : index
      %c0_11 = arith.constant 0 : index
      %8 = vector.load %arg3[%c0_8, %c0_9, %c0_10, %c0_11] : memref<3x3x128x128xbf16, #tpu.memory_space<vmem>>, vector<1x1x128x128xbf16>
      %9 = vector.shape_cast %8 : vector<1x1x128x128xbf16> to vector<128x128xbf16>
      %cst_12 = arith.constant dense<0.000000e+00> : vector<2x128xf32>
      %10 = tpu.matmul %7, %9, %cst_12 {dimension_numbers = #tpu.dot_dimension_numbers<[1], [0], [0], [1], [0, 0, 1, 1], [], []>} : vector<2x128xbf16>, vector<128x128xbf16>, vector<2x128xf32> -> vector<2x128xf32>
      %11 = arith.addf %2, %10 : vector<2x128xf32>
      %c1_i32_13 = arith.constant 1 : i32
      %12 = arith.muli %c1_i32_13, %arg6 : i32
      %c0_i32_14 = arith.constant 0 : i32
      %13 = arith.addi %12, %c0_i32_14 : i32
      %c0_15 = arith.constant 0 : index
      %c0_16 = arith.constant 0 : index
      %14 = arith.index_cast %13 : i32 to index
      %c8 = arith.constant 8 : index
      %c0_17 = arith.constant 0 : index
      %15 = vector.load %arg2[%c0_15, %c0_16, %14, %c8, %c0_17] : memref<1x1x18x18x128xbf16, #tpu.memory_space<vmem>>, vector<1x1x1x2x128xbf16>
      %16 = vector.shape_cast %15 : vector<1x1x1x2x128xbf16> to vector<2x128xbf16>
      %c0_18 = arith.constant 0 : index
      %c1 = arith.constant 1 : index
      %c0_19 = arith.constant 0 : index
      %c0_20 = arith.constant 0 : index
      %17 = vector.load %arg3[%c0_18, %c1, %c0_19, %c0_20] : memref<3x3x128x128xbf16, #tpu.memory_space<vmem>>, vector<1x1x128x128xbf16>
      %18 = vector.shape_cast %17 : vector<1x1x128x128xbf16> to vector<128x128xbf16>
      %cst_21 = arith.constant dense<0.000000e+00> : vector<2x128xf32>
      %19 = tpu.matmul %16, %18, %cst_21 {dimension_numbers = #tpu.dot_dimension_numbers<[1], [0], [0], [1], [0, 0, 1, 1], [], []>} : vector<2x128xbf16>, vector<128x128xbf16>, vector<2x128xf32> -> vector<2x128xf32>
      %20 = arith.addf %11, %19 : vector<2x128xf32>
      %c1_i32_22 = arith.constant 1 : i32
      %21 = arith.muli %c1_i32_22, %arg6 : i32
      %c0_i32_23 = arith.constant 0 : i32
      %22 = arith.addi %21, %c0_i32_23 : i32
      %c0_24 = arith.constant 0 : index
      %c0_25 = arith.constant 0 : index
      %23 = arith.index_cast %22 : i32 to index
      %c16 = arith.constant 16 : index
      %c0_26 = arith.constant 0 : index
      %24 = vector.load %arg2[%c0_24, %c0_25, %23, %c16, %c0_26] : memref<1x1x18x18x128xbf16, #tpu.memory_space<vmem>>, vector<1x1x1x2x128xbf16>
      %25 = vector.shape_cast %24 : vector<1x1x1x2x128xbf16> to vector<2x128xbf16>
      %c0_27 = arith.constant 0 : index
      %c2 = arith.constant 2 : index
      %c0_28 = arith.constant 0 : index
      %c0_29 = arith.constant 0 : index
      %26 = vector.load %arg3[%c0_27, %c2, %c0_28, %c0_29] : memref<3x3x128x128xbf16, #tpu.memory_space<vmem>>, vector<1x1x128x128xbf16>
      %27 = vector.shape_cast %26 : vector<1x1x128x128xbf16> to vector<128x128xbf16>
      %cst_30 = arith.constant dense<0.000000e+00> : vector<2x128xf32>
      %28 = tpu.matmul %25, %27, %cst_30 {dimension_numbers = #tpu.dot_dimension_numbers<[1], [0], [0], [1], [0, 0, 1, 1], [], []>} : vector<2x128xbf16>, vector<128x128xbf16>, vector<2x128xf32> -> vector<2x128xf32>
      %29 = arith.addf %20, %28 : vector<2x128xf32>
      %c1_i32_31 = arith.constant 1 : i32
      %30 = arith.muli %c1_i32_31, %arg6 : i32
      %c8_i32 = arith.constant 8 : i32
      %31 = arith.addi %30, %c8_i32 : i32
      %c0_32 = arith.constant 0 : index
      %c0_33 = arith.constant 0 : index
      %32 = arith.index_cast %31 : i32 to index
      %c0_34 = arith.constant 0 : index
      %c0_35 = arith.constant 0 : index
      %33 = vector.load %arg2[%c0_32, %c0_33, %32, %c0_34, %c0_35] : memref<1x1x18x18x128xbf16, #tpu.memory_space<vmem>>, vector<1x1x1x2x128xbf16>
      %34 = vector.shape_cast %33 : vector<1x1x1x2x128xbf16> to vector<2x128xbf16>
      %c1_36 = arith.constant 1 : index
      %c0_37 = arith.constant 0 : index
      %c0_38 = arith.constant 0 : index
      %c0_39 = arith.constant 0 : index
      %35 = vector.load %arg3[%c1_36, %c0_37, %c0_38, %c0_39] : memref<3x3x128x128xbf16, #tpu.memory_space<vmem>>, vector<1x1x128x128xbf16>
      %36 = vector.shape_cast %35 : vector<1x1x128x128xbf16> to vector<128x128xbf16>
      %cst_40 = arith.constant dense<0.000000e+00> : vector<2x128xf32>
      %37 = tpu.matmul %34, %36, %cst_40 {dimension_numbers = #tpu.dot_dimension_numbers<[1], [0], [0], [1], [0, 0, 1, 1], [], []>} : vector<2x128xbf16>, vector<128x128xbf16>, vector<2x128xf32> -> vector<2x128xf32>
      %38 = arith.addf %29, %37 : vector<2x128xf32>
      %c1_i32_41 = arith.constant 1 : i32
      %39 = arith.muli %c1_i32_41, %arg6 : i32
      %c8_i32_42 = arith.constant 8 : i32
      %40 = arith.addi %39, %c8_i32_42 : i32
      %c0_43 = arith.constant 0 : index
      %c0_44 = arith.constant 0 : index
      %41 = arith.index_cast %40 : i32 to index
      %c8_45 = arith.constant 8 : index
      %c0_46 = arith.constant 0 : index
      %42 = vector.load %arg2[%c0_43, %c0_44, %41, %c8_45, %c0_46] : memref<1x1x18x18x128xbf16, #tpu.memory_space<vmem>>, vector<1x1x1x2x128xbf16>
      %43 = vector.shape_cast %42 : vector<1x1x1x2x128xbf16> to vector<2x128xbf16>
      %c1_47 = arith.constant 1 : index
      %c1_48 = arith.constant 1 : index
      %c0_49 = arith.constant 0 : index
      %c0_50 = arith.constant 0 : index
      %44 = vector.load %arg3[%c1_47, %c1_48, %c0_49, %c0_50] : memref<3x3x128x128xbf16, #tpu.memory_space<vmem>>, vector<1x1x128x128xbf16>
      %45 = vector.shape_cast %44 : vector<1x1x128x128xbf16> to vector<128x128xbf16>
      %cst_51 = arith.constant dense<0.000000e+00> : vector<2x128xf32>
      %46 = tpu.matmul %43, %45, %cst_51 {dimension_numbers = #tpu.dot_dimension_numbers<[1], [0], [0], [1], [0, 0, 1, 1], [], []>} : vector<2x128xbf16>, vector<128x128xbf16>, vector<2x128xf32> -> vector<2x128xf32>
      %47 = arith.addf %38, %46 : vector<2x128xf32>
      %c1_i32_52 = arith.constant 1 : i32
      %48 = arith.muli %c1_i32_52, %arg6 : i32
      %c8_i32_53 = arith.constant 8 : i32
      %49 = arith.addi %48, %c8_i32_53 : i32
      %c0_54 = arith.constant 0 : index
      %c0_55 = arith.constant 0 : index
      %50 = arith.index_cast %49 : i32 to index
      %c16_56 = arith.constant 16 : index
      %c0_57 = arith.constant 0 : index
      %51 = vector.load %arg2[%c0_54, %c0_55, %50, %c16_56, %c0_57] : memref<1x1x18x18x128xbf16, #tpu.memory_space<vmem>>, vector<1x1x1x2x128xbf16>
      %52 = vector.shape_cast %51 : vector<1x1x1x2x128xbf16> to vector<2x128xbf16>
      %c1_58 = arith.constant 1 : index
      %c2_59 = arith.constant 2 : index
      %c0_60 = arith.constant 0 : index
      %c0_61 = arith.constant 0 : index
      %53 = vector.load %arg3[%c1_58, %c2_59, %c0_60, %c0_61] : memref<3x3x128x128xbf16, #tpu.memory_space<vmem>>, vector<1x1x128x128xbf16>
      %54 = vector.shape_cast %53 : vector<1x1x128x128xbf16> to vector<128x128xbf16>
      %cst_62 = arith.constant dense<0.000000e+00> : vector<2x128xf32>
      %55 = tpu.matmul %52, %54, %cst_62 {dimension_numbers = #tpu.dot_dimension_numbers<[1], [0], [0], [1], [0, 0, 1, 1], [], []>} : vector<2x128xbf16>, vector<128x128xbf16>, vector<2x128xf32> -> vector<2x128xf32>
      %56 = arith.addf %47, %55 : vector<2x128xf32>
      %c1_i32_63 = arith.constant 1 : i32
      %57 = arith.muli %c1_i32_63, %arg6 : i32
      %c16_i32 = arith.constant 16 : i32
      %58 = arith.addi %57, %c16_i32 : i32
      %c0_64 = arith.constant 0 : index
      %c0_65 = arith.constant 0 : index
      %59 = arith.index_cast %58 : i32 to index
      %c0_66 = arith.constant 0 : index
      %c0_67 = arith.constant 0 : index
      %60 = vector.load %arg2[%c0_64, %c0_65, %59, %c0_66, %c0_67] : memref<1x1x18x18x128xbf16, #tpu.memory_space<vmem>>, vector<1x1x1x2x128xbf16>
      %61 = vector.shape_cast %60 : vector<1x1x1x2x128xbf16> to vector<2x128xbf16>
      %c2_68 = arith.constant 2 : index
      %c0_69 = arith.constant 0 : index
      %c0_70 = arith.constant 0 : index
      %c0_71 = arith.constant 0 : index
      %62 = vector.load %arg3[%c2_68, %c0_69, %c0_70, %c0_71] : memref<3x3x128x128xbf16, #tpu.memory_space<vmem>>, vector<1x1x128x128xbf16>
      %63 = vector.shape_cast %62 : vector<1x1x128x128xbf16> to vector<128x128xbf16>
      %cst_72 = arith.constant dense<0.000000e+00> : vector<2x128xf32>
      %64 = tpu.matmul %61, %63, %cst_72 {dimension_numbers = #tpu.dot_dimension_numbers<[1], [0], [0], [1], [0, 0, 1, 1], [], []>} : vector<2x128xbf16>, vector<128x128xbf16>, vector<2x128xf32> -> vector<2x128xf32>
      %65 = arith.addf %56, %64 : vector<2x128xf32>
      %c1_i32_73 = arith.constant 1 : i32
      %66 = arith.muli %c1_i32_73, %arg6 : i32
      %c16_i32_74 = arith.constant 16 : i32
      %67 = arith.addi %66, %c16_i32_74 : i32
      %c0_75 = arith.constant 0 : index
      %c0_76 = arith.constant 0 : index
      %68 = arith.index_cast %67 : i32 to index
      %c8_77 = arith.constant 8 : index
      %c0_78 = arith.constant 0 : index
      %69 = vector.load %arg2[%c0_75, %c0_76, %68, %c8_77, %c0_78] : memref<1x1x18x18x128xbf16, #tpu.memory_space<vmem>>, vector<1x1x1x2x128xbf16>
      %70 = vector.shape_cast %69 : vector<1x1x1x2x128xbf16> to vector<2x128xbf16>
      %c2_79 = arith.constant 2 : index
      %c1_80 = arith.constant 1 : index
      %c0_81 = arith.constant 0 : index
      %c0_82 = arith.constant 0 : index
      %71 = vector.load %arg3[%c2_79, %c1_80, %c0_81, %c0_82] : memref<3x3x128x128xbf16, #tpu.memory_space<vmem>>, vector<1x1x128x128xbf16>
      %72 = vector.shape_cast %71 : vector<1x1x128x128xbf16> to vector<128x128xbf16>
      %cst_83 = arith.constant dense<0.000000e+00> : vector<2x128xf32>
      %73 = tpu.matmul %70, %72, %cst_83 {dimension_numbers = #tpu.dot_dimension_numbers<[1], [0], [0], [1], [0, 0, 1, 1], [], []>} : vector<2x128xbf16>, vector<128x128xbf16>, vector<2x128xf32> -> vector<2x128xf32>
      %74 = arith.addf %65, %73 : vector<2x128xf32>
      %c1_i32_84 = arith.constant 1 : i32
      %75 = arith.muli %c1_i32_84, %arg6 : i32
      %c16_i32_85 = arith.constant 16 : i32
      %76 = arith.addi %75, %c16_i32_85 : i32
      %c0_86 = arith.constant 0 : index
      %c0_87 = arith.constant 0 : index
      %77 = arith.index_cast %76 : i32 to index
      %c16_88 = arith.constant 16 : index
      %c0_89 = arith.constant 0 : index
      %78 = vector.load %arg2[%c0_86, %c0_87, %77, %c16_88, %c0_89] : memref<1x1x18x18x128xbf16, #tpu.memory_space<vmem>>, vector<1x1x1x2x128xbf16>
      %79 = vector.shape_cast %78 : vector<1x1x1x2x128xbf16> to vector<2x128xbf16>
      %c2_90 = arith.constant 2 : index
      %c2_91 = arith.constant 2 : index
      %c0_92 = arith.constant 0 : index
      %c0_93 = arith.constant 0 : index
      %80 = vector.load %arg3[%c2_90, %c2_91, %c0_92, %c0_93] : memref<3x3x128x128xbf16, #tpu.memory_space<vmem>>, vector<1x1x128x128xbf16>
      %81 = vector.shape_cast %80 : vector<1x1x128x128xbf16> to vector<128x128xbf16>
      %cst_94 = arith.constant dense<0.000000e+00> : vector<2x128xf32>
      %82 = tpu.matmul %79, %81, %cst_94 {dimension_numbers = #tpu.dot_dimension_numbers<[1], [0], [0], [1], [0, 0, 1, 1], [], []>} : vector<2x128xbf16>, vector<128x128xbf16>, vector<2x128xf32> -> vector<2x128xf32>
      %83 = arith.addf %74, %82 : vector<2x128xf32>
      %84 = vector.broadcast %0 : vector<1x128xf32> to vector<2x128xf32>
      %85 = arith.addf %83, %84 : vector<2x128xf32>
      %cst_95 = arith.constant 0.000000e+00 : f32
      %86 = vector.broadcast %cst_95 : f32 to vector<2x128xf32>
      %87 = arith.cmpf oge, %85, %86 : vector<2x128xf32>
      %cst_96 = arith.constant 1.000000e-01 : f32
      %88 = vector.broadcast %cst_96 : f32 to vector<2x128xf32>
      %89 = arith.mulf %88, %85 : vector<2x128xf32>
      %90 = arith.select %87, %85, %89 : vector<2x128xi1>, vector<2x128xf32>
      %91 = arith.truncf %90 : vector<2x128xf32> to vector<2x128xbf16>
      %c0_97 = arith.constant 0 : index
      %92 = arith.index_cast %arg6 : i32 to index
      %c0_98 = arith.constant 0 : index
      %c0_99 = arith.constant 0 : index
      %93 = vector.load %arg5[%c0_97, %92, %c0_98, %c0_99] : memref<1x2x2x128xbf16, #tpu.memory_space<vmem>>, vector<1x1x2x128xbf16>
      %94 = vector.shape_cast %93 : vector<1x1x2x128xbf16> to vector<2x128xbf16>
      %95 = vector.shape_cast %91 : vector<2x128xbf16> to vector<1x1x2x128xbf16>
      tpu.vector_store %arg5[%c0_97, %92, %c0_98, %c0_99], %95 {strides = array<i32>} : memref<1x2x2x128xbf16, #tpu.memory_space<vmem>>, vector<1x1x2x128xbf16>,
    }
    %c2_i32_1 = arith.constant 2 : i32
    return
  }
  func.func @transform_0(%arg0: i32, %arg1: i32) -> (i32, i32, i32, i32, i32) {
    %c0_i32 = arith.constant 0 : i32
    %c0_i32_0 = arith.constant 0 : i32
    %c0_i32_1 = arith.constant 0 : i32
    %c0_i32_2 = arith.constant 0 : i32
    return %arg0, %arg1, %c0_i32, %c0_i32_0, %c0_i32_1 : i32, i32, i32, i32, i32
  }
  func.func @transform_1(%arg0: i32, %arg1: i32) -> (i32, i32, i32, i32) {
    %c0_i32 = arith.constant 0 : i32
    %c0_i32_0 = arith.constant 0 : i32
    %c0_i32_1 = arith.constant 0 : i32
    %c0_i32_2 = arith.constant 0 : i32
    %c0_i32_3 = arith.constant 0 : i32
    return %c0_i32, %c0_i32_0, %c0_i32_1, %c0_i32_2 : i32, i32, i32, i32
  }
  func.func @transform_2(%arg0: i32, %arg1: i32) -> (i32, i32) {
    %c0_i32 = arith.constant 0 : i32
    %c0_i32_0 = arith.constant 0 : i32
    %c0_i32_1 = arith.constant 0 : i32
    return %c0_i32, %c0_i32_0 : i32, i32
  }
  func.func @transform_3(%arg0: i32, %arg1: i32) -> (i32, i32, i32, i32) {
    %c0_i32 = arith.constant 0 : i32
    %c0_i32_0 = arith.constant 0 : i32
    %c0_i32_1 = arith.constant 0 : i32
    return %arg0, %arg1, %c0_i32, %c0_i32_0 : i32, i32, i32, i32
  }
}

module attributes {stable_mosaic.version = 11 : i64} {
  func.func @_matmul_prelu_kernel(%arg0: i32, %arg1: memref<8x128xbf16, #tpu.memory_space<vmem>>, %arg2: memref<128x256xbf16, #tpu.memory_space<vmem>>, %arg3: memref<1x256xf32, #tpu.memory_space<vmem>>, %arg4: memref<8x256xbf16, #tpu.memory_space<vmem>>) attributes {dimension_semantics = [#tpu.dimension_semantics<parallel>], iteration_bounds = array<i64: 1>, scalar_prefetch = 0 : i64, scratch_operands = 0 : i64, tpu.core_type = #tpu.core_type<tc>, window_params = [{transform_indices = @transform_0, window_bounds = array<i64: 8, 128>}, {pipeline_mode = #tpu.pipeline_mode<synchronous>, transform_indices = @transform_1, window_bounds = array<i64: 128, 256>}, {pipeline_mode = #tpu.pipeline_mode<synchronous>, transform_indices = @transform_2, window_bounds = array<i64: 1, 256>}, {transform_indices = @transform_3, window_bounds = array<i64: 8, 256>}]} {
    %c0 = arith.constant 0 : index
    %c0_0 = arith.constant 0 : index
    %0 = vector.load %arg1[%c0, %c0_0] : memref<8x128xbf16, #tpu.memory_space<vmem>>, vector<8x128xbf16>
    %c0_1 = arith.constant 0 : index
    %c0_2 = arith.constant 0 : index
    %1 = vector.load %arg2[%c0_1, %c0_2] : memref<128x256xbf16, #tpu.memory_space<vmem>>, vector<128x256xbf16>
    %cst = arith.constant dense<0.000000e+00> : vector<8x256xf32>
    %2 = tpu.matmul %0, %1, %cst {dimension_numbers = #tpu.dot_dimension_numbers<[1], [0], [0], [1], [0, 0, 1, 1], [], []>} : vector<8x128xbf16>, vector<128x256xbf16>, vector<8x256xf32> -> vector<8x256xf32>
    %c0_3 = arith.constant 0 : index
    %c0_4 = arith.constant 0 : index
    %3 = vector.load %arg3[%c0_3, %c0_4] : memref<1x256xf32, #tpu.memory_space<vmem>>, vector<1x256xf32>
    %4 = vector.broadcast %3 : vector<1x256xf32> to vector<8x256xf32>
    %5 = arith.addf %2, %4 : vector<8x256xf32>
    %cst_5 = arith.constant 0.000000e+00 : f32
    %6 = vector.broadcast %cst_5 : f32 to vector<8x256xf32>
    %7 = arith.cmpf oge, %5, %6 : vector<8x256xf32>
    %cst_6 = arith.constant 2.500000e-01 : f32
    %8 = vector.broadcast %cst_6 : f32 to vector<8x256xf32>
    %9 = arith.mulf %8, %5 : vector<8x256xf32>
    %10 = arith.select %7, %5, %9 : vector<8x256xi1>, vector<8x256xf32>
    %11 = arith.truncf %10 : vector<8x256xf32> to vector<8x256xbf16>
    %c0_7 = arith.constant 0 : index
    %c0_8 = arith.constant 0 : index
    %12 = vector.load %arg4[%c0_7, %c0_8] : memref<8x256xbf16, #tpu.memory_space<vmem>>, vector<8x256xbf16>
    tpu.vector_store %arg4[%c0_7, %c0_8], %11 {strides = array<i32>} : memref<8x256xbf16, #tpu.memory_space<vmem>>, vector<8x256xbf16>,
    return
  }
  func.func @transform_0(%arg0: i32) -> (i32, i32) {
    %c0_i32 = arith.constant 0 : i32
    %c0_i32_0 = arith.constant 0 : i32
    return %arg0, %c0_i32 : i32, i32
  }
  func.func @transform_1(%arg0: i32) -> (i32, i32) {
    %c0_i32 = arith.constant 0 : i32
    %c0_i32_0 = arith.constant 0 : i32
    %c0_i32_1 = arith.constant 0 : i32
    return %c0_i32, %c0_i32_0 : i32, i32
  }
  func.func @transform_2(%arg0: i32) -> (i32, i32) {
    %c0_i32 = arith.constant 0 : i32
    %c0_i32_0 = arith.constant 0 : i32
    %c0_i32_1 = arith.constant 0 : i32
    return %c0_i32, %c0_i32_0 : i32, i32
  }
  func.func @transform_3(%arg0: i32) -> (i32, i32) {
    %c0_i32 = arith.constant 0 : i32
    %c0_i32_0 = arith.constant 0 : i32
    return %arg0, %c0_i32 : i32, i32
  }
}

module attributes {stable_mosaic.version = 11 : i64} {
  func.func @_matmul_prelu_kernel(%arg0: i32, %arg1: memref<16x128xbf16, #tpu.memory_space<vmem>>, %arg2: memref<128x128xbf16, #tpu.memory_space<vmem>>, %arg3: memref<1x128xf32, #tpu.memory_space<vmem>>, %arg4: memref<16x128xbf16, #tpu.memory_space<vmem>>) attributes {dimension_semantics = [#tpu.dimension_semantics<parallel>], iteration_bounds = array<i64: 1>, scalar_prefetch = 0 : i64, scratch_operands = 0 : i64, tpu.core_type = #tpu.core_type<tc>, window_params = [{transform_indices = @transform_0, window_bounds = array<i64: 16, 128>}, {pipeline_mode = #tpu.pipeline_mode<synchronous>, transform_indices = @transform_1, window_bounds = array<i64: 128, 128>}, {pipeline_mode = #tpu.pipeline_mode<synchronous>, transform_indices = @transform_2, window_bounds = array<i64: 1, 128>}, {transform_indices = @transform_3, window_bounds = array<i64: 16, 128>}]} {
    %c0 = arith.constant 0 : index
    %c0_0 = arith.constant 0 : index
    %0 = vector.load %arg1[%c0, %c0_0] : memref<16x128xbf16, #tpu.memory_space<vmem>>, vector<16x128xbf16>
    %c0_1 = arith.constant 0 : index
    %c0_2 = arith.constant 0 : index
    %1 = vector.load %arg2[%c0_1, %c0_2] : memref<128x128xbf16, #tpu.memory_space<vmem>>, vector<128x128xbf16>
    %cst = arith.constant dense<0.000000e+00> : vector<16x128xf32>
    %2 = tpu.matmul %0, %1, %cst {dimension_numbers = #tpu.dot_dimension_numbers<[1], [0], [0], [1], [0, 0, 1, 1], [], []>} : vector<16x128xbf16>, vector<128x128xbf16>, vector<16x128xf32> -> vector<16x128xf32>
    %c0_3 = arith.constant 0 : index
    %c0_4 = arith.constant 0 : index
    %3 = vector.load %arg3[%c0_3, %c0_4] : memref<1x128xf32, #tpu.memory_space<vmem>>, vector<1x128xf32>
    %4 = vector.broadcast %3 : vector<1x128xf32> to vector<16x128xf32>
    %5 = arith.addf %2, %4 : vector<16x128xf32>
    %cst_5 = arith.constant 0.000000e+00 : f32
    %6 = vector.broadcast %cst_5 : f32 to vector<16x128xf32>
    %7 = arith.cmpf oge, %5, %6 : vector<16x128xf32>
    %cst_6 = arith.constant 1.000000e-01 : f32
    %8 = vector.broadcast %cst_6 : f32 to vector<16x128xf32>
    %9 = arith.mulf %8, %5 : vector<16x128xf32>
    %10 = arith.select %7, %5, %9 : vector<16x128xi1>, vector<16x128xf32>
    %11 = arith.truncf %10 : vector<16x128xf32> to vector<16x128xbf16>
    %c0_7 = arith.constant 0 : index
    %c0_8 = arith.constant 0 : index
    %12 = vector.load %arg4[%c0_7, %c0_8] : memref<16x128xbf16, #tpu.memory_space<vmem>>, vector<16x128xbf16>
    tpu.vector_store %arg4[%c0_7, %c0_8], %11 {strides = array<i32>} : memref<16x128xbf16, #tpu.memory_space<vmem>>, vector<16x128xbf16>,
    return
  }
  func.func @transform_0(%arg0: i32) -> (i32, i32) {
    %c0_i32 = arith.constant 0 : i32
    %c0_i32_0 = arith.constant 0 : i32
    return %arg0, %c0_i32 : i32, i32
  }
  func.func @transform_1(%arg0: i32) -> (i32, i32) {
    %c0_i32 = arith.constant 0 : i32
    %c0_i32_0 = arith.constant 0 : i32
    %c0_i32_1 = arith.constant 0 : i32
    return %c0_i32, %c0_i32_0 : i32, i32
  }
  func.func @transform_2(%arg0: i32) -> (i32, i32) {
    %c0_i32 = arith.constant 0 : i32
    %c0_i32_0 = arith.constant 0 : i32
    %c0_i32_1 = arith.constant 0 : i32
    return %c0_i32, %c0_i32_0 : i32, i32
  }
  func.func @transform_3(%arg0: i32) -> (i32, i32) {
    %c0_i32 = arith.constant 0 : i32
    %c0_i32_0 = arith.constant 0 : i32
    return %arg0, %c0_i32 : i32, i32
  }
}

module attributes {stable_mosaic.version = 11 : i64} {
  func.func @_matmul_prelu_kernel(%arg0: i32, %arg1: memref<32x64xbf16, #tpu.memory_space<vmem>>, %arg2: memref<64x128xbf16, #tpu.memory_space<vmem>>, %arg3: memref<1x128xf32, #tpu.memory_space<vmem>>, %arg4: memref<32x128xbf16, #tpu.memory_space<vmem>>) attributes {dimension_semantics = [#tpu.dimension_semantics<parallel>], iteration_bounds = array<i64: 1>, scalar_prefetch = 0 : i64, scratch_operands = 0 : i64, tpu.core_type = #tpu.core_type<tc>, window_params = [{transform_indices = @transform_0, window_bounds = array<i64: 32, 64>}, {pipeline_mode = #tpu.pipeline_mode<synchronous>, transform_indices = @transform_1, window_bounds = array<i64: 64, 128>}, {pipeline_mode = #tpu.pipeline_mode<synchronous>, transform_indices = @transform_2, window_bounds = array<i64: 1, 128>}, {transform_indices = @transform_3, window_bounds = array<i64: 32, 128>}]} {
    %c0 = arith.constant 0 : index
    %c0_0 = arith.constant 0 : index
    %0 = vector.load %arg1[%c0, %c0_0] : memref<32x64xbf16, #tpu.memory_space<vmem>>, vector<32x64xbf16>
    %c0_1 = arith.constant 0 : index
    %c0_2 = arith.constant 0 : index
    %1 = vector.load %arg2[%c0_1, %c0_2] : memref<64x128xbf16, #tpu.memory_space<vmem>>, vector<64x128xbf16>
    %cst = arith.constant dense<0.000000e+00> : vector<32x128xf32>
    %2 = tpu.matmul %0, %1, %cst {dimension_numbers = #tpu.dot_dimension_numbers<[1], [0], [0], [1], [0, 0, 1, 1], [], []>} : vector<32x64xbf16>, vector<64x128xbf16>, vector<32x128xf32> -> vector<32x128xf32>
    %c0_3 = arith.constant 0 : index
    %c0_4 = arith.constant 0 : index
    %3 = vector.load %arg3[%c0_3, %c0_4] : memref<1x128xf32, #tpu.memory_space<vmem>>, vector<1x128xf32>
    %4 = vector.broadcast %3 : vector<1x128xf32> to vector<32x128xf32>
    %5 = arith.addf %2, %4 : vector<32x128xf32>
    %cst_5 = arith.constant 0.000000e+00 : f32
    %6 = vector.broadcast %cst_5 : f32 to vector<32x128xf32>
    %7 = arith.cmpf oge, %5, %6 : vector<32x128xf32>
    %cst_6 = arith.constant 2.500000e-01 : f32
    %8 = vector.broadcast %cst_6 : f32 to vector<32x128xf32>
    %9 = arith.mulf %8, %5 : vector<32x128xf32>
    %10 = arith.select %7, %5, %9 : vector<32x128xi1>, vector<32x128xf32>
    %11 = arith.truncf %10 : vector<32x128xf32> to vector<32x128xbf16>
    %c0_7 = arith.constant 0 : index
    %c0_8 = arith.constant 0 : index
    %12 = vector.load %arg4[%c0_7, %c0_8] : memref<32x128xbf16, #tpu.memory_space<vmem>>, vector<32x128xbf16>
    tpu.vector_store %arg4[%c0_7, %c0_8], %11 {strides = array<i32>} : memref<32x128xbf16, #tpu.memory_space<vmem>>, vector<32x128xbf16>,
    return
  }
  func.func @transform_0(%arg0: i32) -> (i32, i32) {
    %c0_i32 = arith.constant 0 : i32
    %c0_i32_0 = arith.constant 0 : i32
    return %arg0, %c0_i32 : i32, i32
  }
  func.func @transform_1(%arg0: i32) -> (i32, i32) {
    %c0_i32 = arith.constant 0 : i32
    %c0_i32_0 = arith.constant 0 : i32
    %c0_i32_1 = arith.constant 0 : i32
    return %c0_i32, %c0_i32_0 : i32, i32
  }
  func.func @transform_2(%arg0: i32) -> (i32, i32) {
    %c0_i32 = arith.constant 0 : i32
    %c0_i32_0 = arith.constant 0 : i32
    %c0_i32_1 = arith.constant 0 : i32
    return %c0_i32, %c0_i32_0 : i32, i32
  }
  func.func @transform_3(%arg0: i32) -> (i32, i32) {
    %c0_i32 = arith.constant 0 : i32
    %c0_i32_0 = arith.constant 0 : i32
    return %arg0, %c0_i32 : i32, i32
  }
}

module attributes {stable_mosaic.version = 11 : i64} {
  func.func @_matmul_prelu_kernel(%arg0: i32, %arg1: memref<32x128xbf16, #tpu.memory_space<vmem>>, %arg2: memref<128x128xbf16, #tpu.memory_space<vmem>>, %arg3: memref<1x128xf32, #tpu.memory_space<vmem>>, %arg4: memref<32x128xbf16, #tpu.memory_space<vmem>>) attributes {dimension_semantics = [#tpu.dimension_semantics<parallel>], iteration_bounds = array<i64: 1>, scalar_prefetch = 0 : i64, scratch_operands = 0 : i64, tpu.core_type = #tpu.core_type<tc>, window_params = [{transform_indices = @transform_0, window_bounds = array<i64: 32, 128>}, {pipeline_mode = #tpu.pipeline_mode<synchronous>, transform_indices = @transform_1, window_bounds = array<i64: 128, 128>}, {pipeline_mode = #tpu.pipeline_mode<synchronous>, transform_indices = @transform_2, window_bounds = array<i64: 1, 128>}, {transform_indices = @transform_3, window_bounds = array<i64: 32, 128>}]} {
    %c0 = arith.constant 0 : index
    %c0_0 = arith.constant 0 : index
    %0 = vector.load %arg1[%c0, %c0_0] : memref<32x128xbf16, #tpu.memory_space<vmem>>, vector<32x128xbf16>
    %c0_1 = arith.constant 0 : index
    %c0_2 = arith.constant 0 : index
    %1 = vector.load %arg2[%c0_1, %c0_2] : memref<128x128xbf16, #tpu.memory_space<vmem>>, vector<128x128xbf16>
    %cst = arith.constant dense<0.000000e+00> : vector<32x128xf32>
    %2 = tpu.matmul %0, %1, %cst {dimension_numbers = #tpu.dot_dimension_numbers<[1], [0], [0], [1], [0, 0, 1, 1], [], []>} : vector<32x128xbf16>, vector<128x128xbf16>, vector<32x128xf32> -> vector<32x128xf32>
    %c0_3 = arith.constant 0 : index
    %c0_4 = arith.constant 0 : index
    %3 = vector.load %arg3[%c0_3, %c0_4] : memref<1x128xf32, #tpu.memory_space<vmem>>, vector<1x128xf32>
    %4 = vector.broadcast %3 : vector<1x128xf32> to vector<32x128xf32>
    %5 = arith.addf %2, %4 : vector<32x128xf32>
    %cst_5 = arith.constant 0.000000e+00 : f32
    %6 = vector.broadcast %cst_5 : f32 to vector<32x128xf32>
    %7 = arith.cmpf oge, %5, %6 : vector<32x128xf32>
    %cst_6 = arith.constant 1.000000e-01 : f32
    %8 = vector.broadcast %cst_6 : f32 to vector<32x128xf32>
    %9 = arith.mulf %8, %5 : vector<32x128xf32>
    %10 = arith.select %7, %5, %9 : vector<32x128xi1>, vector<32x128xf32>
    %11 = arith.truncf %10 : vector<32x128xf32> to vector<32x128xbf16>
    %c0_7 = arith.constant 0 : index
    %c0_8 = arith.constant 0 : index
    %12 = vector.load %arg4[%c0_7, %c0_8] : memref<32x128xbf16, #tpu.memory_space<vmem>>, vector<32x128xbf16>
    tpu.vector_store %arg4[%c0_7, %c0_8], %11 {strides = array<i32>} : memref<32x128xbf16, #tpu.memory_space<vmem>>, vector<32x128xbf16>,
    return
  }
  func.func @transform_0(%arg0: i32) -> (i32, i32) {
    %c0_i32 = arith.constant 0 : i32
    %c0_i32_0 = arith.constant 0 : i32
    return %arg0, %c0_i32 : i32, i32
  }
  func.func @transform_1(%arg0: i32) -> (i32, i32) {
    %c0_i32 = arith.constant 0 : i32
    %c0_i32_0 = arith.constant 0 : i32
    %c0_i32_1 = arith.constant 0 : i32
    return %c0_i32, %c0_i32_0 : i32, i32
  }
  func.func @transform_2(%arg0: i32) -> (i32, i32) {
    %c0_i32 = arith.constant 0 : i32
    %c0_i32_0 = arith.constant 0 : i32
    %c0_i32_1 = arith.constant 0 : i32
    return %c0_i32, %c0_i32_0 : i32, i32
  }
  func.func @transform_3(%arg0: i32) -> (i32, i32) {
    %c0_i32 = arith.constant 0 : i32
    %c0_i32_0 = arith.constant 0 : i32
    return %arg0, %c0_i32 : i32, i32
  }
}

module attributes {stable_mosaic.version = 11 : i64} {
  func.func @_matmul_prelu_kernel(%arg0: i32, %arg1: memref<64x64xbf16, #tpu.memory_space<vmem>>, %arg2: memref<64x128xbf16, #tpu.memory_space<vmem>>, %arg3: memref<1x128xf32, #tpu.memory_space<vmem>>, %arg4: memref<64x128xbf16, #tpu.memory_space<vmem>>) attributes {dimension_semantics = [#tpu.dimension_semantics<parallel>], iteration_bounds = array<i64: 1>, scalar_prefetch = 0 : i64, scratch_operands = 0 : i64, tpu.core_type = #tpu.core_type<tc>, window_params = [{transform_indices = @transform_0, window_bounds = array<i64: 64, 64>}, {pipeline_mode = #tpu.pipeline_mode<synchronous>, transform_indices = @transform_1, window_bounds = array<i64: 64, 128>}, {pipeline_mode = #tpu.pipeline_mode<synchronous>, transform_indices = @transform_2, window_bounds = array<i64: 1, 128>}, {transform_indices = @transform_3, window_bounds = array<i64: 64, 128>}]} {
    %c0 = arith.constant 0 : index
    %c0_0 = arith.constant 0 : index
    %0 = vector.load %arg1[%c0, %c0_0] : memref<64x64xbf16, #tpu.memory_space<vmem>>, vector<64x64xbf16>
    %c0_1 = arith.constant 0 : index
    %c0_2 = arith.constant 0 : index
    %1 = vector.load %arg2[%c0_1, %c0_2] : memref<64x128xbf16, #tpu.memory_space<vmem>>, vector<64x128xbf16>
    %cst = arith.constant dense<0.000000e+00> : vector<64x128xf32>
    %2 = tpu.matmul %0, %1, %cst {dimension_numbers = #tpu.dot_dimension_numbers<[1], [0], [0], [1], [0, 0, 1, 1], [], []>} : vector<64x64xbf16>, vector<64x128xbf16>, vector<64x128xf32> -> vector<64x128xf32>
    %c0_3 = arith.constant 0 : index
    %c0_4 = arith.constant 0 : index
    %3 = vector.load %arg3[%c0_3, %c0_4] : memref<1x128xf32, #tpu.memory_space<vmem>>, vector<1x128xf32>
    %4 = vector.broadcast %3 : vector<1x128xf32> to vector<64x128xf32>
    %5 = arith.addf %2, %4 : vector<64x128xf32>
    %cst_5 = arith.constant 0.000000e+00 : f32
    %6 = vector.broadcast %cst_5 : f32 to vector<64x128xf32>
    %7 = arith.cmpf oge, %5, %6 : vector<64x128xf32>
    %cst_6 = arith.constant 2.500000e-01 : f32
    %8 = vector.broadcast %cst_6 : f32 to vector<64x128xf32>
    %9 = arith.mulf %8, %5 : vector<64x128xf32>
    %10 = arith.select %7, %5, %9 : vector<64x128xi1>, vector<64x128xf32>
    %11 = arith.truncf %10 : vector<64x128xf32> to vector<64x128xbf16>
    %c0_7 = arith.constant 0 : index
    %c0_8 = arith.constant 0 : index
    %12 = vector.load %arg4[%c0_7, %c0_8] : memref<64x128xbf16, #tpu.memory_space<vmem>>, vector<64x128xbf16>
    tpu.vector_store %arg4[%c0_7, %c0_8], %11 {strides = array<i32>} : memref<64x128xbf16, #tpu.memory_space<vmem>>, vector<64x128xbf16>,
    return
  }
  func.func @transform_0(%arg0: i32) -> (i32, i32) {
    %c0_i32 = arith.constant 0 : i32
    %c0_i32_0 = arith.constant 0 : i32
    return %arg0, %c0_i32 : i32, i32
  }
  func.func @transform_1(%arg0: i32) -> (i32, i32) {
    %c0_i32 = arith.constant 0 : i32
    %c0_i32_0 = arith.constant 0 : i32
    %c0_i32_1 = arith.constant 0 : i32
    return %c0_i32, %c0_i32_0 : i32, i32
  }
  func.func @transform_2(%arg0: i32) -> (i32, i32) {
    %c0_i32 = arith.constant 0 : i32
    %c0_i32_0 = arith.constant 0 : i32
    %c0_i32_1 = arith.constant 0 : i32
    return %c0_i32, %c0_i32_0 : i32, i32
  }
  func.func @transform_3(%arg0: i32) -> (i32, i32) {
    %c0_i32 = arith.constant 0 : i32
    %c0_i32_0 = arith.constant 0 : i32
    return %arg0, %c0_i32 : i32, i32
  }
}

module attributes {stable_mosaic.version = 11 : i64} {
  func.func @_matmul_prelu_kernel(%arg0: i32, %arg1: memref<128x64xbf16, #tpu.memory_space<vmem>>, %arg2: memref<64x128xbf16, #tpu.memory_space<vmem>>, %arg3: memref<1x128xf32, #tpu.memory_space<vmem>>, %arg4: memref<128x128xbf16, #tpu.memory_space<vmem>>) attributes {dimension_semantics = [#tpu.dimension_semantics<parallel>], iteration_bounds = array<i64: 1>, scalar_prefetch = 0 : i64, scratch_operands = 0 : i64, tpu.core_type = #tpu.core_type<tc>, window_params = [{transform_indices = @transform_0, window_bounds = array<i64: 128, 64>}, {pipeline_mode = #tpu.pipeline_mode<synchronous>, transform_indices = @transform_1, window_bounds = array<i64: 64, 128>}, {pipeline_mode = #tpu.pipeline_mode<synchronous>, transform_indices = @transform_2, window_bounds = array<i64: 1, 128>}, {transform_indices = @transform_3, window_bounds = array<i64: 128, 128>}]} {
    %c0 = arith.constant 0 : index
    %c0_0 = arith.constant 0 : index
    %0 = vector.load %arg1[%c0, %c0_0] : memref<128x64xbf16, #tpu.memory_space<vmem>>, vector<128x64xbf16>
    %c0_1 = arith.constant 0 : index
    %c0_2 = arith.constant 0 : index
    %1 = vector.load %arg2[%c0_1, %c0_2] : memref<64x128xbf16, #tpu.memory_space<vmem>>, vector<64x128xbf16>
    %cst = arith.constant dense<0.000000e+00> : vector<128x128xf32>
    %2 = tpu.matmul %0, %1, %cst {dimension_numbers = #tpu.dot_dimension_numbers<[1], [0], [0], [1], [0, 0, 1, 1], [], []>} : vector<128x64xbf16>, vector<64x128xbf16>, vector<128x128xf32> -> vector<128x128xf32>
    %c0_3 = arith.constant 0 : index
    %c0_4 = arith.constant 0 : index
    %3 = vector.load %arg3[%c0_3, %c0_4] : memref<1x128xf32, #tpu.memory_space<vmem>>, vector<1x128xf32>
    %4 = vector.broadcast %3 : vector<1x128xf32> to vector<128x128xf32>
    %5 = arith.addf %2, %4 : vector<128x128xf32>
    %cst_5 = arith.constant 0.000000e+00 : f32
    %6 = vector.broadcast %cst_5 : f32 to vector<128x128xf32>
    %7 = arith.cmpf oge, %5, %6 : vector<128x128xf32>
    %cst_6 = arith.constant 1.000000e-01 : f32
    %8 = vector.broadcast %cst_6 : f32 to vector<128x128xf32>
    %9 = arith.mulf %8, %5 : vector<128x128xf32>
    %10 = arith.select %7, %5, %9 : vector<128x128xi1>, vector<128x128xf32>
    %11 = arith.truncf %10 : vector<128x128xf32> to vector<128x128xbf16>
    %c0_7 = arith.constant 0 : index
    %c0_8 = arith.constant 0 : index
    %12 = vector.load %arg4[%c0_7, %c0_8] : memref<128x128xbf16, #tpu.memory_space<vmem>>, vector<128x128xbf16>
    tpu.vector_store %arg4[%c0_7, %c0_8], %11 {strides = array<i32>} : memref<128x128xbf16, #tpu.memory_space<vmem>>, vector<128x128xbf16>,
    return
  }
  func.func @transform_0(%arg0: i32) -> (i32, i32) {
    %c0_i32 = arith.constant 0 : i32
    %c0_i32_0 = arith.constant 0 : i32
    return %arg0, %c0_i32 : i32, i32
  }
  func.func @transform_1(%arg0: i32) -> (i32, i32) {
    %c0_i32 = arith.constant 0 : i32
    %c0_i32_0 = arith.constant 0 : i32
    %c0_i32_1 = arith.constant 0 : i32
    return %c0_i32, %c0_i32_0 : i32, i32
  }
  func.func @transform_2(%arg0: i32) -> (i32, i32) {
    %c0_i32 = arith.constant 0 : i32
    %c0_i32_0 = arith.constant 0 : i32
    %c0_i32_1 = arith.constant 0 : i32
    return %c0_i32, %c0_i32_0 : i32, i32
  }
  func.func @transform_3(%arg0: i32) -> (i32, i32) {
    %c0_i32 = arith.constant 0 : i32
    %c0_i32_0 = arith.constant 0 : i32
    return %arg0, %c0_i32 : i32, i32
  }
}

</mosaic_0001>

<bundles_post_ra>
// kernel: _lambda_.16
= control target key start
LH: loop header
LB: loop body
LE: loop exit
PB: predicated region body
PF: predicated region fallthrough
CT: control target
= control target key end

     0   :  { %s1175_s12 = smov 0   ;;  %s1177_s13 = smov 0   ;;  %s1352_s0 = inlined_call_operand.vmem [shape: bf16[2,1,18,9,64], index: 0, kind: input, shape index: {}]   ;;  %s1353_s1 = inlined_call_operand.vmem [shape: bf16[3,2,64,32], index: 1, kind: input, shape index: {}]   ;;  %s1354_s2 = inlined_call_operand.vmem [shape: f32[1,32], index: 2, kind: input, shape index: {}]   ;;  %s1355_s3 = inlined_call_operand.vmem [shape: bf16[2,8,8,32], index: 3, kind: output, shape index: {}]  }
   0x1   :  { %s1179_s14 = smov 0  }
   0x2 LB: > { %s25_s15 = sadd.s32 1, %s1143_s13  ;;  %p858_p0 = scmp.ge.s32.totalorder %s1147_s14, 1  ;;  %s1147_s14 = sphi %s1179_s14, %s13_s14   ;;  %s1143_s13 = sphi %s1177_s13, %s1357_s13   ;;  %s1139_s12 = sphi %s1175_s12, %s1356_s12  }
   0x3   : > { %p27_p1 = scmp.ge.s32.totalorder %s25_s15, 2  ;;  %p157_p2 = scmp.lt.s32.totalorder %s1147_s14, 3 }
   0x5   : > { %s1359_s15 = smov (%p27_p1, %s25_s15), 0  ;;  %p158_p3 = pnand %p858_p0, %p157_p2 }
   0x6   : > { %p189_p4 = scmp.lt.s32.totalorder (!%p158_p3), %s1139_s12, 1  ;;  %v1196_v0 = vld [vmem:[%s1354_s2] ss:$0 sm:$0xff] (!%p158_p3)  ;;  %s1208_s26 = smov (!%p158_p3), 0  }
   0x7   : > { %161 = sbr.rel (%p158_p3) target bundleno = 291 (0x123), region = 32 }
   0xe   : > { %s1361_s12 = smov (!%p189_p4, %s1139_s12), 1 }
   0xf   : > { %s1059_s18 = smul.u32 144, %s1361_s12  ;;  %s952_s19 = sshll.u32 %s1361_s12, 5 }
  0x10   : > { %s1201_s22 = scalar_lea.vmem %s1355_s3, %s952_s19 }
  0x11   : > { %s1206_s25 = scalar_lea.vmem %s1352_s0, %s1059_s18 }
  0x12 LB: >> { %v1094_v1 = vld [vmem:[%s1353_s1 + $0x20] sm:$0xff]   ;;  %v1153_v2 = vmov 0.0   ;;  %v1096_v4 = vld [vmem:[%s1353_s1 + $0x28] sm:$0xff]   ;;  %vm1154_vm0 = vmmov 0   ;;  %s954_s6 = sshll.u32 %s1151_s26, 4  ;;  %v1098_v6 = vld [vmem:[%s1353_s1 + $0x30] sm:$0xff]   ;;  %s1151_s26 = sphi %s1208_s26, %s215_s26  }
  0x13   : >> { %987 = vmatprep.subr.bf16.mxu0 %v1153_v2  ;;  %999 = vmatprep.subr.bf16.mxu1 %v1153_v2  ;;  %v1095_v3 = vld [vmem:[%s1353_s1] sm:$0xff]   ;;  %v1097_v5 = vld [vmem:[%s1353_s1 + $0x8] sm:$0xff]   ;;  %s1235_s9 = scalar_lea.vmem %s1206_s25, %s954_s6  ;;  %v1099_v7 = vld [vmem:[%s1353_s1 + $0x10] sm:$0xff]   ;;  %vm275_vm1 = vcmask 523264   ;;  %vm745_vm3 = vcmask 257024  }
  0x14   : >> { %988 = vmatpush3.bf16.msra.mxu0 %v1094_v1  ;;  %995 = vmatprep.mubr.msk.bf16.mxu0 %vm1154_vm0, %v1153_v2  ;;  %v220_v8 = vld [vmem:[%s1235_s9] sm:$0xf]  ;;  %v229_v9 = vld [vmem:[%s1235_s9 + $0x4] sm:$0x1]  ;;  %v1100_v11 = vld [vmem:[%s1353_s1 + $0x38] sm:$0xff]  }
  0x15   : >> { %1000 = vmatpush3.bf16.msra.mxu1 %v1095_v3  ;;  %989 = vmatprep.subr.bf16.mxu0 %v1153_v2  ;;  %v873_v10 = vcombine.low %v220_v8, %v229_v9  ;;  %v1101_v12 = vld [vmem:[%s1353_s1 + $0x18] sm:$0xff]   ;;  %v1103_v16 = vld [vmem:[%s1353_s1 + $0x40] sm:$0xff]   ;;  %v1105_v19 = vld [vmem:[%s1353_s1 + $0x48] sm:$0xff]  }
  0x16   : >> { %1001 = vmatprep.subr.bf16.mxu1 %v1153_v2  ;;  %1007 = vmatprep.mubr.msk.bf16.mxu1 %vm1154_vm0, %v1153_v2  ;;  %v1104_v18 = vld [vmem:[%s1353_s1 + $0x60] sm:$0xff]   ;;  %v1111_v20 = vld [vmem:[%s1235_s9 + $0x8] sm:$0x1f]   ;;  %v1107_v22 = vld [vmem:[%s1353_s1 + $0x50] sm:$0xff]  }
  0x17   : >> { %v245_v13 = vshrl.u32 %v873_v10, 16  ;;  %v247_v14 = vshll.u32 %v873_v10, 16  ;;  %v1106_v21 = vld [vmem:[%s1353_s1 + $0x68] sm:$0xff]   ;;  %v487_v23 = vshll.u32 %v1111_v20, 16  ;;  %v1108_v24 = vld [vmem:[%s1353_s1 + $0x70] sm:$0xff]   ;;  %v1109_v25 = vld [vmem:[%s1353_s1 + $0x58] sm:$0xff]  }
  0x18   : >> { %990 = vmatpush3.bf16.msra.mxu0 %v1096_v4  ;;  %v485_v26 = vshrl.u32 %v1111_v20, 16  ;;  %v1110_v28 = vld [vmem:[%s1353_s1 + $0x78] sm:$0xff]   ;;  %v886_v29 = vld [vmem:[%s1235_s9 + $0x8] sm:$0xf]  ;;  %v1112_v31 = vld [vmem:[%s1353_s1 + $0x80] sm:$0xff]  }
  0x19   : >> { %1002 = vmatpush3.bf16.msra.mxu1 %v1097_v5  ;;  %991 = vmatprep.subr.bf16.mxu0 %v1153_v2  ;;  %v249_v15 = vrot.slane %v247_v14, 1  ;;  %v489_v27 = vrot.slane %v487_v23, 1  ;;  %v1113_v32 = vld [vmem:[%s1353_s1 + $0xa0] sm:$0xff]   ;;  %v1114_v33 = vld [vmem:[%s1353_s1 + $0x88] sm:$0xff]   ;;  %v1120_v34 = vld [vmem:[%s1235_s9 + $0x10] sm:$0x1f]  }
  0x1a   : >> { %1003 = vmatprep.subr.bf16.mxu1 %v1153_v2  ;;  %v1115_v35 = vld [vmem:[%s1353_s1 + $0xa8] sm:$0xff]   ;;  %v1116_v36 = vld [vmem:[%s1353_s1 + $0x90] sm:$0xff]   ;;  %v660_v37 = vshll.u32 %v1120_v34, 16  ;;  %v1118_v39 = vld [vmem:[%s1353_s1 + $0x98] sm:$0xff]   ;;  %v658_v40 = vshrl.u32 %v1120_v34, 16 }
  0x1b   : >> { %v250_v17 = vor.u32 %v249_v15, %v245_v13  ;;  %v490_v30 = vor.u32 %v489_v27, %v485_v26  ;;  %v1117_v38 = vld [vmem:[%s1353_s1 + $0xb0] sm:$0xff]   ;;  %v1119_v42 = vld [vmem:[%s1353_s1 + $0xb8] sm:$0xff]  }
  0x1c   : >> { %992 = vmatpush3.bf16.msra.mxu0 %v1098_v6  ;;  %v662_v41 = vrot.slane %v660_v37, 1  ;;  %v918_v43 = vld [vmem:[%s1235_s9 + $0x10] sm:$0xf]  ;;  %s949_s9 = sshll.u32 %s1151_s26, 2  ;;  %s215_s26 = sadd.s32 1, %s1151_s26  }
  0x1d   : >> { %1004 = vmatpush3.bf16.msra.mxu1 %v1099_v7  ;;  %993 = vmatprep.subr.bf16.mxu0 %v1153_v2  ;;  %s744_s10 = scalar_lea.vmem %s1201_s22, %s949_s9  ;;  %p212_p5 = scmp.ge.s32.totalorder %s215_s26, 8  }
  0x1e   : >> { %1005 = vmatprep.subr.bf16.mxu1 %v1153_v2  ;;  %v663_v44 = vor.u32 %v662_v41, %v658_v40 }
  0x20   : >> { %994 = vmatpush3.bf16.msra.mxu0 %v1100_v11 }
  0x21   : >> { %1006 = vmatpush3.bf16.msra.mxu1 %v1101_v12  ;;  %1011 = vmatprep.subr.bf16.mxu0 %v1153_v2 }
  0x22   : >> { %1023 = vmatprep.subr.bf16.mxu1 %v1153_v2 }
  0x23   : >> { %996 = vmatmul.mubr.msk.bf16.vlgmr.msra.gmra.mrb[0].mxu0 %vm275_vm1, %v250_v17 }
  0x24   : >> { %1008 = vmatmul.mubr.msk.bf16.vlgmr.msra.gmra.mrb[0].mxu1 %vm275_vm1, %v220_v8  ;;  %1012 = vmatpush3.bf16.msra.mxu0 %v1103_v16 }
  0x25   : >> { %1024 = vmatpush3.bf16.msra.mxu1 %v1104_v18  ;;  %1013 = vmatprep.subr.bf16.mxu0 %v1153_v2 }
  0x26   : >> { %1025 = vmatprep.subr.bf16.mxu1 %v1153_v2  ;;  %1019 = vmatprep.mubr.msk.bf16.mxu0 %vm1154_vm0, %v1153_v2 }
  0x27   : >> { %1031 = vmatprep.mubr.msk.bf16.mxu1 %vm1154_vm0, %v1153_v2 }
  0x28   : >> { %1014 = vmatpush3.bf16.msra.mxu0 %v1105_v19 }
  0x29   : >> { %1026 = vmatpush3.bf16.msra.mxu1 %v1106_v21  ;;  %1015 = vmatprep.subr.bf16.mxu0 %v1153_v2 }
  0x2a   : >> { %1027 = vmatprep.subr.bf16.mxu1 %v1153_v2 }
  0x2c   : >> { %1016 = vmatpush3.bf16.msra.mxu0 %v1107_v22 }
  0x2d   : >> { %1028 = vmatpush3.bf16.msra.mxu1 %v1108_v24  ;;  %1017 = vmatprep.subr.bf16.mxu0 %v1153_v2 }
  0x2e   : >> { %1029 = vmatprep.subr.bf16.mxu1 %v1153_v2 }
  0x30   : >> { %1018 = vmatpush3.bf16.msra.mxu0 %v1109_v25 }
  0x31   : >> { %1030 = vmatpush3.bf16.msra.mxu1 %v1110_v28  ;;  %1035 = vmatprep.subr.bf16.mxu0 %v1153_v2 }
  0x32   : >> { %1047 = vmatprep.subr.bf16.mxu1 %v1153_v2 }
  0x33   : >> { %1020 = vmatmul.mubr.msk.bf16.vlgmr.msra.gmra.mrb[4].mxu0 %vm275_vm1, %v886_v29 }
  0x34   : >> { %1032 = vmatmul.mubr.msk.bf16.vlgmr.msra.gmra.mrb[4].mxu1 %vm275_vm1, %v490_v30  ;;  %1036 = vmatpush3.bf16.msra.mxu0 %v1112_v31 }
  0x35   : >> { %1048 = vmatpush3.bf16.msra.mxu1 %v1113_v32  ;;  %1037 = vmatprep.subr.bf16.mxu0 %v1153_v2 }
  0x36   : >> { %1049 = vmatprep.subr.bf16.mxu1 %v1153_v2  ;;  %1043 = vmatprep.mubr.msk.bf16.mxu0 %vm1154_vm0, %v1153_v2 }
  0x37   : >> { %1055 = vmatprep.mubr.msk.bf16.mxu1 %vm1154_vm0, %v1153_v2 }
  0x38   : >> { %1038 = vmatpush3.bf16.msra.mxu0 %v1114_v33 }
  0x39   : >> { %1050 = vmatpush3.bf16.msra.mxu1 %v1115_v35  ;;  %1039 = vmatprep.subr.bf16.mxu0 %v1153_v2 }
  0x3a   : >> { %1051 = vmatprep.subr.bf16.mxu1 %v1153_v2 }
  0x3c   : >> { %1040 = vmatpush3.bf16.msra.mxu0 %v1116_v36 }
  0x3d   : >> { %1052 = vmatpush3.bf16.msra.mxu1 %v1117_v38  ;;  %1041 = vmatprep.subr.bf16.mxu0 %v1153_v2 }
  0x3e   : >> { %1053 = vmatprep.subr.bf16.mxu1 %v1153_v2 }
  0x40   : >> { %1042 = vmatpush3.bf16.msra.mxu0 %v1118_v39 }
  0x41   : >> { %1054 = vmatpush3.bf16.msra.mxu1 %v1119_v42 }
  0x43   : >> { %1044 = vmatmul.mubr.msk.bf16.vlgmr.msra.gmra.mrb[8].mxu0 %vm275_vm1, %v918_v43 }
  0x44   : >> { %1056 = vmatmul.mubr.msk.bf16.vlgmr.msra.gmra.mrb[8].mxu1 %vm275_vm1, %v663_v44 }
  0xf6   : >> { %v313_v45 = vpop.f32.mrb[0].mxu0 }
  0xf7   : >> { %v380_v46 = vpop.f32.mrb[0].mxu1  ;;  %v997_v47 = vpop.f32.mrb[1].mxu0 }
  0xf8   : >> { %v381_v48 = vadd.f32 %v380_v46, %v313_v45  ;;  %v1009_v49 = vpop.f32.mrb[1].mxu1  ;;  %v316_v50 = vpop.f32.mrb[2].mxu0 }
  0xf9   : >> { %v383_v51 = vpop.f32.mrb[2].mxu1  ;;  %v998_v52 = vpop.f32.mrb[3].mxu0 }
  0xfa   : >> { %v1010_v53 = vpop.f32.mrb[3].mxu1 }
 0x106   : >> { %v461_v54 = vpop.f32.mrb[4].mxu0 }
 0x107   : >> { %v467_v55 = vadd.f32 %v461_v54, %v381_v48  ;;  %v552_v56 = vpop.f32.mrb[4].mxu1  ;;  %v1021_v57 = vpop.f32.mrb[5].mxu0 }
 0x108   : >> { %v1033_v58 = vpop.f32.mrb[5].mxu1  ;;  %v464_v59 = vpop.f32.mrb[6].mxu0 }
 0x109   : >> { %v558_v60 = vadd.f32 %v552_v56, %v467_v55  ;;  %v555_v61 = vpop.f32.mrb[6].mxu1  ;;  %v1022_v62 = vpop.f32.mrb[7].mxu0 }
 0x10a   : >> { %v1034_v63 = vpop.f32.mrb[7].mxu1 }
 0x116   : >> { %v634_v1 = vpop.f32.mrb[8].mxu0 }
 0x117   : >> { %v640_v2 = vadd.f32 %v634_v1, %v558_v60  ;;  %v725_v3 = vpop.f32.mrb[8].mxu1  ;;  %v1045_v4 = vpop.f32.mrb[9].mxu0 }
 0x118   : >> { %v1057_v5 = vpop.f32.mrb[9].mxu1  ;;  %v637_v6 = vpop.f32.mrb[10].mxu0 }
 0x119   : >> { %v731_v7 = vadd.f32 %v725_v3, %v640_v2  ;;  %v728_v8 = vpop.f32.mrb[10].mxu1  ;;  %v1046_v9 = vpop.f32.mrb[11].mxu0 }
 0x11a   : >> { %v1058_v10 = vpop.f32.mrb[11].mxu1 }
 0x11b   : >> { %v738_v11 = vadd.f32 %v1196_v0, %v731_v7 }
 0x11c   : > { %214 = sbr.rel (!%p212_p5) target bundleno = 18 (0x12), region = 78 }
 0x11d   : >> { %vm739_vm2 = vcmp.ge.f32.partialorder %v738_v11, 0.0  ;;  %v740_v12 = vmul.f32 0.1, %v738_v11 }
 0x11f   : >> { %v741_v13 = vsel %vm739_vm2, %v738_v11, %v740_v12 }
 0x120   : >> { %v742_v14 = vpack.c.bf16 %v741_v13, %v741_v13 }
 0x122   : >> { %746 = vst.msk [vmem:[%s744_s10] sm:$0xf] %vm745_vm3, %v742_v14 }
 0x123 PF: > { %s13_s14 = sadd.s32 1, %s1147_s14   ;;  %s1356_s12 = smov %s1143_s13 }
 0x124   : > { %p10_p6 = scmp.ge.s32.totalorder %s13_s14, 4   ;;  %s1357_s13 = smov %s1359_s15 }
 0x126   :  { %12 = sbr.rel (!%p10_p6) target bundleno = 2 (0x2), region = 89 }

// kernel: _lambda_.17
= control target key start
LH: loop header
LB: loop body
LE: loop exit
PB: predicated region body
PF: predicated region fallthrough
CT: control target
= control target key end

     0   :  { %s1256_s12 = smov 0   ;;  %s1258_s13 = smov 0   ;;  %s1423_s0 = inlined_call_operand.vmem [shape: bf16[2,1,10,10,32], index: 0, kind: input, shape index: {}]   ;;  %s1424_s1 = inlined_call_operand.vmem [shape: bf16[3,3,32,64], index: 1, kind: input, shape index: {}]   ;;  %s1425_s2 = inlined_call_operand.vmem [shape: f32[1,64], index: 2, kind: input, shape index: {}]   ;;  %s1426_s3 = inlined_call_operand.vmem [shape: bf16[2,8,8,64], index: 3, kind: output, shape index: {}]  }
   0x1   :  { %s1260_s14 = smov 0  }
   0x2 LB: > { %s25_s15 = sadd.s32 1, %s1224_s13  ;;  %p957_p0 = scmp.ge.s32.totalorder %s1228_s14, 1  ;;  %s1228_s14 = sphi %s1260_s14, %s13_s14   ;;  %s1224_s13 = sphi %s1258_s13, %s1428_s13   ;;  %s1220_s12 = sphi %s1256_s12, %s1427_s12  }
   0x3   : > { %p27_p1 = scmp.ge.s32.totalorder %s25_s15, 2  ;;  %p157_p2 = scmp.lt.s32.totalorder %s1228_s14, 3 }
   0x5   : > { %s1430_s15 = smov (%p27_p1, %s25_s15), 0  ;;  %p158_p3 = pnand %p957_p0, %p157_p2 }
   0x6   : > { %p189_p4 = scmp.lt.s32.totalorder (!%p158_p3), %s1220_s12, 1  ;;  %v1277_v0 = vld [vmem:[%s1425_s2] ss:$0 sm:$0xff] (!%p158_p3)  ;;  %s1289_s26 = smov (!%p158_p3), 0  }
   0x7   : > { %161 = sbr.rel (%p158_p3) target bundleno = 284 (0x11c), region = 32 }
   0xe   : > { %s1432_s12 = smov (!%p189_p4, %s1220_s12), 1 }
   0xf   : > { %s1143_s18 = smul.u32 80, %s1432_s12  ;;  %s1042_s19 = sshll.u32 %s1432_s12, 5 }
  0x10   : > { %s1282_s22 = scalar_lea.vmem %s1426_s3, %s1042_s19 }
  0x11   : > { %s1287_s25 = scalar_lea.vmem %s1423_s0, %s1143_s18 }
  0x12 LB: >> { %v1178_v1 = vld [vmem:[%s1424_s1 + $0x10] sm:$0xff]   ;;  %v1234_v2 = vmov 0.0   ;;  %v1179_v3 = vld [vmem:[%s1424_s1] sm:$0xff]   ;;  %v1180_v4 = vld [vmem:[%s1424_s1 + $0x18] sm:$0xff]   ;;  %vm1235_vm0 = vmmov 0   ;;  %s1043_s6 = sshll.u32 %s1232_s26, 3  ;;  %s1232_s26 = sphi %s1289_s26, %s215_s26  }
  0x13   : >> { %1071 = vmatprep.subr.bf16.mxu0 %v1234_v2  ;;  %1079 = vmatprep.subr.bf16.mxu1 %v1234_v2  ;;  %v1181_v5 = vld [vmem:[%s1424_s1 + $0x8] sm:$0xff]   ;;  %s1313_s9 = scalar_lea.vmem %s1287_s25, %s1043_s6  ;;  %vm254_vm1 = vcmask 261120   ;;  %v1184_v11 = vld [vmem:[%s1424_s1 + $0x30] sm:$0xff]   ;;  %v1183_v14 = vld [vmem:[%s1424_s1 + $0x20] sm:$0xff]   ;;  %vm846_vm3 = vcmask 519168  }
  0x14   : >> { %1072 = vmatpush3.bf16.msra.mxu0 %v1178_v1  ;;  %1075 = vmatprep.mubr.msk.bf16.mxu0 %vm1235_vm0, %v1234_v2  ;;  %v219_v6 = vld [vmem:[%s1313_s9] sm:$0xf]  ;;  %v224_v7 = vld [vmem:[%s1313_s9 + $0x4] sm:$0x1]  ;;  %v1186_v16 = vld [vmem:[%s1424_s1 + $0x38] sm:$0xff]  }
  0x15   : >> { %1080 = vmatpush3.bf16.msra.mxu1 %v1179_v3  ;;  %1073 = vmatprep.subr.bf16.mxu0 %v1234_v2  ;;  %v967_v8 = vcombine.low %v219_v6, %v224_v7  ;;  %v353_v12 = vld [vmem:[%s1313_s9] sm:$0xe]  ;;  %v1185_v17 = vld [vmem:[%s1424_s1 + $0x28] sm:$0xff]   ;;  %v1189_v22 = vld [vmem:[%s1424_s1 + $0x50] sm:$0xff]  }
  0x16   : >> { %1081 = vmatprep.subr.bf16.mxu1 %v1234_v2  ;;  %1083 = vmatprep.mubr.msk.bf16.mxu1 %vm1235_vm0, %v1234_v2  ;;  %v978_v18 = vcombine.low %v353_v12, %v224_v7  ;;  %v983_v19 = vld [vmem:[%s1313_s9 + $0x8] sm:$0xf]  ;;  %v992_v21 = vld [vmem:[%s1313_s9 + $0xc] sm:$0x1]  ;;  %v1188_v27 = vld [vmem:[%s1424_s1 + $0x40] sm:$0xff]  }
  0x17   : >> { %v236_v9 = vshrl.u32 %v967_v8, 16  ;;  %v238_v10 = vshll.u32 %v967_v8, 16  ;;  %v991_v20 = vld [vmem:[%s1313_s9 + $0x8] sm:$0xf]  ;;  %v1191_v28 = vld [vmem:[%s1424_s1 + $0x58] sm:$0xff]   ;;  %v1195_v37 = vld [vmem:[%s1424_s1 + $0x70] sm:$0xff]  }
  0x18   : >> { %1074 = vmatpush3.bf16.msra.mxu0 %v1180_v4  ;;  %v997_v23 = vcombine.low %v991_v20, %v992_v21  ;;  %v1001_v24 = vld [vmem:[%s1313_s9 + $0x8] sm:$0xe]  ;;  %v362_v25 = vrot.slane %v978_v18, 1  ;;  %v1019_v30 = vld [vmem:[%s1313_s9 + $0x10] sm:$0xf]  ;;  %v1193_v40 = vld [vmem:[%s1424_s1 + $0x60] sm:$0xff]  }
  0x19   : >> { %1082 = vmatpush3.bf16.msra.mxu1 %v1181_v5  ;;  %1087 = vmatprep.subr.bf16.mxu0 %v1234_v2  ;;  %v240_v13 = vrot.slane %v238_v10, 1  ;;  %v1006_v29 = vcombine.low %v1001_v24, %v992_v21  ;;  %v1020_v31 = vld [vmem:[%s1313_s9 + $0x14] sm:$0x1]  ;;  %v1190_v35 = vld [vmem:[%s1424_s1 + $0x48] sm:$0xff]   ;;  %v1197_v43 = vld [vmem:[%s1424_s1 + $0x78] sm:$0xff]  }
  0x1a   : >> { %1095 = vmatprep.subr.bf16.mxu1 %v1234_v2  ;;  %v500_v26 = vshll.u32 %v997_v23, 16  ;;  %v498_v32 = vshrl.u32 %v997_v23, 16  ;;  %v1025_v34 = vcombine.low %v1019_v30, %v1020_v31  ;;  %v1196_v44 = vld [vmem:[%s1424_s1 + $0x68] sm:$0xff]   ;;  %v1011_v46 = vld [vmem:[%s1313_s9 + $0x10] sm:$0xf]  ;;  %v1198_v47 = vld [vmem:[%s1424_s1 + $0x80] sm:$0xff]  }
  0x1b   : >> { %v241_v15 = vor.u32 %v240_v13, %v236_v9  ;;  %v569_v36 = vrot.slane %v1006_v29, 1  ;;  %v1029_v48 = vld [vmem:[%s1313_s9 + $0x10] sm:$0xe]  ;;  %v1200_v50 = vld [vmem:[%s1424_s1 + $0x88] sm:$0xff]   ;;  %s1039_s9 = sshll.u32 %s1232_s26, 2  ;;  %s215_s26 = sadd.s32 1, %s1232_s26  }
  0x1c   : >> { %1084 = vmatmul.mubr.msk.bf16.vlgmr.msra.gmra.mrb[0].mxu1 %vm254_vm1, %v219_v6  ;;  %v502_v33 = vrot.slane %v500_v26, 1  ;;  %v707_v38 = vshll.u32 %v1025_v34, 16  ;;  %v705_v41 = vshrl.u32 %v1025_v34, 16  ;;  %v1034_v49 = vcombine.low %v1029_v48, %v1020_v31  ;;  %s845_s21 = scalar_lea.vmem %s1282_s22, %s1039_s9  ;;  %p212_p5 = scmp.ge.s32.totalorder %s215_s26, 8  }
  0x1d   : >> { %1096 = vmatpush3.bf16.msra.mxu1 %v1184_v11  ;;  %1099 = vmatprep.mubr.msk.bf16.mxu1 %vm1235_vm0, %v1234_v2 }
  0x1e   : >> { %1097 = vmatprep.subr.bf16.mxu1 %v1234_v2  ;;  %1076 = vmatmul.mubr.msk.bf16.vlgmr.msra.gmra.mrb[0].mxu0 %vm254_vm1, %v241_v15  ;;  %v503_v39 = vor.u32 %v502_v33, %v498_v32  ;;  %v709_v42 = vrot.slane %v707_v38, 1  ;;  %v776_v51 = vrot.slane %v1034_v49, 1 }
  0x1f   : >> { %1088 = vmatpush3.bf16.msra.mxu0 %v1183_v14  ;;  %1091 = vmatprep.mubr.msk.bf16.mxu0 %vm1235_vm0, %v1234_v2 }
  0x20   : >> { %1089 = vmatprep.subr.bf16.mxu0 %v1234_v2  ;;  %v710_v45 = vor.u32 %v709_v42, %v705_v41 }
  0x21   : >> { %1098 = vmatpush3.bf16.msra.mxu1 %v1186_v16 }
  0x22   : >> { %1111 = vmatprep.subr.bf16.mxu1 %v1234_v2 }
  0x23   : >> { %1090 = vmatpush3.bf16.msra.mxu0 %v1185_v17 }
  0x24   : >> { %1100 = vmatmul.mubr.msk.bf16.vlgmr.msra.gmra.mrb[4].mxu1 %vm254_vm1, %v983_v19  ;;  %1103 = vmatprep.subr.bf16.mxu0 %v1234_v2 }
  0x25   : >> { %1112 = vmatpush3.bf16.msra.mxu1 %v1189_v22  ;;  %1115 = vmatprep.mubr.msk.bf16.mxu1 %vm1235_vm0, %v1234_v2 }
  0x26   : >> { %1113 = vmatprep.subr.bf16.mxu1 %v1234_v2  ;;  %1092 = vmatmul.mubr.msk.bf16.vlgmr.msra.gmra.mrb[4].mxu0 %vm254_vm1, %v362_v25 }
  0x27   : >> { %1104 = vmatpush3.bf16.msra.mxu0 %v1188_v27  ;;  %1107 = vmatprep.mubr.msk.bf16.mxu0 %vm1235_vm0, %v1234_v2 }
  0x28   : >> { %1105 = vmatprep.subr.bf16.mxu0 %v1234_v2 }
  0x29   : >> { %1114 = vmatpush3.bf16.msra.mxu1 %v1191_v28 }
  0x2a   : >> { %1127 = vmatprep.subr.bf16.mxu1 %v1234_v2 }
  0x2b   : >> { %1106 = vmatpush3.bf16.msra.mxu0 %v1190_v35 }
  0x2c   : >> { %1116 = vmatmul.mubr.msk.bf16.vlgmr.msra.gmra.mrb[8].mxu1 %vm254_vm1, %v569_v36  ;;  %1119 = vmatprep.subr.bf16.mxu0 %v1234_v2 }
  0x2d   : >> { %1128 = vmatpush3.bf16.msra.mxu1 %v1195_v37  ;;  %1131 = vmatprep.mubr.msk.bf16.mxu1 %vm1235_vm0, %v1234_v2 }
  0x2e   : >> { %1129 = vmatprep.subr.bf16.mxu1 %v1234_v2  ;;  %1108 = vmatmul.mubr.msk.bf16.vlgmr.msra.gmra.mrb[8].mxu0 %vm254_vm1, %v503_v39 }
  0x2f   : >> { %1120 = vmatpush3.bf16.msra.mxu0 %v1193_v40  ;;  %1123 = vmatprep.mubr.msk.bf16.mxu0 %vm1235_vm0, %v1234_v2 }
  0x30   : >> { %1121 = vmatprep.subr.bf16.mxu0 %v1234_v2 }
  0x31   : >> { %1130 = vmatpush3.bf16.msra.mxu1 %v1197_v43 }
  0x33   : >> { %1122 = vmatpush3.bf16.msra.mxu0 %v1196_v44 }
  0x34   : >> { %1132 = vmatmul.mubr.msk.bf16.vlgmr.msra.gmra.mrb[12].mxu1 %vm254_vm1, %v710_v45  ;;  %1135 = vmatprep.subr.bf16.mxu0 %v1234_v2 }
  0x36   : >> { %1124 = vmatmul.mubr.msk.bf16.vlgmr.msra.gmra.mrb[12].mxu0 %vm254_vm1, %v1011_v46 }
  0x37   : >> { %1136 = vmatpush3.bf16.msra.mxu0 %v1198_v47  ;;  %1139 = vmatprep.mubr.msk.bf16.mxu0 %vm1235_vm0, %v1234_v2 }
  0x38   : >> { %1137 = vmatprep.subr.bf16.mxu0 %v1234_v2 }
  0x3b   : >> { %1138 = vmatpush3.bf16.msra.mxu0 %v1200_v50 }
  0x3e   : >> { %1140 = vmatmul.mubr.msk.bf16.vlgmr.msra.gmra.mrb[16].mxu0 %vm254_vm1, %v776_v51 }
  0xef   : >> { %v347_v52 = vpop.f32.mrb[0].mxu1 }
  0xf0   : >> { %v1085_v53 = vpop.f32.mrb[1].mxu1 }
  0xf1   : >> { %v350_v54 = vpop.f32.mrb[2].mxu1  ;;  %v292_v55 = vpop.f32.mrb[0].mxu0 }
  0xf2   : >> { %v1086_v56 = vpop.f32.mrb[3].mxu1  ;;  %v348_v57 = vadd.f32 %v347_v52, %v292_v55  ;;  %v1077_v58 = vpop.f32.mrb[1].mxu0 }
  0xf3   : >> { %v295_v59 = vpop.f32.mrb[2].mxu0 }
  0xf4   : >> { %v1078_v60 = vpop.f32.mrb[3].mxu0 }
  0xf7   : >> { %v478_v61 = vpop.f32.mrb[4].mxu1 }
  0xf8   : >> { %v1101_v62 = vpop.f32.mrb[5].mxu1 }
  0xf9   : >> { %v481_v63 = vpop.f32.mrb[6].mxu1  ;;  %v412_v1 = vpop.f32.mrb[4].mxu0 }
  0xfa   : >> { %v1102_v3 = vpop.f32.mrb[7].mxu1  ;;  %v418_v4 = vadd.f32 %v412_v1, %v348_v57  ;;  %v1093_v2 = vpop.f32.mrb[5].mxu0 }
  0xfb   : >> { %v415_v5 = vpop.f32.mrb[6].mxu0 }
  0xfc   : >> { %v484_v6 = vadd.f32 %v478_v61, %v418_v4  ;;  %v1094_v7 = vpop.f32.mrb[7].mxu0 }
  0xff   : >> { %v619_v8 = vpop.f32.mrb[8].mxu1 }
 0x100   : >> { %v1117_v9 = vpop.f32.mrb[9].mxu1 }
 0x101   : >> { %v622_v10 = vpop.f32.mrb[10].mxu1  ;;  %v553_v11 = vpop.f32.mrb[8].mxu0 }
 0x102   : >> { %v1118_v12 = vpop.f32.mrb[11].mxu1  ;;  %v559_v13 = vadd.f32 %v553_v11, %v484_v6  ;;  %v1109_v14 = vpop.f32.mrb[9].mxu0 }
 0x103   : >> { %v556_v15 = vpop.f32.mrb[10].mxu0 }
 0x104   : >> { %v625_v16 = vadd.f32 %v619_v8, %v559_v13  ;;  %v1110_v17 = vpop.f32.mrb[11].mxu0 }
 0x107   : >> { %v760_v18 = vpop.f32.mrb[12].mxu1 }
 0x108   : >> { %v1133_v19 = vpop.f32.mrb[13].mxu1 }
 0x109   : >> { %v763_v20 = vpop.f32.mrb[14].mxu1  ;;  %v685_v21 = vpop.f32.mrb[12].mxu0 }
 0x10a   : >> { %v1134_v22 = vpop.f32.mrb[15].mxu1  ;;  %v691_v23 = vadd.f32 %v685_v21, %v625_v16  ;;  %v1125_v24 = vpop.f32.mrb[13].mxu0 }
 0x10b   : >> { %v688_v25 = vpop.f32.mrb[14].mxu0 }
 0x10c   : >> { %v766_v26 = vadd.f32 %v760_v18, %v691_v23  ;;  %v1126_v27 = vpop.f32.mrb[15].mxu0 }
 0x111   : >> { %v826_v28 = vpop.f32.mrb[16].mxu0 }
 0x112   : >> { %v832_v29 = vadd.f32 %v826_v28, %v766_v26  ;;  %v1141_v30 = vpop.f32.mrb[17].mxu0 }
 0x113   : >> { %v829_v31 = vpop.f32.mrb[18].mxu0 }
 0x114   : >> { %v839_v32 = vadd.f32 %v1277_v0, %v832_v29  ;;  %v1142_v33 = vpop.f32.mrb[19].mxu0 }
 0x115   : > { %214 = sbr.rel (!%p212_p5) target bundleno = 18 (0x12), region = 81 }
 0x116   : >> { %vm840_vm2 = vcmp.ge.f32.partialorder %v839_v32, 0.0  ;;  %v841_v34 = vmul.f32 0.1, %v839_v32 }
 0x118   : >> { %v842_v35 = vsel %vm840_vm2, %v839_v32, %v841_v34 }
 0x119   : >> { %v843_v36 = vpack.c.bf16 %v842_v35, %v842_v35 }
 0x11b   : >> { %847 = vst.msk [vmem:[%s845_s21] sm:$0xf] %vm846_vm3, %v843_v36 }
 0x11c PF: > { %s13_s14 = sadd.s32 1, %s1228_s14   ;;  %s1427_s12 = smov %s1224_s13 }
 0x11d   : > { %p10_p6 = scmp.ge.s32.totalorder %s13_s14, 4   ;;  %s1428_s13 = smov %s1430_s15 }
 0x11f   :  { %12 = sbr.rel (!%p10_p6) target bundleno = 2 (0x2), region = 92 }

// kernel: _lambda_.15
= control target key start
LH: loop header
LB: loop body
LE: loop exit
PB: predicated region body
PF: predicated region fallthrough
CT: control target
= control target key end

     0   :  { %s4315_s12 = smov 0   ;;  %s4317_s13 = smov 0   ;;  %s4985_s0 = inlined_call_operand.vmem [shape: bf16[2,1,22,22,3], index: 0, kind: input, shape index: {}]   ;;  %s4986_s1 = inlined_call_operand.vmem [shape: bf16[7,7,3,32], index: 1, kind: input, shape index: {}]   ;;  %s4987_s2 = inlined_call_operand.vmem [shape: f32[1,32], index: 2, kind: input, shape index: {}]   ;;  %s4988_s3 = inlined_call_operand.vmem [shape: bf16[2,16,16,32], index: 3, kind: output, shape index: {}]  }
   0x1   :  { %s4319_s14 = smov 0  }
   0x2 LB: > { %s25_s15 = sadd.s32 1, %s4282_s13  ;;  %p3548_p0 = scmp.ge.s32.totalorder %s4286_s14, 1  ;;  %s4286_s14 = sphi %s4319_s14, %s13_s14   ;;  %s4282_s13 = sphi %s4317_s13, %s4990_s13   ;;  %s4278_s12 = sphi %s4315_s12, %s4989_s12  }
   0x3   : > { %p27_p1 = scmp.ge.s32.totalorder %s25_s15, 2  ;;  %p157_p2 = scmp.lt.s32.totalorder %s4286_s14, 3 }
   0x5   : > { %s4992_s15 = smov (%p27_p1, %s25_s15), 0  ;;  %p158_p3 = pnand %p3548_p0, %p157_p2 }
   0x6   : > { %p190_p4 = scmp.lt.s32.totalorder (!%p158_p3), %s4278_s12, 1  ;;  %v4336_v0 = vld [vmem:[%s4987_s2] ss:$0 sm:$0xff] (!%p158_p3)  ;;  %s4348_s26 = smov (!%p158_p3), 0  }
   0x7   : > { %161 = sbr.rel (%p158_p3) target bundleno = 448 (0x1c0), region = 32 }
   0xe   : > { %s4994_s12 = smov (!%p190_p4, %s4278_s12), 1 }
   0xf   : > { %s4169_s18 = smul.u32 264, %s4994_s12  ;;  %s3772_s19 = sshll.u32 %s4994_s12, 7 }
  0x10   : > { %s4341_s22 = scalar_lea.vmem %s4988_s3, %s3772_s19 }
  0x11   : > { %s4346_s25 = scalar_lea.vmem %s4985_s0, %s4169_s18 }
  0x12 LB: >> { %v3553_v1 = vld [vmem:[%s4986_s1 + $0x2] sm:$0x3]  ;;  %vm252_vm0 = vcmask 1040384   ;;  %vm253_vm1 = vcmask 1041408   ;;  %v4292_v2 = vmov 0.0   ;;  %v4293_v3 = vmov 65535   ;;  %s4290_s26 = sphi %s4348_s26, %s217_s26  }
  0x13   : >> { %3875 = vmatprep.subr.bf16.mxu0 %v4292_v2  ;;  %v254_v4 = vsel %vm252_vm0, 4294967295, %v4293_v3  ;;  %3881 = vmatprep.subr.bf16.mxu1 %v4292_v2  ;;  %v223_v5 = vld [vmem:[%s4986_s1] sm:$0x3]  ;;  %vm4294_vm2 = vmmov 0   ;;  %s3773_s4 = smul.u32 12, %s4290_s26  ;;  %vm248_vm4 = vcmask 23552  }
  0x14   : >> { %v4361_v6 = vsel %vm253_vm1, %v254_v4, 0  ;;  %3877 = vmatprep.mubr.msk.bf16.mxu0 %vm4294_vm2, %v4292_v2  ;;  %3883 = vmatprep.mubr.msk.bf16.mxu1 %vm4294_vm2, %v4292_v2  ;;  %v3561_v9 = vld [vmem:[%s4986_s1 + $0x6] sm:$0x3]  ;;  %vm235_vm3 = vsmask.f32 7424  ;;  %vm352_vm6 = vcmask 1046528  }
  0x15   : >> { %v257_v7 = vand.u32 %v3553_v1, %v4361_v6  ;;  %v303_v8 = vand.u32 %v4361_v6, %v223_v5  ;;  %s4374_s7 = scalar_lea.vmem %s4346_s25, %s3773_s4  ;;  %v433_v12 = vand.u32 %v3561_v9, %v4361_v6  ;;  %v3558_v16 = vld [vmem:[%s4986_s1 + $0x4] sm:$0x3]  ;;  %v3567_v34 = vld [vmem:[%s4986_s1 + $0xa] sm:$0x3]  ;;  %vm411_vm5 = vsmask.f32 6400 }
  0x16   : >> { %v221_v10 = vld [vmem:[%s4374_s7] sm:$0xf]  ;;  %v4378_v11 = vld [vmem:[%s4374_s7 + $0x4] sm:$0xf]  ;;  %v360_v36 = vand.u32 %v3558_v16, %v4361_v6  ;;  %v565_v43 = vand.u32 %v3567_v34, %v4361_v6  ;;  %v3564_v52 = vld [vmem:[%s4986_s1 + $0x8] sm:$0x3] }
  0x17   : >> { %3876 = vmatpush3.bf16.msra.mxu0 %v257_v7  ;;  %3882 = vmatpush3.bf16.msra.mxu1 %v303_v8  ;;  %v3554_v13 = vcombine.low %v221_v10, %v4378_v11  ;;  %v4206_v14 = vld [vmem:[%s4374_s7 + $0x8] ss:$0 sps:$4 sm:$0x11]   ;;  %v346_v15 = vld [vmem:[%s4374_s7] sm:$0xe]  ;;  %v492_v58 = vand.u32 %v3564_v52, %v4361_v6  ;;  %vm484_vm8 = vcmask 1045504  }
  0x18   : >> { %3887 = vmatprep.subr.bf16.mxu0 %v4292_v2  ;;  %3893 = vmatprep.subr.bf16.mxu1 %v4292_v2  ;;  %v3559_v17 = vcombine.low %v346_v15, %v4378_v11  ;;  %v4391_v18 = vld [vmem:[%s4374_s7 + $0x8] ss:$0 sps:$4 sm:$0x33]   ;;  %v244_v21 = vshll.u32 %v4206_v14, 16  ;;  %v478_v22 = vld [vmem:[%s4374_s7] sm:$0xc] }
  0x19   : >> { %v237_v19 = vshrl.u32 %v3554_v13, 16  ;;  %v239_v20 = vshll.u32 %v3554_v13, 16  ;;  %v421_v25 = vshrl.u32 %v4391_v18, 16  ;;  %v424_v28 = vshll.u32 %v4391_v18, 16  ;;  %v3575_v56 = vld [vmem:[%s4986_s1 + $0xe] sm:$0x3] }
  0x1a   : >> { %3884 = vmatmul.mubr.msk.bf16.vlgmr.msra.gmra.mrb[0].mxu1 %vm248_vm4, %v3554_v13  ;;  %v413_v23 = vshrl.u32 %v3559_v17, 16  ;;  %v416_v24 = vshll.u32 %v3559_v17, 16  ;;  %v246_v27 = vrot.slane %v244_v21, 1  ;;  %v3565_v29 = vcombine.low %v478_v22, %v4378_v11  ;;  %v4402_v30 = vld [vmem:[%s4374_s7 + $0x8] ss:$0 sps:$4 sm:$0x77]  }
  0x1b   : >> { %3894 = vmatpush3.bf16.msra.mxu1 %v433_v12  ;;  %3895 = vmatprep.mubr.msk.bf16.mxu1 %vm4294_vm2, %v4292_v2  ;;  %v241_v26 = vrot.slane %v239_v20, 1  ;;  %v423_v33 = vrot.slane %v421_v25, 1  ;;  %v426_v37 = vrot.slane %v424_v28, 2  ;;  %v553_v44 = vshrl.u32 %v4402_v30, 16  ;;  %v3570_v63 = vld [vmem:[%s4986_s1 + $0xc] sm:$0x3] }
  0x1c   : >> { %3905 = vmatprep.subr.bf16.mxu1 %v4292_v2  ;;  %v415_v31 = vrot.slane %v413_v23, 1  ;;  %v418_v32 = vrot.slane %v416_v24, 2  ;;  %v545_v39 = vshrl.u32 %v3565_v29, 16  ;;  %v548_v40 = vshll.u32 %v3565_v29, 16  ;;  %v610_v1 = vld [vmem:[%s4374_s7] sm:$0x8] }
  0x1d   : >> { %v242_v35 = vor.u32 %v241_v26, %v237_v19  ;;  %v427_v42 = vor.u32 %v426_v37, %v423_v33  ;;  %v556_v47 = vshll.u32 %v4402_v30, 16  ;;  %v353_v48 = vrot.slane %v3559_v17, 1  ;;  %v3578_v3 = vld [vmem:[%s4374_s7 + $0xc] sm:$0xf]  ;;  %v4443_v4 = vld [vmem:[%s4374_s7 + $0x10] sm:$0xf] }
  0x1e   : >> { %v419_v38 = vor.u32 %v418_v32, %v415_v31  ;;  %v547_v45 = vrot.slane %v545_v39, 2  ;;  %v550_v46 = vrot.slane %v548_v40, 3  ;;  %v354_v49 = vrot.slane %v4206_v14, 1  ;;  %v3586_v5 = vld [vmem:[%s4986_s1 + $0x12] sm:$0x3] }
  0x1f   : >> { %v247_v41 = vsel %vm235_vm3, %v242_v35, %v246_v27  ;;  %v555_v51 = vrot.slane %v553_v44, 2  ;;  %v558_v53 = vrot.slane %v556_v47, 3  ;;  %vm543_vm7 = vsmask.f32 5376  ;;  %v3585_v7 = vld [vmem:[%s4374_s7 + $0xc] sm:$0xe] }
  0x20   : >> { %3878 = vmatmul.mubr.msk.bf16.vlgmr.msra.gmra.mrb[0].mxu0 %vm248_vm4, %v247_v41  ;;  %v428_v50 = vsel %vm411_vm5, %v419_v38, %v427_v42  ;;  %v551_v54 = vor.u32 %v550_v46, %v547_v45  ;;  %v355_v57 = vsel %vm352_vm6, %v353_v48, %v354_v49  ;;  %v686_v60 = vand.u32 %v3575_v56, %v4361_v6  ;;  %v4212_v13 = vld [vmem:[%s4374_s7 + $0xc] sm:$0xff]   ;;  %v3594_v23 = vld [vmem:[%s4986_s1 + $0x16] sm:$0x3]  ;;  %v3590_v39 = vld [vmem:[%s4986_s1 + $0x14] sm:$0x3] }
  0x21   : >> { %3888 = vmatpush3.bf16.msra.mxu0 %v360_v36  ;;  %3889 = vmatprep.mubr.msk.bf16.mxu0 %vm4294_vm2, %v4292_v2  ;;  %v559_v55 = vor.u32 %v558_v53, %v555_v51  ;;  %v485_v61 = vrot.slane %v3565_v29, 2  ;;  %v486_v62 = vrot.slane %v4391_v18, 2  ;;  %v624_v9 = vand.u32 %v3570_v63, %v4361_v6  ;;  %v3581_v16 = vld [vmem:[%s4986_s1 + $0x10] sm:$0x3]  ;;  %v3593_v24 = vld [vmem:[%s4374_s7 + $0xc] sm:$0xc] }
  0x22   : >> { %3899 = vmatprep.subr.bf16.mxu0 %v4292_v2  ;;  %3896 = vmatmul.mubr.msk.bf16.vlgmr.msra.gmra.mrb[4].mxu1 %vm248_vm4, %v428_v50  ;;  %v3571_v10 = vcombine.low %v610_v1, %v4378_v11  ;;  %v3582_v12 = vcombine.low %v3578_v3, %v4443_v4  ;;  %v818_v14 = vand.u32 %v3586_v5, %v4361_v6  ;;  %v618_v11 = vrot.slane %v4402_v30, 3  ;;  %v4214_v18 = vld [vmem:[%s4374_s7 + $0x14] ss:$0 sps:$4 sm:$0x11]   ;;  %v3602_v42 = vld [vmem:[%s4986_s1 + $0x1a] sm:$0x3] }
  0x23   : >> { %3906 = vmatpush3.bf16.msra.mxu1 %v565_v43  ;;  %3907 = vmatprep.mubr.msk.bf16.mxu1 %vm4294_vm2, %v4292_v2  ;;  %v560_v59 = vsel %vm543_vm7, %v551_v54, %v559_v55  ;;  %v487_v8 = vsel %vm484_vm8, %v485_v61, %v486_v62  ;;  %v3587_v15 = vcombine.low %v3585_v7, %v4443_v4  ;;  %vm616_vm9 = vcmask 1044480   ;;  %v4216_v29 = vld [vmem:[%s4374_s7 + $0x14] ss:$0 sps:$4 sm:$0x33]   ;;  %v3601_v44 = vld [vmem:[%s4374_s7 + $0xc] sm:$0x8] }
  0x24   : >> { %3917 = vmatprep.subr.bf16.mxu1 %v4292_v2  ;;  %v617_v17 = vrot.slane %v3571_v10, 3  ;;  %v747_v19 = vshll.u32 %v3582_v12, 16  ;;  %v812_v21 = vrot.slane %v4214_v18, 1  ;;  %v760_v22 = vand.u32 %v3581_v16, %v4361_v6  ;;  %v4218_v43 = vld [vmem:[%s4374_s7 + $0x14] ss:$0 sps:$4 sm:$0x77]  }
  0x25   : >> { %v811_v20 = vrot.slane %v3587_v15, 1  ;;  %v745_v26 = vshrl.u32 %v3582_v12, 16  ;;  %v752_v28 = vshll.u32 %v4214_v18, 16  ;;  %v948_v31 = vand.u32 %v3594_v23, %v4361_v6  ;;  %v3610_v47 = vld [vmem:[%s4374_s7 + $0x18] sm:$0xf] }
  0x26   : >> { %v619_v25 = vsel %vm616_vm9, %v617_v17, %v618_v11  ;;  %v749_v27 = vrot.slane %v747_v19, 1  ;;  %v3595_v32 = vcombine.low %v3593_v24, %v4443_v4  ;;  %v870_v33 = vshrl.u32 %v3587_v15, 16  ;;  %v4500_v48 = vld [vmem:[%s4374_s7 + $0x1c] sm:$0xf] }
  0x27   : >> { %v813_v30 = vsel %vm352_vm6, %v811_v20, %v812_v21  ;;  %v873_v34 = vshll.u32 %v3587_v15, 16  ;;  %v754_v36 = vrot.slane %v752_v28, 1  ;;  %v878_v37 = vshrl.u32 %v4216_v29, 16  ;;  %v4522_v5 = vld [vmem:[%s4374_s7 + $0x20] ss:$0 sps:$4 sm:$0x11]  }
  0x28   : >> { %3890 = vmatmul.mubr.msk.bf16.vlgmr.msra.gmra.mrb[4].mxu0 %vm248_vm4, %v355_v57  ;;  %v750_v35 = vor.u32 %v749_v27, %v745_v26  ;;  %v881_v38 = vshll.u32 %v4216_v29, 16  ;;  %v941_v40 = vrot.slane %v3595_v32, 2  ;;  %v942_v41 = vrot.slane %v4216_v29, 2  ;;  %v4533_v11 = vld [vmem:[%s4374_s7 + $0x20] ss:$0 sps:$4 sm:$0x33]  }
  0x29   : >> { %3900 = vmatpush3.bf16.msra.mxu0 %v492_v58  ;;  %3901 = vmatprep.mubr.msk.bf16.mxu0 %vm4294_vm2, %v4292_v2  ;;  %v872_v45 = vrot.slane %v870_v33, 1  ;;  %v875_v46 = vrot.slane %v873_v34, 2  ;;  %v890_v50 = vand.u32 %v3590_v39, %v4361_v6  ;;  %v880_v51 = vrot.slane %v878_v37, 1  ;;  %v3598_v58 = vld [vmem:[%s4986_s1 + $0x18] sm:$0x3] }
  0x2a   : >> { %3911 = vmatprep.subr.bf16.mxu0 %v4292_v2  ;;  %3908 = vmatmul.mubr.msk.bf16.vlgmr.msra.gmra.mrb[8].mxu1 %vm248_vm4, %v560_v59  ;;  %v755_v49 = vsel %vm235_vm3, %v750_v35, %v754_v36  ;;  %v883_v52 = vrot.slane %v881_v38, 2  ;;  %v3603_v53 = vcombine.low %v3601_v44, %v4443_v4  ;;  %v943_v54 = vsel %vm484_vm8, %v941_v40, %v942_v41  ;;  %v3613_v4 = vld [vmem:[%s4986_s1 + $0x1e] sm:$0x3]  ;;  %v3607_v24 = vld [vmem:[%s4986_s1 + $0x1c] sm:$0x3] }
  0x2b   : >> { %3918 = vmatpush3.bf16.msra.mxu1 %v686_v60  ;;  %3919 = vmatprep.mubr.msk.bf16.mxu1 %vm4294_vm2, %v4292_v2  ;;  %v1078_v55 = vand.u32 %v3602_v42, %v4361_v6  ;;  %v3614_v56 = vcombine.low %v3610_v47, %v4500_v48  ;;  %v876_v57 = vor.u32 %v875_v46, %v872_v45  ;;  %v1000_v59 = vshrl.u32 %v3595_v32, 16  ;;  %v4564_v42 = vld [vmem:[%s4374_s7 + $0x20] ss:$0 sps:$4 sm:$0x77]   ;;  %v3630_v45 = vld [vmem:[%s4986_s1 + $0x26] sm:$0x3] }
  0x2c   : >> { %3929 = vmatprep.subr.bf16.mxu1 %v4292_v2  ;;  %v884_v60 = vor.u32 %v883_v52, %v880_v51  ;;  %v1003_v61 = vshll.u32 %v3595_v32, 16  ;;  %v1008_v62 = vshrl.u32 %v4218_v43, 16  ;;  %v1011_v63 = vshll.u32 %v4218_v43, 16  ;;  %v3622_v32 = vld [vmem:[%s4986_s1 + $0x22] sm:$0x3]  ;;  %v4220_v52 = vld [vmem:[%s4374_s7 + $0x18] sm:$0xff]  }
  0x2d   : >> { %v1071_v1 = vrot.slane %v3603_v53, 3  ;;  %v1072_v3 = vrot.slane %v4218_v43, 3  ;;  %v1201_v7 = vshll.u32 %v3614_v56, 16  ;;  %v1002_v10 = vrot.slane %v1000_v59, 2  ;;  %v3618_v43 = vld [vmem:[%s4986_s1 + $0x20] sm:$0x3] }
  0x2e   : >> { %v885_v12 = vsel %vm411_vm5, %v876_v57, %v884_v60  ;;  %v1013_v15 = vrot.slane %v1011_v63, 3  ;;  %v1214_v16 = vand.u32 %v3613_v4, %v4361_v6  ;;  %v1199_v19 = vshrl.u32 %v3614_v56, 16 }
  0x2f   : >> { %v1073_v18 = vsel %vm616_vm9, %v1071_v1, %v1072_v3  ;;  %v1203_v20 = vrot.slane %v1201_v7, 1  ;;  %v1206_v21 = vshll.u32 %v4522_v5, 16  ;;  %v1332_v29 = vshrl.u32 %v4533_v11, 16  ;;  %v3639_v3 = vld [vmem:[%s4986_s1 + $0x2a] sm:$0x3] }
  0x30   : >> { %3902 = vmatmul.mubr.msk.bf16.vlgmr.msra.gmra.mrb[8].mxu0 %vm248_vm4, %v487_v8  ;;  %v3617_v8 = vld [vmem:[%s4374_s7 + $0x18] sm:$0xe]  ;;  %v1140_v34 = vand.u32 %v3607_v24, %v4361_v6  ;;  %v1344_v39 = vand.u32 %v3622_v32, %v4361_v6  ;;  %v1465_v51 = vshll.u32 %v4564_v42, 16  ;;  %v1272_v53 = vand.u32 %v3618_v43, %v4361_v6  ;;  %v3645_v24 = vld [vmem:[%s4986_s1 + $0x2c] sm:$0x3] }
  0x31   : >> { %3912 = vmatpush3.bf16.msra.mxu0 %v624_v9  ;;  %3913 = vmatprep.mubr.msk.bf16.mxu0 %vm4294_vm2, %v4292_v2  ;;  %v1020_v9 = vand.u32 %v3598_v58, %v4361_v6  ;;  %v4530_v17 = vcombine.low %v3617_v8, %v4500_v48  ;;  %v1204_v27 = vor.u32 %v1203_v20, %v1199_v19  ;;  %v1208_v28 = vrot.slane %v1206_v21, 1  ;;  %v4228_v21 = vld [vmem:[%s4374_s7 + $0x24] sm:$0xff]  }
  0x32   : >> { %3923 = vmatprep.subr.bf16.mxu0 %v4292_v2  ;;  %3920 = vmatmul.mubr.msk.bf16.vlgmr.msra.gmra.mrb[12].mxu1 %vm248_vm4, %v4212_v13  ;;  %v1005_v13 = vrot.slane %v1003_v61, 3  ;;  %v1334_v40 = vrot.slane %v1332_v29, 1  ;;  %v1467_v59 = vrot.slane %v1465_v51, 3  ;;  %v1266_v61 = vrot.slane %v4522_v5, 1  ;;  %v3657_v32 = vld [vmem:[%s4374_s7 + $0x24] sm:$0xc] }
  0x33   : >> { %3930 = vmatpush3.bf16.msra.mxu1 %v818_v14  ;;  %3931 = vmatprep.mubr.msk.bf16.mxu1 %vm4294_vm2, %v4292_v2  ;;  %v1010_v14 = vrot.slane %v1008_v62, 2  ;;  %v1327_v26 = vshll.u32 %v4530_v17, 16  ;;  %v1209_v38 = vsel %vm235_vm3, %v1204_v27, %v1208_v28  ;;  %v1265_v60 = vrot.slane %v4530_v17, 1  ;;  %v3626_v62 = vld [vmem:[%s4986_s1 + $0x24] sm:$0x3] }
  0x34   : >> { %3941 = vmatprep.subr.bf16.mxu1 %v4292_v2  ;;  %v1402_v5 = vand.u32 %v3626_v62, %v4361_v6  ;;  %v1594_v8 = vand.u32 %v3639_v3, %v4361_v6  ;;  %v3666_v51 = vld [vmem:[%s4986_s1 + $0x36] sm:$0x3]  ;;  %vm3418_vm11 = vcmask 257024  }
  0x35   : >> { %v1014_v23 = vor.u32 %v1013_v15, %v1010_v14  ;;  %v1329_v36 = vrot.slane %v1327_v26, 2  ;;  %v1267_v4 = vsel %vm352_vm6, %v1265_v60, %v1266_v61  ;;  %v3642_v14 = vld [vmem:[%s4374_s7 + $0x24] sm:$0xf]  ;;  %v4621_v15 = vld [vmem:[%s4374_s7 + $0x28] sm:$0xf] }
  0x36   : >> { %v3646_v20 = vcombine.low %v3642_v14, %v4621_v15  ;;  %v4230_v26 = vld [vmem:[%s4374_s7 + $0x2c] ss:$0 sps:$4 sm:$0x11]  }
  0x37   : >> { %v1720_v29 = vrot.slane %v4230_v26, 1  ;;  %v4234_v61 = vld [vmem:[%s4374_s7 + $0x2c] ss:$0 sps:$4 sm:$0x77]  }
  0x38   : >> { %3914 = vmatmul.mubr.msk.bf16.vlgmr.msra.gmra.mrb[12].mxu0 %vm248_vm4, %v619_v25  ;;  %v1324_v25 = vshrl.u32 %v4530_v17, 16  ;;  %v3649_v17 = vld [vmem:[%s4374_s7 + $0x24] sm:$0xe]  ;;  %v1655_v27 = vshll.u32 %v3646_v20, 16  ;;  %v1980_v14 = vrot.slane %v4234_v61, 3 }
  0x39   : >> { %3924 = vmatpush3.bf16.msra.mxu0 %v760_v22  ;;  %3925 = vmatprep.mubr.msk.bf16.mxu0 %vm4294_vm2, %v4292_v2  ;;  %v1006_v22 = vor.u32 %v1005_v13, %v1002_v10  ;;  %v1396_v10 = vrot.slane %v4533_v11, 2  ;;  %v3633_v13 = vld [vmem:[%s4374_s7 + $0x18] sm:$0x8] }
  0x3a   : >> { %3935 = vmatprep.subr.bf16.mxu0 %v4292_v2  ;;  %3932 = vmatmul.mubr.msk.bf16.vlgmr.msra.gmra.mrb[16].mxu1 %vm248_vm4, %v813_v30  ;;  %v1335_v30 = vshll.u32 %v4533_v11, 16  ;;  %v1326_v35 = vrot.slane %v1324_v25, 1  ;;  %v3635_v19 = vcombine.low %v3633_v13, %v4500_v48 }
  0x3b   : >> { %3942 = vmatpush3.bf16.msra.mxu1 %v948_v31  ;;  %3943 = vmatprep.mubr.msk.bf16.mxu1 %vm4294_vm2, %v4292_v2  ;;  %v3625_v31 = vld [vmem:[%s4374_s7 + $0x18] sm:$0xc]  ;;  %v1015_v33 = vsel %vm543_vm7, %v1006_v22, %v1014_v23  ;;  %v3651_v23 = vcombine.low %v3649_v17, %v4621_v15 }
  0x3c   : >> { %3953 = vmatprep.subr.bf16.mxu1 %v4292_v2  ;;  %v4559_v37 = vcombine.low %v3625_v31, %v4500_v48  ;;  %v1337_v41 = vrot.slane %v1335_v30, 2  ;;  %v1330_v44 = vor.u32 %v1329_v36, %v1326_v35  ;;  %v1525_v25 = vrot.slane %v3635_v19, 3  ;;  %v3658_v31 = vld [vmem:[%s4986_s1 + $0x32] sm:$0x3] }
  0x3d   : >> { %v1526_v48 = vrot.slane %v4564_v42, 3  ;;  %v1719_v28 = vrot.slane %v3651_v23, 1  ;;  %v1668_v30 = vand.u32 %v3645_v24, %v4361_v6  ;;  %v1657_v35 = vrot.slane %v1655_v27, 1 }
  0x3e   : >> { %v1454_v46 = vshrl.u32 %v4559_v37, 16  ;;  %v1338_v47 = vor.u32 %v1337_v41, %v1334_v40  ;;  %v1660_v36 = vshll.u32 %v4230_v26, 16  ;;  %v3659_v40 = vcombine.low %v3657_v32, %v4621_v15  ;;  %v3671_v32 = vld [vmem:[%s4986_s1 + $0x38] sm:$0x3] }
  0x3f   : >> { %v1778_v41 = vshrl.u32 %v3651_v23, 16 }
  0x40   : >> { %3926 = vmatmul.mubr.msk.bf16.vlgmr.msra.gmra.mrb[16].mxu0 %vm248_vm4, %v755_v49  ;;  %v1457_v49 = vshll.u32 %v4559_v37, 16  ;;  %v1339_v56 = vsel %vm411_vm5, %v1330_v44, %v1338_v47  ;;  %v1662_v44 = vrot.slane %v1660_v36, 1  ;;  %v3654_v47 = vld [vmem:[%s4986_s1 + $0x30] sm:$0x3] }
  0x41   : >> { %3936 = vmatpush3.bf16.msra.mxu0 %v890_v50  ;;  %3937 = vmatprep.mubr.msk.bf16.mxu0 %vm4294_vm2, %v4292_v2  ;;  %v1462_v50 = vshrl.u32 %v4564_v42, 16  ;;  %v1781_v42 = vshll.u32 %v3651_v23, 16 }
  0x42   : >> { %3947 = vmatprep.subr.bf16.mxu0 %v4292_v2  ;;  %3944 = vmatmul.mubr.msk.bf16.vlgmr.msra.gmra.mrb[20].mxu1 %vm248_vm4, %v943_v54  ;;  %v1474_v54 = vand.u32 %v3630_v45, %v4361_v6  ;;  %v1459_v57 = vrot.slane %v1457_v49, 3  ;;  %v1849_v49 = vrot.slane %v3659_v40, 2 }
  0x43   : >> { %3954 = vmatpush3.bf16.msra.mxu1 %v1078_v55  ;;  %3955 = vmatprep.mubr.msk.bf16.mxu1 %vm4294_vm2, %v4292_v2  ;;  %v1456_v55 = vrot.slane %v1454_v46, 2  ;;  %v1464_v58 = vrot.slane %v1462_v50, 2 }
  0x44   : >> { %3965 = vmatprep.subr.bf16.mxu1 %v4292_v2 }
  0x45   : >> { %v1460_v63 = vor.u32 %v1459_v57, %v1456_v55  ;;  %v1468_v1 = vor.u32 %v1467_v59, %v1464_v58  ;;  %v3674_v55 = vld [vmem:[%s4374_s7 + $0x30] sm:$0xf]  ;;  %v1798_v58 = vand.u32 %v3654_v47, %v4361_v6 }
  0x47   : >> { %v1469_v7 = vsel %vm543_vm7, %v1460_v63, %v1468_v1  ;;  %v1986_v1 = vand.u32 %v3666_v51, %v4361_v6  ;;  %v4742_v51 = vld [vmem:[%s4374_s7 + $0x38] ss:$0 sps:$4 sm:$0x77]  }
  0x48   : >> { %3938 = vmatmul.mubr.msk.bf16.vlgmr.msra.gmra.mrb[20].mxu0 %vm248_vm4, %v885_v12  ;;  %v3634_v12 = vld [vmem:[%s4986_s1 + $0x28] sm:$0x3] }
  0x49   : >> { %3948 = vmatpush3.bf16.msra.mxu0 %v1020_v9  ;;  %3949 = vmatprep.mubr.msk.bf16.mxu0 %vm4294_vm2, %v4292_v2  ;;  %v1395_v9 = vrot.slane %v4559_v37, 2  ;;  %v4232_v37 = vld [vmem:[%s4374_s7 + $0x2c] ss:$0 sps:$4 sm:$0x33]  }
  0x4a   : >> { %3959 = vmatprep.subr.bf16.mxu0 %v4292_v2  ;;  %3956 = vmatmul.mubr.msk.bf16.vlgmr.msra.gmra.mrb[24].mxu1 %vm248_vm4, %v1073_v18  ;;  %v1532_v18 = vand.u32 %v3634_v12, %v4361_v6  ;;  %v1786_v45 = vshrl.u32 %v4232_v37, 16  ;;  %v1789_v46 = vshll.u32 %v4232_v37, 16  ;;  %v1850_v50 = vrot.slane %v4232_v37, 2 }
  0x4b   : >> { %3966 = vmatpush3.bf16.msra.mxu1 %v1214_v16  ;;  %3967 = vmatprep.mubr.msk.bf16.mxu1 %vm4294_vm2, %v4292_v2  ;;  %v3650_v16 = vld [vmem:[%s4986_s1 + $0x2e] sm:$0x3]  ;;  %v1397_v11 = vsel %vm484_vm8, %v1395_v9, %v1396_v10  ;;  %v1911_v9 = vshll.u32 %v3659_v40, 16  ;;  %v1916_v10 = vshrl.u32 %v4234_v61, 16  ;;  %v1919_v12 = vshll.u32 %v4234_v61, 16  ;;  %v4236_v61 = vld [vmem:[%s4374_s7 + $0x30] sm:$0xff]  }
  0x4c   : >> { %3977 = vmatprep.subr.bf16.mxu1 %v4292_v2  ;;  %v1726_v22 = vand.u32 %v3650_v16, %v4361_v6  ;;  %v1788_v59 = vrot.slane %v1786_v45, 1  ;;  %v1791_v60 = vrot.slane %v1789_v46, 2  ;;  %v1851_v63 = vsel %vm484_vm8, %v1849_v49, %v1850_v50  ;;  %v4700_v16 = vld [vmem:[%s4374_s7 + $0x38] ss:$0 sps:$4 sm:$0x11]  }
  0x4d   : >> { %v1921_v23 = vrot.slane %v1919_v12, 3 }
  0x50   : >> { %3950 = vmatmul.mubr.msk.bf16.vlgmr.msra.gmra.mrb[24].mxu0 %vm248_vm4, %v1015_v33  ;;  %v1527_v33 = vsel %vm616_vm9, %v1525_v25, %v1526_v48 }
  0x51   : >> { %3960 = vmatpush3.bf16.msra.mxu0 %v1140_v34  ;;  %3961 = vmatprep.mubr.msk.bf16.mxu0 %vm4294_vm2, %v4292_v2  ;;  %v1653_v34 = vshrl.u32 %v3646_v20, 16 }
  0x52   : >> { %3971 = vmatprep.subr.bf16.mxu0 %v4292_v2  ;;  %3968 = vmatmul.mubr.msk.bf16.vlgmr.msra.gmra.mrb[28].mxu1 %vm248_vm4, %v1209_v38  ;;  %v1721_v38 = vsel %vm352_vm6, %v1719_v28, %v1720_v29  ;;  %v2114_v28 = vshll.u32 %v4700_v16, 16  ;;  %v4713_v29 = vld [vmem:[%s4374_s7 + $0x38] ss:$0 sps:$4 sm:$0x33]  }
  0x53   : >> { %3978 = vmatpush3.bf16.msra.mxu1 %v1344_v39  ;;  %3979 = vmatprep.mubr.msk.bf16.mxu1 %vm4294_vm2, %v4292_v2  ;;  %v1856_v39 = vand.u32 %v3658_v31, %v4361_v6  ;;  %v1658_v43 = vor.u32 %v1657_v35, %v1653_v34  ;;  %v2240_v37 = vshrl.u32 %v4713_v29, 16 }
  0x54   : >> { %3989 = vmatprep.subr.bf16.mxu1 %v4292_v2  ;;  %v2116_v36 = vrot.slane %v2114_v28, 1 }
  0x55   : >> { %v1663_v57 = vsel %vm235_vm3, %v1658_v43, %v1662_v44  ;;  %v2242_v49 = vrot.slane %v2240_v37, 1 }
  0x58   : >> { %3962 = vmatmul.mubr.msk.bf16.vlgmr.msra.gmra.mrb[28].mxu0 %vm248_vm4, %v4220_v52  ;;  %v3665_v52 = vld [vmem:[%s4374_s7 + $0x24] sm:$0x8] }
  0x59   : >> { %3972 = vmatpush3.bf16.msra.mxu0 %v1272_v53  ;;  %3973 = vmatprep.mubr.msk.bf16.mxu0 %vm4294_vm2, %v4292_v2  ;;  %v1780_v53 = vrot.slane %v1778_v41, 1  ;;  %v3667_v62 = vcombine.low %v3665_v52, %v4621_v15  ;;  %v3677_v15 = vld [vmem:[%s4986_s1 + $0x3a] sm:$0x3]  ;;  %v3682_v52 = vld [vmem:[%s4986_s1 + $0x3c] sm:$0x3] }
  0x5a   : >> { %3983 = vmatprep.subr.bf16.mxu0 %v4292_v2  ;;  %3980 = vmatmul.mubr.msk.bf16.vlgmr.msra.gmra.mrb[32].mxu1 %vm248_vm4, %v1339_v56  ;;  %v4677_v56 = vld [vmem:[%s4374_s7 + $0x34] sm:$0xf]  ;;  %v2122_v24 = vand.u32 %v3677_v15, %v4361_v6 }
  0x5b   : >> { %3990 = vmatpush3.bf16.msra.mxu1 %v1474_v54  ;;  %3991 = vmatprep.mubr.msk.bf16.mxu1 %vm4294_vm2, %v4292_v2  ;;  %v1783_v54 = vrot.slane %v1781_v42, 2  ;;  %v3678_v3 = vcombine.low %v3674_v55, %v4677_v56  ;;  %v1979_v13 = vrot.slane %v3667_v62, 3  ;;  %v2048_v42 = vand.u32 %v3671_v32, %v4361_v6  ;;  %v3709_v32 = vld [vmem:[%s4986_s1 + $0x48] sm:$0x3] }
  0x5c   : >> { %4001 = vmatprep.subr.bf16.mxu1 %v4292_v2  ;;  %v2180_v62 = vand.u32 %v3682_v52, %v4361_v6 }
  0x5d   : >> { %v2109_v17 = vshll.u32 %v3678_v3, 16  ;;  %v1981_v48 = vsel %vm616_vm9, %v1979_v13, %v1980_v14  ;;  %v2107_v26 = vshrl.u32 %v3678_v3, 16  ;;  %v3703_v14 = vld [vmem:[%s4986_s1 + $0x46] sm:$0x3] }
  0x5f   : >> { %v2111_v27 = vrot.slane %v2109_v17, 1 }
  0x60   : >> { %3974 = vmatmul.mubr.msk.bf16.vlgmr.msra.gmra.mrb[32].mxu0 %vm248_vm4, %v1267_v4  ;;  %v1784_v4 = vor.u32 %v1783_v54, %v1780_v53 }
  0x61   : >> { %3984 = vmatpush3.bf16.msra.mxu0 %v1402_v5  ;;  %3985 = vmatprep.mubr.msk.bf16.mxu0 %vm4294_vm2, %v4292_v2  ;;  %v1908_v5 = vshrl.u32 %v3659_v40, 16  ;;  %v2112_v35 = vor.u32 %v2111_v27, %v2107_v26  ;;  %v3686_v40 = vld [vmem:[%s4986_s1 + $0x3e] sm:$0x3] }
  0x62   : >> { %3995 = vmatprep.subr.bf16.mxu0 %v4292_v2  ;;  %3992 = vmatmul.mubr.msk.bf16.vlgmr.msra.gmra.mrb[36].mxu1 %vm248_vm4, %v1469_v7  ;;  %v1792_v7 = vor.u32 %v1791_v60, %v1788_v59  ;;  %v2252_v47 = vand.u32 %v3686_v40, %v4361_v6  ;;  %v2370_v59 = vshrl.u32 %v4742_v51, 16  ;;  %v2373_v60 = vshll.u32 %v4742_v51, 16  ;;  %v3721_v40 = vld [vmem:[%s4374_s7 + $0x3c] sm:$0xc] }
  0x63   : >> { %4002 = vmatpush3.bf16.msra.mxu1 %v1594_v8  ;;  %4003 = vmatprep.mubr.msk.bf16.mxu1 %vm4294_vm2, %v4292_v2  ;;  %v3662_v8 = vld [vmem:[%s4986_s1 + $0x34] sm:$0x3]  ;;  %v1910_v19 = vrot.slane %v1908_v5, 2  ;;  %v2117_v46 = vsel %vm235_vm3, %v2112_v35, %v2116_v36 }
  0x64   : >> { %4013 = vmatprep.subr.bf16.mxu1 %v4292_v2  ;;  %v1793_v20 = vsel %vm411_vm5, %v1784_v4, %v1792_v7  ;;  %v2372_v5 = vrot.slane %v2370_v59, 2  ;;  %v2375_v7 = vrot.slane %v2373_v60, 3  ;;  %v3730_v60 = vld [vmem:[%s4986_s1 + $0x52] sm:$0x3] }
  0x66   : >> { %v2376_v13 = vor.u32 %v2375_v7, %v2372_v5 }
  0x68   : >> { %3986 = vmatmul.mubr.msk.bf16.vlgmr.msra.gmra.mrb[36].mxu0 %vm248_vm4, %v1397_v11  ;;  %v3681_v11 = vld [vmem:[%s4374_s7 + $0x30] sm:$0xe] }
  0x69   : >> { %3996 = vmatpush3.bf16.msra.mxu0 %v1532_v18  ;;  %3997 = vmatprep.mubr.msk.bf16.mxu0 %vm4294_vm2, %v4292_v2  ;;  %v1928_v18 = vand.u32 %v3662_v8, %v4361_v6  ;;  %v4708_v25 = vcombine.low %v3681_v11, %v4677_v56  ;;  %v2502_v11 = vand.u32 %v3703_v14, %v4361_v6 }
  0x6a   : >> { %4007 = vmatprep.subr.bf16.mxu0 %v4292_v2  ;;  %4004 = vmatmul.mubr.msk.bf16.vlgmr.msra.gmra.mrb[40].mxu1 %vm248_vm4, %v4228_v21  ;;  %v1913_v21 = vrot.slane %v1911_v9, 3  ;;  %v2174_v9 = vrot.slane %v4700_v16, 1 }
  0x6b   : >> { %4014 = vmatpush3.bf16.msra.mxu1 %v1726_v22  ;;  %4015 = vmatprep.mubr.msk.bf16.mxu1 %vm4294_vm2, %v4292_v2  ;;  %v1918_v22 = vrot.slane %v1916_v10, 2  ;;  %v2235_v34 = vshll.u32 %v4708_v25, 16  ;;  %v2173_v8 = vrot.slane %v4708_v25, 1  ;;  %v3690_v10 = vld [vmem:[%s4986_s1 + $0x40] sm:$0x3] }
  0x6c   : >> { %4025 = vmatprep.subr.bf16.mxu1 %v4292_v2  ;;  %v2310_v16 = vand.u32 %v3690_v10, %v4361_v6 }
  0x6d   : >> { %v1922_v31 = vor.u32 %v1921_v23, %v1918_v22  ;;  %v2237_v44 = vrot.slane %v2235_v34, 2  ;;  %v2175_v15 = vsel %vm352_vm6, %v2173_v8, %v2174_v9  ;;  %v3706_v22 = vld [vmem:[%s4374_s7 + $0x3c] sm:$0xf]  ;;  %v4799_v23 = vld [vmem:[%s4374_s7 + $0x40] sm:$0xf] }
  0x6e   : >> { %v3710_v28 = vcombine.low %v3706_v22, %v4799_v23  ;;  %v4246_v34 = vld [vmem:[%s4374_s7 + $0x44] ss:$0 sps:$4 sm:$0x11]  }
  0x6f   : >> { %v2628_v37 = vrot.slane %v4246_v34, 1  ;;  %v4250_v9 = vld [vmem:[%s4374_s7 + $0x44] ss:$0 sps:$4 sm:$0x77]  }
  0x70   : >> { %3998 = vmatmul.mubr.msk.bf16.vlgmr.msra.gmra.mrb[40].mxu0 %vm248_vm4, %v1527_v33  ;;  %v2232_v33 = vshrl.u32 %v4708_v25, 16  ;;  %v3713_v25 = vld [vmem:[%s4374_s7 + $0x3c] sm:$0xe]  ;;  %v2563_v35 = vshll.u32 %v3710_v28, 16  ;;  %v2888_v22 = vrot.slane %v4250_v9, 3 }
  0x71   : >> { %4008 = vmatpush3.bf16.msra.mxu0 %v1668_v30  ;;  %4009 = vmatprep.mubr.msk.bf16.mxu0 %vm4294_vm2, %v4292_v2  ;;  %v1914_v30 = vor.u32 %v1913_v21, %v1910_v19  ;;  %v2304_v19 = vrot.slane %v4713_v29, 2  ;;  %v3697_v21 = vld [vmem:[%s4374_s7 + $0x30] sm:$0x8] }
  0x72   : >> { %4019 = vmatprep.subr.bf16.mxu0 %v4292_v2  ;;  %4016 = vmatmul.mubr.msk.bf16.vlgmr.msra.gmra.mrb[44].mxu1 %vm248_vm4, %v1721_v38  ;;  %v2243_v38 = vshll.u32 %v4713_v29, 16  ;;  %v2234_v43 = vrot.slane %v2232_v33, 1  ;;  %v3699_v27 = vcombine.low %v3697_v21, %v4677_v56  ;;  %v4244_v29 = vld [vmem:[%s4374_s7 + $0x3c] sm:$0xff]  }
  0x73   : >> { %4026 = vmatpush3.bf16.msra.mxu1 %v1856_v39  ;;  %4027 = vmatprep.mubr.msk.bf16.mxu1 %vm4294_vm2, %v4292_v2  ;;  %v3689_v39 = vld [vmem:[%s4374_s7 + $0x30] sm:$0xc]  ;;  %v1923_v41 = vsel %vm543_vm7, %v1914_v30, %v1922_v31  ;;  %v3715_v31 = vcombine.low %v3713_v25, %v4799_v23 }
  0x74   : >> { %4037 = vmatprep.subr.bf16.mxu1 %v4292_v2  ;;  %v4737_v45 = vcombine.low %v3689_v39, %v4677_v56  ;;  %v2245_v50 = vrot.slane %v2243_v38, 2  ;;  %v2238_v53 = vor.u32 %v2237_v44, %v2234_v43  ;;  %v2433_v33 = vrot.slane %v3699_v27, 3  ;;  %v3722_v39 = vld [vmem:[%s4986_s1 + $0x4e] sm:$0x3] }
  0x75   : >> { %v2434_v56 = vrot.slane %v4742_v51, 3  ;;  %v2627_v36 = vrot.slane %v3715_v31, 1  ;;  %v2576_v38 = vand.u32 %v3709_v32, %v4361_v6  ;;  %v2565_v43 = vrot.slane %v2563_v35, 1 }
  0x76   : >> { %v2362_v54 = vshrl.u32 %v4737_v45, 16  ;;  %v2246_v55 = vor.u32 %v2245_v50, %v2242_v49  ;;  %v2568_v44 = vshll.u32 %v4246_v34, 16  ;;  %v3723_v49 = vcombine.low %v3721_v40, %v4799_v23  ;;  %v3735_v40 = vld [vmem:[%s4986_s1 + $0x54] sm:$0x3] }
  0x77   : >> { %v2686_v50 = vshrl.u32 %v3715_v31, 16  ;;  %v2689_v51 = vshll.u32 %v3715_v31, 16 }
  0x78   : >> { %4010 = vmatmul.mubr.msk.bf16.vlgmr.msra.gmra.mrb[44].mxu0 %vm248_vm4, %v1663_v57  ;;  %v3694_v57 = vld [vmem:[%s4986_s1 + $0x42] sm:$0x3]  ;;  %v2247_v3 = vsel %vm411_vm5, %v2238_v53, %v2246_v55  ;;  %v2570_v53 = vrot.slane %v2568_v44, 1 }
  0x79   : >> { %4020 = vmatpush3.bf16.msra.mxu0 %v1798_v58  ;;  %4021 = vmatprep.mubr.msk.bf16.mxu0 %vm4294_vm2, %v4292_v2  ;;  %v2365_v58 = vshll.u32 %v4737_v45, 16 }
  0x7a   : >> { %4031 = vmatprep.subr.bf16.mxu0 %v4292_v2  ;;  %4028 = vmatmul.mubr.msk.bf16.vlgmr.msra.gmra.mrb[48].mxu1 %vm248_vm4, %v1851_v63  ;;  %v2382_v63 = vand.u32 %v3694_v57, %v4361_v6  ;;  %v3718_v57 = vld [vmem:[%s4986_s1 + $0x4c] sm:$0x3] }
  0x7b   : >> { %4038 = vmatpush3.bf16.msra.mxu1 %v1986_v1  ;;  %4039 = vmatprep.mubr.msk.bf16.mxu1 %vm4294_vm2, %v4292_v2  ;;  %v2364_v1 = vrot.slane %v2362_v54, 2  ;;  %v2367_v4 = vrot.slane %v2365_v58, 3  ;;  %v2757_v58 = vrot.slane %v3723_v49, 2  ;;  %v2706_v5 = vand.u32 %v3718_v57, %v4361_v6 }
  0x7c   : >> { %4049 = vmatprep.subr.bf16.mxu1 %v4292_v2 }
  0x7d   : >> { %v2368_v12 = vor.u32 %v2367_v4, %v2364_v1  ;;  %v3738_v1 = vld [vmem:[%s4374_s7 + $0x48] sm:$0xf] }
  0x7f   : >> { %v2377_v17 = vsel %vm543_vm7, %v2368_v12, %v2376_v13  ;;  %v2894_v13 = vand.u32 %v3730_v60, %v4361_v6  ;;  %v4258_v60 = vld [vmem:[%s4374_s7 + $0x50] ss:$0 sps:$4 sm:$0x77]  }
  0x80   : >> { %4022 = vmatmul.mubr.msk.bf16.vlgmr.msra.gmra.mrb[48].mxu0 %vm248_vm4, %v1793_v20  ;;  %v3698_v20 = vld [vmem:[%s4986_s1 + $0x44] sm:$0x3] }
  0x81   : >> { %4032 = vmatpush3.bf16.msra.mxu0 %v1928_v18  ;;  %4033 = vmatprep.mubr.msk.bf16.mxu0 %vm4294_vm2, %v4292_v2  ;;  %v2303_v18 = vrot.slane %v4737_v45, 2  ;;  %v2440_v26 = vand.u32 %v3698_v20, %v4361_v6  ;;  %v4248_v45 = vld [vmem:[%s4374_s7 + $0x44] ss:$0 sps:$4 sm:$0x33]   ;;  %v2827_v20 = vshll.u32 %v4250_v9, 16 }
  0x82   : >> { %4043 = vmatprep.subr.bf16.mxu0 %v4292_v2  ;;  %4040 = vmatmul.mubr.msk.bf16.vlgmr.msra.gmra.mrb[52].mxu1 %vm248_vm4, %v1981_v48  ;;  %v2694_v54 = vshrl.u32 %v4248_v45, 16  ;;  %v2697_v55 = vshll.u32 %v4248_v45, 16  ;;  %v2758_v59 = vrot.slane %v4248_v45, 2 }
  0x83   : >> { %4050 = vmatpush3.bf16.msra.mxu1 %v2122_v24  ;;  %4051 = vmatprep.mubr.msk.bf16.mxu1 %vm4294_vm2, %v4292_v2  ;;  %v3714_v24 = vld [vmem:[%s4986_s1 + $0x4a] sm:$0x3]  ;;  %v2305_v48 = vsel %vm484_vm8, %v2303_v18, %v2304_v19  ;;  %v2819_v18 = vshll.u32 %v3723_v49, 16  ;;  %v2824_v19 = vshrl.u32 %v4250_v9, 16  ;;  %v2829_v31 = vrot.slane %v2827_v20, 3 }
  0x84   : >> { %4061 = vmatprep.subr.bf16.mxu1 %v4292_v2  ;;  %v2634_v30 = vand.u32 %v3714_v24, %v4361_v6  ;;  %v2696_v7 = vrot.slane %v2694_v54, 1  ;;  %v2699_v8 = vrot.slane %v2697_v55, 2  ;;  %v2759_v12 = vsel %vm484_vm8, %v2757_v58, %v2758_v59  ;;  %v4878_v24 = vld [vmem:[%s4374_s7 + $0x50] ss:$0 sps:$4 sm:$0x11]   ;;  %v4252_v9 = vld [vmem:[%s4374_s7 + $0x48] sm:$0xff]  }
  0x88   : >> { %4034 = vmatmul.mubr.msk.bf16.vlgmr.msra.gmra.mrb[52].mxu0 %vm248_vm4, %v1923_v41  ;;  %v2435_v41 = vsel %vm616_vm9, %v2433_v33, %v2434_v56 }
  0x89   : >> { %4044 = vmatpush3.bf16.msra.mxu0 %v2048_v42  ;;  %4045 = vmatprep.mubr.msk.bf16.mxu0 %vm4294_vm2, %v4292_v2  ;;  %v2561_v42 = vshrl.u32 %v3710_v28, 16 }
  0x8a   : >> { %4055 = vmatprep.subr.bf16.mxu0 %v4292_v2  ;;  %4052 = vmatmul.mubr.msk.bf16.vlgmr.msra.gmra.mrb[56].mxu1 %vm248_vm4, %v2117_v46  ;;  %v2629_v46 = vsel %vm352_vm6, %v2627_v36, %v2628_v37  ;;  %v3022_v36 = vshll.u32 %v4878_v24, 16  ;;  %v4891_v37 = vld [vmem:[%s4374_s7 + $0x50] ss:$0 sps:$4 sm:$0x33]  }
  0x8b   : >> { %4062 = vmatpush3.bf16.msra.mxu1 %v2252_v47  ;;  %4063 = vmatprep.mubr.msk.bf16.mxu1 %vm4294_vm2, %v4292_v2  ;;  %v2764_v47 = vand.u32 %v3722_v39, %v4361_v6  ;;  %v2566_v52 = vor.u32 %v2565_v43, %v2561_v42  ;;  %v3148_v45 = vshrl.u32 %v4891_v37, 16 }
  0x8c   : >> { %4073 = vmatprep.subr.bf16.mxu1 %v4292_v2  ;;  %v3024_v44 = vrot.slane %v3022_v36, 1 }
  0x8d   : >> { %v2571_v4 = vsel %vm235_vm3, %v2566_v52, %v2570_v53  ;;  %v3150_v58 = vrot.slane %v3148_v45, 1 }
  0x90   : >> { %4046 = vmatmul.mubr.msk.bf16.vlgmr.msra.gmra.mrb[56].mxu0 %vm248_vm4, %v4236_v61  ;;  %v3729_v61 = vld [vmem:[%s4374_s7 + $0x3c] sm:$0x8] }
  0x91   : >> { %4056 = vmatpush3.bf16.msra.mxu0 %v2180_v62  ;;  %4057 = vmatprep.mubr.msk.bf16.mxu0 %vm4294_vm2, %v4292_v2  ;;  %v2688_v62 = vrot.slane %v2686_v50, 1  ;;  %v3731_v10 = vcombine.low %v3729_v61, %v4799_v23  ;;  %v3741_v23 = vld [vmem:[%s4986_s1 + $0x56] sm:$0x3]  ;;  %v3746_v61 = vld [vmem:[%s4986_s1 + $0x58] sm:$0x3] }
  0x92   : >> { %4067 = vmatprep.subr.bf16.mxu0 %v4292_v2  ;;  %4064 = vmatmul.mubr.msk.bf16.vlgmr.msra.gmra.mrb[60].mxu1 %vm248_vm4, %v2247_v3  ;;  %v4855_v3 = vld [vmem:[%s4374_s7 + $0x4c] sm:$0xf]  ;;  %v3030_v32 = vand.u32 %v3741_v23, %v4361_v6 }
  0x93   : >> { %4074 = vmatpush3.bf16.msra.mxu1 %v2382_v63  ;;  %4075 = vmatprep.mubr.msk.bf16.mxu1 %vm4294_vm2, %v4292_v2  ;;  %v2691_v63 = vrot.slane %v2689_v51, 2  ;;  %v3742_v14 = vcombine.low %v3738_v1, %v4855_v3  ;;  %v2887_v21 = vrot.slane %v3731_v10, 3  ;;  %v2956_v51 = vand.u32 %v3735_v40, %v4361_v6 }
  0x94   : >> { %4085 = vmatprep.subr.bf16.mxu1 %v4292_v2  ;;  %v3088_v10 = vand.u32 %v3746_v61, %v4361_v6 }
  0x95   : >> { %v3017_v25 = vshll.u32 %v3742_v14, 16  ;;  %v2889_v56 = vsel %vm616_vm9, %v2887_v21, %v2888_v22  ;;  %v3015_v34 = vshrl.u32 %v3742_v14, 16 }
  0x97   : >> { %v3019_v35 = vrot.slane %v3017_v25, 1 }
  0x98   : >> { %4058 = vmatmul.mubr.msk.bf16.vlgmr.msra.gmra.mrb[60].mxu0 %vm248_vm4, %v2175_v15  ;;  %v2692_v15 = vor.u32 %v2691_v63, %v2688_v62 }
  0x99   : >> { %4068 = vmatpush3.bf16.msra.mxu0 %v2310_v16  ;;  %4069 = vmatprep.mubr.msk.bf16.mxu0 %vm4294_vm2, %v4292_v2  ;;  %v2816_v16 = vshrl.u32 %v3723_v49, 16  ;;  %v3020_v43 = vor.u32 %v3019_v35, %v3015_v34  ;;  %v3750_v49 = vld [vmem:[%s4986_s1 + $0x5a] sm:$0x3] }
  0x9a   : >> { %4079 = vmatprep.subr.bf16.mxu0 %v4292_v2  ;;  %4076 = vmatmul.mubr.msk.bf16.vlgmr.msra.gmra.mrb[64].mxu1 %vm248_vm4, %v2377_v17  ;;  %v2700_v17 = vor.u32 %v2699_v8, %v2696_v7  ;;  %v3160_v57 = vand.u32 %v3750_v49, %v4361_v6  ;;  %v3278_v7 = vshrl.u32 %v4258_v60, 16  ;;  %v3281_v8 = vshll.u32 %v4258_v60, 16 }
  0x9b   : >> { %4086 = vmatpush3.bf16.msra.mxu1 %v2502_v11  ;;  %4087 = vmatprep.mubr.msk.bf16.mxu1 %vm4294_vm2, %v4292_v2  ;;  %v3726_v11 = vld [vmem:[%s4986_s1 + $0x50] sm:$0x3]  ;;  %v2818_v27 = vrot.slane %v2816_v16, 2  ;;  %v3025_v55 = vsel %vm235_vm3, %v3020_v43, %v3024_v44 }
  0x9c   : >> { %4097 = vmatprep.subr.bf16.mxu1 %v4292_v2  ;;  %v2701_v28 = vsel %vm411_vm5, %v2692_v15, %v2700_v17  ;;  %v3280_v16 = vrot.slane %v3278_v7, 2  ;;  %v3283_v17 = vrot.slane %v3281_v8, 3 }
  0x9e   : >> { %v3284_v21 = vor.u32 %v3283_v17, %v3280_v16 }
  0xa0   : >> { %4070 = vmatmul.mubr.msk.bf16.vlgmr.msra.gmra.mrb[64].mxu0 %vm248_vm4, %v2305_v48  ;;  %v3745_v48 = vld [vmem:[%s4374_s7 + $0x48] sm:$0xe] }
  0xa1   : >> { %4080 = vmatpush3.bf16.msra.mxu0 %v2440_v26  ;;  %4081 = vmatprep.mubr.msk.bf16.mxu0 %vm4294_vm2, %v4292_v2  ;;  %v2836_v26 = vand.u32 %v3726_v11, %v4361_v6  ;;  %v4886_v33 = vcombine.low %v3745_v48, %v4855_v3  ;;  %v3212_v48 = vrot.slane %v4891_v37, 2 }
  0xa2   : >> { %4091 = vmatprep.subr.bf16.mxu0 %v4292_v2  ;;  %4088 = vmatmul.mubr.msk.bf16.vlgmr.msra.gmra.mrb[68].mxu1 %vm248_vm4, %v4244_v29  ;;  %v2821_v29 = vrot.slane %v2819_v18, 3  ;;  %v3082_v18 = vrot.slane %v4878_v24, 1 }
  0xa3   : >> { %4098 = vmatpush3.bf16.msra.mxu1 %v2634_v30  ;;  %4099 = vmatprep.mubr.msk.bf16.mxu1 %vm4294_vm2, %v4292_v2  ;;  %v2826_v30 = vrot.slane %v2824_v19, 2  ;;  %v3143_v42 = vshll.u32 %v4886_v33, 16  ;;  %v3081_v11 = vrot.slane %v4886_v33, 1  ;;  %v3754_v19 = vld [vmem:[%s4986_s1 + $0x5c] sm:$0x3] }
  0xa4   : >> { %4109 = vmatprep.subr.bf16.mxu1 %v4292_v2  ;;  %v3218_v23 = vand.u32 %v3754_v19, %v4361_v6 }
  0xa5   : >> { %v2830_v39 = vor.u32 %v2829_v31, %v2826_v30  ;;  %v3145_v53 = vrot.slane %v3143_v42, 2  ;;  %v3083_v22 = vsel %vm352_vm6, %v3081_v11, %v3082_v18 }
  0xa8   : >> { %4082 = vmatmul.mubr.msk.bf16.vlgmr.msra.gmra.mrb[68].mxu0 %vm248_vm4, %v2435_v41  ;;  %v3140_v41 = vshrl.u32 %v4886_v33, 16 }
  0xa9   : >> { %4092 = vmatpush3.bf16.msra.mxu0 %v2576_v38  ;;  %4093 = vmatprep.mubr.msk.bf16.mxu0 %vm4294_vm2, %v4292_v2  ;;  %v2822_v38 = vor.u32 %v2821_v29, %v2818_v27  ;;  %v3761_v27 = vld [vmem:[%s4374_s7 + $0x48] sm:$0x8] }
  0xaa   : >> { %4103 = vmatprep.subr.bf16.mxu0 %v4292_v2  ;;  %4100 = vmatmul.mubr.msk.bf16.vlgmr.msra.gmra.mrb[72].mxu1 %vm248_vm4, %v2629_v46  ;;  %v3151_v46 = vshll.u32 %v4891_v37, 16  ;;  %v3142_v52 = vrot.slane %v3140_v41, 1  ;;  %v3763_v30 = vcombine.low %v3761_v27, %v4855_v3 }
  0xab   : >> { %4110 = vmatpush3.bf16.msra.mxu1 %v2764_v47  ;;  %4111 = vmatprep.mubr.msk.bf16.mxu1 %vm4294_vm2, %v4292_v2  ;;  %v3753_v47 = vld [vmem:[%s4374_s7 + $0x48] sm:$0xc]  ;;  %v2831_v50 = vsel %vm543_vm7, %v2822_v38, %v2830_v39  ;;  %s3776_s7 = sshll.u32 %s4290_s26, 3  ;;  %s217_s26 = sadd.s32 1, %s4290_s26  }
  0xac   : >> { %4121 = vmatprep.subr.bf16.mxu1 %v4292_v2  ;;  %v3755_v54 = vcombine.low %v3753_v47, %v4855_v3  ;;  %v3153_v59 = vrot.slane %v3151_v46, 2  ;;  %v3146_v62 = vor.u32 %v3145_v53, %v3142_v52  ;;  %v3341_v31 = vrot.slane %v3763_v30, 3  ;;  %s3417_s24 = scalar_lea.vmem %s4341_s22, %s3776_s7  ;;  %p214_p5 = scmp.ge.s32.totalorder %s217_s26, 16  }
  0xae   : >> { %v3270_v63 = vshrl.u32 %v3755_v54, 16  ;;  %v3154_v1 = vor.u32 %v3153_v59, %v3150_v58  ;;  %v3211_v25 = vrot.slane %v3755_v54, 2 }
  0xb0   : >> { %4094 = vmatmul.mubr.msk.bf16.vlgmr.msra.gmra.mrb[72].mxu0 %vm248_vm4, %v2571_v4  ;;  %v3758_v4 = vld [vmem:[%s4986_s1 + $0x5e] sm:$0x3]  ;;  %v3155_v14 = vsel %vm411_vm5, %v3146_v62, %v3154_v1 }
  0xb1   : >> { %4104 = vmatpush3.bf16.msra.mxu0 %v2706_v5  ;;  %4105 = vmatprep.mubr.msk.bf16.mxu0 %vm4294_vm2, %v4292_v2  ;;  %v3273_v5 = vshll.u32 %v3755_v54, 16 }
  0xb2   : >> { %4115 = vmatprep.subr.bf16.mxu0 %v4292_v2  ;;  %4112 = vmatmul.mubr.msk.bf16.vlgmr.msra.gmra.mrb[76].mxu1 %vm248_vm4, %v2759_v12  ;;  %v3290_v12 = vand.u32 %v3758_v4, %v4361_v6 }
  0xb3   : >> { %4122 = vmatpush3.bf16.msra.mxu1 %v2894_v13  ;;  %4123 = vmatprep.mubr.msk.bf16.mxu1 %vm4294_vm2, %v4292_v2  ;;  %v3272_v13 = vrot.slane %v3270_v63, 2  ;;  %v3275_v15 = vrot.slane %v3273_v5, 3 }
  0xb4   : >> { %4133 = vmatprep.subr.bf16.mxu1 %v4292_v2 }
  0xb5   : >> { %v3276_v20 = vor.u32 %v3275_v15, %v3272_v13 }
  0xb7   : >> { %v3285_v24 = vsel %vm543_vm7, %v3276_v20, %v3284_v21 }
  0xb8   : >> { %4106 = vmatmul.mubr.msk.bf16.vlgmr.msra.gmra.mrb[76].mxu0 %vm248_vm4, %v2701_v28  ;;  %v3213_v28 = vsel %vm484_vm8, %v3211_v25, %v3212_v48 }
  0xb9   : >> { %4116 = vmatpush3.bf16.msra.mxu0 %v2836_v26  ;;  %4117 = vmatprep.mubr.msk.bf16.mxu0 %vm4294_vm2, %v4292_v2  ;;  %v3762_v26 = vld [vmem:[%s4986_s1 + $0x60] sm:$0x3] }
  0xba   : >> { %4127 = vmatprep.subr.bf16.mxu0 %v4292_v2  ;;  %4124 = vmatmul.mubr.msk.bf16.vlgmr.msra.gmra.mrb[80].mxu1 %vm248_vm4, %v2889_v56  ;;  %v3348_v29 = vand.u32 %v3762_v26, %v4361_v6 }
  0xbb   : >> { %4134 = vmatpush3.bf16.msra.mxu1 %v3030_v32  ;;  %4135 = vmatprep.mubr.msk.bf16.mxu1 %vm4294_vm2, %v4292_v2  ;;  %v3342_v32 = vrot.slane %v4258_v60, 3 }
  0xbc   : >> { %4145 = vmatprep.subr.bf16.mxu1 %v4292_v2 }
  0xbd   : >> { %v3343_v33 = vsel %vm616_vm9, %v3341_v31, %v3342_v32 }
  0xc0   : >> { %4118 = vmatmul.mubr.msk.bf16.vlgmr.msra.gmra.mrb[80].mxu0 %vm248_vm4, %v2831_v50 }
  0xc1   : >> { %4128 = vmatpush3.bf16.msra.mxu0 %v2956_v51  ;;  %4129 = vmatprep.mubr.msk.bf16.mxu0 %vm4294_vm2, %v4292_v2 }
  0xc2   : >> { %4139 = vmatprep.subr.bf16.mxu0 %v4292_v2  ;;  %4136 = vmatmul.mubr.msk.bf16.vlgmr.msra.gmra.mrb[84].mxu1 %vm248_vm4, %v3025_v55 }
  0xc3   : >> { %4146 = vmatpush3.bf16.msra.mxu1 %v3160_v57  ;;  %4147 = vmatprep.mubr.msk.bf16.mxu1 %vm4294_vm2, %v4292_v2 }
  0xc4   : >> { %4157 = vmatprep.subr.bf16.mxu1 %v4292_v2 }
  0xc8   : >> { %4130 = vmatmul.mubr.msk.bf16.vlgmr.msra.gmra.mrb[84].mxu0 %vm248_vm4, %v4252_v9 }
  0xc9   : >> { %4140 = vmatpush3.bf16.msra.mxu0 %v3088_v10  ;;  %4141 = vmatprep.mubr.msk.bf16.mxu0 %vm4294_vm2, %v4292_v2 }
  0xca   : >> { %4151 = vmatprep.subr.bf16.mxu0 %v4292_v2  ;;  %4148 = vmatmul.mubr.msk.bf16.vlgmr.msra.gmra.mrb[88].mxu1 %vm248_vm4, %v3155_v14 }
  0xcb   : >> { %4158 = vmatpush3.bf16.msra.mxu1 %v3290_v12  ;;  %4159 = vmatprep.mubr.msk.bf16.mxu1 %vm4294_vm2, %v4292_v2 }
  0xd0   : >> { %4142 = vmatmul.mubr.msk.bf16.vlgmr.msra.gmra.mrb[88].mxu0 %vm248_vm4, %v3083_v22 }
  0xd1   : >> { %4152 = vmatpush3.bf16.msra.mxu0 %v3218_v23  ;;  %4153 = vmatprep.mubr.msk.bf16.mxu0 %vm4294_vm2, %v4292_v2 }
  0xd2   : >> { %4163 = vmatprep.subr.bf16.mxu0 %v4292_v2  ;;  %4160 = vmatmul.mubr.msk.bf16.vlgmr.msra.gmra.mrb[92].mxu1 %vm248_vm4, %v3285_v24 }
  0xd8   : >> { %4154 = vmatmul.mubr.msk.bf16.vlgmr.msra.gmra.mrb[92].mxu0 %vm248_vm4, %v3213_v28 }
  0xd9   : >> { %4164 = vmatpush3.bf16.msra.mxu0 %v3348_v29  ;;  %4165 = vmatprep.mubr.msk.bf16.mxu0 %vm4294_vm2, %v4292_v2 }
  0xe0   : >> { %4166 = vmatmul.mubr.msk.bf16.vlgmr.msra.gmra.mrb[96].mxu0 %vm248_vm4, %v3343_v33 }
  0xed   : >> { %v339_v56 = vpop.f32.mrb[0].mxu1 }
  0xee   : >> { %v3885_v34 = vpop.f32.mrb[1].mxu1 }
  0xef   : >> { %v342_v35 = vpop.f32.mrb[2].mxu1 }
  0xf0   : >> { %v3886_v36 = vpop.f32.mrb[3].mxu1 }
  0xf3   : >> { %v293_v37 = vpop.f32.mrb[0].mxu0 }
  0xf4   : >> { %v340_v6 = vadd.f32 %v339_v56, %v293_v37  ;;  %v3879_v38 = vpop.f32.mrb[1].mxu0 }
  0xf5   : >> { %v296_v3 = vpop.f32.mrb[2].mxu0  ;;  %v469_v39 = vpop.f32.mrb[4].mxu1 }
  0xf6   : >> { %v343_v40 = vadd.f32 %v342_v35, %v296_v3  ;;  %v3880_v41 = vpop.f32.mrb[3].mxu0  ;;  %v3897_v42 = vpop.f32.mrb[5].mxu1 }
  0xf7   : >> { %v472_v43 = vpop.f32.mrb[6].mxu1 }
  0xf8   : >> { %v3898_v2 = vpop.f32.mrb[7].mxu1 }
  0xfb   : >> { %v396_v44 = vpop.f32.mrb[4].mxu0 }
  0xfc   : >> { %v403_v45 = vadd.f32 %v396_v44, %v340_v6  ;;  %v3891_v46 = vpop.f32.mrb[5].mxu0 }
  0xfd   : >> { %v399_v47 = vpop.f32.mrb[6].mxu0  ;;  %v601_v49 = vpop.f32.mrb[8].mxu1 }
  0xfe   : >> { %v404_v50 = vadd.f32 %v399_v47, %v343_v40  ;;  %v476_v51 = vadd.f32 %v469_v39, %v403_v45  ;;  %v3892_v52 = vpop.f32.mrb[7].mxu0  ;;  %v3909_v53 = vpop.f32.mrb[9].mxu1 }
  0xff   : >> { %v604_v54 = vpop.f32.mrb[10].mxu1 }
 0x100   : >> { %v477_v55 = vadd.f32 %v472_v43, %v404_v50  ;;  %v3910_v57 = vpop.f32.mrb[11].mxu1 }
 0x103   : >> { %v528_v58 = vpop.f32.mrb[8].mxu0 }
 0x104   : >> { %v535_v59 = vadd.f32 %v528_v58, %v476_v51  ;;  %v3903_v60 = vpop.f32.mrb[9].mxu0 }
 0x105   : >> { %v531_v61 = vpop.f32.mrb[10].mxu0  ;;  %v722_v62 = vpop.f32.mrb[12].mxu1 }
 0x106   : >> { %v536_v63 = vadd.f32 %v531_v61, %v477_v55  ;;  %v608_v1 = vadd.f32 %v601_v49, %v535_v59  ;;  %v3904_v4 = vpop.f32.mrb[11].mxu0  ;;  %v3921_v5 = vpop.f32.mrb[13].mxu1 }
 0x107   : >> { %v725_v7 = vpop.f32.mrb[14].mxu1 }
 0x108   : >> { %v609_v8 = vadd.f32 %v604_v54, %v536_v63  ;;  %v3922_v9 = vpop.f32.mrb[15].mxu1 }
 0x10b   : >> { %v660_v10 = vpop.f32.mrb[12].mxu0 }
 0x10c   : >> { %v667_v12 = vadd.f32 %v660_v10, %v608_v1  ;;  %v3915_v13 = vpop.f32.mrb[13].mxu0 }
 0x10d   : >> { %v663_v14 = vpop.f32.mrb[14].mxu0  ;;  %v854_v15 = vpop.f32.mrb[16].mxu1 }
 0x10e   : >> { %v668_v16 = vadd.f32 %v663_v14, %v609_v8  ;;  %v729_v17 = vadd.f32 %v722_v62, %v667_v12  ;;  %v3916_v11 = vpop.f32.mrb[15].mxu0  ;;  %v3933_v18 = vpop.f32.mrb[17].mxu1 }
 0x10f   : >> { %v857_v19 = vpop.f32.mrb[18].mxu1 }
 0x110   : >> { %v730_v20 = vadd.f32 %v725_v7, %v668_v16  ;;  %v3934_v21 = vpop.f32.mrb[19].mxu1 }
 0x113   : >> { %v796_v22 = vpop.f32.mrb[16].mxu0 }
 0x114   : >> { %v803_v23 = vadd.f32 %v796_v22, %v729_v17  ;;  %v3927_v24 = vpop.f32.mrb[17].mxu0 }
 0x115   : >> { %v799_v25 = vpop.f32.mrb[18].mxu0  ;;  %v984_v48 = vpop.f32.mrb[20].mxu1 }
 0x116   : >> { %v804_v26 = vadd.f32 %v799_v25, %v730_v20  ;;  %v861_v27 = vadd.f32 %v854_v15, %v803_v23  ;;  %v3928_v28 = vpop.f32.mrb[19].mxu0  ;;  %v3945_v29 = vpop.f32.mrb[21].mxu1 }
 0x117   : >> { %v987_v30 = vpop.f32.mrb[22].mxu1 }
 0x118   : >> { %v862_v31 = vadd.f32 %v857_v19, %v804_v26  ;;  %v3946_v32 = vpop.f32.mrb[23].mxu1 }
 0x11b   : >> { %v926_v33 = vpop.f32.mrb[20].mxu0 }
 0x11c   : >> { %v933_v56 = vadd.f32 %v926_v33, %v861_v27  ;;  %v3939_v34 = vpop.f32.mrb[21].mxu0 }
 0x11d   : >> { %v929_v35 = vpop.f32.mrb[22].mxu0  ;;  %v1114_v36 = vpop.f32.mrb[24].mxu1 }
 0x11e   : >> { %v934_v37 = vadd.f32 %v929_v35, %v862_v31  ;;  %v991_v6 = vadd.f32 %v984_v48, %v933_v56  ;;  %v3940_v38 = vpop.f32.mrb[23].mxu0  ;;  %v3957_v3 = vpop.f32.mrb[25].mxu1 }
 0x11f   : >> { %v1117_v39 = vpop.f32.mrb[26].mxu1 }
 0x120   : >> { %v992_v40 = vadd.f32 %v987_v30, %v934_v37  ;;  %v3958_v41 = vpop.f32.mrb[27].mxu1 }
 0x123   : >> { %v1056_v42 = vpop.f32.mrb[24].mxu0 }
 0x124   : >> { %v1063_v43 = vadd.f32 %v1056_v42, %v991_v6  ;;  %v3951_v2 = vpop.f32.mrb[25].mxu0 }
 0x125   : >> { %v1059_v44 = vpop.f32.mrb[26].mxu0  ;;  %v1250_v45 = vpop.f32.mrb[28].mxu1 }
 0x126   : >> { %v1064_v46 = vadd.f32 %v1059_v44, %v992_v40  ;;  %v1121_v47 = vadd.f32 %v1114_v36, %v1063_v43  ;;  %v3952_v49 = vpop.f32.mrb[27].mxu0  ;;  %v3969_v50 = vpop.f32.mrb[29].mxu1 }
 0x127   : >> { %v1253_v51 = vpop.f32.mrb[30].mxu1 }
 0x128   : >> { %v1122_v52 = vadd.f32 %v1117_v39, %v1064_v46  ;;  %v3970_v53 = vpop.f32.mrb[31].mxu1 }
 0x12b   : >> { %v1176_v54 = vpop.f32.mrb[28].mxu0 }
 0x12c   : >> { %v1183_v55 = vadd.f32 %v1176_v54, %v1121_v47  ;;  %v3963_v57 = vpop.f32.mrb[29].mxu0 }
 0x12d   : >> { %v1179_v58 = vpop.f32.mrb[30].mxu0  ;;  %v1380_v59 = vpop.f32.mrb[32].mxu1 }
 0x12e   : >> { %v1184_v60 = vadd.f32 %v1179_v58, %v1122_v52  ;;  %v1257_v61 = vadd.f32 %v1250_v45, %v1183_v55  ;;  %v3964_v62 = vpop.f32.mrb[31].mxu0  ;;  %v3981_v63 = vpop.f32.mrb[33].mxu1 }
 0x12f   : >> { %v1383_v1 = vpop.f32.mrb[34].mxu1 }
 0x130   : >> { %v1258_v4 = vadd.f32 %v1253_v51, %v1184_v60  ;;  %v3982_v5 = vpop.f32.mrb[35].mxu1 }
 0x133   : >> { %v1308_v7 = vpop.f32.mrb[32].mxu0 }
 0x134   : >> { %v1315_v8 = vadd.f32 %v1308_v7, %v1257_v61  ;;  %v3975_v9 = vpop.f32.mrb[33].mxu0 }
 0x135   : >> { %v1311_v10 = vpop.f32.mrb[34].mxu0  ;;  %v1510_v12 = vpop.f32.mrb[36].mxu1 }
 0x136   : >> { %v1316_v13 = vadd.f32 %v1311_v10, %v1258_v4  ;;  %v1387_v14 = vadd.f32 %v1380_v59, %v1315_v8  ;;  %v3976_v15 = vpop.f32.mrb[35].mxu0  ;;  %v3993_v16 = vpop.f32.mrb[37].mxu1 }
 0x137   : >> { %v1513_v17 = vpop.f32.mrb[38].mxu1 }
 0x138   : >> { %v1388_v11 = vadd.f32 %v1383_v1, %v1316_v13  ;;  %v3994_v18 = vpop.f32.mrb[39].mxu1 }
 0x13b   : >> { %v1438_v19 = vpop.f32.mrb[36].mxu0 }
 0x13c   : >> { %v1445_v20 = vadd.f32 %v1438_v19, %v1387_v14  ;;  %v3987_v21 = vpop.f32.mrb[37].mxu0 }
 0x13d   : >> { %v1441_v22 = vpop.f32.mrb[38].mxu0  ;;  %v1630_v23 = vpop.f32.mrb[40].mxu1 }
 0x13e   : >> { %v1446_v24 = vadd.f32 %v1441_v22, %v1388_v11  ;;  %v1517_v25 = vadd.f32 %v1510_v12, %v1445_v20  ;;  %v3988_v48 = vpop.f32.mrb[39].mxu0  ;;  %v4005_v26 = vpop.f32.mrb[41].mxu1 }
 0x13f   : >> { %v1633_v27 = vpop.f32.mrb[42].mxu1 }
 0x140   : >> { %v1518_v28 = vadd.f32 %v1513_v17, %v1446_v24  ;;  %v4006_v29 = vpop.f32.mrb[43].mxu1 }
 0x143   : >> { %v1568_v30 = vpop.f32.mrb[40].mxu0 }
 0x144   : >> { %v1575_v31 = vadd.f32 %v1568_v30, %v1517_v25  ;;  %v3999_v32 = vpop.f32.mrb[41].mxu0 }
 0x145   : >> { %v1571_v33 = vpop.f32.mrb[42].mxu0  ;;  %v1762_v56 = vpop.f32.mrb[44].mxu1 }
 0x146   : >> { %v1576_v34 = vadd.f32 %v1571_v33, %v1518_v28  ;;  %v1637_v35 = vadd.f32 %v1630_v23, %v1575_v31  ;;  %v4000_v36 = vpop.f32.mrb[43].mxu0  ;;  %v4017_v37 = vpop.f32.mrb[45].mxu1 }
 0x147   : >> { %v1765_v6 = vpop.f32.mrb[46].mxu1 }
 0x148   : >> { %v1638_v38 = vadd.f32 %v1633_v27, %v1576_v34  ;;  %v4018_v3 = vpop.f32.mrb[47].mxu1 }
 0x14b   : >> { %v1704_v39 = vpop.f32.mrb[44].mxu0 }
 0x14c   : >> { %v1711_v40 = vadd.f32 %v1704_v39, %v1637_v35  ;;  %v4011_v41 = vpop.f32.mrb[45].mxu0 }
 0x14d   : >> { %v1707_v42 = vpop.f32.mrb[46].mxu0  ;;  %v1892_v43 = vpop.f32.mrb[48].mxu1 }
 0x14e   : >> { %v1712_v2 = vadd.f32 %v1707_v42, %v1638_v38  ;;  %v1769_v44 = vadd.f32 %v1762_v56, %v1711_v40  ;;  %v4012_v45 = vpop.f32.mrb[47].mxu0  ;;  %v4029_v46 = vpop.f32.mrb[49].mxu1 }
 0x14f   : >> { %v1895_v47 = vpop.f32.mrb[50].mxu1 }
 0x150   : >> { %v1770_v49 = vadd.f32 %v1765_v6, %v1712_v2  ;;  %v4030_v50 = vpop.f32.mrb[51].mxu1 }
 0x153   : >> { %v1834_v51 = vpop.f32.mrb[48].mxu0 }
 0x154   : >> { %v1841_v52 = vadd.f32 %v1834_v51, %v1769_v44  ;;  %v4023_v53 = vpop.f32.mrb[49].mxu0 }
 0x155   : >> { %v1837_v54 = vpop.f32.mrb[50].mxu0  ;;  %v2022_v55 = vpop.f32.mrb[52].mxu1 }
 0x156   : >> { %v1842_v57 = vadd.f32 %v1837_v54, %v1770_v49  ;;  %v1899_v58 = vadd.f32 %v1892_v43, %v1841_v52  ;;  %v4024_v59 = vpop.f32.mrb[51].mxu0  ;;  %v4041_v60 = vpop.f32.mrb[53].mxu1 }
 0x157   : >> { %v2025_v61 = vpop.f32.mrb[54].mxu1 }
 0x158   : >> { %v1900_v62 = vadd.f32 %v1895_v47, %v1842_v57  ;;  %v4042_v63 = vpop.f32.mrb[55].mxu1 }
 0x15b   : >> { %v1964_v1 = vpop.f32.mrb[52].mxu0 }
 0x15c   : >> { %v1971_v4 = vadd.f32 %v1964_v1, %v1899_v58  ;;  %v4035_v5 = vpop.f32.mrb[53].mxu0 }
 0x15d   : >> { %v1967_v7 = vpop.f32.mrb[54].mxu0  ;;  %v2158_v8 = vpop.f32.mrb[56].mxu1 }
 0x15e   : >> { %v1972_v9 = vadd.f32 %v1967_v7, %v1900_v62  ;;  %v2029_v10 = vadd.f32 %v2022_v55, %v1971_v4  ;;  %v4036_v12 = vpop.f32.mrb[55].mxu0  ;;  %v4053_v13 = vpop.f32.mrb[57].mxu1 }
 0x15f   : >> { %v2161_v14 = vpop.f32.mrb[58].mxu1 }
 0x160   : >> { %v2030_v15 = vadd.f32 %v2025_v61, %v1972_v9  ;;  %v4054_v16 = vpop.f32.mrb[59].mxu1 }
 0x163   : >> { %v2084_v17 = vpop.f32.mrb[56].mxu0 }
 0x164   : >> { %v2091_v11 = vadd.f32 %v2084_v17, %v2029_v10  ;;  %v4047_v18 = vpop.f32.mrb[57].mxu0 }
 0x165   : >> { %v2087_v19 = vpop.f32.mrb[58].mxu0  ;;  %v2288_v20 = vpop.f32.mrb[60].mxu1 }
 0x166   : >> { %v2092_v21 = vadd.f32 %v2087_v19, %v2030_v15  ;;  %v2165_v22 = vadd.f32 %v2158_v8, %v2091_v11  ;;  %v4048_v23 = vpop.f32.mrb[59].mxu0  ;;  %v4065_v24 = vpop.f32.mrb[61].mxu1 }
 0x167   : >> { %v2291_v25 = vpop.f32.mrb[62].mxu1 }
 0x168   : >> { %v2166_v48 = vadd.f32 %v2161_v14, %v2092_v21  ;;  %v4066_v26 = vpop.f32.mrb[63].mxu1 }
 0x16b   : >> { %v2216_v27 = vpop.f32.mrb[60].mxu0 }
 0x16c   : >> { %v2223_v28 = vadd.f32 %v2216_v27, %v2165_v22  ;;  %v4059_v29 = vpop.f32.mrb[61].mxu0 }
 0x16d   : >> { %v2219_v30 = vpop.f32.mrb[62].mxu0  ;;  %v2418_v31 = vpop.f32.mrb[64].mxu1 }
 0x16e   : >> { %v2224_v32 = vadd.f32 %v2219_v30, %v2166_v48  ;;  %v2295_v33 = vadd.f32 %v2288_v20, %v2223_v28  ;;  %v4060_v56 = vpop.f32.mrb[63].mxu0  ;;  %v4077_v34 = vpop.f32.mrb[65].mxu1 }
 0x16f   : >> { %v2421_v35 = vpop.f32.mrb[66].mxu1 }
 0x170   : >> { %v2296_v36 = vadd.f32 %v2291_v25, %v2224_v32  ;;  %v4078_v37 = vpop.f32.mrb[67].mxu1 }
 0x173   : >> { %v2346_v6 = vpop.f32.mrb[64].mxu0 }
 0x174   : >> { %v2353_v38 = vadd.f32 %v2346_v6, %v2295_v33  ;;  %v4071_v3 = vpop.f32.mrb[65].mxu0 }
 0x175   : >> { %v2349_v39 = vpop.f32.mrb[66].mxu0  ;;  %v2538_v40 = vpop.f32.mrb[68].mxu1 }
 0x176   : >> { %v2354_v41 = vadd.f32 %v2349_v39, %v2296_v36  ;;  %v2425_v42 = vadd.f32 %v2418_v31, %v2353_v38  ;;  %v4072_v43 = vpop.f32.mrb[67].mxu0  ;;  %v4089_v2 = vpop.f32.mrb[69].mxu1 }
 0x177   : >> { %v2541_v44 = vpop.f32.mrb[70].mxu1 }
 0x178   : >> { %v2426_v45 = vadd.f32 %v2421_v35, %v2354_v41  ;;  %v4090_v46 = vpop.f32.mrb[71].mxu1 }
 0x17b   : >> { %v2476_v47 = vpop.f32.mrb[68].mxu0 }
 0x17c   : >> { %v2483_v49 = vadd.f32 %v2476_v47, %v2425_v42  ;;  %v4083_v50 = vpop.f32.mrb[69].mxu0 }
 0x17d   : >> { %v2479_v51 = vpop.f32.mrb[70].mxu0  ;;  %v2670_v52 = vpop.f32.mrb[72].mxu1 }
 0x17e   : >> { %v2484_v53 = vadd.f32 %v2479_v51, %v2426_v45  ;;  %v2545_v54 = vadd.f32 %v2538_v40, %v2483_v49  ;;  %v4084_v55 = vpop.f32.mrb[71].mxu0  ;;  %v4101_v57 = vpop.f32.mrb[73].mxu1 }
 0x17f   : >> { %v2673_v58 = vpop.f32.mrb[74].mxu1 }
 0x180   : >> { %v2546_v59 = vadd.f32 %v2541_v44, %v2484_v53  ;;  %v4102_v60 = vpop.f32.mrb[75].mxu1 }
 0x183   : >> { %v2612_v61 = vpop.f32.mrb[72].mxu0 }
 0x184   : >> { %v2619_v62 = vadd.f32 %v2612_v61, %v2545_v54  ;;  %v4095_v63 = vpop.f32.mrb[73].mxu0 }
 0x185   : >> { %v2615_v1 = vpop.f32.mrb[74].mxu0  ;;  %v2800_v4 = vpop.f32.mrb[76].mxu1 }
 0x186   : >> { %v2620_v5 = vadd.f32 %v2615_v1, %v2546_v59  ;;  %v2677_v7 = vadd.f32 %v2670_v52, %v2619_v62  ;;  %v4096_v8 = vpop.f32.mrb[75].mxu0  ;;  %v4113_v9 = vpop.f32.mrb[77].mxu1 }
 0x187   : >> { %v2803_v10 = vpop.f32.mrb[78].mxu1 }
 0x188   : >> { %v2678_v12 = vadd.f32 %v2673_v58, %v2620_v5  ;;  %v4114_v13 = vpop.f32.mrb[79].mxu1 }
 0x18b   : >> { %v2742_v14 = vpop.f32.mrb[76].mxu0 }
 0x18c   : >> { %v2749_v15 = vadd.f32 %v2742_v14, %v2677_v7  ;;  %v4107_v16 = vpop.f32.mrb[77].mxu0 }
 0x18d   : >> { %v2745_v17 = vpop.f32.mrb[78].mxu0  ;;  %v2930_v11 = vpop.f32.mrb[80].mxu1 }
 0x18e   : >> { %v2750_v18 = vadd.f32 %v2745_v17, %v2678_v12  ;;  %v2807_v19 = vadd.f32 %v2800_v4, %v2749_v15  ;;  %v4108_v20 = vpop.f32.mrb[79].mxu0  ;;  %v4125_v21 = vpop.f32.mrb[81].mxu1 }
 0x18f   : >> { %v2933_v22 = vpop.f32.mrb[82].mxu1 }
 0x190   : >> { %v2808_v23 = vadd.f32 %v2803_v10, %v2750_v18  ;;  %v4126_v24 = vpop.f32.mrb[83].mxu1 }
 0x193   : >> { %v2872_v25 = vpop.f32.mrb[80].mxu0 }
 0x194   : >> { %v2879_v48 = vadd.f32 %v2872_v25, %v2807_v19  ;;  %v4119_v26 = vpop.f32.mrb[81].mxu0 }
 0x195   : >> { %v2875_v27 = vpop.f32.mrb[82].mxu0  ;;  %v3066_v28 = vpop.f32.mrb[84].mxu1 }
 0x196   : >> { %v2880_v29 = vadd.f32 %v2875_v27, %v2808_v23  ;;  %v2937_v30 = vadd.f32 %v2930_v11, %v2879_v48  ;;  %v4120_v31 = vpop.f32.mrb[83].mxu0  ;;  %v4137_v32 = vpop.f32.mrb[85].mxu1 }
 0x197   : >> { %v3069_v33 = vpop.f32.mrb[86].mxu1 }
 0x198   : >> { %v2938_v56 = vadd.f32 %v2933_v22, %v2880_v29  ;;  %v4138_v34 = vpop.f32.mrb[87].mxu1 }
 0x19b   : >> { %v2992_v35 = vpop.f32.mrb[84].mxu0 }
 0x19c   : >> { %v2999_v36 = vadd.f32 %v2992_v35, %v2937_v30  ;;  %v4131_v37 = vpop.f32.mrb[85].mxu0 }
 0x19d   : >> { %v2995_v6 = vpop.f32.mrb[86].mxu0  ;;  %v3196_v38 = vpop.f32.mrb[88].mxu1 }
 0x19e   : >> { %v3000_v3 = vadd.f32 %v2995_v6, %v2938_v56  ;;  %v3073_v39 = vadd.f32 %v3066_v28, %v2999_v36  ;;  %v4132_v40 = vpop.f32.mrb[87].mxu0  ;;  %v4149_v41 = vpop.f32.mrb[89].mxu1 }
 0x19f   : >> { %v3199_v42 = vpop.f32.mrb[90].mxu1 }
 0x1a0   : >> { %v3074_v43 = vadd.f32 %v3069_v33, %v3000_v3  ;;  %v4150_v2 = vpop.f32.mrb[91].mxu1 }
 0x1a3   : >> { %v3124_v44 = vpop.f32.mrb[88].mxu0 }
 0x1a4   : >> { %v3131_v45 = vadd.f32 %v3124_v44, %v3073_v39  ;;  %v4143_v46 = vpop.f32.mrb[89].mxu0 }
 0x1a5   : >> { %v3127_v47 = vpop.f32.mrb[90].mxu0  ;;  %v3326_v49 = vpop.f32.mrb[92].mxu1 }
 0x1a6   : >> { %v3132_v50 = vadd.f32 %v3127_v47, %v3074_v43  ;;  %v3203_v51 = vadd.f32 %v3196_v38, %v3131_v45  ;;  %v4144_v52 = vpop.f32.mrb[91].mxu0  ;;  %v4161_v53 = vpop.f32.mrb[93].mxu1 }
 0x1a7   : >> { %v3329_v54 = vpop.f32.mrb[94].mxu1 }
 0x1a8   : >> { %v3204_v55 = vadd.f32 %v3199_v42, %v3132_v50  ;;  %v4162_v57 = vpop.f32.mrb[95].mxu1 }
 0x1ab   : >> { %v3254_v58 = vpop.f32.mrb[92].mxu0 }
 0x1ac   : >> { %v3261_v59 = vadd.f32 %v3254_v58, %v3203_v51  ;;  %v4155_v60 = vpop.f32.mrb[93].mxu0 }
 0x1ad   : >> { %v3257_v61 = vpop.f32.mrb[94].mxu0 }
 0x1ae   : >> { %v3262_v62 = vadd.f32 %v3257_v61, %v3204_v55  ;;  %v3333_v63 = vadd.f32 %v3326_v49, %v3261_v59  ;;  %v4156_v1 = vpop.f32.mrb[95].mxu0 }
 0x1b0   : >> { %v3334_v4 = vadd.f32 %v3329_v54, %v3262_v62 }
 0x1b3   : >> { %v3384_v5 = vpop.f32.mrb[96].mxu0 }
 0x1b4   : >> { %v3391_v7 = vadd.f32 %v3384_v5, %v3333_v63  ;;  %v4167_v8 = vpop.f32.mrb[97].mxu0 }
 0x1b5   : >> { %v3387_v9 = vpop.f32.mrb[98].mxu0 }
 0x1b6   : >> { %v3399_v10 = vadd.f32 %v4336_v0, %v3391_v7  ;;  %v3392_v12 = vadd.f32 %v3387_v9, %v3334_v4  ;;  %v4168_v13 = vpop.f32.mrb[99].mxu0 }
 0x1b8   : >> { %vm3401_vm10 = vcmp.ge.f32.partialorder %v3399_v10, 0.0  ;;  %v3403_v14 = vmul.f32 0.1, %v3399_v10  ;;  %v3400_v15 = vadd.f32 %v4336_v0, %v3392_v12 }
 0x1b9   : > { %216 = sbr.rel (!%p214_p5) target bundleno = 18 (0x12), region = 125 }
 0x1ba   : >> { %v3405_v16 = vsel %vm3401_vm10, %v3399_v10, %v3403_v14  ;;  %vm3402_vm12 = vcmp.ge.f32.partialorder %v3400_v15, 0.0  ;;  %v3404_v17 = vmul.f32 0.1, %v3400_v15 }
 0x1bb   : >> { %v3774_v11 = vpack.c.bf16 %v3405_v16, %v3405_v16 }
 0x1bc   : >> { %v3406_v18 = vsel %vm3402_vm12, %v3400_v15, %v3404_v17 }
 0x1bd   : >> { %3419 = vst.msk [vmem:[%s3417_s24] sm:$0xf] %vm3418_vm11, %v3774_v11  ;;  %v3775_v19 = vpack.c.bf16 %v3406_v18, %v3406_v18 }
 0x1bf   : >> { %3420 = vst.msk [vmem:[%s3417_s24 + $0x4] sm:$0xf] %vm3418_vm11, %v3775_v19 }
 0x1c0 PF: > { %s13_s14 = sadd.s32 1, %s4286_s14   ;;  %s4989_s12 = smov %s4282_s13 }
 0x1c1   : > { %p10_p6 = scmp.ge.s32.totalorder %s13_s14, 4   ;;  %s4990_s13 = smov %s4992_s15 }
 0x1c3   :  { %12 = sbr.rel (!%p10_p6) target bundleno = 2 (0x2), region = 136 }

// kernel: _lambda_.18
= control target key start
LH: loop header
LB: loop body
LE: loop exit
PB: predicated region body
PF: predicated region fallthrough
CT: control target
= control target key end

     0   :  { %s1490_s12 = smov 0   ;;  %s1492_s13 = smov 0   ;;  %s1757_s0 = inlined_call_operand.vmem [shape: bf16[2,1,10,5,128], index: 0, kind: input, shape index: {}]   ;;  %s1758_s1 = inlined_call_operand.vmem [shape: bf16[3,2,128,64], index: 1, kind: input, shape index: {}]   ;;  %s1759_s2 = inlined_call_operand.vmem [shape: f32[1,64], index: 2, kind: input, shape index: {}]   ;;  %s1760_s3 = inlined_call_operand.vmem [shape: bf16[2,4,4,64], index: 3, kind: output, shape index: {}]  }
   0x1   :  { %s1494_s14 = smov 0  }
   0x2 LB: > { %s25_s15 = sadd.s32 1, %s1458_s13  ;;  %p1023_p0 = scmp.ge.s32.totalorder %s1462_s14, 1  ;;  %s1462_s14 = sphi %s1494_s14, %s13_s14   ;;  %s1458_s13 = sphi %s1492_s13, %s1762_s13   ;;  %s1454_s12 = sphi %s1490_s12, %s1761_s12  }
   0x3   : > { %p27_p1 = scmp.ge.s32.totalorder %s25_s15, 2  ;;  %p157_p2 = scmp.lt.s32.totalorder %s1462_s14, 3 }
   0x5   : > { %s1764_s15 = smov (%p27_p1, %s25_s15), 0  ;;  %p158_p3 = pnand %p1023_p0, %p157_p2 }
   0x6   : > { %p189_p4 = scmp.lt.s32.totalorder (!%p158_p3), %s1454_s12, 1  ;;  %v1511_v0 = vld [vmem:[%s1759_s2] ss:$0 sm:$0xff] (!%p158_p3)  ;;  %s1523_s26 = smov (!%p158_p3), 0  }
   0x7   : > { %161 = sbr.rel (%p158_p3) target bundleno = 339 (0x153), region = 32 }
   0xe   : > { %s1766_s12 = smov (!%p189_p4, %s1454_s12), 1 }
   0xf   : > { %s1350_s18 = smul.u32 40, %s1766_s12  ;;  %s1172_s19 = sshll.u32 %s1766_s12, 3 }
  0x10   : > { %s1516_s22 = scalar_lea.vmem %s1760_s3, %s1172_s19 }
  0x11   : > { %s1521_s25 = scalar_lea.vmem %s1757_s0, %s1350_s18 }
  0x12 LB: >> { %v1385_v1 = vld [vmem:[%s1758_s1 + $0x40] sm:$0xff]   ;;  %v1468_v2 = vmov 0.0   ;;  %v1387_v4 = vld [vmem:[%s1758_s1 + $0x48] sm:$0xff]   ;;  %vm1469_vm0 = vmmov 0   ;;  %v1389_v6 = vld [vmem:[%s1758_s1 + $0x50] sm:$0xff]   ;;  %s1173_s17 = sshll.u32 %s1466_s26, 3  ;;  %s1466_s26 = sphi %s1523_s26, %s215_s26  }
  0x13   : >> { %1230 = vmatprep.subr.bf16.mxu0 %v1468_v2  ;;  %1250 = vmatprep.subr.bf16.mxu1 %v1468_v2  ;;  %v1386_v3 = vld [vmem:[%s1758_s1] sm:$0xff]   ;;  %v1388_v5 = vld [vmem:[%s1758_s1 + $0x8] sm:$0xff]   ;;  %v1390_v7 = vld [vmem:[%s1758_s1 + $0x10] sm:$0xff]   ;;  %s1566_s20 = scalar_lea.vmem %s1521_s25, %s1173_s17  ;;  %vm910_vm2 = vcmask 517120  }
  0x14   : >> { %1231 = vmatpush3.bf16.msra.mxu0 %v1385_v1  ;;  %1246 = vmatprep.mubr.msk.bf16.mxu0 %vm1469_vm0, %v1468_v2  ;;  %v1391_v8 = vld [vmem:[%s1758_s1 + $0x58] sm:$0xff]   ;;  %v1393_v10 = vld [vmem:[%s1758_s1 + $0x60] sm:$0xff]   ;;  %v1395_v13 = vld [vmem:[%s1758_s1 + $0x68] sm:$0xff]  }
  0x15   : >> { %1251 = vmatpush3.bf16.msra.mxu1 %v1386_v3  ;;  %1232 = vmatprep.subr.bf16.mxu0 %v1468_v2  ;;  %v1392_v9 = vld [vmem:[%s1758_s1 + $0x18] sm:$0xff]   ;;  %v1394_v11 = vld [vmem:[%s1758_s1 + $0x20] sm:$0xff]   ;;  %v1396_v14 = vld [vmem:[%s1758_s1 + $0x28] sm:$0xff]  }
  0x16   : >> { %1252 = vmatprep.subr.bf16.mxu1 %v1468_v2  ;;  %1266 = vmatprep.mubr.msk.bf16.mxu1 %vm1469_vm0, %v1468_v2  ;;  %v1401_v12 = vld [vmem:[%s1566_s20] ss:$0 sps:$4 sm:$0x77]   ;;  %v1397_v16 = vld [vmem:[%s1758_s1 + $0x70] sm:$0xff]   ;;  %v1399_v20 = vld [vmem:[%s1758_s1 + $0x78] sm:$0xff]  }
  0x17   : >> { %v260_v15 = vshll.u32 %v1401_v12, 16  ;;  %v1398_v17 = vld [vmem:[%s1758_s1 + $0x30] sm:$0xff]   ;;  %v258_v18 = vshrl.u32 %v1401_v12, 16  ;;  %v1400_v21 = vld [vmem:[%s1758_s1 + $0x38] sm:$0xff]   ;;  %v1402_v23 = vld [vmem:[%s1758_s1 + $0x80] sm:$0xff]  }
  0x18   : >> { %1233 = vmatpush3.bf16.msra.mxu0 %v1387_v4  ;;  %v219_v24 = vld [vmem:[%s1566_s20] sm:$0x3]  ;;  %v1404_v26 = vld [vmem:[%s1758_s1 + $0x88] sm:$0xff]   ;;  %v1406_v28 = vld [vmem:[%s1758_s1 + $0x90] sm:$0xff]  }
  0x19   : >> { %1253 = vmatpush3.bf16.msra.mxu1 %v1388_v5  ;;  %1234 = vmatprep.subr.bf16.mxu0 %v1468_v2  ;;  %v262_v19 = vrot.slane %v260_v15, 1  ;;  %v1403_v25 = vld [vmem:[%s1758_s1 + $0xc0] sm:$0xff]   ;;  %v1405_v27 = vld [vmem:[%s1758_s1 + $0xc8] sm:$0xff]   ;;  %v1407_v29 = vld [vmem:[%s1758_s1 + $0xd0] sm:$0xff]  }
  0x1a   : >> { %1254 = vmatprep.subr.bf16.mxu1 %v1468_v2  ;;  %v1408_v30 = vld [vmem:[%s1758_s1 + $0x98] sm:$0xff]   ;;  %v1410_v32 = vld [vmem:[%s1758_s1 + $0xa0] sm:$0xff]   ;;  %v1412_v34 = vld [vmem:[%s1758_s1 + $0xa8] sm:$0xff]  }
  0x1b   : >> { %v263_v22 = vor.u32 %v262_v19, %v258_v18  ;;  %v1409_v31 = vld [vmem:[%s1758_s1 + $0xd8] sm:$0xff]   ;;  %v1411_v33 = vld [vmem:[%s1758_s1 + $0xe0] sm:$0xff]   ;;  %v1413_v36 = vld [vmem:[%s1758_s1 + $0xe8] sm:$0xff]  }
  0x1c   : >> { %1235 = vmatpush3.bf16.msra.mxu0 %v1389_v6  ;;  %v1418_v35 = vld [vmem:[%s1566_s20 + $0x4] ss:$0 sps:$4 sm:$0x77]   ;;  %v1414_v37 = vld [vmem:[%s1758_s1 + $0xb0] sm:$0xff]   ;;  %v1416_v40 = vld [vmem:[%s1758_s1 + $0xb8] sm:$0xff]  }
  0x1d   : >> { %1255 = vmatpush3.bf16.msra.mxu1 %v1390_v7  ;;  %1236 = vmatprep.subr.bf16.mxu0 %v1468_v2  ;;  %v575_v38 = vshll.u32 %v1418_v35, 16  ;;  %v1415_v39 = vld [vmem:[%s1758_s1 + $0xf0] sm:$0xff]   ;;  %v573_v41 = vshrl.u32 %v1418_v35, 16  ;;  %v1417_v43 = vld [vmem:[%s1758_s1 + $0xf8] sm:$0xff]   ;;  %v1064_v44 = vld [vmem:[%s1566_s20 + $0x4] sm:$0x3] }
  0x1e   : >> { %1256 = vmatprep.subr.bf16.mxu1 %v1468_v2  ;;  %v1419_v46 = vld [vmem:[%s1758_s1 + $0x100] sm:$0xff]   ;;  %v1421_v48 = vld [vmem:[%s1758_s1 + $0x108] sm:$0xff]   ;;  %v1423_v50 = vld [vmem:[%s1758_s1 + $0x110] sm:$0xff]  }
  0x1f   : >> { %v577_v42 = vrot.slane %v575_v38, 1  ;;  %v1420_v47 = vld [vmem:[%s1758_s1 + $0x140] sm:$0xff]   ;;  %v1422_v49 = vld [vmem:[%s1758_s1 + $0x148] sm:$0xff]   ;;  %v1424_v51 = vld [vmem:[%s1758_s1 + $0x150] sm:$0xff]  }
  0x20   : >> { %1237 = vmatpush3.bf16.msra.mxu0 %v1391_v8  ;;  %v1425_v52 = vld [vmem:[%s1758_s1 + $0x118] sm:$0xff]   ;;  %v1427_v54 = vld [vmem:[%s1758_s1 + $0x120] sm:$0xff]   ;;  %v1429_v56 = vld [vmem:[%s1758_s1 + $0x128] sm:$0xff]  }
  0x21   : >> { %1257 = vmatpush3.bf16.msra.mxu1 %v1392_v9  ;;  %1238 = vmatprep.subr.bf16.mxu0 %v1468_v2  ;;  %v578_v45 = vor.u32 %v577_v42, %v573_v41  ;;  %v1426_v53 = vld [vmem:[%s1758_s1 + $0x158] sm:$0xff]   ;;  %v1428_v55 = vld [vmem:[%s1758_s1 + $0x160] sm:$0xff]   ;;  %v1435_v57 = vld [vmem:[%s1566_s20 + $0x8] ss:$0 sps:$4 sm:$0x77]  }
  0x22   : >> { %1258 = vmatprep.subr.bf16.mxu1 %v1468_v2  ;;  %v1430_v58 = vld [vmem:[%s1758_s1 + $0x168] sm:$0xff]   ;;  %v1431_v59 = vld [vmem:[%s1758_s1 + $0x130] sm:$0xff]   ;;  %v803_v60 = vshll.u32 %v1435_v57, 16  ;;  %v1433_v62 = vld [vmem:[%s1758_s1 + $0x138] sm:$0xff]   ;;  %v801_v63 = vshrl.u32 %v1435_v57, 16 }
  0x23   : >> { %v1432_v61 = vld [vmem:[%s1758_s1 + $0x170] sm:$0xff]   ;;  %v1434_v3 = vld [vmem:[%s1758_s1 + $0x178] sm:$0xff]   ;;  %v1117_v4 = vld [vmem:[%s1566_s20 + $0x8] sm:$0x3]  ;;  %s1169_s20 = sshll.u32 %s1466_s26, 1  ;;  %s215_s26 = sadd.s32 1, %s1466_s26  }
  0x24   : >> { %1239 = vmatpush3.bf16.msra.mxu0 %v1393_v10  ;;  %v805_v1 = vrot.slane %v803_v60, 1  ;;  %s909_s21 = scalar_lea.vmem %s1516_s22, %s1169_s20  ;;  %p212_p5 = scmp.ge.s32.totalorder %s215_s26, 4  }
  0x25   : >> { %1259 = vmatpush3.bf16.msra.mxu1 %v1394_v11  ;;  %1240 = vmatprep.subr.bf16.mxu0 %v1468_v2 }
  0x26   : >> { %1260 = vmatprep.subr.bf16.mxu1 %v1468_v2  ;;  %v806_v5 = vor.u32 %v805_v1, %v801_v63 }
  0x28   : >> { %1241 = vmatpush3.bf16.msra.mxu0 %v1395_v13 }
  0x29   : >> { %1261 = vmatpush3.bf16.msra.mxu1 %v1396_v14  ;;  %1242 = vmatprep.subr.bf16.mxu0 %v1468_v2 }
  0x2a   : >> { %1262 = vmatprep.subr.bf16.mxu1 %v1468_v2 }
  0x2c   : >> { %1243 = vmatpush3.bf16.msra.mxu0 %v1397_v16 }
  0x2d   : >> { %1263 = vmatpush3.bf16.msra.mxu1 %v1398_v17  ;;  %1244 = vmatprep.subr.bf16.mxu0 %v1468_v2 }
  0x2e   : >> { %1264 = vmatprep.subr.bf16.mxu1 %v1468_v2 }
  0x30   : >> { %1245 = vmatpush3.bf16.msra.mxu0 %v1399_v20 }
  0x31   : >> { %1265 = vmatpush3.bf16.msra.mxu1 %v1400_v21  ;;  %1270 = vmatprep.subr.bf16.mxu0 %v1468_v2 }
  0x32   : >> { %1290 = vmatprep.subr.bf16.mxu1 %v1468_v2 }
  0x33   : >> { %1247 = vmatmul.mubr.bf16.vlgmr.msra.gmra.mrb[0].mxu0 %v263_v22 }
  0x34   : >> { %1267 = vmatmul.mubr.bf16.vlgmr.msra.gmra.mrb[0].mxu1 %v219_v24  ;;  %1271 = vmatpush3.bf16.msra.mxu0 %v1402_v23 }
  0x35   : >> { %1291 = vmatpush3.bf16.msra.mxu1 %v1403_v25  ;;  %1272 = vmatprep.subr.bf16.mxu0 %v1468_v2 }
  0x36   : >> { %1292 = vmatprep.subr.bf16.mxu1 %v1468_v2  ;;  %1286 = vmatprep.mubr.msk.bf16.mxu0 %vm1469_vm0, %v1468_v2 }
  0x37   : >> { %1306 = vmatprep.mubr.msk.bf16.mxu1 %vm1469_vm0, %v1468_v2 }
  0x38   : >> { %1273 = vmatpush3.bf16.msra.mxu0 %v1404_v26 }
  0x39   : >> { %1293 = vmatpush3.bf16.msra.mxu1 %v1405_v27  ;;  %1274 = vmatprep.subr.bf16.mxu0 %v1468_v2 }
  0x3a   : >> { %1294 = vmatprep.subr.bf16.mxu1 %v1468_v2 }
  0x3c   : >> { %1275 = vmatpush3.bf16.msra.mxu0 %v1406_v28 }
  0x3d   : >> { %1295 = vmatpush3.bf16.msra.mxu1 %v1407_v29  ;;  %1276 = vmatprep.subr.bf16.mxu0 %v1468_v2 }
  0x3e   : >> { %1296 = vmatprep.subr.bf16.mxu1 %v1468_v2 }
  0x40   : >> { %1277 = vmatpush3.bf16.msra.mxu0 %v1408_v30 }
  0x41   : >> { %1297 = vmatpush3.bf16.msra.mxu1 %v1409_v31  ;;  %1278 = vmatprep.subr.bf16.mxu0 %v1468_v2 }
  0x42   : >> { %1298 = vmatprep.subr.bf16.mxu1 %v1468_v2 }
  0x44   : >> { %1279 = vmatpush3.bf16.msra.mxu0 %v1410_v32 }
  0x45   : >> { %1299 = vmatpush3.bf16.msra.mxu1 %v1411_v33  ;;  %1280 = vmatprep.subr.bf16.mxu0 %v1468_v2 }
  0x46   : >> { %1300 = vmatprep.subr.bf16.mxu1 %v1468_v2 }
  0x48   : >> { %1281 = vmatpush3.bf16.msra.mxu0 %v1412_v34 }
  0x49   : >> { %1301 = vmatpush3.bf16.msra.mxu1 %v1413_v36  ;;  %1282 = vmatprep.subr.bf16.mxu0 %v1468_v2 }
  0x4a   : >> { %1302 = vmatprep.subr.bf16.mxu1 %v1468_v2 }
  0x4c   : >> { %1283 = vmatpush3.bf16.msra.mxu0 %v1414_v37 }
  0x4d   : >> { %1303 = vmatpush3.bf16.msra.mxu1 %v1415_v39  ;;  %1284 = vmatprep.subr.bf16.mxu0 %v1468_v2 }
  0x4e   : >> { %1304 = vmatprep.subr.bf16.mxu1 %v1468_v2 }
  0x50   : >> { %1285 = vmatpush3.bf16.msra.mxu0 %v1416_v40 }
  0x51   : >> { %1305 = vmatpush3.bf16.msra.mxu1 %v1417_v43  ;;  %1310 = vmatprep.subr.bf16.mxu0 %v1468_v2 }
  0x52   : >> { %1330 = vmatprep.subr.bf16.mxu1 %v1468_v2 }
  0x53   : >> { %1287 = vmatmul.mubr.bf16.vlgmr.msra.gmra.mrb[4].mxu0 %v1064_v44 }
  0x54   : >> { %1307 = vmatmul.mubr.bf16.vlgmr.msra.gmra.mrb[4].mxu1 %v578_v45  ;;  %1311 = vmatpush3.bf16.msra.mxu0 %v1419_v46 }
  0x55   : >> { %1331 = vmatpush3.bf16.msra.mxu1 %v1420_v47  ;;  %1312 = vmatprep.subr.bf16.mxu0 %v1468_v2 }
  0x56   : >> { %1332 = vmatprep.subr.bf16.mxu1 %v1468_v2  ;;  %1326 = vmatprep.mubr.msk.bf16.mxu0 %vm1469_vm0, %v1468_v2 }
  0x57   : >> { %1346 = vmatprep.mubr.msk.bf16.mxu1 %vm1469_vm0, %v1468_v2 }
  0x58   : >> { %1313 = vmatpush3.bf16.msra.mxu0 %v1421_v48 }
  0x59   : >> { %1333 = vmatpush3.bf16.msra.mxu1 %v1422_v49  ;;  %1314 = vmatprep.subr.bf16.mxu0 %v1468_v2 }
  0x5a   : >> { %1334 = vmatprep.subr.bf16.mxu1 %v1468_v2 }
  0x5c   : >> { %1315 = vmatpush3.bf16.msra.mxu0 %v1423_v50 }
  0x5d   : >> { %1335 = vmatpush3.bf16.msra.mxu1 %v1424_v51  ;;  %1316 = vmatprep.subr.bf16.mxu0 %v1468_v2 }
  0x5e   : >> { %1336 = vmatprep.subr.bf16.mxu1 %v1468_v2 }
  0x60   : >> { %1317 = vmatpush3.bf16.msra.mxu0 %v1425_v52 }
  0x61   : >> { %1337 = vmatpush3.bf16.msra.mxu1 %v1426_v53  ;;  %1318 = vmatprep.subr.bf16.mxu0 %v1468_v2 }
  0x62   : >> { %1338 = vmatprep.subr.bf16.mxu1 %v1468_v2 }
  0x64   : >> { %1319 = vmatpush3.bf16.msra.mxu0 %v1427_v54 }
  0x65   : >> { %1339 = vmatpush3.bf16.msra.mxu1 %v1428_v55  ;;  %1320 = vmatprep.subr.bf16.mxu0 %v1468_v2 }
  0x66   : >> { %1340 = vmatprep.subr.bf16.mxu1 %v1468_v2 }
  0x68   : >> { %1321 = vmatpush3.bf16.msra.mxu0 %v1429_v56 }
  0x69   : >> { %1341 = vmatpush3.bf16.msra.mxu1 %v1430_v58  ;;  %1322 = vmatprep.subr.bf16.mxu0 %v1468_v2 }
  0x6a   : >> { %1342 = vmatprep.subr.bf16.mxu1 %v1468_v2 }
  0x6c   : >> { %1323 = vmatpush3.bf16.msra.mxu0 %v1431_v59 }
  0x6d   : >> { %1343 = vmatpush3.bf16.msra.mxu1 %v1432_v61  ;;  %1324 = vmatprep.subr.bf16.mxu0 %v1468_v2 }
  0x6e   : >> { %1344 = vmatprep.subr.bf16.mxu1 %v1468_v2 }
  0x70   : >> { %1325 = vmatpush3.bf16.msra.mxu0 %v1433_v62 }
  0x71   : >> { %1345 = vmatpush3.bf16.msra.mxu1 %v1434_v3 }
  0x73   : >> { %1327 = vmatmul.mubr.bf16.vlgmr.msra.gmra.mrb[8].mxu0 %v1117_v4 }
  0x74   : >> { %1347 = vmatmul.mubr.bf16.vlgmr.msra.gmra.mrb[8].mxu1 %v806_v5 }
 0x106   : >> { %v347_v6 = vpop.f32.mrb[0].mxu0 }
 0x107   : >> { %v435_v7 = vpop.f32.mrb[0].mxu1  ;;  %v1248_v8 = vpop.f32.mrb[1].mxu0 }
 0x108   : >> { %v436_v9 = vadd.f32 %v435_v7, %v347_v6  ;;  %v1268_v10 = vpop.f32.mrb[1].mxu1  ;;  %v350_v11 = vpop.f32.mrb[2].mxu0 }
 0x109   : >> { %v438_v12 = vpop.f32.mrb[2].mxu1  ;;  %v1249_v13 = vpop.f32.mrb[3].mxu0 }
 0x10a   : >> { %v1269_v14 = vpop.f32.mrb[3].mxu1 }
 0x126   : >> { %v544_v15 = vpop.f32.mrb[4].mxu0 }
 0x127   : >> { %v550_v16 = vadd.f32 %v544_v15, %v436_v9  ;;  %v662_v17 = vpop.f32.mrb[4].mxu1  ;;  %v1288_v18 = vpop.f32.mrb[5].mxu0 }
 0x128   : >> { %v1308_v2 = vpop.f32.mrb[5].mxu1  ;;  %v547_v19 = vpop.f32.mrb[6].mxu0 }
 0x129   : >> { %v668_v20 = vadd.f32 %v662_v17, %v550_v16  ;;  %v665_v21 = vpop.f32.mrb[6].mxu1  ;;  %v1289_v22 = vpop.f32.mrb[7].mxu0 }
 0x12a   : >> { %v1309_v23 = vpop.f32.mrb[7].mxu1 }
 0x146   : >> { %v772_v24 = vpop.f32.mrb[8].mxu0 }
 0x147   : >> { %v778_v25 = vadd.f32 %v772_v24, %v668_v20  ;;  %v890_v26 = vpop.f32.mrb[8].mxu1  ;;  %v1328_v27 = vpop.f32.mrb[9].mxu0 }
 0x148   : >> { %v1348_v28 = vpop.f32.mrb[9].mxu1  ;;  %v775_v29 = vpop.f32.mrb[10].mxu0 }
 0x149   : >> { %v896_v30 = vadd.f32 %v890_v26, %v778_v25  ;;  %v893_v31 = vpop.f32.mrb[10].mxu1  ;;  %v1329_v32 = vpop.f32.mrb[11].mxu0 }
 0x14a   : >> { %v1349_v33 = vpop.f32.mrb[11].mxu1 }
 0x14b   : >> { %v903_v34 = vadd.f32 %v1511_v0, %v896_v30 }
 0x14c   : > { %214 = sbr.rel (!%p212_p5) target bundleno = 18 (0x12), region = 78 }
 0x14d   : >> { %vm904_vm1 = vcmp.ge.f32.partialorder %v903_v34, 0.0  ;;  %v905_v35 = vmul.f32 0.1, %v903_v34 }
 0x14f   : >> { %v906_v36 = vsel %vm904_vm1, %v903_v34, %v905_v35 }
 0x150   : >> { %v907_v37 = vpack.c.bf16 %v906_v36, %v906_v36 }
 0x152   : >> { %911 = vst.msk [vmem:[%s909_s21] sm:$0x3] %vm910_vm2, %v907_v37 }
 0x153 PF: > { %s13_s14 = sadd.s32 1, %s1462_s14   ;;  %s1761_s12 = smov %s1458_s13 }
 0x154   : > { %p10_p6 = scmp.ge.s32.totalorder %s13_s14, 4   ;;  %s1762_s13 = smov %s1764_s15 }
 0x156   :  { %12 = sbr.rel (!%p10_p6) target bundleno = 2 (0x2), region = 89 }

// kernel: _lambda_.19
= control target key start
LH: loop header
LB: loop body
LE: loop exit
PB: predicated region body
PF: predicated region fallthrough
CT: control target
= control target key end

     0   :  { %s1506_s12 = smov 0   ;;  %s1508_s13 = smov 0   ;;  %s1743_s0 = inlined_call_operand.vmem [shape: bf16[2,1,6,6,64], index: 0, kind: input, shape index: {}]   ;;  %s1744_s1 = inlined_call_operand.vmem [shape: bf16[3,3,64,128], index: 1, kind: input, shape index: {}]   ;;  %s1745_s2 = inlined_call_operand.vmem [shape: f32[1,128], index: 2, kind: input, shape index: {}]   ;;  %s1746_s3 = inlined_call_operand.vmem [shape: bf16[2,4,4,128], index: 3, kind: output, shape index: {}]  }
   0x1   :  { %s1510_s14 = smov 0  }
   0x2 LB: > { %s25_s15 = sadd.s32 1, %s1474_s13  ;;  %p1089_p0 = scmp.ge.s32.totalorder %s1478_s14, 1  ;;  %s1478_s14 = sphi %s1510_s14, %s13_s14   ;;  %s1474_s13 = sphi %s1508_s13, %s1748_s13   ;;  %s1470_s12 = sphi %s1506_s12, %s1747_s12  }
   0x3   : > { %p27_p1 = scmp.ge.s32.totalorder %s25_s15, 2  ;;  %p157_p2 = scmp.lt.s32.totalorder %s1478_s14, 3 }
   0x5   : > { %s1750_s15 = smov (%p27_p1, %s25_s15), 0  ;;  %p158_p3 = pnand %p1089_p0, %p157_p2 }
   0x6   : > { %p189_p4 = scmp.lt.s32.totalorder (!%p158_p3), %s1470_s12, 1  ;;  %v1527_v0 = vld [vmem:[%s1745_s2] ss:$0 sm:$0xff] (!%p158_p3)  ;;  %s1539_s26 = smov (!%p158_p3), 0  }
   0x7   : > { %161 = sbr.rel (%p158_p3) target bundleno = 321 (0x141), region = 32 }
   0xe   : > { %s1752_s12 = smov (!%p189_p4, %s1470_s12), 1 }
   0xf   : > { %s1375_s18 = smul.u32 24, %s1752_s12  ;;  %s1221_s19 = sshll.u32 %s1752_s12, 3 }
  0x10   : > { %s1532_s22 = scalar_lea.vmem %s1746_s3, %s1221_s19 }
  0x11   : > { %s1537_s25 = scalar_lea.vmem %s1743_s0, %s1375_s18 }
  0x12 LB: >> { %v1410_v1 = vld [vmem:[%s1744_s1 + $0x20] sm:$0xff]   ;;  %v1484_v2 = vmov 0.0   ;;  %v1412_v4 = vld [vmem:[%s1744_s1 + $0x28] sm:$0xff]   ;;  %vm1485_vm0 = vmmov 0   ;;  %s1093_s6 = sshll.u32 %s1482_s26, 2  ;;  %v1414_v6 = vld [vmem:[%s1744_s1 + $0x30] sm:$0xff]   ;;  %s1482_s26 = sphi %s1539_s26, %s215_s26  }
  0x13   : >> { %1267 = vmatprep.subr.bf16.mxu0 %v1484_v2  ;;  %1279 = vmatprep.subr.bf16.mxu1 %v1484_v2  ;;  %v1411_v3 = vld [vmem:[%s1744_s1] sm:$0xff]   ;;  %v1413_v5 = vld [vmem:[%s1744_s1 + $0x8] sm:$0xff]   ;;  %s1566_s9 = scalar_lea.vmem %s1537_s25, %s1093_s6  ;;  %v1415_v7 = vld [vmem:[%s1744_s1 + $0x10] sm:$0xff]   ;;  %vm271_vm1 = vcmask 523264  }
  0x14   : >> { %1268 = vmatpush3.bf16.msra.mxu0 %v1410_v1  ;;  %1275 = vmatprep.mubr.msk.bf16.mxu0 %vm1485_vm0, %v1484_v2  ;;  %v1418_v8 = vld [vmem:[%s1566_s9] ss:$0 sps:$4 sm:$0x77]   ;;  %v1416_v9 = vld [vmem:[%s1744_s1 + $0x38] sm:$0xff]   ;;  %v1421_v18 = vld [vmem:[%s1744_s1 + $0x48] sm:$0xff]  }
  0x15   : >> { %1280 = vmatpush3.bf16.msra.mxu1 %v1411_v3  ;;  %1269 = vmatprep.subr.bf16.mxu0 %v1484_v2  ;;  %v241_v10 = vshrl.u32 %v1418_v8, 16  ;;  %v243_v11 = vshll.u32 %v1418_v8, 16  ;;  %v1417_v12 = vld [vmem:[%s1744_s1 + $0x18] sm:$0xff]   ;;  %v1419_v14 = vld [vmem:[%s1744_s1 + $0x40] sm:$0xff]   ;;  %v1422_v19 = vld [vmem:[%s1744_s1 + $0x68] sm:$0xff]  }
  0x16   : >> { %1281 = vmatprep.subr.bf16.mxu1 %v1484_v2  ;;  %1287 = vmatprep.mubr.msk.bf16.mxu1 %vm1485_vm0, %v1484_v2  ;;  %v218_v16 = vld [vmem:[%s1566_s9] sm:$0x3]  ;;  %v1423_v20 = vld [vmem:[%s1744_s1 + $0x50] sm:$0xff]   ;;  %v1425_v23 = vld [vmem:[%s1744_s1 + $0x58] sm:$0xff]  }
  0x17   : >> { %v245_v13 = vrot.slane %v243_v11, 1  ;;  %v1420_v17 = vld [vmem:[%s1744_s1 + $0x60] sm:$0xff]   ;;  %v1424_v21 = vld [vmem:[%s1744_s1 + $0x70] sm:$0xff]   ;;  %v1426_v24 = vld [vmem:[%s1744_s1 + $0x78] sm:$0xff]  }
  0x18   : >> { %1270 = vmatpush3.bf16.msra.mxu0 %v1412_v4  ;;  %v1427_v22 = vld [vmem:[%s1566_s9] ss:$0 sps:$4 sm:$0x66]   ;;  %v1128_v27 = vld [vmem:[%s1566_s9 + $0x4] sm:$0x3]  ;;  %v1430_v30 = vld [vmem:[%s1744_s1 + $0x88] sm:$0xff]  }
  0x19   : >> { %1282 = vmatpush3.bf16.msra.mxu1 %v1413_v5  ;;  %1271 = vmatprep.subr.bf16.mxu0 %v1484_v2  ;;  %v246_v15 = vor.u32 %v245_v13, %v241_v10  ;;  %v395_v25 = vrot.slane %v1427_v22, 1  ;;  %v1428_v26 = vld [vmem:[%s1744_s1 + $0x80] sm:$0xff]   ;;  %v1431_v31 = vld [vmem:[%s1744_s1 + $0xa8] sm:$0xff]   ;;  %v1432_v33 = vld [vmem:[%s1744_s1 + $0x90] sm:$0xff]  }
  0x1a   : >> { %1283 = vmatprep.subr.bf16.mxu1 %v1484_v2  ;;  %v1429_v28 = vld [vmem:[%s1744_s1 + $0xa0] sm:$0xff]   ;;  %v1433_v34 = vld [vmem:[%s1744_s1 + $0xb0] sm:$0xff]   ;;  %v1434_v37 = vld [vmem:[%s1744_s1 + $0x98] sm:$0xff]  }
  0x1b   : >> { %v1436_v29 = vld [vmem:[%s1566_s9 + $0x4] ss:$0 sps:$4 sm:$0x77]   ;;  %v1435_v39 = vld [vmem:[%s1744_s1 + $0xb8] sm:$0xff]   ;;  %v1440_v44 = vld [vmem:[%s1744_s1 + $0xc8] sm:$0xff]  }
  0x1c   : >> { %1272 = vmatpush3.bf16.msra.mxu0 %v1414_v6  ;;  %v561_v32 = vshll.u32 %v1436_v29, 16  ;;  %v559_v35 = vshrl.u32 %v1436_v29, 16  ;;  %v1438_v38 = vld [vmem:[%s1566_s9 + $0x4] ss:$0 sps:$4 sm:$0x66]   ;;  %v1441_v46 = vld [vmem:[%s1744_s1 + $0xe8] sm:$0xff]  }
  0x1d   : >> { %1284 = vmatpush3.bf16.msra.mxu1 %v1415_v7  ;;  %1273 = vmatprep.subr.bf16.mxu0 %v1484_v2  ;;  %v1437_v41 = vld [vmem:[%s1744_s1 + $0xc0] sm:$0xff]   ;;  %v646_v42 = vrot.slane %v1438_v38, 1  ;;  %v1447_v45 = vld [vmem:[%s1566_s9 + $0x8] ss:$0 sps:$4 sm:$0x77]   ;;  %v1442_v47 = vld [vmem:[%s1744_s1 + $0xd0] sm:$0xff]  }
  0x1e   : >> { %1285 = vmatprep.subr.bf16.mxu1 %v1484_v2  ;;  %v563_v36 = vrot.slane %v561_v32, 1  ;;  %v1439_v43 = vld [vmem:[%s1744_s1 + $0xe0] sm:$0xff]   ;;  %v812_v48 = vshll.u32 %v1447_v45, 16  ;;  %v1443_v49 = vld [vmem:[%s1744_s1 + $0xf0] sm:$0xff]   ;;  %v1444_v50 = vld [vmem:[%s1744_s1 + $0xd8] sm:$0xff]   ;;  %v810_v51 = vshrl.u32 %v1447_v45, 16 }
  0x1f   : >> { %v1445_v53 = vld [vmem:[%s1744_s1 + $0xf8] sm:$0xff]   ;;  %v1173_v54 = vld [vmem:[%s1566_s9 + $0x8] sm:$0x3]  ;;  %v1446_v55 = vld [vmem:[%s1744_s1 + $0x100] sm:$0xff]  }
  0x20   : >> { %1274 = vmatpush3.bf16.msra.mxu0 %v1416_v9  ;;  %v564_v40 = vor.u32 %v563_v36, %v559_v35  ;;  %v814_v52 = vrot.slane %v812_v48, 1  ;;  %v1448_v57 = vld [vmem:[%s1744_s1 + $0x108] sm:$0xff]   ;;  %v1449_v58 = vld [vmem:[%s1744_s1 + $0x110] sm:$0xff]   ;;  %v1450_v60 = vld [vmem:[%s1744_s1 + $0x118] sm:$0xff]  }
  0x21   : >> { %1286 = vmatpush3.bf16.msra.mxu1 %v1417_v12  ;;  %1291 = vmatprep.subr.bf16.mxu0 %v1484_v2  ;;  %v1451_v59 = vld [vmem:[%s1566_s9 + $0x8] ss:$0 sps:$4 sm:$0x66]   ;;  %s1218_s9 = sshll.u32 %s1482_s26, 1  ;;  %s215_s26 = sadd.s32 1, %s1482_s26  }
  0x22   : >> { %1303 = vmatprep.subr.bf16.mxu1 %v1484_v2  ;;  %v815_v56 = vor.u32 %v814_v52, %v810_v51  ;;  %v897_v61 = vrot.slane %v1451_v59, 1  ;;  %s978_s17 = scalar_lea.vmem %s1532_s22, %s1218_s9  ;;  %p212_p5 = scmp.ge.s32.totalorder %s215_s26, 4  }
  0x23   : >> { %1276 = vmatmul.mubr.msk.bf16.vlgmr.msra.gmra.mrb[0].mxu0 %vm271_vm1, %v246_v15 }
  0x24   : >> { %1288 = vmatmul.mubr.msk.bf16.vlgmr.msra.gmra.mrb[0].mxu1 %vm271_vm1, %v218_v16  ;;  %1292 = vmatpush3.bf16.msra.mxu0 %v1419_v14 }
  0x25   : >> { %1304 = vmatpush3.bf16.msra.mxu1 %v1420_v17  ;;  %1293 = vmatprep.subr.bf16.mxu0 %v1484_v2 }
  0x26   : >> { %1305 = vmatprep.subr.bf16.mxu1 %v1484_v2  ;;  %1299 = vmatprep.mubr.msk.bf16.mxu0 %vm1485_vm0, %v1484_v2 }
  0x27   : >> { %1311 = vmatprep.mubr.msk.bf16.mxu1 %vm1485_vm0, %v1484_v2 }
  0x28   : >> { %1294 = vmatpush3.bf16.msra.mxu0 %v1421_v18 }
  0x29   : >> { %1306 = vmatpush3.bf16.msra.mxu1 %v1422_v19  ;;  %1295 = vmatprep.subr.bf16.mxu0 %v1484_v2 }
  0x2a   : >> { %1307 = vmatprep.subr.bf16.mxu1 %v1484_v2 }
  0x2c   : >> { %1296 = vmatpush3.bf16.msra.mxu0 %v1423_v20 }
  0x2d   : >> { %1308 = vmatpush3.bf16.msra.mxu1 %v1424_v21  ;;  %1297 = vmatprep.subr.bf16.mxu0 %v1484_v2 }
  0x2e   : >> { %1309 = vmatprep.subr.bf16.mxu1 %v1484_v2 }
  0x30   : >> { %1298 = vmatpush3.bf16.msra.mxu0 %v1425_v23 }
  0x31   : >> { %1310 = vmatpush3.bf16.msra.mxu1 %v1426_v24  ;;  %1315 = vmatprep.subr.bf16.mxu0 %v1484_v2 }
  0x32   : >> { %1327 = vmatprep.subr.bf16.mxu1 %v1484_v2 }
  0x33   : >> { %1300 = vmatmul.mubr.msk.bf16.vlgmr.msra.gmra.mrb[4].mxu0 %vm271_vm1, %v395_v25 }
  0x34   : >> { %1316 = vmatpush3.bf16.msra.mxu0 %v1428_v26  ;;  %1312 = vmatmul.mubr.msk.bf16.vlgmr.msra.gmra.mrb[4].mxu1 %vm271_vm1, %v1128_v27 }
  0x35   : >> { %1328 = vmatpush3.bf16.msra.mxu1 %v1429_v28  ;;  %1317 = vmatprep.subr.bf16.mxu0 %v1484_v2 }
  0x36   : >> { %1329 = vmatprep.subr.bf16.mxu1 %v1484_v2  ;;  %1323 = vmatprep.mubr.msk.bf16.mxu0 %vm1485_vm0, %v1484_v2 }
  0x37   : >> { %1335 = vmatprep.mubr.msk.bf16.mxu1 %vm1485_vm0, %v1484_v2 }
  0x38   : >> { %1318 = vmatpush3.bf16.msra.mxu0 %v1430_v30 }
  0x39   : >> { %1330 = vmatpush3.bf16.msra.mxu1 %v1431_v31  ;;  %1319 = vmatprep.subr.bf16.mxu0 %v1484_v2 }
  0x3a   : >> { %1331 = vmatprep.subr.bf16.mxu1 %v1484_v2 }
  0x3c   : >> { %1320 = vmatpush3.bf16.msra.mxu0 %v1432_v33 }
  0x3d   : >> { %1332 = vmatpush3.bf16.msra.mxu1 %v1433_v34  ;;  %1321 = vmatprep.subr.bf16.mxu0 %v1484_v2 }
  0x3e   : >> { %1333 = vmatprep.subr.bf16.mxu1 %v1484_v2 }
  0x40   : >> { %1322 = vmatpush3.bf16.msra.mxu0 %v1434_v37 }
  0x41   : >> { %1334 = vmatpush3.bf16.msra.mxu1 %v1435_v39  ;;  %1339 = vmatprep.subr.bf16.mxu0 %v1484_v2 }
  0x42   : >> { %1351 = vmatprep.subr.bf16.mxu1 %v1484_v2 }
  0x43   : >> { %1324 = vmatmul.mubr.msk.bf16.vlgmr.msra.gmra.mrb[8].mxu0 %vm271_vm1, %v564_v40 }
  0x44   : >> { %1340 = vmatpush3.bf16.msra.mxu0 %v1437_v41  ;;  %1336 = vmatmul.mubr.msk.bf16.vlgmr.msra.gmra.mrb[8].mxu1 %vm271_vm1, %v646_v42 }
  0x45   : >> { %1352 = vmatpush3.bf16.msra.mxu1 %v1439_v43  ;;  %1341 = vmatprep.subr.bf16.mxu0 %v1484_v2 }
  0x46   : >> { %1353 = vmatprep.subr.bf16.mxu1 %v1484_v2  ;;  %1347 = vmatprep.mubr.msk.bf16.mxu0 %vm1485_vm0, %v1484_v2 }
  0x47   : >> { %1359 = vmatprep.mubr.msk.bf16.mxu1 %vm1485_vm0, %v1484_v2 }
  0x48   : >> { %1342 = vmatpush3.bf16.msra.mxu0 %v1440_v44 }
  0x49   : >> { %1354 = vmatpush3.bf16.msra.mxu1 %v1441_v46  ;;  %1343 = vmatprep.subr.bf16.mxu0 %v1484_v2 }
  0x4a   : >> { %1355 = vmatprep.subr.bf16.mxu1 %v1484_v2 }
  0x4c   : >> { %1344 = vmatpush3.bf16.msra.mxu0 %v1442_v47 }
  0x4d   : >> { %1356 = vmatpush3.bf16.msra.mxu1 %v1443_v49  ;;  %1345 = vmatprep.subr.bf16.mxu0 %v1484_v2 }
  0x4e   : >> { %1357 = vmatprep.subr.bf16.mxu1 %v1484_v2 }
  0x50   : >> { %1346 = vmatpush3.bf16.msra.mxu0 %v1444_v50 }
  0x51   : >> { %1358 = vmatpush3.bf16.msra.mxu1 %v1445_v53  ;;  %1363 = vmatprep.subr.bf16.mxu0 %v1484_v2 }
  0x53   : >> { %1348 = vmatmul.mubr.msk.bf16.vlgmr.msra.gmra.mrb[12].mxu0 %vm271_vm1, %v1173_v54 }
  0x54   : >> { %1364 = vmatpush3.bf16.msra.mxu0 %v1446_v55  ;;  %1360 = vmatmul.mubr.msk.bf16.vlgmr.msra.gmra.mrb[12].mxu1 %vm271_vm1, %v815_v56 }
  0x55   : >> { %1365 = vmatprep.subr.bf16.mxu0 %v1484_v2  ;;  %1371 = vmatprep.mubr.msk.bf16.mxu0 %vm1485_vm0, %v1484_v2 }
  0x58   : >> { %1366 = vmatpush3.bf16.msra.mxu0 %v1448_v57 }
  0x59   : >> { %1367 = vmatprep.subr.bf16.mxu0 %v1484_v2 }
  0x5c   : >> { %1368 = vmatpush3.bf16.msra.mxu0 %v1449_v58 }
  0x5d   : >> { %1369 = vmatprep.subr.bf16.mxu0 %v1484_v2 }
  0x60   : >> { %1370 = vmatpush3.bf16.msra.mxu0 %v1450_v60 }
  0x63   : >> { %1372 = vmatmul.mubr.msk.bf16.vlgmr.msra.gmra.mrb[16].mxu0 %vm271_vm1, %v897_v61 }
  0xf6   : >> { %v309_v62 = vpop.f32.mrb[0].mxu0 }
  0xf7   : >> { %v1277_v63 = vpop.f32.mrb[1].mxu0  ;;  %v376_v1 = vpop.f32.mrb[0].mxu1 }
  0xf8   : >> { %v377_v3 = vadd.f32 %v376_v1, %v309_v62  ;;  %v312_v4 = vpop.f32.mrb[2].mxu0  ;;  %v1289_v5 = vpop.f32.mrb[1].mxu1 }
  0xf9   : >> { %v1278_v6 = vpop.f32.mrb[3].mxu0  ;;  %v379_v7 = vpop.f32.mrb[2].mxu1 }
  0xfa   : >> { %v1290_v8 = vpop.f32.mrb[3].mxu1 }
 0x106   : >> { %v457_v9 = vpop.f32.mrb[4].mxu0 }
 0x107   : >> { %v463_v10 = vadd.f32 %v457_v9, %v377_v3  ;;  %v1301_v11 = vpop.f32.mrb[5].mxu0  ;;  %v538_v12 = vpop.f32.mrb[4].mxu1 }
 0x108   : >> { %v460_v13 = vpop.f32.mrb[6].mxu0  ;;  %v1313_v14 = vpop.f32.mrb[5].mxu1 }
 0x109   : >> { %v544_v2 = vadd.f32 %v538_v12, %v463_v10  ;;  %v1302_v15 = vpop.f32.mrb[7].mxu0  ;;  %v541_v16 = vpop.f32.mrb[6].mxu1 }
 0x10a   : >> { %v1314_v17 = vpop.f32.mrb[7].mxu1 }
 0x116   : >> { %v626_v18 = vpop.f32.mrb[8].mxu0 }
 0x117   : >> { %v632_v19 = vadd.f32 %v626_v18, %v544_v2  ;;  %v1325_v20 = vpop.f32.mrb[9].mxu0  ;;  %v708_v21 = vpop.f32.mrb[8].mxu1 }
 0x118   : >> { %v629_v22 = vpop.f32.mrb[10].mxu0  ;;  %v1337_v23 = vpop.f32.mrb[9].mxu1 }
 0x119   : >> { %v714_v24 = vadd.f32 %v708_v21, %v632_v19  ;;  %v1326_v25 = vpop.f32.mrb[11].mxu0  ;;  %v711_v26 = vpop.f32.mrb[10].mxu1 }
 0x11a   : >> { %v1338_v27 = vpop.f32.mrb[11].mxu1 }
 0x126   : >> { %v789_v28 = vpop.f32.mrb[12].mxu0 }
 0x127   : >> { %v795_v29 = vadd.f32 %v789_v28, %v714_v24  ;;  %v1349_v30 = vpop.f32.mrb[13].mxu0  ;;  %v877_v31 = vpop.f32.mrb[12].mxu1 }
 0x128   : >> { %v792_v32 = vpop.f32.mrb[14].mxu0  ;;  %v1361_v33 = vpop.f32.mrb[13].mxu1 }
 0x129   : >> { %v883_v34 = vadd.f32 %v877_v31, %v795_v29  ;;  %v1350_v35 = vpop.f32.mrb[15].mxu0  ;;  %v880_v36 = vpop.f32.mrb[14].mxu1 }
 0x12a   : >> { %v1362_v37 = vpop.f32.mrb[15].mxu1 }
 0x136   : >> { %v959_v38 = vpop.f32.mrb[16].mxu0 }
 0x137   : >> { %v965_v39 = vadd.f32 %v959_v38, %v883_v34  ;;  %v1373_v40 = vpop.f32.mrb[17].mxu0 }
 0x138   : >> { %v962_v41 = vpop.f32.mrb[18].mxu0 }
 0x139   : >> { %v972_v42 = vadd.f32 %v1527_v0, %v965_v39  ;;  %v1374_v43 = vpop.f32.mrb[19].mxu0 }
 0x13a   : > { %214 = sbr.rel (!%p212_p5) target bundleno = 18 (0x12), region = 81 }
 0x13b   : >> { %vm973_vm2 = vcmp.ge.f32.partialorder %v972_v42, 0.0  ;;  %v974_v44 = vmul.f32 0.1, %v972_v42 }
 0x13d   : >> { %v975_v45 = vsel %vm973_vm2, %v972_v42, %v974_v44 }
 0x13e   : >> { %v976_v46 = vpack.c.bf16 %v975_v45, %v975_v45 }
 0x140   : >> { %979 = vst [vmem:[%s978_s17] sm:$0x3] %v976_v46 }
 0x141 PF: > { %s13_s14 = sadd.s32 1, %s1478_s14   ;;  %s1747_s12 = smov %s1474_s13 }
 0x142   : > { %p10_p6 = scmp.ge.s32.totalorder %s13_s14, 4   ;;  %s1748_s13 = smov %s1750_s15 }
 0x144   :  { %12 = sbr.rel (!%p10_p6) target bundleno = 2 (0x2), region = 92 }

// kernel: _lambda_.21
= control target key start
LH: loop header
LB: loop body
LE: loop exit
PB: predicated region body
PF: predicated region fallthrough
CT: control target
= control target key end

     0   :  { %s1976_s12 = smov 0   ;;  %s1978_s13 = smov 0   ;;  %s2348_s0 = inlined_call_operand.vmem [shape: bf16[2,1,6,6,128], index: 0, kind: input, shape index: {}]   ;;  %s2349_s1 = inlined_call_operand.vmem [shape: bf16[3,3,128,128], index: 1, kind: input, shape index: {}]   ;;  %s2350_s2 = inlined_call_operand.vmem [shape: f32[1,128], index: 2, kind: input, shape index: {}]   ;;  %s2351_s3 = inlined_call_operand.vmem [shape: bf16[2,2,2,128], index: 3, kind: output, shape index: {}]  }
   0x1   :  { %s1980_s14 = smov 0  }
   0x2 LB: > { %s25_s15 = sadd.s32 1, %s1944_s13  ;;  %p1327_p0 = scmp.ge.s32.totalorder %s1948_s14, 1  ;;  %s1948_s14 = sphi %s1980_s14, %s13_s14   ;;  %s1944_s13 = sphi %s1978_s13, %s2353_s13   ;;  %s1940_s12 = sphi %s1976_s12, %s2352_s12  }
   0x3   : > { %p27_p1 = scmp.ge.s32.totalorder %s25_s15, 2  ;;  %p157_p2 = scmp.lt.s32.totalorder %s1948_s14, 3 }
   0x5   : > { %s2355_s15 = smov (%p27_p1, %s25_s15), 0  ;;  %p158_p3 = pnand %p1327_p0, %p157_p2 }
   0x6   : > { %p188_p4 = scmp.lt.s32.totalorder (!%p158_p3), %s1940_s12, 1  ;;  %v1997_v0 = vld [vmem:[%s2350_s2] ss:$0 sm:$0xff] (!%p158_p3)  ;;  %s2009_s26 = smov (!%p158_p3), 0  }
   0x7   : > { %161 = sbr.rel (%p158_p3) target bundleno = 401 (0x191), region = 32 }
   0xe   : > { %s2357_s12 = smov (!%p188_p4, %s1940_s12), 1 }
   0xf   : > { %s1809_s18 = smul.u32 24, %s2357_s12  ;;  %s1329_s19 = sshll.u32 %s2357_s12, 1 }
  0x10   : > { %s2002_s22 = scalar_lea.vmem %s2351_s3, %s1329_s19 }
  0x11   : > { %s2007_s25 = scalar_lea.vmem %s2348_s0, %s1809_s18 }
  0x12 LB: >> { %v1844_v1 = vld [vmem:[%s2349_s1 + $0x40] sm:$0xff]   ;;  %v1954_v2 = vmov 0.0   ;;  %v1846_v4 = vld [vmem:[%s2349_s1 + $0x48] sm:$0xff]   ;;  %vm1955_vm0 = vmmov 0   ;;  %v1848_v6 = vld [vmem:[%s2349_s1 + $0x50] sm:$0xff]   ;;  %s1330_s19 = sshll.u32 %s1952_s26, 2  ;;  %s1952_s26 = sphi %s2009_s26, %s213_s26  }
  0x13   : >> { %1629 = vmatprep.subr.bf16.mxu0 %v1954_v2  ;;  %1649 = vmatprep.subr.bf16.mxu1 %v1954_v2  ;;  %v1845_v3 = vld [vmem:[%s2349_s1] sm:$0xff]   ;;  %v1847_v5 = vld [vmem:[%s2349_s1 + $0x8] sm:$0xff]   ;;  %v1849_v7 = vld [vmem:[%s2349_s1 + $0x10] sm:$0xff]   ;;  %s2059_s27 = scalar_lea.vmem %s2007_s25, %s1330_s19 }
  0x14   : >> { %1630 = vmatpush3.bf16.msra.mxu0 %v1844_v1  ;;  %1645 = vmatprep.mubr.msk.bf16.mxu0 %vm1955_vm0, %v1954_v2  ;;  %v1850_v8 = vld [vmem:[%s2349_s1 + $0x58] sm:$0xff]   ;;  %v1852_v10 = vld [vmem:[%s2349_s1 + $0x60] sm:$0xff]   ;;  %v1854_v12 = vld [vmem:[%s2349_s1 + $0x68] sm:$0xff]  }
  0x15   : >> { %1650 = vmatpush3.bf16.msra.mxu1 %v1845_v3  ;;  %1631 = vmatprep.subr.bf16.mxu0 %v1954_v2  ;;  %v1851_v9 = vld [vmem:[%s2349_s1 + $0x18] sm:$0xff]   ;;  %v1853_v11 = vld [vmem:[%s2349_s1 + $0x20] sm:$0xff]   ;;  %v1855_v13 = vld [vmem:[%s2349_s1 + $0x28] sm:$0xff]  }
  0x16   : >> { %1651 = vmatprep.subr.bf16.mxu1 %v1954_v2  ;;  %1665 = vmatprep.mubr.msk.bf16.mxu1 %vm1955_vm0, %v1954_v2  ;;  %v1856_v14 = vld [vmem:[%s2349_s1 + $0x70] sm:$0xff]   ;;  %v1860_v16 = vld [vmem:[%s2059_s27] ss:$0 sps:$4 sm:$0x22]   ;;  %v1858_v17 = vld [vmem:[%s2349_s1 + $0x78] sm:$0xff]  }
  0x17   : >> { %v1857_v15 = vld [vmem:[%s2349_s1 + $0x30] sm:$0xff]   ;;  %v1859_v18 = vld [vmem:[%s2349_s1 + $0x38] sm:$0xff]   ;;  %v254_v19 = vrot.slane %v1860_v16, 1  ;;  %v1861_v20 = vld [vmem:[%s2349_s1 + $0x80] sm:$0xff]  }
  0x18   : >> { %1632 = vmatpush3.bf16.msra.mxu0 %v1846_v4  ;;  %v216_v21 = vld [vmem:[%s2059_s27] sm:$0x1]  ;;  %v1863_v23 = vld [vmem:[%s2349_s1 + $0x88] sm:$0xff]   ;;  %v1865_v25 = vld [vmem:[%s2349_s1 + $0x90] sm:$0xff]  }
  0x19   : >> { %1652 = vmatpush3.bf16.msra.mxu1 %v1847_v5  ;;  %1633 = vmatprep.subr.bf16.mxu0 %v1954_v2  ;;  %v1862_v22 = vld [vmem:[%s2349_s1 + $0xc0] sm:$0xff]   ;;  %v1864_v24 = vld [vmem:[%s2349_s1 + $0xc8] sm:$0xff]   ;;  %v1866_v26 = vld [vmem:[%s2349_s1 + $0xd0] sm:$0xff]  }
  0x1a   : >> { %1653 = vmatprep.subr.bf16.mxu1 %v1954_v2  ;;  %v1867_v27 = vld [vmem:[%s2349_s1 + $0x98] sm:$0xff]   ;;  %v1869_v29 = vld [vmem:[%s2349_s1 + $0xa0] sm:$0xff]   ;;  %v1871_v31 = vld [vmem:[%s2349_s1 + $0xa8] sm:$0xff]  }
  0x1b   : >> { %v1868_v28 = vld [vmem:[%s2349_s1 + $0xd8] sm:$0xff]   ;;  %v1870_v30 = vld [vmem:[%s2349_s1 + $0xe0] sm:$0xff]   ;;  %v1872_v32 = vld [vmem:[%s2349_s1 + $0xe8] sm:$0xff]  }
  0x1c   : >> { %1634 = vmatpush3.bf16.msra.mxu0 %v1848_v6  ;;  %v1873_v33 = vld [vmem:[%s2349_s1 + $0xb0] sm:$0xff]   ;;  %v1877_v35 = vld [vmem:[%s2059_s27] ss:$0 sps:$4 sm:$0x44]   ;;  %v1875_v36 = vld [vmem:[%s2349_s1 + $0xb8] sm:$0xff]  }
  0x1d   : >> { %1654 = vmatpush3.bf16.msra.mxu1 %v1849_v7  ;;  %1635 = vmatprep.subr.bf16.mxu0 %v1954_v2  ;;  %v1874_v34 = vld [vmem:[%s2349_s1 + $0xf0] sm:$0xff]   ;;  %v1876_v37 = vld [vmem:[%s2349_s1 + $0xf8] sm:$0xff]   ;;  %v453_v38 = vrot.slane %v1877_v35, 2  ;;  %v1878_v39 = vld [vmem:[%s2349_s1 + $0x100] sm:$0xff]  }
  0x1e   : >> { %1655 = vmatprep.subr.bf16.mxu1 %v1954_v2  ;;  %v1390_v40 = vld [vmem:[%s2059_s27 + $0x8] sm:$0x1]  ;;  %v1879_v41 = vld [vmem:[%s2349_s1 + $0x140] sm:$0xff]   ;;  %v1882_v44 = vld [vmem:[%s2349_s1 + $0x110] sm:$0xff]  }
  0x1f   : >> { %v1880_v42 = vld [vmem:[%s2349_s1 + $0x108] sm:$0xff]   ;;  %v1883_v45 = vld [vmem:[%s2349_s1 + $0x150] sm:$0xff]   ;;  %v1884_v46 = vld [vmem:[%s2349_s1 + $0x118] sm:$0xff]  }
  0x20   : >> { %1636 = vmatpush3.bf16.msra.mxu0 %v1850_v8  ;;  %v1881_v43 = vld [vmem:[%s2349_s1 + $0x148] sm:$0xff]   ;;  %v1885_v47 = vld [vmem:[%s2349_s1 + $0x158] sm:$0xff]   ;;  %v1886_v48 = vld [vmem:[%s2349_s1 + $0x120] sm:$0xff]  }
  0x21   : >> { %1656 = vmatpush3.bf16.msra.mxu1 %v1851_v9  ;;  %1637 = vmatprep.subr.bf16.mxu0 %v1954_v2  ;;  %v1887_v49 = vld [vmem:[%s2349_s1 + $0x160] sm:$0xff]   ;;  %v1888_v50 = vld [vmem:[%s2349_s1 + $0x128] sm:$0xff]   ;;  %v1890_v52 = vld [vmem:[%s2349_s1 + $0x130] sm:$0xff]  }
  0x22   : >> { %1657 = vmatprep.subr.bf16.mxu1 %v1954_v2  ;;  %v1889_v51 = vld [vmem:[%s2349_s1 + $0x168] sm:$0xff]   ;;  %v1891_v53 = vld [vmem:[%s2349_s1 + $0x170] sm:$0xff]   ;;  %v1892_v55 = vld [vmem:[%s2349_s1 + $0x138] sm:$0xff]  }
  0x23   : >> { %v1894_v54 = vld [vmem:[%s2059_s27 + $0x8] ss:$0 sps:$4 sm:$0x22]   ;;  %v1893_v57 = vld [vmem:[%s2349_s1 + $0x178] sm:$0xff]   ;;  %v1895_v59 = vld [vmem:[%s2349_s1 + $0x180] sm:$0xff]  }
  0x24   : >> { %1638 = vmatpush3.bf16.msra.mxu0 %v1852_v10  ;;  %v1896_v56 = vld [vmem:[%s2059_s27 + $0x8] ss:$0 sps:$4 sm:$0x44]   ;;  %v675_v58 = vrot.slane %v1894_v54, 1  ;;  %v1897_v61 = vld [vmem:[%s2349_s1 + $0x1c0] sm:$0xff]   ;;  %v1900_v1 = vld [vmem:[%s2349_s1 + $0x190] sm:$0xff]  }
  0x25   : >> { %1658 = vmatpush3.bf16.msra.mxu1 %v1853_v11  ;;  %1639 = vmatprep.subr.bf16.mxu0 %v1954_v2  ;;  %v787_v60 = vrot.slane %v1896_v56, 2  ;;  %v1898_v62 = vld [vmem:[%s2349_s1 + $0x188] sm:$0xff]   ;;  %v1901_v3 = vld [vmem:[%s2349_s1 + $0x1d0] sm:$0xff]   ;;  %v1902_v4 = vld [vmem:[%s2349_s1 + $0x198] sm:$0xff]  }
  0x26   : >> { %1659 = vmatprep.subr.bf16.mxu1 %v1954_v2  ;;  %v1899_v63 = vld [vmem:[%s2349_s1 + $0x1c8] sm:$0xff]   ;;  %v1903_v5 = vld [vmem:[%s2349_s1 + $0x1d8] sm:$0xff]   ;;  %v1904_v6 = vld [vmem:[%s2349_s1 + $0x1a0] sm:$0xff]  }
  0x27   : >> { %v1905_v7 = vld [vmem:[%s2349_s1 + $0x1e0] sm:$0xff]   ;;  %v1906_v8 = vld [vmem:[%s2349_s1 + $0x1a8] sm:$0xff]   ;;  %v1908_v10 = vld [vmem:[%s2349_s1 + $0x1b0] sm:$0xff]  }
  0x28   : >> { %1640 = vmatpush3.bf16.msra.mxu0 %v1854_v12  ;;  %v1907_v9 = vld [vmem:[%s2349_s1 + $0x1e8] sm:$0xff]   ;;  %v1909_v11 = vld [vmem:[%s2349_s1 + $0x1f0] sm:$0xff]   ;;  %v1910_v12 = vld [vmem:[%s2349_s1 + $0x1b8] sm:$0xff]  }
  0x29   : >> { %1660 = vmatpush3.bf16.msra.mxu1 %v1855_v13  ;;  %1641 = vmatprep.subr.bf16.mxu0 %v1954_v2  ;;  %v1913_v13 = vld [vmem:[%s2059_s27 + $0x10] ss:$0 sps:$4 sm:$0x22]   ;;  %v1912_v16 = vld [vmem:[%s2349_s1 + $0x200] sm:$0xff]  }
  0x2a   : >> { %1661 = vmatprep.subr.bf16.mxu1 %v1954_v2 }
  0x2c   : >> { %1642 = vmatpush3.bf16.msra.mxu0 %v1856_v14  ;;  %v1911_v14 = vld [vmem:[%s2349_s1 + $0x1f8] sm:$0xff]  }
  0x2d   : >> { %1662 = vmatpush3.bf16.msra.mxu1 %v1857_v15  ;;  %1643 = vmatprep.subr.bf16.mxu0 %v1954_v2  ;;  %v1468_v15 = vld [vmem:[%s2059_s27 + $0x10] sm:$0x1] }
  0x2e   : >> { %1663 = vmatprep.subr.bf16.mxu1 %v1954_v2 }
  0x30   : >> { %1644 = vmatpush3.bf16.msra.mxu0 %v1858_v17  ;;  %v1009_v17 = vrot.slane %v1913_v13, 1 }
  0x31   : >> { %1664 = vmatpush3.bf16.msra.mxu1 %v1859_v18  ;;  %1669 = vmatprep.subr.bf16.mxu0 %v1954_v2  ;;  %v1914_v18 = vld [vmem:[%s2349_s1 + $0x208] sm:$0xff]  }
  0x32   : >> { %1689 = vmatprep.subr.bf16.mxu1 %v1954_v2 }
  0x33   : >> { %1646 = vmatmul.mubr.bf16.vlgmr.msra.gmra.mrb[0].mxu0 %v254_v19  ;;  %v1915_v19 = vld [vmem:[%s2349_s1 + $0x210] sm:$0xff]  }
  0x34   : >> { %1666 = vmatmul.mubr.bf16.vlgmr.msra.gmra.mrb[0].mxu1 %v216_v21  ;;  %1670 = vmatpush3.bf16.msra.mxu0 %v1861_v20  ;;  %v1916_v20 = vld [vmem:[%s2349_s1 + $0x218] sm:$0xff]   ;;  %v1917_v21 = vld [vmem:[%s2349_s1 + $0x220] sm:$0xff]  }
  0x35   : >> { %1690 = vmatpush3.bf16.msra.mxu1 %v1862_v22  ;;  %1671 = vmatprep.subr.bf16.mxu0 %v1954_v2  ;;  %v1918_v22 = vld [vmem:[%s2349_s1 + $0x228] sm:$0xff]  }
  0x36   : >> { %1691 = vmatprep.subr.bf16.mxu1 %v1954_v2  ;;  %1685 = vmatprep.mubr.msk.bf16.mxu0 %vm1955_vm0, %v1954_v2 }
  0x37   : >> { %1705 = vmatprep.mubr.msk.bf16.mxu1 %vm1955_vm0, %v1954_v2 }
  0x38   : >> { %1672 = vmatpush3.bf16.msra.mxu0 %v1863_v23  ;;  %v1919_v23 = vld [vmem:[%s2349_s1 + $0x230] sm:$0xff]  }
  0x39   : >> { %1692 = vmatpush3.bf16.msra.mxu1 %v1864_v24  ;;  %1673 = vmatprep.subr.bf16.mxu0 %v1954_v2  ;;  %v1921_v24 = vld [vmem:[%s2059_s27 + $0x10] ss:$0 sps:$4 sm:$0x44]   ;;  %s1223_s27 = scalar_lea.vmem %s2002_s22, %s1952_s26  ;;  %s213_s26 = sadd.s32 1, %s1952_s26  }
  0x3a   : >> { %1693 = vmatprep.subr.bf16.mxu1 %v1954_v2  ;;  %p210_p5 = scmp.ge.s32.totalorder %s213_s26, 2  }
  0x3c   : >> { %1674 = vmatpush3.bf16.msra.mxu0 %v1865_v25  ;;  %v1920_v25 = vld [vmem:[%s2349_s1 + $0x238] sm:$0xff]  }
  0x3d   : >> { %1694 = vmatpush3.bf16.msra.mxu1 %v1866_v26  ;;  %1675 = vmatprep.subr.bf16.mxu0 %v1954_v2  ;;  %v1121_v26 = vrot.slane %v1921_v24, 2 }
  0x3e   : >> { %1695 = vmatprep.subr.bf16.mxu1 %v1954_v2 }
  0x40   : >> { %1676 = vmatpush3.bf16.msra.mxu0 %v1867_v27 }
  0x41   : >> { %1696 = vmatpush3.bf16.msra.mxu1 %v1868_v28  ;;  %1677 = vmatprep.subr.bf16.mxu0 %v1954_v2 }
  0x42   : >> { %1697 = vmatprep.subr.bf16.mxu1 %v1954_v2 }
  0x44   : >> { %1678 = vmatpush3.bf16.msra.mxu0 %v1869_v29 }
  0x45   : >> { %1698 = vmatpush3.bf16.msra.mxu1 %v1870_v30  ;;  %1679 = vmatprep.subr.bf16.mxu0 %v1954_v2 }
  0x46   : >> { %1699 = vmatprep.subr.bf16.mxu1 %v1954_v2 }
  0x48   : >> { %1680 = vmatpush3.bf16.msra.mxu0 %v1871_v31 }
  0x49   : >> { %1700 = vmatpush3.bf16.msra.mxu1 %v1872_v32  ;;  %1681 = vmatprep.subr.bf16.mxu0 %v1954_v2 }
  0x4a   : >> { %1701 = vmatprep.subr.bf16.mxu1 %v1954_v2 }
  0x4c   : >> { %1682 = vmatpush3.bf16.msra.mxu0 %v1873_v33 }
  0x4d   : >> { %1702 = vmatpush3.bf16.msra.mxu1 %v1874_v34  ;;  %1683 = vmatprep.subr.bf16.mxu0 %v1954_v2 }
  0x4e   : >> { %1703 = vmatprep.subr.bf16.mxu1 %v1954_v2 }
  0x50   : >> { %1684 = vmatpush3.bf16.msra.mxu0 %v1875_v36 }
  0x51   : >> { %1704 = vmatpush3.bf16.msra.mxu1 %v1876_v37  ;;  %1709 = vmatprep.subr.bf16.mxu0 %v1954_v2 }
  0x52   : >> { %1729 = vmatprep.subr.bf16.mxu1 %v1954_v2 }
  0x53   : >> { %1686 = vmatmul.mubr.bf16.vlgmr.msra.gmra.mrb[4].mxu0 %v453_v38 }
  0x54   : >> { %1710 = vmatpush3.bf16.msra.mxu0 %v1878_v39  ;;  %1706 = vmatmul.mubr.bf16.vlgmr.msra.gmra.mrb[4].mxu1 %v1390_v40 }
  0x55   : >> { %1730 = vmatpush3.bf16.msra.mxu1 %v1879_v41  ;;  %1711 = vmatprep.subr.bf16.mxu0 %v1954_v2 }
  0x56   : >> { %1731 = vmatprep.subr.bf16.mxu1 %v1954_v2  ;;  %1725 = vmatprep.mubr.msk.bf16.mxu0 %vm1955_vm0, %v1954_v2 }
  0x57   : >> { %1745 = vmatprep.mubr.msk.bf16.mxu1 %vm1955_vm0, %v1954_v2 }
  0x58   : >> { %1712 = vmatpush3.bf16.msra.mxu0 %v1880_v42 }
  0x59   : >> { %1732 = vmatpush3.bf16.msra.mxu1 %v1881_v43  ;;  %1713 = vmatprep.subr.bf16.mxu0 %v1954_v2 }
  0x5a   : >> { %1733 = vmatprep.subr.bf16.mxu1 %v1954_v2 }
  0x5c   : >> { %1714 = vmatpush3.bf16.msra.mxu0 %v1882_v44 }
  0x5d   : >> { %1734 = vmatpush3.bf16.msra.mxu1 %v1883_v45  ;;  %1715 = vmatprep.subr.bf16.mxu0 %v1954_v2 }
  0x5e   : >> { %1735 = vmatprep.subr.bf16.mxu1 %v1954_v2 }
  0x60   : >> { %1716 = vmatpush3.bf16.msra.mxu0 %v1884_v46 }
  0x61   : >> { %1736 = vmatpush3.bf16.msra.mxu1 %v1885_v47  ;;  %1717 = vmatprep.subr.bf16.mxu0 %v1954_v2 }
  0x62   : >> { %1737 = vmatprep.subr.bf16.mxu1 %v1954_v2 }
  0x64   : >> { %1718 = vmatpush3.bf16.msra.mxu0 %v1886_v48 }
  0x65   : >> { %1738 = vmatpush3.bf16.msra.mxu1 %v1887_v49  ;;  %1719 = vmatprep.subr.bf16.mxu0 %v1954_v2 }
  0x66   : >> { %1739 = vmatprep.subr.bf16.mxu1 %v1954_v2 }
  0x68   : >> { %1720 = vmatpush3.bf16.msra.mxu0 %v1888_v50 }
  0x69   : >> { %1740 = vmatpush3.bf16.msra.mxu1 %v1889_v51  ;;  %1721 = vmatprep.subr.bf16.mxu0 %v1954_v2 }
  0x6a   : >> { %1741 = vmatprep.subr.bf16.mxu1 %v1954_v2 }
  0x6c   : >> { %1722 = vmatpush3.bf16.msra.mxu0 %v1890_v52 }
  0x6d   : >> { %1742 = vmatpush3.bf16.msra.mxu1 %v1891_v53  ;;  %1723 = vmatprep.subr.bf16.mxu0 %v1954_v2 }
  0x6e   : >> { %1743 = vmatprep.subr.bf16.mxu1 %v1954_v2 }
  0x70   : >> { %1724 = vmatpush3.bf16.msra.mxu0 %v1892_v55 }
  0x71   : >> { %1744 = vmatpush3.bf16.msra.mxu1 %v1893_v57  ;;  %1749 = vmatprep.subr.bf16.mxu0 %v1954_v2 }
  0x72   : >> { %1769 = vmatprep.subr.bf16.mxu1 %v1954_v2 }
  0x73   : >> { %1726 = vmatmul.mubr.bf16.vlgmr.msra.gmra.mrb[8].mxu0 %v675_v58 }
  0x74   : >> { %1750 = vmatpush3.bf16.msra.mxu0 %v1895_v59  ;;  %1746 = vmatmul.mubr.bf16.vlgmr.msra.gmra.mrb[8].mxu1 %v787_v60 }
  0x75   : >> { %1770 = vmatpush3.bf16.msra.mxu1 %v1897_v61  ;;  %1751 = vmatprep.subr.bf16.mxu0 %v1954_v2 }
  0x76   : >> { %1771 = vmatprep.subr.bf16.mxu1 %v1954_v2  ;;  %1765 = vmatprep.mubr.msk.bf16.mxu0 %vm1955_vm0, %v1954_v2 }
  0x77   : >> { %1785 = vmatprep.mubr.msk.bf16.mxu1 %vm1955_vm0, %v1954_v2 }
  0x78   : >> { %1752 = vmatpush3.bf16.msra.mxu0 %v1898_v62 }
  0x79   : >> { %1772 = vmatpush3.bf16.msra.mxu1 %v1899_v63  ;;  %1753 = vmatprep.subr.bf16.mxu0 %v1954_v2 }
  0x7a   : >> { %1773 = vmatprep.subr.bf16.mxu1 %v1954_v2 }
  0x7c   : >> { %1754 = vmatpush3.bf16.msra.mxu0 %v1900_v1 }
  0x7d   : >> { %1774 = vmatpush3.bf16.msra.mxu1 %v1901_v3  ;;  %1755 = vmatprep.subr.bf16.mxu0 %v1954_v2 }
  0x7e   : >> { %1775 = vmatprep.subr.bf16.mxu1 %v1954_v2 }
  0x80   : >> { %1756 = vmatpush3.bf16.msra.mxu0 %v1902_v4 }
  0x81   : >> { %1776 = vmatpush3.bf16.msra.mxu1 %v1903_v5  ;;  %1757 = vmatprep.subr.bf16.mxu0 %v1954_v2 }
  0x82   : >> { %1777 = vmatprep.subr.bf16.mxu1 %v1954_v2 }
  0x84   : >> { %1758 = vmatpush3.bf16.msra.mxu0 %v1904_v6 }
  0x85   : >> { %1778 = vmatpush3.bf16.msra.mxu1 %v1905_v7  ;;  %1759 = vmatprep.subr.bf16.mxu0 %v1954_v2 }
  0x86   : >> { %1779 = vmatprep.subr.bf16.mxu1 %v1954_v2 }
  0x88   : >> { %1760 = vmatpush3.bf16.msra.mxu0 %v1906_v8 }
  0x89   : >> { %1780 = vmatpush3.bf16.msra.mxu1 %v1907_v9  ;;  %1761 = vmatprep.subr.bf16.mxu0 %v1954_v2 }
  0x8a   : >> { %1781 = vmatprep.subr.bf16.mxu1 %v1954_v2 }
  0x8c   : >> { %1762 = vmatpush3.bf16.msra.mxu0 %v1908_v10 }
  0x8d   : >> { %1782 = vmatpush3.bf16.msra.mxu1 %v1909_v11  ;;  %1763 = vmatprep.subr.bf16.mxu0 %v1954_v2 }
  0x8e   : >> { %1783 = vmatprep.subr.bf16.mxu1 %v1954_v2 }
  0x90   : >> { %1764 = vmatpush3.bf16.msra.mxu0 %v1910_v12 }
  0x91   : >> { %1784 = vmatpush3.bf16.msra.mxu1 %v1911_v14  ;;  %1789 = vmatprep.subr.bf16.mxu0 %v1954_v2 }
  0x93   : >> { %1766 = vmatmul.mubr.bf16.vlgmr.msra.gmra.mrb[12].mxu0 %v1468_v15 }
  0x94   : >> { %1790 = vmatpush3.bf16.msra.mxu0 %v1912_v16  ;;  %1786 = vmatmul.mubr.bf16.vlgmr.msra.gmra.mrb[12].mxu1 %v1009_v17 }
  0x95   : >> { %1791 = vmatprep.subr.bf16.mxu0 %v1954_v2  ;;  %1805 = vmatprep.mubr.msk.bf16.mxu0 %vm1955_vm0, %v1954_v2 }
  0x98   : >> { %1792 = vmatpush3.bf16.msra.mxu0 %v1914_v18 }
  0x99   : >> { %1793 = vmatprep.subr.bf16.mxu0 %v1954_v2 }
  0x9c   : >> { %1794 = vmatpush3.bf16.msra.mxu0 %v1915_v19 }
  0x9d   : >> { %1795 = vmatprep.subr.bf16.mxu0 %v1954_v2 }
  0xa0   : >> { %1796 = vmatpush3.bf16.msra.mxu0 %v1916_v20 }
  0xa1   : >> { %1797 = vmatprep.subr.bf16.mxu0 %v1954_v2 }
  0xa4   : >> { %1798 = vmatpush3.bf16.msra.mxu0 %v1917_v21 }
  0xa5   : >> { %1799 = vmatprep.subr.bf16.mxu0 %v1954_v2 }
  0xa8   : >> { %1800 = vmatpush3.bf16.msra.mxu0 %v1918_v22 }
  0xa9   : >> { %1801 = vmatprep.subr.bf16.mxu0 %v1954_v2 }
  0xac   : >> { %1802 = vmatpush3.bf16.msra.mxu0 %v1919_v23 }
  0xad   : >> { %1803 = vmatprep.subr.bf16.mxu0 %v1954_v2 }
  0xb0   : >> { %1804 = vmatpush3.bf16.msra.mxu0 %v1920_v25 }
  0xb3   : >> { %1806 = vmatmul.mubr.bf16.vlgmr.msra.gmra.mrb[16].mxu0 %v1121_v26 }
 0x106   : >> { %v338_v27 = vpop.f32.mrb[0].mxu0 }
 0x107   : >> { %v1647_v28 = vpop.f32.mrb[1].mxu0  ;;  %v426_v29 = vpop.f32.mrb[0].mxu1 }
 0x108   : >> { %v427_v30 = vadd.f32 %v426_v29, %v338_v27  ;;  %v341_v31 = vpop.f32.mrb[2].mxu0  ;;  %v1667_v32 = vpop.f32.mrb[1].mxu1 }
 0x109   : >> { %v1648_v33 = vpop.f32.mrb[3].mxu0  ;;  %v429_v34 = vpop.f32.mrb[2].mxu1 }
 0x10a   : >> { %v1668_v35 = vpop.f32.mrb[3].mxu1 }
 0x126   : >> { %v537_v36 = vpop.f32.mrb[4].mxu0 }
 0x127   : >> { %v543_v37 = vadd.f32 %v537_v36, %v427_v30  ;;  %v1687_v38 = vpop.f32.mrb[5].mxu0  ;;  %v647_v39 = vpop.f32.mrb[4].mxu1 }
 0x128   : >> { %v540_v40 = vpop.f32.mrb[6].mxu0  ;;  %v1707_v41 = vpop.f32.mrb[5].mxu1 }
 0x129   : >> { %v653_v42 = vadd.f32 %v647_v39, %v543_v37  ;;  %v1688_v2 = vpop.f32.mrb[7].mxu0  ;;  %v650_v43 = vpop.f32.mrb[6].mxu1 }
 0x12a   : >> { %v1708_v44 = vpop.f32.mrb[7].mxu1 }
 0x146   : >> { %v759_v45 = vpop.f32.mrb[8].mxu0 }
 0x147   : >> { %v765_v46 = vadd.f32 %v759_v45, %v653_v42  ;;  %v1727_v47 = vpop.f32.mrb[9].mxu0  ;;  %v871_v48 = vpop.f32.mrb[8].mxu1 }
 0x148   : >> { %v762_v49 = vpop.f32.mrb[10].mxu0  ;;  %v1747_v50 = vpop.f32.mrb[9].mxu1 }
 0x149   : >> { %v877_v51 = vadd.f32 %v871_v48, %v765_v46  ;;  %v1728_v52 = vpop.f32.mrb[11].mxu0  ;;  %v874_v53 = vpop.f32.mrb[10].mxu1 }
 0x14a   : >> { %v1748_v54 = vpop.f32.mrb[11].mxu1 }
 0x166   : >> { %v981_v55 = vpop.f32.mrb[12].mxu0 }
 0x167   : >> { %v987_v56 = vadd.f32 %v981_v55, %v877_v51  ;;  %v1767_v57 = vpop.f32.mrb[13].mxu0  ;;  %v1093_v58 = vpop.f32.mrb[12].mxu1 }
 0x168   : >> { %v984_v59 = vpop.f32.mrb[14].mxu0  ;;  %v1787_v60 = vpop.f32.mrb[13].mxu1 }
 0x169   : >> { %v1099_v61 = vadd.f32 %v1093_v58, %v987_v56  ;;  %v1768_v62 = vpop.f32.mrb[15].mxu0  ;;  %v1096_v63 = vpop.f32.mrb[14].mxu1 }
 0x16a   : >> { %v1788_v1 = vpop.f32.mrb[15].mxu1 }
 0x186   : >> { %v1205_v3 = vpop.f32.mrb[16].mxu0 }
 0x187   : >> { %v1211_v4 = vadd.f32 %v1205_v3, %v1099_v61  ;;  %v1807_v5 = vpop.f32.mrb[17].mxu0 }
 0x188   : >> { %v1208_v6 = vpop.f32.mrb[18].mxu0 }
 0x189   : >> { %v1218_v7 = vadd.f32 %v1997_v0, %v1211_v4  ;;  %v1808_v8 = vpop.f32.mrb[19].mxu0 }
 0x18a   : > { %212 = sbr.rel (!%p210_p5) target bundleno = 18 (0x12), region = 81 }
 0x18b   : >> { %vm1219_vm1 = vcmp.ge.f32.partialorder %v1218_v7, 0.0  ;;  %v1220_v9 = vmul.f32 0.1, %v1218_v7 }
 0x18d   : >> { %v1221_v10 = vsel %vm1219_vm1, %v1218_v7, %v1220_v9 }
 0x18e   : >> { %v1222_v11 = vpack.c.bf16 %v1221_v10, %v1221_v10 }
 0x190   : >> { %1224 = vst [vmem:[%s1223_s27] sm:$0x1] %v1222_v11 }
 0x191 PF: > { %s13_s14 = sadd.s32 1, %s1948_s14   ;;  %s2352_s12 = smov %s1944_s13 }
 0x192   : > { %p10_p6 = scmp.ge.s32.totalorder %s13_s14, 4   ;;  %s2353_s13 = smov %s2355_s15 }
 0x194   :  { %12 = sbr.rel (!%p10_p6) target bundleno = 2 (0x2), region = 92 }

// kernel: _lambda_.22
= control target key start
LH: loop header
LB: loop body
LE: loop exit
PB: predicated region body
PF: predicated region fallthrough
CT: control target
= control target key end

     0   :  { %s1960_s12 = smov 0   ;;  %s1962_s13 = smov 0   ;;  %s2332_s0 = inlined_call_operand.vmem [shape: bf16[2,1,10,10,128], index: 0, kind: input, shape index: {}]   ;;  %s2333_s1 = inlined_call_operand.vmem [shape: bf16[3,3,128,128], index: 1, kind: input, shape index: {}]   ;;  %s2334_s2 = inlined_call_operand.vmem [shape: f32[1,128], index: 2, kind: input, shape index: {}]   ;;  %s2335_s3 = inlined_call_operand.vmem [shape: bf16[2,2,2,128], index: 3, kind: output, shape index: {}]  }
   0x1   :  { %s1964_s14 = smov 0  }
   0x2 LB: > { %s25_s15 = sadd.s32 1, %s1928_s13  ;;  %p1315_p0 = scmp.ge.s32.totalorder %s1932_s14, 1  ;;  %s1932_s14 = sphi %s1964_s14, %s13_s14   ;;  %s1928_s13 = sphi %s1962_s13, %s2337_s13   ;;  %s1924_s12 = sphi %s1960_s12, %s2336_s12  }
   0x3   : > { %p27_p1 = scmp.ge.s32.totalorder %s25_s15, 2  ;;  %p157_p2 = scmp.lt.s32.totalorder %s1932_s14, 3 }
   0x5   : > { %s2339_s15 = smov (%p27_p1, %s25_s15), 0  ;;  %p158_p3 = pnand %p1315_p0, %p157_p2 }
   0x6   : > { %p188_p4 = scmp.lt.s32.totalorder (!%p158_p3), %s1924_s12, 1  ;;  %v1981_v0 = vld [vmem:[%s2334_s2] ss:$0 sm:$0xff] (!%p158_p3)  ;;  %s1993_s26 = smov (!%p158_p3), 0  }
   0x7   : > { %161 = sbr.rel (%p158_p3) target bundleno = 401 (0x191), region = 32 }
   0xe   : > { %s2341_s12 = smov (!%p188_p4, %s1924_s12), 1 }
   0xf   : > { %s1796_s18 = smul.u32 80, %s2341_s12  ;;  %s1317_s19 = sshll.u32 %s2341_s12, 1 }
  0x10   : > { %s1986_s22 = scalar_lea.vmem %s2335_s3, %s1317_s19 }
  0x11   : > { %s1991_s25 = scalar_lea.vmem %s2332_s0, %s1796_s18 }
  0x12 LB: >> { %v1831_v1 = vld [vmem:[%s2333_s1 + $0x40] sm:$0xff]   ;;  %v1938_v2 = vmov 0.0   ;;  %v1833_v4 = vld [vmem:[%s2333_s1 + $0x48] sm:$0xff]   ;;  %vm1939_vm0 = vmmov 0   ;;  %v1835_v6 = vld [vmem:[%s2333_s1 + $0x50] sm:$0xff]   ;;  %s1534_s19 = sshll.u32 %s1936_s26, 3  ;;  %s1936_s26 = sphi %s1993_s26, %s213_s26  }
  0x13   : >> { %1616 = vmatprep.subr.bf16.mxu0 %v1938_v2  ;;  %1636 = vmatprep.subr.bf16.mxu1 %v1938_v2  ;;  %v1832_v3 = vld [vmem:[%s2333_s1] sm:$0xff]   ;;  %v1834_v5 = vld [vmem:[%s2333_s1 + $0x8] sm:$0xff]   ;;  %v1836_v7 = vld [vmem:[%s2333_s1 + $0x10] sm:$0xff]   ;;  %s2043_s27 = scalar_lea.vmem %s1991_s25, %s1534_s19 }
  0x14   : >> { %1617 = vmatpush3.bf16.msra.mxu0 %v1831_v1  ;;  %1632 = vmatprep.mubr.msk.bf16.mxu0 %vm1939_vm0, %v1938_v2  ;;  %v1837_v8 = vld [vmem:[%s2333_s1 + $0x58] sm:$0xff]   ;;  %v1839_v10 = vld [vmem:[%s2333_s1 + $0x60] sm:$0xff]   ;;  %v1841_v12 = vld [vmem:[%s2333_s1 + $0x68] sm:$0xff]  }
  0x15   : >> { %1637 = vmatpush3.bf16.msra.mxu1 %v1832_v3  ;;  %1618 = vmatprep.subr.bf16.mxu0 %v1938_v2  ;;  %v1838_v9 = vld [vmem:[%s2333_s1 + $0x18] sm:$0xff]   ;;  %v1840_v11 = vld [vmem:[%s2333_s1 + $0x20] sm:$0xff]   ;;  %v1842_v13 = vld [vmem:[%s2333_s1 + $0x28] sm:$0xff]  }
  0x16   : >> { %1638 = vmatprep.subr.bf16.mxu1 %v1938_v2  ;;  %1652 = vmatprep.mubr.msk.bf16.mxu1 %vm1939_vm0, %v1938_v2  ;;  %v1843_v14 = vld [vmem:[%s2333_s1 + $0x70] sm:$0xff]   ;;  %v1847_v16 = vld [vmem:[%s2043_s27] ss:$0 sps:$4 sm:$0x44]   ;;  %v1845_v17 = vld [vmem:[%s2333_s1 + $0x78] sm:$0xff]  }
  0x17   : >> { %v1844_v15 = vld [vmem:[%s2333_s1 + $0x30] sm:$0xff]   ;;  %v1846_v18 = vld [vmem:[%s2333_s1 + $0x38] sm:$0xff]   ;;  %v255_v19 = vrot.slane %v1847_v16, 2  ;;  %v1848_v20 = vld [vmem:[%s2333_s1 + $0x80] sm:$0xff]  }
  0x18   : >> { %1619 = vmatpush3.bf16.msra.mxu0 %v1833_v4  ;;  %v217_v21 = vld [vmem:[%s2043_s27] sm:$0x1]  ;;  %v1850_v23 = vld [vmem:[%s2333_s1 + $0x88] sm:$0xff]   ;;  %v1852_v25 = vld [vmem:[%s2333_s1 + $0x90] sm:$0xff]  }
  0x19   : >> { %1639 = vmatpush3.bf16.msra.mxu1 %v1834_v5  ;;  %1620 = vmatprep.subr.bf16.mxu0 %v1938_v2  ;;  %v1849_v22 = vld [vmem:[%s2333_s1 + $0xc0] sm:$0xff]   ;;  %v1851_v24 = vld [vmem:[%s2333_s1 + $0xc8] sm:$0xff]   ;;  %v1853_v26 = vld [vmem:[%s2333_s1 + $0xd0] sm:$0xff]  }
  0x1a   : >> { %1640 = vmatprep.subr.bf16.mxu1 %v1938_v2  ;;  %v1854_v27 = vld [vmem:[%s2333_s1 + $0x98] sm:$0xff]   ;;  %v1856_v29 = vld [vmem:[%s2333_s1 + $0xa0] sm:$0xff]   ;;  %v1858_v31 = vld [vmem:[%s2333_s1 + $0xa8] sm:$0xff]  }
  0x1b   : >> { %v1855_v28 = vld [vmem:[%s2333_s1 + $0xd8] sm:$0xff]   ;;  %v1857_v30 = vld [vmem:[%s2333_s1 + $0xe0] sm:$0xff]   ;;  %v1859_v32 = vld [vmem:[%s2333_s1 + $0xe8] sm:$0xff]  }
  0x1c   : >> { %1621 = vmatpush3.bf16.msra.mxu0 %v1835_v6  ;;  %v1860_v33 = vld [vmem:[%s2333_s1 + $0xb0] sm:$0xff]   ;;  %v1862_v35 = vld [vmem:[%s2333_s1 + $0xb8] sm:$0xff]   ;;  %v433_v37 = vld [vmem:[%s2043_s27 + $0x4] sm:$0x1] }
  0x1d   : >> { %1641 = vmatpush3.bf16.msra.mxu1 %v1836_v7  ;;  %1622 = vmatprep.subr.bf16.mxu0 %v1938_v2  ;;  %v1861_v34 = vld [vmem:[%s2333_s1 + $0xf0] sm:$0xff]   ;;  %v1863_v36 = vld [vmem:[%s2333_s1 + $0xf8] sm:$0xff]   ;;  %v1864_v38 = vld [vmem:[%s2333_s1 + $0x100] sm:$0xff]  }
  0x1e   : >> { %1642 = vmatprep.subr.bf16.mxu1 %v1938_v2  ;;  %v1378_v39 = vld [vmem:[%s2043_s27 + $0x20] sm:$0x1]  ;;  %v1866_v41 = vld [vmem:[%s2333_s1 + $0x108] sm:$0xff]   ;;  %v1868_v43 = vld [vmem:[%s2333_s1 + $0x110] sm:$0xff]  }
  0x1f   : >> { %v1865_v40 = vld [vmem:[%s2333_s1 + $0x140] sm:$0xff]   ;;  %v1867_v42 = vld [vmem:[%s2333_s1 + $0x148] sm:$0xff]   ;;  %v1869_v44 = vld [vmem:[%s2333_s1 + $0x150] sm:$0xff]  }
  0x20   : >> { %1623 = vmatpush3.bf16.msra.mxu0 %v1837_v8  ;;  %v1870_v45 = vld [vmem:[%s2333_s1 + $0x118] sm:$0xff]   ;;  %v1872_v47 = vld [vmem:[%s2333_s1 + $0x120] sm:$0xff]   ;;  %v1874_v49 = vld [vmem:[%s2333_s1 + $0x128] sm:$0xff]  }
  0x21   : >> { %1643 = vmatpush3.bf16.msra.mxu1 %v1838_v9  ;;  %1624 = vmatprep.subr.bf16.mxu0 %v1938_v2  ;;  %v1871_v46 = vld [vmem:[%s2333_s1 + $0x158] sm:$0xff]   ;;  %v1873_v48 = vld [vmem:[%s2333_s1 + $0x160] sm:$0xff]   ;;  %v1875_v50 = vld [vmem:[%s2333_s1 + $0x168] sm:$0xff]  }
  0x22   : >> { %1644 = vmatprep.subr.bf16.mxu1 %v1938_v2  ;;  %v1876_v51 = vld [vmem:[%s2333_s1 + $0x130] sm:$0xff]   ;;  %v1880_v53 = vld [vmem:[%s2043_s27 + $0x20] ss:$0 sps:$4 sm:$0x44]   ;;  %v1878_v54 = vld [vmem:[%s2333_s1 + $0x138] sm:$0xff]  }
  0x23   : >> { %v1877_v52 = vld [vmem:[%s2333_s1 + $0x170] sm:$0xff]   ;;  %v1879_v55 = vld [vmem:[%s2333_s1 + $0x178] sm:$0xff]   ;;  %v672_v56 = vrot.slane %v1880_v53, 2  ;;  %v1881_v57 = vld [vmem:[%s2333_s1 + $0x180] sm:$0xff]  }
  0x24   : >> { %1625 = vmatpush3.bf16.msra.mxu0 %v1839_v10  ;;  %v1429_v58 = vld [vmem:[%s2043_s27 + $0x24] sm:$0x1]  ;;  %v1883_v60 = vld [vmem:[%s2333_s1 + $0x188] sm:$0xff]   ;;  %v1885_v62 = vld [vmem:[%s2333_s1 + $0x190] sm:$0xff]  }
  0x25   : >> { %1645 = vmatpush3.bf16.msra.mxu1 %v1840_v11  ;;  %1626 = vmatprep.subr.bf16.mxu0 %v1938_v2  ;;  %v1882_v59 = vld [vmem:[%s2333_s1 + $0x1c0] sm:$0xff]   ;;  %v1884_v61 = vld [vmem:[%s2333_s1 + $0x1c8] sm:$0xff]   ;;  %v1886_v63 = vld [vmem:[%s2333_s1 + $0x1d0] sm:$0xff]  }
  0x26   : >> { %1646 = vmatprep.subr.bf16.mxu1 %v1938_v2  ;;  %v1887_v1 = vld [vmem:[%s2333_s1 + $0x198] sm:$0xff]   ;;  %v1889_v4 = vld [vmem:[%s2333_s1 + $0x1a0] sm:$0xff]   ;;  %v1891_v6 = vld [vmem:[%s2333_s1 + $0x1a8] sm:$0xff]  }
  0x27   : >> { %v1888_v3 = vld [vmem:[%s2333_s1 + $0x1d8] sm:$0xff]   ;;  %v1890_v5 = vld [vmem:[%s2333_s1 + $0x1e0] sm:$0xff]   ;;  %v1892_v7 = vld [vmem:[%s2333_s1 + $0x1e8] sm:$0xff]  }
  0x28   : >> { %1627 = vmatpush3.bf16.msra.mxu0 %v1841_v12  ;;  %v1893_v8 = vld [vmem:[%s2333_s1 + $0x1b0] sm:$0xff]   ;;  %v1895_v10 = vld [vmem:[%s2333_s1 + $0x1b8] sm:$0xff]   ;;  %v1898_v11 = vld [vmem:[%s2043_s27 + $0x40] ss:$0 sps:$4 sm:$0x44]  }
  0x29   : >> { %1647 = vmatpush3.bf16.msra.mxu1 %v1842_v13  ;;  %1628 = vmatprep.subr.bf16.mxu0 %v1938_v2  ;;  %v1894_v9 = vld [vmem:[%s2333_s1 + $0x1f0] sm:$0xff]   ;;  %v1896_v12 = vld [vmem:[%s2333_s1 + $0x1f8] sm:$0xff]   ;;  %v1455_v13 = vld [vmem:[%s2043_s27 + $0x40] sm:$0x1] }
  0x2a   : >> { %1648 = vmatprep.subr.bf16.mxu1 %v1938_v2  ;;  %v1899_v16 = vld [vmem:[%s2333_s1 + $0x208] sm:$0xff]  }
  0x2c   : >> { %1629 = vmatpush3.bf16.msra.mxu0 %v1843_v14  ;;  %v1897_v14 = vld [vmem:[%s2333_s1 + $0x200] sm:$0xff]  }
  0x2d   : >> { %1649 = vmatpush3.bf16.msra.mxu1 %v1844_v15  ;;  %1630 = vmatprep.subr.bf16.mxu0 %v1938_v2  ;;  %v1002_v15 = vrot.slane %v1898_v11, 2 }
  0x2e   : >> { %1650 = vmatprep.subr.bf16.mxu1 %v1938_v2 }
  0x30   : >> { %1631 = vmatpush3.bf16.msra.mxu0 %v1845_v17  ;;  %v1900_v17 = vld [vmem:[%s2333_s1 + $0x210] sm:$0xff]  }
  0x31   : >> { %1651 = vmatpush3.bf16.msra.mxu1 %v1846_v18  ;;  %1656 = vmatprep.subr.bf16.mxu0 %v1938_v2  ;;  %v1901_v18 = vld [vmem:[%s2333_s1 + $0x218] sm:$0xff]  }
  0x32   : >> { %1676 = vmatprep.subr.bf16.mxu1 %v1938_v2 }
  0x33   : >> { %1633 = vmatmul.mubr.bf16.vlgmr.msra.gmra.mrb[0].mxu0 %v255_v19  ;;  %v1902_v19 = vld [vmem:[%s2333_s1 + $0x220] sm:$0xff]  }
  0x34   : >> { %1653 = vmatmul.mubr.bf16.vlgmr.msra.gmra.mrb[0].mxu1 %v217_v21  ;;  %1657 = vmatpush3.bf16.msra.mxu0 %v1848_v20  ;;  %v1903_v20 = vld [vmem:[%s2333_s1 + $0x228] sm:$0xff]   ;;  %v1904_v21 = vld [vmem:[%s2333_s1 + $0x230] sm:$0xff]  }
  0x35   : >> { %1677 = vmatpush3.bf16.msra.mxu1 %v1849_v22  ;;  %1658 = vmatprep.subr.bf16.mxu0 %v1938_v2  ;;  %v1905_v22 = vld [vmem:[%s2333_s1 + $0x238] sm:$0xff]  }
  0x36   : >> { %1678 = vmatprep.subr.bf16.mxu1 %v1938_v2  ;;  %1672 = vmatprep.mubr.msk.bf16.mxu0 %vm1939_vm0, %v1938_v2 }
  0x37   : >> { %1692 = vmatprep.mubr.msk.bf16.mxu1 %vm1939_vm0, %v1938_v2 }
  0x38   : >> { %1659 = vmatpush3.bf16.msra.mxu0 %v1850_v23  ;;  %v1506_v23 = vld [vmem:[%s2043_s27 + $0x44] sm:$0x1]  ;;  %s1211_s27 = scalar_lea.vmem %s1986_s22, %s1936_s26  ;;  %s213_s26 = sadd.s32 1, %s1936_s26  }
  0x39   : >> { %1679 = vmatpush3.bf16.msra.mxu1 %v1851_v24  ;;  %1660 = vmatprep.subr.bf16.mxu0 %v1938_v2  ;;  %p210_p5 = scmp.ge.s32.totalorder %s213_s26, 2  }
  0x3a   : >> { %1680 = vmatprep.subr.bf16.mxu1 %v1938_v2 }
  0x3c   : >> { %1661 = vmatpush3.bf16.msra.mxu0 %v1852_v25 }
  0x3d   : >> { %1681 = vmatpush3.bf16.msra.mxu1 %v1853_v26  ;;  %1662 = vmatprep.subr.bf16.mxu0 %v1938_v2 }
  0x3e   : >> { %1682 = vmatprep.subr.bf16.mxu1 %v1938_v2 }
  0x40   : >> { %1663 = vmatpush3.bf16.msra.mxu0 %v1854_v27 }
  0x41   : >> { %1683 = vmatpush3.bf16.msra.mxu1 %v1855_v28  ;;  %1664 = vmatprep.subr.bf16.mxu0 %v1938_v2 }
  0x42   : >> { %1684 = vmatprep.subr.bf16.mxu1 %v1938_v2 }
  0x44   : >> { %1665 = vmatpush3.bf16.msra.mxu0 %v1856_v29 }
  0x45   : >> { %1685 = vmatpush3.bf16.msra.mxu1 %v1857_v30  ;;  %1666 = vmatprep.subr.bf16.mxu0 %v1938_v2 }
  0x46   : >> { %1686 = vmatprep.subr.bf16.mxu1 %v1938_v2 }
  0x48   : >> { %1667 = vmatpush3.bf16.msra.mxu0 %v1858_v31 }
  0x49   : >> { %1687 = vmatpush3.bf16.msra.mxu1 %v1859_v32  ;;  %1668 = vmatprep.subr.bf16.mxu0 %v1938_v2 }
  0x4a   : >> { %1688 = vmatprep.subr.bf16.mxu1 %v1938_v2 }
  0x4c   : >> { %1669 = vmatpush3.bf16.msra.mxu0 %v1860_v33 }
  0x4d   : >> { %1689 = vmatpush3.bf16.msra.mxu1 %v1861_v34  ;;  %1670 = vmatprep.subr.bf16.mxu0 %v1938_v2 }
  0x4e   : >> { %1690 = vmatprep.subr.bf16.mxu1 %v1938_v2 }
  0x50   : >> { %1671 = vmatpush3.bf16.msra.mxu0 %v1862_v35 }
  0x51   : >> { %1691 = vmatpush3.bf16.msra.mxu1 %v1863_v36  ;;  %1696 = vmatprep.subr.bf16.mxu0 %v1938_v2 }
  0x52   : >> { %1716 = vmatprep.subr.bf16.mxu1 %v1938_v2 }
  0x53   : >> { %1673 = vmatmul.mubr.bf16.vlgmr.msra.gmra.mrb[4].mxu0 %v433_v37 }
  0x54   : >> { %1697 = vmatpush3.bf16.msra.mxu0 %v1864_v38  ;;  %1693 = vmatmul.mubr.bf16.vlgmr.msra.gmra.mrb[4].mxu1 %v1378_v39 }
  0x55   : >> { %1717 = vmatpush3.bf16.msra.mxu1 %v1865_v40  ;;  %1698 = vmatprep.subr.bf16.mxu0 %v1938_v2 }
  0x56   : >> { %1718 = vmatprep.subr.bf16.mxu1 %v1938_v2  ;;  %1712 = vmatprep.mubr.msk.bf16.mxu0 %vm1939_vm0, %v1938_v2 }
  0x57   : >> { %1732 = vmatprep.mubr.msk.bf16.mxu1 %vm1939_vm0, %v1938_v2 }
  0x58   : >> { %1699 = vmatpush3.bf16.msra.mxu0 %v1866_v41 }
  0x59   : >> { %1719 = vmatpush3.bf16.msra.mxu1 %v1867_v42  ;;  %1700 = vmatprep.subr.bf16.mxu0 %v1938_v2 }
  0x5a   : >> { %1720 = vmatprep.subr.bf16.mxu1 %v1938_v2 }
  0x5c   : >> { %1701 = vmatpush3.bf16.msra.mxu0 %v1868_v43 }
  0x5d   : >> { %1721 = vmatpush3.bf16.msra.mxu1 %v1869_v44  ;;  %1702 = vmatprep.subr.bf16.mxu0 %v1938_v2 }
  0x5e   : >> { %1722 = vmatprep.subr.bf16.mxu1 %v1938_v2 }
  0x60   : >> { %1703 = vmatpush3.bf16.msra.mxu0 %v1870_v45 }
  0x61   : >> { %1723 = vmatpush3.bf16.msra.mxu1 %v1871_v46  ;;  %1704 = vmatprep.subr.bf16.mxu0 %v1938_v2 }
  0x62   : >> { %1724 = vmatprep.subr.bf16.mxu1 %v1938_v2 }
  0x64   : >> { %1705 = vmatpush3.bf16.msra.mxu0 %v1872_v47 }
  0x65   : >> { %1725 = vmatpush3.bf16.msra.mxu1 %v1873_v48  ;;  %1706 = vmatprep.subr.bf16.mxu0 %v1938_v2 }
  0x66   : >> { %1726 = vmatprep.subr.bf16.mxu1 %v1938_v2 }
  0x68   : >> { %1707 = vmatpush3.bf16.msra.mxu0 %v1874_v49 }
  0x69   : >> { %1727 = vmatpush3.bf16.msra.mxu1 %v1875_v50  ;;  %1708 = vmatprep.subr.bf16.mxu0 %v1938_v2 }
  0x6a   : >> { %1728 = vmatprep.subr.bf16.mxu1 %v1938_v2 }
  0x6c   : >> { %1709 = vmatpush3.bf16.msra.mxu0 %v1876_v51 }
  0x6d   : >> { %1729 = vmatpush3.bf16.msra.mxu1 %v1877_v52  ;;  %1710 = vmatprep.subr.bf16.mxu0 %v1938_v2 }
  0x6e   : >> { %1730 = vmatprep.subr.bf16.mxu1 %v1938_v2 }
  0x70   : >> { %1711 = vmatpush3.bf16.msra.mxu0 %v1878_v54 }
  0x71   : >> { %1731 = vmatpush3.bf16.msra.mxu1 %v1879_v55  ;;  %1736 = vmatprep.subr.bf16.mxu0 %v1938_v2 }
  0x72   : >> { %1756 = vmatprep.subr.bf16.mxu1 %v1938_v2 }
  0x73   : >> { %1713 = vmatmul.mubr.bf16.vlgmr.msra.gmra.mrb[8].mxu0 %v672_v56 }
  0x74   : >> { %1737 = vmatpush3.bf16.msra.mxu0 %v1881_v57  ;;  %1733 = vmatmul.mubr.bf16.vlgmr.msra.gmra.mrb[8].mxu1 %v1429_v58 }
  0x75   : >> { %1757 = vmatpush3.bf16.msra.mxu1 %v1882_v59  ;;  %1738 = vmatprep.subr.bf16.mxu0 %v1938_v2 }
  0x76   : >> { %1758 = vmatprep.subr.bf16.mxu1 %v1938_v2  ;;  %1752 = vmatprep.mubr.msk.bf16.mxu0 %vm1939_vm0, %v1938_v2 }
  0x77   : >> { %1772 = vmatprep.mubr.msk.bf16.mxu1 %vm1939_vm0, %v1938_v2 }
  0x78   : >> { %1739 = vmatpush3.bf16.msra.mxu0 %v1883_v60 }
  0x79   : >> { %1759 = vmatpush3.bf16.msra.mxu1 %v1884_v61  ;;  %1740 = vmatprep.subr.bf16.mxu0 %v1938_v2 }
  0x7a   : >> { %1760 = vmatprep.subr.bf16.mxu1 %v1938_v2 }
  0x7c   : >> { %1741 = vmatpush3.bf16.msra.mxu0 %v1885_v62 }
  0x7d   : >> { %1761 = vmatpush3.bf16.msra.mxu1 %v1886_v63  ;;  %1742 = vmatprep.subr.bf16.mxu0 %v1938_v2 }
  0x7e   : >> { %1762 = vmatprep.subr.bf16.mxu1 %v1938_v2 }
  0x80   : >> { %1743 = vmatpush3.bf16.msra.mxu0 %v1887_v1 }
  0x81   : >> { %1763 = vmatpush3.bf16.msra.mxu1 %v1888_v3  ;;  %1744 = vmatprep.subr.bf16.mxu0 %v1938_v2 }
  0x82   : >> { %1764 = vmatprep.subr.bf16.mxu1 %v1938_v2 }
  0x84   : >> { %1745 = vmatpush3.bf16.msra.mxu0 %v1889_v4 }
  0x85   : >> { %1765 = vmatpush3.bf16.msra.mxu1 %v1890_v5  ;;  %1746 = vmatprep.subr.bf16.mxu0 %v1938_v2 }
  0x86   : >> { %1766 = vmatprep.subr.bf16.mxu1 %v1938_v2 }
  0x88   : >> { %1747 = vmatpush3.bf16.msra.mxu0 %v1891_v6 }
  0x89   : >> { %1767 = vmatpush3.bf16.msra.mxu1 %v1892_v7  ;;  %1748 = vmatprep.subr.bf16.mxu0 %v1938_v2 }
  0x8a   : >> { %1768 = vmatprep.subr.bf16.mxu1 %v1938_v2 }
  0x8c   : >> { %1749 = vmatpush3.bf16.msra.mxu0 %v1893_v8 }
  0x8d   : >> { %1769 = vmatpush3.bf16.msra.mxu1 %v1894_v9  ;;  %1750 = vmatprep.subr.bf16.mxu0 %v1938_v2 }
  0x8e   : >> { %1770 = vmatprep.subr.bf16.mxu1 %v1938_v2 }
  0x90   : >> { %1751 = vmatpush3.bf16.msra.mxu0 %v1895_v10 }
  0x91   : >> { %1771 = vmatpush3.bf16.msra.mxu1 %v1896_v12  ;;  %1776 = vmatprep.subr.bf16.mxu0 %v1938_v2 }
  0x93   : >> { %1753 = vmatmul.mubr.bf16.vlgmr.msra.gmra.mrb[12].mxu0 %v1455_v13 }
  0x94   : >> { %1777 = vmatpush3.bf16.msra.mxu0 %v1897_v14  ;;  %1773 = vmatmul.mubr.bf16.vlgmr.msra.gmra.mrb[12].mxu1 %v1002_v15 }
  0x95   : >> { %1778 = vmatprep.subr.bf16.mxu0 %v1938_v2  ;;  %1792 = vmatprep.mubr.msk.bf16.mxu0 %vm1939_vm0, %v1938_v2 }
  0x98   : >> { %1779 = vmatpush3.bf16.msra.mxu0 %v1899_v16 }
  0x99   : >> { %1780 = vmatprep.subr.bf16.mxu0 %v1938_v2 }
  0x9c   : >> { %1781 = vmatpush3.bf16.msra.mxu0 %v1900_v17 }
  0x9d   : >> { %1782 = vmatprep.subr.bf16.mxu0 %v1938_v2 }
  0xa0   : >> { %1783 = vmatpush3.bf16.msra.mxu0 %v1901_v18 }
  0xa1   : >> { %1784 = vmatprep.subr.bf16.mxu0 %v1938_v2 }
  0xa4   : >> { %1785 = vmatpush3.bf16.msra.mxu0 %v1902_v19 }
  0xa5   : >> { %1786 = vmatprep.subr.bf16.mxu0 %v1938_v2 }
  0xa8   : >> { %1787 = vmatpush3.bf16.msra.mxu0 %v1903_v20 }
  0xa9   : >> { %1788 = vmatprep.subr.bf16.mxu0 %v1938_v2 }
  0xac   : >> { %1789 = vmatpush3.bf16.msra.mxu0 %v1904_v21 }
  0xad   : >> { %1790 = vmatprep.subr.bf16.mxu0 %v1938_v2 }
  0xb0   : >> { %1791 = vmatpush3.bf16.msra.mxu0 %v1905_v22 }
  0xb3   : >> { %1793 = vmatmul.mubr.bf16.vlgmr.msra.gmra.mrb[16].mxu0 %v1506_v23 }
 0x106   : >> { %v339_v24 = vpop.f32.mrb[0].mxu0 }
 0x107   : >> { %v1634_v25 = vpop.f32.mrb[1].mxu0  ;;  %v427_v26 = vpop.f32.mrb[0].mxu1 }
 0x108   : >> { %v428_v27 = vadd.f32 %v427_v26, %v339_v24  ;;  %v342_v28 = vpop.f32.mrb[2].mxu0  ;;  %v1654_v29 = vpop.f32.mrb[1].mxu1 }
 0x109   : >> { %v1635_v30 = vpop.f32.mrb[3].mxu0  ;;  %v430_v31 = vpop.f32.mrb[2].mxu1 }
 0x10a   : >> { %v1655_v32 = vpop.f32.mrb[3].mxu1 }
 0x126   : >> { %v533_v33 = vpop.f32.mrb[4].mxu0 }
 0x127   : >> { %v539_v34 = vadd.f32 %v533_v33, %v428_v27  ;;  %v1674_v35 = vpop.f32.mrb[5].mxu0  ;;  %v644_v36 = vpop.f32.mrb[4].mxu1 }
 0x128   : >> { %v536_v37 = vpop.f32.mrb[6].mxu0  ;;  %v1694_v38 = vpop.f32.mrb[5].mxu1 }
 0x129   : >> { %v650_v39 = vadd.f32 %v644_v36, %v539_v34  ;;  %v1675_v2 = vpop.f32.mrb[7].mxu0  ;;  %v647_v40 = vpop.f32.mrb[6].mxu1 }
 0x12a   : >> { %v1695_v41 = vpop.f32.mrb[7].mxu1 }
 0x146   : >> { %v756_v42 = vpop.f32.mrb[8].mxu0 }
 0x147   : >> { %v762_v43 = vadd.f32 %v756_v42, %v650_v39  ;;  %v1714_v44 = vpop.f32.mrb[9].mxu0  ;;  %v863_v45 = vpop.f32.mrb[8].mxu1 }
 0x148   : >> { %v759_v46 = vpop.f32.mrb[10].mxu0  ;;  %v1734_v47 = vpop.f32.mrb[9].mxu1 }
 0x149   : >> { %v869_v48 = vadd.f32 %v863_v45, %v762_v43  ;;  %v1715_v49 = vpop.f32.mrb[11].mxu0  ;;  %v866_v50 = vpop.f32.mrb[10].mxu1 }
 0x14a   : >> { %v1735_v51 = vpop.f32.mrb[11].mxu1 }
 0x166   : >> { %v974_v52 = vpop.f32.mrb[12].mxu0 }
 0x167   : >> { %v980_v53 = vadd.f32 %v974_v52, %v869_v48  ;;  %v1754_v54 = vpop.f32.mrb[13].mxu0  ;;  %v1086_v55 = vpop.f32.mrb[12].mxu1 }
 0x168   : >> { %v977_v56 = vpop.f32.mrb[14].mxu0  ;;  %v1774_v57 = vpop.f32.mrb[13].mxu1 }
 0x169   : >> { %v1092_v58 = vadd.f32 %v1086_v55, %v980_v53  ;;  %v1755_v59 = vpop.f32.mrb[15].mxu0  ;;  %v1089_v60 = vpop.f32.mrb[14].mxu1 }
 0x16a   : >> { %v1775_v61 = vpop.f32.mrb[15].mxu1 }
 0x186   : >> { %v1193_v62 = vpop.f32.mrb[16].mxu0 }
 0x187   : >> { %v1199_v63 = vadd.f32 %v1193_v62, %v1092_v58  ;;  %v1794_v1 = vpop.f32.mrb[17].mxu0 }
 0x188   : >> { %v1196_v3 = vpop.f32.mrb[18].mxu0 }
 0x189   : >> { %v1206_v4 = vadd.f32 %v1981_v0, %v1199_v63  ;;  %v1795_v5 = vpop.f32.mrb[19].mxu0 }
 0x18a   : > { %212 = sbr.rel (!%p210_p5) target bundleno = 18 (0x12), region = 81 }
 0x18b   : >> { %vm1207_vm1 = vcmp.ge.f32.partialorder %v1206_v4, 0.0  ;;  %v1208_v6 = vmul.f32 0.1, %v1206_v4 }
 0x18d   : >> { %v1209_v7 = vsel %vm1207_vm1, %v1206_v4, %v1208_v6 }
 0x18e   : >> { %v1210_v8 = vpack.c.bf16 %v1209_v7, %v1209_v7 }
 0x190   : >> { %1212 = vst [vmem:[%s1211_s27] sm:$0x1] %v1210_v8 }
 0x191 PF: > { %s13_s14 = sadd.s32 1, %s1932_s14   ;;  %s2336_s12 = smov %s1928_s13 }
 0x192   : > { %p10_p6 = scmp.ge.s32.totalorder %s13_s14, 4   ;;  %s2337_s13 = smov %s2339_s15 }
 0x194   :  { %12 = sbr.rel (!%p10_p6) target bundleno = 2 (0x2), region = 92 }

// kernel: _lambda_.20
= control target key start
LH: loop header
LB: loop body
LE: loop exit
PB: predicated region body
PF: predicated region fallthrough
CT: control target
= control target key end

     0   :  { %s2070_s12 = smov 0   ;;  %s2072_s13 = smov 0   ;;  %s2421_s0 = inlined_call_operand.vmem [shape: bf16[2,1,6,3,256], index: 0, kind: input, shape index: {}]   ;;  %s2422_s1 = inlined_call_operand.vmem [shape: bf16[3,2,256,128], index: 1, kind: input, shape index: {}]   ;;  %s2423_s2 = inlined_call_operand.vmem [shape: f32[1,128], index: 2, kind: input, shape index: {}]   ;;  %s2424_s3 = inlined_call_operand.vmem [shape: bf16[2,2,2,128], index: 3, kind: output, shape index: {}]  }
   0x1   :  { %s2074_s14 = smov 0  }
   0x2 LB: > { %s25_s15 = sadd.s32 1, %s2040_s13  ;;  %p1474_p0 = scmp.ge.s32.totalorder %s2044_s14, 1  ;;  %s2044_s14 = sphi %s2074_s14, %s13_s14   ;;  %s2040_s13 = sphi %s2072_s13, %s2426_s13   ;;  %s2036_s12 = sphi %s2070_s12, %s2425_s12  }
   0x3   : > { %p27_p1 = scmp.ge.s32.totalorder %s25_s15, 2  ;;  %p157_p2 = scmp.lt.s32.totalorder %s2044_s14, 3 }
   0x5   : > { %s2428_s15 = smov (%p27_p1, %s25_s15), 0  ;;  %p158_p3 = pnand %p1474_p0, %p157_p2 }
   0x6   : > { %p188_p4 = scmp.lt.s32.totalorder (!%p158_p3), %s2036_s12, 1  ;;  %v2091_v0 = vld [vmem:[%s2423_s2] ss:$0 sm:$0xff] (!%p158_p3)  ;;  %s2103_s26 = smov (!%p158_p3), 0  }
   0x7   : > { %161 = sbr.rel (%p158_p3) target bundleno = 343 (0x157), region = 32 }
   0xe   : > { %s2430_s12 = smov (!%p188_p4, %s2036_s12), 1 }
   0xf   : > { %s1889_s18 = smul.u32 24, %s2430_s12  ;;  %s1476_s19 = sshll.u32 %s2430_s12, 1 }
  0x10   : > { %s2096_s22 = scalar_lea.vmem %s2424_s3, %s1476_s19 }
  0x11   : > { %s2101_s25 = scalar_lea.vmem %s2421_s0, %s1889_s18 }
  0x12 LB: >> { %v1922_v1 = vld [vmem:[%s2422_s1 + $0xc0] sm:$0xff]   ;;  %v1926_v5 = vld [vmem:[%s2422_s1 + $0xc8] sm:$0xff]   ;;  %v1930_v9 = vld [vmem:[%s2422_s1 + $0xd0] sm:$0xff]   ;;  %s1754_s12 = sshll.u32 %s2048_s26, 3  ;;  %s2048_s26 = sphi %s2103_s26, %s213_s26  }
  0x13   : >> { %v1923_v2 = vld [vmem:[%s2422_s1 + $0x40] sm:$0xff]   ;;  %1757 = vmatprep.subr.bf16.mxu0 %v1922_v1  ;;  %v1927_v6 = vld [vmem:[%s2422_s1 + $0x48] sm:$0xff]   ;;  %v1931_v10 = vld [vmem:[%s2422_s1 + $0x50] sm:$0xff]   ;;  %s2200_s23 = scalar_lea.vmem %s2101_s25, %s1754_s12 }
  0x14   : >> { %v1924_v3 = vld [vmem:[%s2422_s1 + $0x80] sm:$0xff]   ;;  %1779 = vmatprep.subr.bf16.mxu1 %v1923_v2  ;;  %v1928_v7 = vld [vmem:[%s2422_s1 + $0x88] sm:$0xff]   ;;  %v1932_v11 = vld [vmem:[%s2422_s1 + $0x90] sm:$0xff]  }
  0x15   : >> { %v1925_v4 = vld [vmem:[%s2422_s1] sm:$0xff]   ;;  %1758 = vmatpush3.bf16.msra.mxu0 %v1924_v3  ;;  %v1929_v8 = vld [vmem:[%s2422_s1 + $0x8] sm:$0xff]   ;;  %v1933_v12 = vld [vmem:[%s2422_s1 + $0x10] sm:$0xff]  }
  0x16   : >> { %1780 = vmatpush3.bf16.msra.mxu1 %v1925_v4  ;;  %1759 = vmatprep.subr.bf16.mxu0 %v1926_v5  ;;  %v1934_v13 = vld [vmem:[%s2422_s1 + $0xd8] sm:$0xff]   ;;  %v1938_v17 = vld [vmem:[%s2422_s1 + $0xe0] sm:$0xff]   ;;  %v1942_v21 = vld [vmem:[%s2422_s1 + $0xe8] sm:$0xff]  }
  0x17   : >> { %1781 = vmatprep.subr.bf16.mxu1 %v1927_v6  ;;  %v1935_v14 = vld [vmem:[%s2422_s1 + $0x58] sm:$0xff]   ;;  %v1939_v18 = vld [vmem:[%s2422_s1 + $0x60] sm:$0xff]   ;;  %v1943_v22 = vld [vmem:[%s2422_s1 + $0x68] sm:$0xff]  }
  0x18   : >> { %v1936_v15 = vld [vmem:[%s2422_s1 + $0x98] sm:$0xff]   ;;  %v1940_v19 = vld [vmem:[%s2422_s1 + $0xa0] sm:$0xff]   ;;  %v1944_v23 = vld [vmem:[%s2422_s1 + $0xa8] sm:$0xff]  }
  0x19   : >> { %1760 = vmatpush3.bf16.msra.mxu0 %v1928_v7  ;;  %v1937_v16 = vld [vmem:[%s2422_s1 + $0x18] sm:$0xff]   ;;  %v1941_v20 = vld [vmem:[%s2422_s1 + $0x20] sm:$0xff]   ;;  %v1945_v24 = vld [vmem:[%s2422_s1 + $0x28] sm:$0xff]  }
  0x1a   : >> { %1782 = vmatpush3.bf16.msra.mxu1 %v1929_v8  ;;  %1761 = vmatprep.subr.bf16.mxu0 %v1930_v9  ;;  %v1946_v25 = vld [vmem:[%s2422_s1 + $0xf0] sm:$0xff]   ;;  %v1950_v29 = vld [vmem:[%s2422_s1 + $0xf8] sm:$0xff]   ;;  %v1512_v33 = vld.sshfl [vmem:[%s2200_s23] sm:$0x33 pattern:$0x76325410] }
  0x1b   : >> { %1783 = vmatprep.subr.bf16.mxu1 %v1931_v10  ;;  %v1947_v26 = vld [vmem:[%s2422_s1 + $0x70] sm:$0xff]   ;;  %v1951_v30 = vld [vmem:[%s2422_s1 + $0x78] sm:$0xff]   ;;  %v293_v34 = vcombine.high %v1512_v33, %v1512_v33  ;;  %v1529_v35 = vld.sshfl [vmem:[%s2200_s23] sm:$0x11 pattern:$0x76325410] }
  0x1c   : >> { %v1948_v27 = vld [vmem:[%s2422_s1 + $0xb0] sm:$0xff]   ;;  %v1952_v31 = vld [vmem:[%s2422_s1 + $0xb8] sm:$0xff]   ;;  %v297_v36 = vshll.u32 %v1512_v33, 16  ;;  %v454_v37 = vcombine.high %v1529_v35, %v1529_v35  ;;  %v295_v38 = vshrl.u32 %v1512_v33, 16  ;;  %v1954_v39 = vld [vmem:[%s2422_s1 + $0x140] sm:$0xff]  }
  0x1d   : >> { %1762 = vmatpush3.bf16.msra.mxu0 %v1932_v11  ;;  %v1949_v28 = vld [vmem:[%s2422_s1 + $0x30] sm:$0xff]   ;;  %v1953_v32 = vld [vmem:[%s2422_s1 + $0x38] sm:$0xff]   ;;  %v302_v40 = vshrl.u32 %v293_v34, 16  ;;  %v304_v41 = vshll.u32 %v293_v34, 16  ;;  %v1955_v43 = vld [vmem:[%s2422_s1 + $0x1c0] sm:$0xff]  }
  0x1e   : >> { %1784 = vmatpush3.bf16.msra.mxu1 %v1933_v12  ;;  %1763 = vmatprep.subr.bf16.mxu0 %v1934_v13  ;;  %v299_v42 = vrot.slane %v297_v36, 1  ;;  %v1957_v45 = vld [vmem:[%s2422_s1 + $0x180] sm:$0xff]   ;;  %v1959_v49 = vld [vmem:[%s2422_s1 + $0x1c8] sm:$0xff]   ;;  %v1963_v53 = vld [vmem:[%s2422_s1 + $0x1d0] sm:$0xff]  }
  0x1f   : >> { %1785 = vmatprep.subr.bf16.mxu1 %v1935_v14  ;;  %585 = vmatprep.mubr.bf16.mxu1 %v454_v37  ;;  %v306_v44 = vrot.slane %v304_v41, 1  ;;  %v1956_v47 = vld [vmem:[%s2422_s1 + $0x100] sm:$0xff]   ;;  %v1958_v50 = vld [vmem:[%s2422_s1 + $0x148] sm:$0xff]   ;;  %v1962_v54 = vld [vmem:[%s2422_s1 + $0x150] sm:$0xff]  }
  0x20   : >> { %v300_v46 = vor.u32 %v299_v42, %v295_v38  ;;  %v1961_v51 = vld [vmem:[%s2422_s1 + $0x188] sm:$0xff]   ;;  %v1965_v55 = vld [vmem:[%s2422_s1 + $0x190] sm:$0xff]   ;;  %v1967_v57 = vld [vmem:[%s2422_s1 + $0x1d8] sm:$0xff]  }
  0x21   : >> { %1764 = vmatpush3.bf16.msra.mxu0 %v1936_v15  ;;  %v307_v48 = vor.u32 %v306_v44, %v302_v40  ;;  %v1960_v52 = vld [vmem:[%s2422_s1 + $0x108] sm:$0xff]   ;;  %v1964_v56 = vld [vmem:[%s2422_s1 + $0x110] sm:$0xff]   ;;  %v1966_v58 = vld [vmem:[%s2422_s1 + $0x158] sm:$0xff]  }
  0x22   : >> { %1786 = vmatpush3.bf16.msra.mxu1 %v1937_v16  ;;  %1765 = vmatprep.subr.bf16.mxu0 %v1938_v17  ;;  %v1969_v59 = vld [vmem:[%s2422_s1 + $0x198] sm:$0xff]   ;;  %v1971_v61 = vld [vmem:[%s2422_s1 + $0x1e0] sm:$0xff]   ;;  %v1975_v2 = vld [vmem:[%s2422_s1 + $0x1e8] sm:$0xff]  }
  0x23   : >> { %1787 = vmatprep.subr.bf16.mxu1 %v1939_v18  ;;  %438 = vmatprep.mubr.bf16.mxu0 %v307_v48  ;;  %v1968_v60 = vld [vmem:[%s2422_s1 + $0x118] sm:$0xff]   ;;  %v1970_v62 = vld [vmem:[%s2422_s1 + $0x160] sm:$0xff]   ;;  %v1974_v3 = vld [vmem:[%s2422_s1 + $0x168] sm:$0xff]  }
  0x24   : >> { %v1973_v63 = vld [vmem:[%s2422_s1 + $0x1a0] sm:$0xff]   ;;  %v1977_v4 = vld [vmem:[%s2422_s1 + $0x1a8] sm:$0xff]   ;;  %v1979_v6 = vld [vmem:[%s2422_s1 + $0x1f0] sm:$0xff]  }
  0x25   : >> { %1766 = vmatpush3.bf16.msra.mxu0 %v1940_v19  ;;  %v1972_v1 = vld [vmem:[%s2422_s1 + $0x120] sm:$0xff]   ;;  %v1976_v5 = vld [vmem:[%s2422_s1 + $0x128] sm:$0xff]   ;;  %v1978_v7 = vld [vmem:[%s2422_s1 + $0x170] sm:$0xff]  }
  0x26   : >> { %1788 = vmatpush3.bf16.msra.mxu1 %v1941_v20  ;;  %1767 = vmatprep.subr.bf16.mxu0 %v1942_v21  ;;  %v1981_v8 = vld [vmem:[%s2422_s1 + $0x1b0] sm:$0xff]   ;;  %v1983_v10 = vld [vmem:[%s2422_s1 + $0x1f8] sm:$0xff]   ;;  %v1581_v14 = vld.sshfl [vmem:[%s2200_s23 + $0x4] sm:$0x11 pattern:$0x76325410] }
  0x27   : >> { %1789 = vmatprep.subr.bf16.mxu1 %v1943_v22  ;;  %v1980_v9 = vld [vmem:[%s2422_s1 + $0x130] sm:$0xff]   ;;  %v1982_v11 = vld [vmem:[%s2422_s1 + $0x178] sm:$0xff]   ;;  %v639_v15 = vcombine.high %v1581_v14, %v1581_v14  ;;  %v1631_v16 = vld.sshfl [vmem:[%s2200_s23 + $0x4] sm:$0x33 pattern:$0x76325410] }
  0x28   : >> { %v1984_v12 = vld [vmem:[%s2422_s1 + $0x138] sm:$0xff]   ;;  %v821_v17 = vcombine.high %v1631_v16, %v1631_v16  ;;  %v823_v18 = vshrl.u32 %v1631_v16, 16  ;;  %v825_v19 = vshll.u32 %v1631_v16, 16  ;;  %v1986_v20 = vld [vmem:[%s2422_s1 + $0x240] sm:$0xff]   ;;  %v1994_v33 = vld [vmem:[%s2422_s1 + $0x250] sm:$0xff]  }
  0x29   : >> { %1768 = vmatpush3.bf16.msra.mxu0 %v1944_v23  ;;  %v1985_v13 = vld [vmem:[%s2422_s1 + $0x1b8] sm:$0xff]   ;;  %v1987_v21 = vld [vmem:[%s2422_s1 + $0x2c0] sm:$0xff]   ;;  %v1993_v34 = vld [vmem:[%s2422_s1 + $0x288] sm:$0xff]  }
  0x2a   : >> { %1790 = vmatpush3.bf16.msra.mxu1 %v1945_v24  ;;  %1769 = vmatprep.subr.bf16.mxu0 %v1946_v25  ;;  %v830_v22 = vshrl.u32 %v821_v17, 16  ;;  %v832_v23 = vshll.u32 %v821_v17, 16  ;;  %v827_v24 = vrot.slane %v825_v19, 1  ;;  %v1988_v25 = vld [vmem:[%s2422_s1 + $0x200] sm:$0xff]   ;;  %v1996_v36 = vld [vmem:[%s2422_s1 + $0x210] sm:$0xff]   ;;  %v1998_v37 = vld [vmem:[%s2422_s1 + $0x258] sm:$0xff]  }
  0x2b   : >> { %1791 = vmatprep.subr.bf16.mxu1 %v1947_v26  ;;  %v1997_v38 = vld [vmem:[%s2422_s1 + $0x290] sm:$0xff]   ;;  %v2000_v40 = vld [vmem:[%s2422_s1 + $0x218] sm:$0xff]   ;;  %v2002_v41 = vld [vmem:[%s2422_s1 + $0x260] sm:$0xff]  }
  0x2c   : >> { %v834_v26 = vrot.slane %v832_v23, 1  ;;  %v2001_v42 = vld [vmem:[%s2422_s1 + $0x298] sm:$0xff]   ;;  %v2004_v44 = vld [vmem:[%s2422_s1 + $0x220] sm:$0xff]   ;;  %v2008_v48 = vld [vmem:[%s2422_s1 + $0x228] sm:$0xff]  }
  0x2d   : >> { %1770 = vmatpush3.bf16.msra.mxu0 %v1948_v27  ;;  %v1990_v27 = vld [vmem:[%s2422_s1 + $0x248] sm:$0xff]  }
  0x2e   : >> { %1792 = vmatpush3.bf16.msra.mxu1 %v1949_v28  ;;  %1771 = vmatprep.subr.bf16.mxu0 %v1950_v29  ;;  %v828_v28 = vor.u32 %v827_v24, %v823_v18  ;;  %v1989_v29 = vld [vmem:[%s2422_s1 + $0x280] sm:$0xff]  }
  0x2f   : >> { %1793 = vmatprep.subr.bf16.mxu1 %v1951_v30  ;;  %v835_v30 = vor.u32 %v834_v26, %v830_v22 }
  0x31   : >> { %1772 = vmatpush3.bf16.msra.mxu0 %v1952_v31  ;;  %v1991_v31 = vld [vmem:[%s2422_s1 + $0x2c8] sm:$0xff]  }
  0x32   : >> { %1794 = vmatpush3.bf16.msra.mxu1 %v1953_v32  ;;  %1801 = vmatprep.subr.bf16.mxu0 %v1954_v39  ;;  %v1992_v32 = vld [vmem:[%s2422_s1 + $0x208] sm:$0xff]   ;;  %v1999_v39 = vld [vmem:[%s2422_s1 + $0x2d8] sm:$0xff]  }
  0x33   : >> { %1823 = vmatprep.subr.bf16.mxu1 %v1955_v43  ;;  %v2003_v43 = vld [vmem:[%s2422_s1 + $0x2e0] sm:$0xff]  }
  0x34   : >> { %439 = vmatmul.mubr.bf16.vlgmr.msra.gmra.mrb[0].mxu0 %v300_v46  ;;  %v2005_v46 = vld [vmem:[%s2422_s1 + $0x2a0] sm:$0xff]  }
  0x35   : >> { %586 = vmatmul.mubr.bf16.vlgmr.msra.gmra.mrb[0].mxu1 %v1529_v35  ;;  %1802 = vmatpush3.bf16.msra.mxu0 %v1956_v47  ;;  %v1995_v35 = vld [vmem:[%s2422_s1 + $0x2d0] sm:$0xff]   ;;  %v2007_v47 = vld [vmem:[%s2422_s1 + $0x2e8] sm:$0xff]  }
  0x36   : >> { %1824 = vmatpush3.bf16.msra.mxu1 %v1957_v45  ;;  %1803 = vmatprep.subr.bf16.mxu0 %v1958_v50  ;;  %v2006_v45 = vld [vmem:[%s2422_s1 + $0x268] sm:$0xff]  }
  0x37   : >> { %1825 = vmatprep.subr.bf16.mxu1 %v1959_v49  ;;  %770 = vmatprep.mubr.bf16.mxu0 %v639_v15  ;;  %v2010_v49 = vld [vmem:[%s2422_s1 + $0x270] sm:$0xff]   ;;  %v2009_v50 = vld [vmem:[%s2422_s1 + $0x2a8] sm:$0xff]  }
  0x38   : >> { %966 = vmatprep.mubr.bf16.mxu1 %v835_v30 }
  0x39   : >> { %1804 = vmatpush3.bf16.msra.mxu0 %v1960_v52  ;;  %v2012_v52 = vld [vmem:[%s2422_s1 + $0x230] sm:$0xff]  }
  0x3a   : >> { %1826 = vmatpush3.bf16.msra.mxu1 %v1961_v51  ;;  %1805 = vmatprep.subr.bf16.mxu0 %v1962_v54  ;;  %v2011_v51 = vld [vmem:[%s2422_s1 + $0x2f0] sm:$0xff]  }
  0x3b   : >> { %1827 = vmatprep.subr.bf16.mxu1 %v1963_v53  ;;  %v2014_v53 = vld [vmem:[%s2422_s1 + $0x278] sm:$0xff]   ;;  %v2013_v54 = vld [vmem:[%s2422_s1 + $0x2b0] sm:$0xff]  }
  0x3d   : >> { %1806 = vmatpush3.bf16.msra.mxu0 %v1964_v56  ;;  %v2016_v56 = vld [vmem:[%s2422_s1 + $0x238] sm:$0xff]  }
  0x3e   : >> { %1828 = vmatpush3.bf16.msra.mxu1 %v1965_v55  ;;  %1807 = vmatprep.subr.bf16.mxu0 %v1966_v58  ;;  %v2015_v55 = vld [vmem:[%s2422_s1 + $0x2f8] sm:$0xff]  }
  0x3f   : >> { %1829 = vmatprep.subr.bf16.mxu1 %v1967_v57  ;;  %v1683_v57 = vld.sshfl [vmem:[%s2200_s23 + $0x8] sm:$0x11 pattern:$0x76325410] }
  0x40   : >> { %v1021_v58 = vcombine.high %v1683_v57, %v1683_v57 }
  0x41   : >> { %1808 = vmatpush3.bf16.msra.mxu0 %v1968_v60  ;;  %v2017_v60 = vld [vmem:[%s2422_s1 + $0x2b8] sm:$0xff]  }
  0x42   : >> { %1830 = vmatpush3.bf16.msra.mxu1 %v1969_v59  ;;  %1809 = vmatprep.subr.bf16.mxu0 %v1970_v62  ;;  %v1733_v59 = vld.sshfl [vmem:[%s2200_s23 + $0x8] sm:$0x33 pattern:$0x76325410]  ;;  %s1368_s23 = scalar_lea.vmem %s2096_s22, %s2048_s26  ;;  %s213_s26 = sadd.s32 1, %s2048_s26  }
  0x43   : >> { %1831 = vmatprep.subr.bf16.mxu1 %v1971_v61  ;;  %v1203_v61 = vcombine.high %v1733_v59, %v1733_v59  ;;  %v1207_v62 = vshll.u32 %v1733_v59, 16  ;;  %p210_p5 = scmp.ge.s32.totalorder %s213_s26, 2  }
  0x45   : >> { %1810 = vmatpush3.bf16.msra.mxu0 %v1972_v1  ;;  %v1212_v1 = vshrl.u32 %v1203_v61, 16 }
  0x46   : >> { %1832 = vmatpush3.bf16.msra.mxu1 %v1973_v63  ;;  %1811 = vmatprep.subr.bf16.mxu0 %v1974_v3  ;;  %v1205_v63 = vshrl.u32 %v1733_v59, 16  ;;  %v1209_v3 = vrot.slane %v1207_v62, 1 }
  0x47   : >> { %1833 = vmatprep.subr.bf16.mxu1 %v1975_v2  ;;  %v1214_v2 = vshll.u32 %v1203_v61, 16 }
  0x49   : >> { %1812 = vmatpush3.bf16.msra.mxu0 %v1976_v5  ;;  %v1210_v5 = vor.u32 %v1209_v3, %v1205_v63 }
  0x4a   : >> { %1834 = vmatpush3.bf16.msra.mxu1 %v1977_v4  ;;  %1813 = vmatprep.subr.bf16.mxu0 %v1978_v7  ;;  %v1216_v4 = vrot.slane %v1214_v2, 1 }
  0x4b   : >> { %1835 = vmatprep.subr.bf16.mxu1 %v1979_v6 }
  0x4c   : >> { %v1217_v6 = vor.u32 %v1216_v4, %v1212_v1 }
  0x4d   : >> { %1814 = vmatpush3.bf16.msra.mxu0 %v1980_v9 }
  0x4e   : >> { %1836 = vmatpush3.bf16.msra.mxu1 %v1981_v8  ;;  %1815 = vmatprep.subr.bf16.mxu0 %v1982_v11 }
  0x4f   : >> { %1837 = vmatprep.subr.bf16.mxu1 %v1983_v10 }
  0x51   : >> { %1816 = vmatpush3.bf16.msra.mxu0 %v1984_v12 }
  0x52   : >> { %1838 = vmatpush3.bf16.msra.mxu1 %v1985_v13  ;;  %1845 = vmatprep.subr.bf16.mxu0 %v1986_v20 }
  0x53   : >> { %1867 = vmatprep.subr.bf16.mxu1 %v1987_v21 }
  0x54   : >> { %771 = vmatmul.mubr.bf16.vlgmr.msra.gmra.mrb[4].mxu0 %v1581_v14 }
  0x55   : >> { %1846 = vmatpush3.bf16.msra.mxu0 %v1988_v25  ;;  %967 = vmatmul.mubr.bf16.vlgmr.msra.gmra.mrb[4].mxu1 %v828_v28 }
  0x56   : >> { %1847 = vmatprep.subr.bf16.mxu0 %v1990_v27  ;;  %1868 = vmatpush3.bf16.msra.mxu1 %v1989_v29 }
  0x57   : >> { %1869 = vmatprep.subr.bf16.mxu1 %v1991_v31  ;;  %1152 = vmatprep.mubr.bf16.mxu0 %v1021_v58 }
  0x58   : >> { %1348 = vmatprep.mubr.bf16.mxu1 %v1217_v6 }
  0x59   : >> { %1848 = vmatpush3.bf16.msra.mxu0 %v1992_v32 }
  0x5a   : >> { %1849 = vmatprep.subr.bf16.mxu0 %v1994_v33  ;;  %1870 = vmatpush3.bf16.msra.mxu1 %v1993_v34 }
  0x5b   : >> { %1871 = vmatprep.subr.bf16.mxu1 %v1995_v35 }
  0x5d   : >> { %1850 = vmatpush3.bf16.msra.mxu0 %v1996_v36 }
  0x5e   : >> { %1851 = vmatprep.subr.bf16.mxu0 %v1998_v37  ;;  %1872 = vmatpush3.bf16.msra.mxu1 %v1997_v38 }
  0x5f   : >> { %1873 = vmatprep.subr.bf16.mxu1 %v1999_v39 }
  0x61   : >> { %1852 = vmatpush3.bf16.msra.mxu0 %v2000_v40 }
  0x62   : >> { %1853 = vmatprep.subr.bf16.mxu0 %v2002_v41  ;;  %1874 = vmatpush3.bf16.msra.mxu1 %v2001_v42 }
  0x63   : >> { %1875 = vmatprep.subr.bf16.mxu1 %v2003_v43 }
  0x65   : >> { %1854 = vmatpush3.bf16.msra.mxu0 %v2004_v44 }
  0x66   : >> { %1855 = vmatprep.subr.bf16.mxu0 %v2006_v45  ;;  %1876 = vmatpush3.bf16.msra.mxu1 %v2005_v46 }
  0x67   : >> { %1877 = vmatprep.subr.bf16.mxu1 %v2007_v47 }
  0x69   : >> { %1856 = vmatpush3.bf16.msra.mxu0 %v2008_v48 }
  0x6a   : >> { %1857 = vmatprep.subr.bf16.mxu0 %v2010_v49  ;;  %1878 = vmatpush3.bf16.msra.mxu1 %v2009_v50 }
  0x6b   : >> { %1879 = vmatprep.subr.bf16.mxu1 %v2011_v51 }
  0x6d   : >> { %1858 = vmatpush3.bf16.msra.mxu0 %v2012_v52 }
  0x6e   : >> { %1859 = vmatprep.subr.bf16.mxu0 %v2014_v53  ;;  %1880 = vmatpush3.bf16.msra.mxu1 %v2013_v54 }
  0x6f   : >> { %1881 = vmatprep.subr.bf16.mxu1 %v2015_v55 }
  0x71   : >> { %1860 = vmatpush3.bf16.msra.mxu0 %v2016_v56 }
  0x72   : >> { %1882 = vmatpush3.bf16.msra.mxu1 %v2017_v60 }
  0x74   : >> { %1153 = vmatmul.mubr.bf16.vlgmr.msra.gmra.mrb[8].mxu0 %v1683_v57 }
  0x75   : >> { %1349 = vmatmul.mubr.bf16.vlgmr.msra.gmra.mrb[8].mxu1 %v1210_v5 }
 0x107   : >> { %v1773_v12 = vpop.f32.mrb[0].mxu0 }
 0x108   : >> { %v1795_v7 = vpop.f32.mrb[0].mxu1  ;;  %v1774_v13 = vpop.f32.mrb[1].mxu0 }
 0x109   : >> { %v1796_v8 = vpop.f32.mrb[1].mxu1  ;;  %v1775_v14 = vadd.f32 %v1774_v13, %v1773_v12  ;;  %v1776_v15 = vpop.f32.mrb[2].mxu0 }
 0x10a   : >> { %v1797_v9 = vadd.f32 %v1796_v8, %v1795_v7  ;;  %v1798_v10 = vpop.f32.mrb[2].mxu1  ;;  %v1777_v16 = vpop.f32.mrb[3].mxu0 }
 0x10b   : >> { %v1799_v11 = vpop.f32.mrb[3].mxu1 }
 0x10c   : >> { %v588_v17 = vadd.f32 %v1797_v9, %v1775_v14 }
 0x127   : >> { %v1817_v18 = vpop.f32.mrb[4].mxu0 }
 0x128   : >> { %v1818_v19 = vpop.f32.mrb[5].mxu0  ;;  %v1839_v22 = vpop.f32.mrb[4].mxu1 }
 0x129   : >> { %v1819_v20 = vadd.f32 %v1818_v19, %v1817_v18  ;;  %v1820_v21 = vpop.f32.mrb[6].mxu0  ;;  %v1840_v25 = vpop.f32.mrb[5].mxu1 }
 0x12a   : >> { %v1821_v23 = vpop.f32.mrb[7].mxu0  ;;  %v1841_v26 = vadd.f32 %v1840_v25, %v1839_v22  ;;  %v1842_v27 = vpop.f32.mrb[6].mxu1 }
 0x12b   : >> { %v778_v24 = vadd.f32 %v1819_v20, %v588_v17  ;;  %v1843_v28 = vpop.f32.mrb[7].mxu1 }
 0x12d   : >> { %v974_v29 = vadd.f32 %v1841_v26, %v778_v24 }
 0x147   : >> { %v1861_v30 = vpop.f32.mrb[8].mxu0 }
 0x148   : >> { %v1862_v31 = vpop.f32.mrb[9].mxu0  ;;  %v1883_v36 = vpop.f32.mrb[8].mxu1 }
 0x149   : >> { %v1863_v32 = vadd.f32 %v1862_v31, %v1861_v30  ;;  %v1864_v33 = vpop.f32.mrb[10].mxu0  ;;  %v1884_v37 = vpop.f32.mrb[9].mxu1 }
 0x14a   : >> { %v1865_v34 = vpop.f32.mrb[11].mxu0  ;;  %v1885_v38 = vadd.f32 %v1884_v37, %v1883_v36  ;;  %v1886_v39 = vpop.f32.mrb[10].mxu1 }
 0x14b   : >> { %v1160_v35 = vadd.f32 %v1863_v32, %v974_v29  ;;  %v1887_v40 = vpop.f32.mrb[11].mxu1 }
 0x14d   : >> { %v1356_v41 = vadd.f32 %v1885_v38, %v1160_v35 }
 0x14f   : >> { %v1363_v42 = vadd.f32 %v2091_v0, %v1356_v41 }
 0x150   : > { %212 = sbr.rel (!%p210_p5) target bundleno = 18 (0x12), region = 78 }
 0x151   : >> { %vm1364_vm0 = vcmp.ge.f32.partialorder %v1363_v42, 0.0  ;;  %v1365_v43 = vmul.f32 0.1, %v1363_v42 }
 0x153   : >> { %v1366_v44 = vsel %vm1364_vm0, %v1363_v42, %v1365_v43 }
 0x154   : >> { %v1367_v45 = vpack.c.bf16 %v1366_v44, %v1366_v44 }
 0x156   : >> { %1369 = vst [vmem:[%s1368_s23] sm:$0x1] %v1367_v45 }
 0x157 PF: > { %s13_s14 = sadd.s32 1, %s2044_s14   ;;  %s2425_s12 = smov %s2040_s13 }
 0x158   : > { %p10_p6 = scmp.ge.s32.totalorder %s13_s14, 4   ;;  %s2426_s13 = smov %s2428_s15 }
 0x15a   :  { %12 = sbr.rel (!%p10_p6) target bundleno = 2 (0x2), region = 89 }

// kernel: _lambda_.24
= control target key start
LH: loop header
LB: loop body
LE: loop exit
PB: predicated region body
PF: predicated region fallthrough
CT: control target
= control target key end

     0   :  { %v227_v1 = vmov 0   ;;  %v34_v18 = vlaneseq  ;;  %s305_s1 = inlined_call_operand.vmem [shape: bf16[128,256], index: 1, kind: input, shape index: {}]   ;;  %s306_s0 = inlined_call_operand.vmem [shape: bf16[8,128], index: 0, kind: input, shape index: {}]   ;;  %s307_s2 = inlined_call_operand.vmem [shape: f32[1,256], index: 2, kind: input, shape index: {}]   ;;  %s308_s3 = inlined_call_operand.vmem [shape: bf16[8,256], index: 3, kind: output, shape index: {}]  }
   0x1   :  { %v203_v0 = vld [vmem:[%s305_s1 + $0x4] ss:$8 sps:$4 sm:$0xff]   ;;  %156 = vmatprep.mubr.bf16.mxu0 %v227_v1  ;;  %v205_v2 = vld [vmem:[%s305_s1] ss:$8 sps:$4 sm:$0xff]   ;;  %v206_v3 = vld [vmem:[%s305_s1 + $0x14] ss:$8 sps:$4 sm:$0xff]  }
   0x2   :  { %124 = vmatprep.subr.bf16.mxu0 %v203_v0  ;;  %v208_v4 = vld [vmem:[%s305_s1 + $0x10] ss:$8 sps:$4 sm:$0xff]   ;;  %v209_v5 = vld [vmem:[%s305_s1 + $0x24] ss:$8 sps:$4 sm:$0xff]   ;;  %v211_v6 = vld [vmem:[%s305_s1 + $0x20] ss:$8 sps:$4 sm:$0xff]  }
   0x3   :  { %125 = vmatpush1.bf16.msra.mxu0 %v205_v2  ;;  %v212_v7 = vld [vmem:[%s305_s1 + $0x34] ss:$8 sps:$4 sm:$0xff]   ;;  %v214_v8 = vld [vmem:[%s305_s1 + $0x30] ss:$8 sps:$4 sm:$0xff]   ;;  %v215_v9 = vld [vmem:[%s305_s1 + $0x44] ss:$8 sps:$4 sm:$0xff]  }
   0x4   :  { %126 = vmatprep.subr.bf16.mxu0 %v206_v3  ;;  %v217_v10 = vld [vmem:[%s305_s1 + $0x40] ss:$8 sps:$4 sm:$0xff]   ;;  %v218_v11 = vld [vmem:[%s305_s1 + $0x54] ss:$8 sps:$4 sm:$0xff]   ;;  %v220_v12 = vld [vmem:[%s305_s1 + $0x50] ss:$8 sps:$4 sm:$0xff]  }
   0x5   :  { %v221_v13 = vld [vmem:[%s305_s1 + $0x64] ss:$8 sps:$4 sm:$0xff]   ;;  %v223_v14 = vld [vmem:[%s305_s1 + $0x60] ss:$8 sps:$4 sm:$0xff]   ;;  %v224_v15 = vld [vmem:[%s305_s1 + $0x74] ss:$8 sps:$4 sm:$0xff]  }
   0x6   :  { %v226_v16 = vld [vmem:[%s305_s1 + $0x70] ss:$8 sps:$4 sm:$0xff]   ;;  %v15_v17 = vld [vmem:[%s306_s0] sm:$0xf]  ;;  %v35_v19 = vshrl.u32 %v34_v18, 7 }
   0x7   :  { %127 = vmatpush1.bf16.msra.mxu0 %v208_v4  ;;  %v32_v21 = vld [vmem:[%s307_s2] sm:$0x3] }
   0x8   :  { %128 = vmatprep.subr.bf16.mxu0 %v209_v5  ;;  %v36_v20 = vsub.s32 0, %v35_v19  ;;  %v40_v22 = vsub.s32 1, %v35_v19 }
   0xa   :  { %v37_v23 = vrot.slane %v32_v21, %v36_v20  ;;  %v41_v24 = vrot.slane %v32_v21, %v40_v22 }
   0xb   :  { %129 = vmatpush1.bf16.msra.mxu0 %v211_v6 }
   0xc   :  { %130 = vmatprep.subr.bf16.mxu0 %v212_v7 }
   0xf   :  { %131 = vmatpush1.bf16.msra.mxu0 %v214_v8 }
  0x10   :  { %132 = vmatprep.subr.bf16.mxu0 %v215_v9 }
  0x13   :  { %133 = vmatpush1.bf16.msra.mxu0 %v217_v10 }
  0x14   :  { %134 = vmatprep.subr.bf16.mxu0 %v218_v11 }
  0x17   :  { %135 = vmatpush1.bf16.msra.mxu0 %v220_v12 }
  0x18   :  { %136 = vmatprep.subr.bf16.mxu0 %v221_v13 }
  0x1b   :  { %137 = vmatpush1.bf16.msra.mxu0 %v223_v14 }
  0x1c   :  { %138 = vmatprep.subr.bf16.mxu0 %v224_v15 }
  0x1f   :  { %139 = vmatpush1.bf16.msra.mxu0 %v226_v16 }
  0x22   :  { %157 = vmatmul.mubr.bf16.vlgmr.msra.gmra.mrb[0].mxu0 %v15_v17 }
  0xf5   :  { %v158_v25 = vpop.f32.mrb[0].mxu0 }
  0xf6   :  { %v159_v26 = vadd.f32 %v158_v25, %v37_v23  ;;  %v160_v27 = vpop.f32.mrb[1].mxu0 }
  0xf7   :  { %v161_v28 = vadd.f32 %v160_v27, %v41_v24  ;;  %v162_v29 = vpop.f32.mrb[2].mxu0 }
  0xf8   :  { %vm165_vm0 = vcmp.ge.f32.partialorder %v159_v26, 0.0  ;;  %v167_v30 = vmul.f32 0.25, %v159_v26  ;;  %v163_v31 = vpop.f32.mrb[3].mxu0 }
  0xf9   :  { %vm166_vm1 = vcmp.ge.f32.partialorder %v161_v28, 0.0  ;;  %v168_v32 = vmul.f32 0.25, %v161_v28 }
  0xfa   :  { %v169_v33 = vsel %vm165_vm0, %v159_v26, %v167_v30 }
  0xfb   :  { %v170_v34 = vsel %vm166_vm1, %v161_v28, %v168_v32 }
  0xfc   :  { %v201_v35 = vpack.c.bf16 %v170_v34, %v169_v33 }
  0xfe   :  { %179 = vst [vmem:[%s308_s3] sm:$0xff] %v201_v35 }

// kernel: tile.18
= control target key start
LH: loop header
LB: loop body
LE: loop exit
PB: predicated region body
PF: predicated region fallthrough
CT: control target
= control target key end

     0   :  { %s22_s0 = inlined_call_operand.vmem [shape: f32[64], index: 0, kind: input, shape index: {}]   ;;  %s23_s1 = inlined_call_operand.vmem [shape: f32[2,64], index: 1, kind: output, shape index: {}]  }
   0x1   :  { %v4_v0 = vld [vmem:[%s22_s0] ss:$0 sm:$0xff] }
   0x2   :  { %5 = vst [vmem:[%s23_s1] sm:$0x3] %v4_v0 }

// kernel: _lambda_.23
= control target key start
LH: loop header
LB: loop body
LE: loop exit
PB: predicated region body
PF: predicated region fallthrough
CT: control target
= control target key end

     0   :  { %s1936_s12 = smov 0   ;;  %s1938_s13 = smov 0   ;;  %s2308_s0 = inlined_call_operand.vmem [shape: bf16[2,1,18,18,128], index: 0, kind: input, shape index: {}]   ;;  %s2309_s1 = inlined_call_operand.vmem [shape: bf16[3,3,128,128], index: 1, kind: input, shape index: {}]   ;;  %s2310_s2 = inlined_call_operand.vmem [shape: f32[1,128], index: 2, kind: input, shape index: {}]   ;;  %s2311_s3 = inlined_call_operand.vmem [shape: bf16[2,2,2,128], index: 3, kind: output, shape index: {}]  }
   0x1   :  { %s1940_s14 = smov 0  }
   0x2 LB: > { %s25_s15 = sadd.s32 1, %s1904_s13  ;;  %p1300_p0 = scmp.ge.s32.totalorder %s1908_s14, 1  ;;  %s1908_s14 = sphi %s1940_s14, %s13_s14   ;;  %s1904_s13 = sphi %s1938_s13, %s2313_s13   ;;  %s1900_s12 = sphi %s1936_s12, %s2312_s12  }
   0x3   : > { %p27_p1 = scmp.ge.s32.totalorder %s25_s15, 2  ;;  %p157_p2 = scmp.lt.s32.totalorder %s1908_s14, 3 }
   0x5   : > { %s2315_s15 = smov (%p27_p1, %s25_s15), 0  ;;  %p158_p3 = pnand %p1300_p0, %p157_p2 }
   0x6   : > { %p188_p4 = scmp.lt.s32.totalorder (!%p158_p3), %s1900_s12, 1  ;;  %v1957_v0 = vld [vmem:[%s2310_s2] ss:$0 sm:$0xff] (!%p158_p3)  ;;  %s1969_s26 = smov (!%p158_p3), 0  }
   0x7   : > { %161 = sbr.rel (%p158_p3) target bundleno = 401 (0x191), region = 32 }
   0xe   : > { %s2317_s12 = smov (!%p188_p4, %s1900_s12), 1 }
   0xf   : > { %s1775_s18 = smul.u32 216, %s2317_s12  ;;  %s1302_s19 = sshll.u32 %s2317_s12, 1 }
  0x10   : > { %s1962_s22 = scalar_lea.vmem %s2311_s3, %s1302_s19 }
  0x11   : > { %s1967_s25 = scalar_lea.vmem %s2308_s0, %s1775_s18 }
  0x12 LB: >> { %v1810_v1 = vld [vmem:[%s2309_s1 + $0x40] sm:$0xff]   ;;  %v1914_v2 = vmov 0.0   ;;  %v1812_v4 = vld [vmem:[%s2309_s1 + $0x48] sm:$0xff]   ;;  %vm1915_vm0 = vmmov 0   ;;  %v1814_v6 = vld [vmem:[%s2309_s1 + $0x50] sm:$0xff]   ;;  %s1513_s30 = smul.u32 12, %s1912_s26  ;;  %s1912_s26 = sphi %s1969_s26, %s213_s26  }
  0x13   : >> { %1595 = vmatprep.subr.bf16.mxu0 %v1914_v2  ;;  %1615 = vmatprep.subr.bf16.mxu1 %v1914_v2  ;;  %v1811_v3 = vld [vmem:[%s2309_s1] sm:$0xff]   ;;  %v1813_v5 = vld [vmem:[%s2309_s1 + $0x8] sm:$0xff]   ;;  %v1815_v7 = vld [vmem:[%s2309_s1 + $0x10] sm:$0xff]  }
  0x14   : >> { %1596 = vmatpush3.bf16.msra.mxu0 %v1810_v1  ;;  %1611 = vmatprep.mubr.msk.bf16.mxu0 %vm1915_vm0, %v1914_v2  ;;  %v1816_v8 = vld [vmem:[%s2309_s1 + $0x58] sm:$0xff]   ;;  %v1818_v10 = vld [vmem:[%s2309_s1 + $0x60] sm:$0xff]   ;;  %v1820_v12 = vld [vmem:[%s2309_s1 + $0x68] sm:$0xff]   ;;  %s2036_s8 = scalar_lea.vmem %s1967_s25, %s1513_s30 }
  0x15   : >> { %1616 = vmatpush3.bf16.msra.mxu1 %v1811_v3  ;;  %1597 = vmatprep.subr.bf16.mxu0 %v1914_v2  ;;  %v1817_v9 = vld [vmem:[%s2309_s1 + $0x18] sm:$0xff]   ;;  %v1819_v11 = vld [vmem:[%s2309_s1 + $0x20] sm:$0xff]   ;;  %v1821_v13 = vld [vmem:[%s2309_s1 + $0x28] sm:$0xff]  }
  0x16   : >> { %1617 = vmatprep.subr.bf16.mxu1 %v1914_v2  ;;  %1631 = vmatprep.mubr.msk.bf16.mxu1 %vm1915_vm0, %v1914_v2  ;;  %v1822_v14 = vld [vmem:[%s2309_s1 + $0x70] sm:$0xff]   ;;  %v1824_v16 = vld [vmem:[%s2309_s1 + $0x78] sm:$0xff]   ;;  %v234_v18 = vld [vmem:[%s2036_s8 + $0x4] sm:$0x1] }
  0x17   : >> { %v1823_v15 = vld [vmem:[%s2309_s1 + $0x30] sm:$0xff]   ;;  %v1825_v17 = vld [vmem:[%s2309_s1 + $0x38] sm:$0xff]   ;;  %v217_v19 = vld [vmem:[%s2036_s8] sm:$0x1] }
  0x18   : >> { %1598 = vmatpush3.bf16.msra.mxu0 %v1812_v4  ;;  %v1826_v20 = vld [vmem:[%s2309_s1 + $0x80] sm:$0xff]   ;;  %v1828_v22 = vld [vmem:[%s2309_s1 + $0x88] sm:$0xff]   ;;  %v1830_v24 = vld [vmem:[%s2309_s1 + $0x90] sm:$0xff]  }
  0x19   : >> { %1618 = vmatpush3.bf16.msra.mxu1 %v1813_v5  ;;  %1599 = vmatprep.subr.bf16.mxu0 %v1914_v2  ;;  %v1827_v21 = vld [vmem:[%s2309_s1 + $0xc0] sm:$0xff]   ;;  %v1829_v23 = vld [vmem:[%s2309_s1 + $0xc8] sm:$0xff]   ;;  %v1831_v25 = vld [vmem:[%s2309_s1 + $0xd0] sm:$0xff]  }
  0x1a   : >> { %1619 = vmatprep.subr.bf16.mxu1 %v1914_v2  ;;  %v1832_v26 = vld [vmem:[%s2309_s1 + $0x98] sm:$0xff]   ;;  %v1834_v28 = vld [vmem:[%s2309_s1 + $0xa0] sm:$0xff]   ;;  %v1836_v30 = vld [vmem:[%s2309_s1 + $0xa8] sm:$0xff]  }
  0x1b   : >> { %v1833_v27 = vld [vmem:[%s2309_s1 + $0xd8] sm:$0xff]   ;;  %v1835_v29 = vld [vmem:[%s2309_s1 + $0xe0] sm:$0xff]   ;;  %v1837_v31 = vld [vmem:[%s2309_s1 + $0xe8] sm:$0xff]  }
  0x1c   : >> { %1600 = vmatpush3.bf16.msra.mxu0 %v1814_v6  ;;  %v1838_v32 = vld [vmem:[%s2309_s1 + $0xb0] sm:$0xff]   ;;  %v1840_v34 = vld [vmem:[%s2309_s1 + $0xb8] sm:$0xff]   ;;  %v428_v36 = vld [vmem:[%s2036_s8 + $0x8] sm:$0x1] }
  0x1d   : >> { %1620 = vmatpush3.bf16.msra.mxu1 %v1815_v7  ;;  %1601 = vmatprep.subr.bf16.mxu0 %v1914_v2  ;;  %v1839_v33 = vld [vmem:[%s2309_s1 + $0xf0] sm:$0xff]   ;;  %v1841_v35 = vld [vmem:[%s2309_s1 + $0xf8] sm:$0xff]   ;;  %v1842_v37 = vld [vmem:[%s2309_s1 + $0x100] sm:$0xff]  }
  0x1e   : >> { %1621 = vmatprep.subr.bf16.mxu1 %v1914_v2  ;;  %v1360_v38 = vld [vmem:[%s2036_s8 + $0x60] sm:$0x1]  ;;  %v1844_v40 = vld [vmem:[%s2309_s1 + $0x108] sm:$0xff]   ;;  %v1846_v42 = vld [vmem:[%s2309_s1 + $0x110] sm:$0xff]  }
  0x1f   : >> { %v1843_v39 = vld [vmem:[%s2309_s1 + $0x140] sm:$0xff]   ;;  %v1845_v41 = vld [vmem:[%s2309_s1 + $0x148] sm:$0xff]   ;;  %v1847_v43 = vld [vmem:[%s2309_s1 + $0x150] sm:$0xff]  }
  0x20   : >> { %1602 = vmatpush3.bf16.msra.mxu0 %v1816_v8  ;;  %v1848_v44 = vld [vmem:[%s2309_s1 + $0x118] sm:$0xff]   ;;  %v1850_v46 = vld [vmem:[%s2309_s1 + $0x120] sm:$0xff]   ;;  %v1852_v48 = vld [vmem:[%s2309_s1 + $0x128] sm:$0xff]  }
  0x21   : >> { %1622 = vmatpush3.bf16.msra.mxu1 %v1817_v9  ;;  %1603 = vmatprep.subr.bf16.mxu0 %v1914_v2  ;;  %v1849_v45 = vld [vmem:[%s2309_s1 + $0x158] sm:$0xff]   ;;  %v1851_v47 = vld [vmem:[%s2309_s1 + $0x160] sm:$0xff]   ;;  %v1853_v49 = vld [vmem:[%s2309_s1 + $0x168] sm:$0xff]  }
  0x22   : >> { %1623 = vmatprep.subr.bf16.mxu1 %v1914_v2  ;;  %v1854_v50 = vld [vmem:[%s2309_s1 + $0x130] sm:$0xff]   ;;  %v1856_v52 = vld [vmem:[%s2309_s1 + $0x138] sm:$0xff]   ;;  %v1385_v54 = vld [vmem:[%s2036_s8 + $0x64] sm:$0x1] }
  0x23   : >> { %v1855_v51 = vld [vmem:[%s2309_s1 + $0x170] sm:$0xff]   ;;  %v1857_v53 = vld [vmem:[%s2309_s1 + $0x178] sm:$0xff]   ;;  %v1858_v55 = vld [vmem:[%s2309_s1 + $0x180] sm:$0xff]  }
  0x24   : >> { %1604 = vmatpush3.bf16.msra.mxu0 %v1818_v10  ;;  %v1410_v56 = vld [vmem:[%s2036_s8 + $0x68] sm:$0x1]  ;;  %v1859_v57 = vld [vmem:[%s2309_s1 + $0x1c0] sm:$0xff]   ;;  %v1862_v60 = vld [vmem:[%s2309_s1 + $0x190] sm:$0xff]  }
  0x25   : >> { %1624 = vmatpush3.bf16.msra.mxu1 %v1819_v11  ;;  %1605 = vmatprep.subr.bf16.mxu0 %v1914_v2  ;;  %v1860_v58 = vld [vmem:[%s2309_s1 + $0x188] sm:$0xff]   ;;  %v1863_v61 = vld [vmem:[%s2309_s1 + $0x1d0] sm:$0xff]   ;;  %v1864_v62 = vld [vmem:[%s2309_s1 + $0x198] sm:$0xff]  }
  0x26   : >> { %1625 = vmatprep.subr.bf16.mxu1 %v1914_v2  ;;  %v1861_v59 = vld [vmem:[%s2309_s1 + $0x1c8] sm:$0xff]   ;;  %v1865_v63 = vld [vmem:[%s2309_s1 + $0x1d8] sm:$0xff]   ;;  %v1866_v1 = vld [vmem:[%s2309_s1 + $0x1a0] sm:$0xff]  }
  0x27   : >> { %v1867_v3 = vld [vmem:[%s2309_s1 + $0x1e0] sm:$0xff]   ;;  %v1868_v4 = vld [vmem:[%s2309_s1 + $0x1a8] sm:$0xff]   ;;  %v1870_v6 = vld [vmem:[%s2309_s1 + $0x1b0] sm:$0xff]  }
  0x28   : >> { %1606 = vmatpush3.bf16.msra.mxu0 %v1820_v12  ;;  %v1869_v5 = vld [vmem:[%s2309_s1 + $0x1e8] sm:$0xff]   ;;  %v1871_v7 = vld [vmem:[%s2309_s1 + $0x1f0] sm:$0xff]   ;;  %v1872_v8 = vld [vmem:[%s2309_s1 + $0x1b8] sm:$0xff]  }
  0x29   : >> { %1626 = vmatpush3.bf16.msra.mxu1 %v1821_v13  ;;  %1607 = vmatprep.subr.bf16.mxu0 %v1914_v2  ;;  %v1873_v9 = vld [vmem:[%s2309_s1 + $0x1f8] sm:$0xff]   ;;  %v1435_v10 = vld [vmem:[%s2036_s8 + $0xc0] sm:$0x1]  ;;  %v1460_v12 = vld [vmem:[%s2036_s8 + $0xc4] sm:$0x1] }
  0x2a   : >> { %1627 = vmatprep.subr.bf16.mxu1 %v1914_v2  ;;  %v1874_v11 = vld [vmem:[%s2309_s1 + $0x200] sm:$0xff]   ;;  %v1875_v13 = vld [vmem:[%s2309_s1 + $0x208] sm:$0xff]  }
  0x2c   : >> { %1608 = vmatpush3.bf16.msra.mxu0 %v1822_v14  ;;  %v1876_v14 = vld [vmem:[%s2309_s1 + $0x210] sm:$0xff]  }
  0x2d   : >> { %1628 = vmatpush3.bf16.msra.mxu1 %v1823_v15  ;;  %1609 = vmatprep.subr.bf16.mxu0 %v1914_v2  ;;  %v1877_v15 = vld [vmem:[%s2309_s1 + $0x218] sm:$0xff]  }
  0x2e   : >> { %1629 = vmatprep.subr.bf16.mxu1 %v1914_v2 }
  0x30   : >> { %1610 = vmatpush3.bf16.msra.mxu0 %v1824_v16  ;;  %v1878_v16 = vld [vmem:[%s2309_s1 + $0x220] sm:$0xff]  }
  0x31   : >> { %1630 = vmatpush3.bf16.msra.mxu1 %v1825_v17  ;;  %1635 = vmatprep.subr.bf16.mxu0 %v1914_v2  ;;  %v1879_v17 = vld [vmem:[%s2309_s1 + $0x228] sm:$0xff]  }
  0x32   : >> { %1655 = vmatprep.subr.bf16.mxu1 %v1914_v2 }
  0x33   : >> { %1612 = vmatmul.mubr.bf16.vlgmr.msra.gmra.mrb[0].mxu0 %v234_v18  ;;  %v1880_v18 = vld [vmem:[%s2309_s1 + $0x230] sm:$0xff]  }
  0x34   : >> { %1632 = vmatmul.mubr.bf16.vlgmr.msra.gmra.mrb[0].mxu1 %v217_v19  ;;  %1636 = vmatpush3.bf16.msra.mxu0 %v1826_v20  ;;  %v1881_v19 = vld [vmem:[%s2309_s1 + $0x238] sm:$0xff]   ;;  %v1485_v20 = vld [vmem:[%s2036_s8 + $0xc8] sm:$0x1]  ;;  %s1196_s8 = scalar_lea.vmem %s1962_s22, %s1912_s26  ;;  %s213_s26 = sadd.s32 1, %s1912_s26  }
  0x35   : >> { %1656 = vmatpush3.bf16.msra.mxu1 %v1827_v21  ;;  %1637 = vmatprep.subr.bf16.mxu0 %v1914_v2  ;;  %p210_p5 = scmp.ge.s32.totalorder %s213_s26, 2  }
  0x36   : >> { %1657 = vmatprep.subr.bf16.mxu1 %v1914_v2  ;;  %1651 = vmatprep.mubr.msk.bf16.mxu0 %vm1915_vm0, %v1914_v2 }
  0x37   : >> { %1671 = vmatprep.mubr.msk.bf16.mxu1 %vm1915_vm0, %v1914_v2 }
  0x38   : >> { %1638 = vmatpush3.bf16.msra.mxu0 %v1828_v22 }
  0x39   : >> { %1658 = vmatpush3.bf16.msra.mxu1 %v1829_v23  ;;  %1639 = vmatprep.subr.bf16.mxu0 %v1914_v2 }
  0x3a   : >> { %1659 = vmatprep.subr.bf16.mxu1 %v1914_v2 }
  0x3c   : >> { %1640 = vmatpush3.bf16.msra.mxu0 %v1830_v24 }
  0x3d   : >> { %1660 = vmatpush3.bf16.msra.mxu1 %v1831_v25  ;;  %1641 = vmatprep.subr.bf16.mxu0 %v1914_v2 }
  0x3e   : >> { %1661 = vmatprep.subr.bf16.mxu1 %v1914_v2 }
  0x40   : >> { %1642 = vmatpush3.bf16.msra.mxu0 %v1832_v26 }
  0x41   : >> { %1662 = vmatpush3.bf16.msra.mxu1 %v1833_v27  ;;  %1643 = vmatprep.subr.bf16.mxu0 %v1914_v2 }
  0x42   : >> { %1663 = vmatprep.subr.bf16.mxu1 %v1914_v2 }
  0x44   : >> { %1644 = vmatpush3.bf16.msra.mxu0 %v1834_v28 }
  0x45   : >> { %1664 = vmatpush3.bf16.msra.mxu1 %v1835_v29  ;;  %1645 = vmatprep.subr.bf16.mxu0 %v1914_v2 }
  0x46   : >> { %1665 = vmatprep.subr.bf16.mxu1 %v1914_v2 }
  0x48   : >> { %1646 = vmatpush3.bf16.msra.mxu0 %v1836_v30 }
  0x49   : >> { %1666 = vmatpush3.bf16.msra.mxu1 %v1837_v31  ;;  %1647 = vmatprep.subr.bf16.mxu0 %v1914_v2 }
  0x4a   : >> { %1667 = vmatprep.subr.bf16.mxu1 %v1914_v2 }
  0x4c   : >> { %1648 = vmatpush3.bf16.msra.mxu0 %v1838_v32 }
  0x4d   : >> { %1668 = vmatpush3.bf16.msra.mxu1 %v1839_v33  ;;  %1649 = vmatprep.subr.bf16.mxu0 %v1914_v2 }
  0x4e   : >> { %1669 = vmatprep.subr.bf16.mxu1 %v1914_v2 }
  0x50   : >> { %1650 = vmatpush3.bf16.msra.mxu0 %v1840_v34 }
  0x51   : >> { %1670 = vmatpush3.bf16.msra.mxu1 %v1841_v35  ;;  %1675 = vmatprep.subr.bf16.mxu0 %v1914_v2 }
  0x52   : >> { %1695 = vmatprep.subr.bf16.mxu1 %v1914_v2 }
  0x53   : >> { %1652 = vmatmul.mubr.bf16.vlgmr.msra.gmra.mrb[4].mxu0 %v428_v36 }
  0x54   : >> { %1676 = vmatpush3.bf16.msra.mxu0 %v1842_v37  ;;  %1672 = vmatmul.mubr.bf16.vlgmr.msra.gmra.mrb[4].mxu1 %v1360_v38 }
  0x55   : >> { %1696 = vmatpush3.bf16.msra.mxu1 %v1843_v39  ;;  %1677 = vmatprep.subr.bf16.mxu0 %v1914_v2 }
  0x56   : >> { %1697 = vmatprep.subr.bf16.mxu1 %v1914_v2  ;;  %1691 = vmatprep.mubr.msk.bf16.mxu0 %vm1915_vm0, %v1914_v2 }
  0x57   : >> { %1711 = vmatprep.mubr.msk.bf16.mxu1 %vm1915_vm0, %v1914_v2 }
  0x58   : >> { %1678 = vmatpush3.bf16.msra.mxu0 %v1844_v40 }
  0x59   : >> { %1698 = vmatpush3.bf16.msra.mxu1 %v1845_v41  ;;  %1679 = vmatprep.subr.bf16.mxu0 %v1914_v2 }
  0x5a   : >> { %1699 = vmatprep.subr.bf16.mxu1 %v1914_v2 }
  0x5c   : >> { %1680 = vmatpush3.bf16.msra.mxu0 %v1846_v42 }
  0x5d   : >> { %1700 = vmatpush3.bf16.msra.mxu1 %v1847_v43  ;;  %1681 = vmatprep.subr.bf16.mxu0 %v1914_v2 }
  0x5e   : >> { %1701 = vmatprep.subr.bf16.mxu1 %v1914_v2 }
  0x60   : >> { %1682 = vmatpush3.bf16.msra.mxu0 %v1848_v44 }
  0x61   : >> { %1702 = vmatpush3.bf16.msra.mxu1 %v1849_v45  ;;  %1683 = vmatprep.subr.bf16.mxu0 %v1914_v2 }
  0x62   : >> { %1703 = vmatprep.subr.bf16.mxu1 %v1914_v2 }
  0x64   : >> { %1684 = vmatpush3.bf16.msra.mxu0 %v1850_v46 }
  0x65   : >> { %1704 = vmatpush3.bf16.msra.mxu1 %v1851_v47  ;;  %1685 = vmatprep.subr.bf16.mxu0 %v1914_v2 }
  0x66   : >> { %1705 = vmatprep.subr.bf16.mxu1 %v1914_v2 }
  0x68   : >> { %1686 = vmatpush3.bf16.msra.mxu0 %v1852_v48 }
  0x69   : >> { %1706 = vmatpush3.bf16.msra.mxu1 %v1853_v49  ;;  %1687 = vmatprep.subr.bf16.mxu0 %v1914_v2 }
  0x6a   : >> { %1707 = vmatprep.subr.bf16.mxu1 %v1914_v2 }
  0x6c   : >> { %1688 = vmatpush3.bf16.msra.mxu0 %v1854_v50 }
  0x6d   : >> { %1708 = vmatpush3.bf16.msra.mxu1 %v1855_v51  ;;  %1689 = vmatprep.subr.bf16.mxu0 %v1914_v2 }
  0x6e   : >> { %1709 = vmatprep.subr.bf16.mxu1 %v1914_v2 }
  0x70   : >> { %1690 = vmatpush3.bf16.msra.mxu0 %v1856_v52 }
  0x71   : >> { %1710 = vmatpush3.bf16.msra.mxu1 %v1857_v53  ;;  %1715 = vmatprep.subr.bf16.mxu0 %v1914_v2 }
  0x72   : >> { %1735 = vmatprep.subr.bf16.mxu1 %v1914_v2 }
  0x73   : >> { %1692 = vmatmul.mubr.bf16.vlgmr.msra.gmra.mrb[8].mxu0 %v1385_v54 }
  0x74   : >> { %1716 = vmatpush3.bf16.msra.mxu0 %v1858_v55  ;;  %1712 = vmatmul.mubr.bf16.vlgmr.msra.gmra.mrb[8].mxu1 %v1410_v56 }
  0x75   : >> { %1736 = vmatpush3.bf16.msra.mxu1 %v1859_v57  ;;  %1717 = vmatprep.subr.bf16.mxu0 %v1914_v2 }
  0x76   : >> { %1737 = vmatprep.subr.bf16.mxu1 %v1914_v2  ;;  %1731 = vmatprep.mubr.msk.bf16.mxu0 %vm1915_vm0, %v1914_v2 }
  0x77   : >> { %1751 = vmatprep.mubr.msk.bf16.mxu1 %vm1915_vm0, %v1914_v2 }
  0x78   : >> { %1718 = vmatpush3.bf16.msra.mxu0 %v1860_v58 }
  0x79   : >> { %1738 = vmatpush3.bf16.msra.mxu1 %v1861_v59  ;;  %1719 = vmatprep.subr.bf16.mxu0 %v1914_v2 }
  0x7a   : >> { %1739 = vmatprep.subr.bf16.mxu1 %v1914_v2 }
  0x7c   : >> { %1720 = vmatpush3.bf16.msra.mxu0 %v1862_v60 }
  0x7d   : >> { %1740 = vmatpush3.bf16.msra.mxu1 %v1863_v61  ;;  %1721 = vmatprep.subr.bf16.mxu0 %v1914_v2 }
  0x7e   : >> { %1741 = vmatprep.subr.bf16.mxu1 %v1914_v2 }
  0x80   : >> { %1722 = vmatpush3.bf16.msra.mxu0 %v1864_v62 }
  0x81   : >> { %1742 = vmatpush3.bf16.msra.mxu1 %v1865_v63  ;;  %1723 = vmatprep.subr.bf16.mxu0 %v1914_v2 }
  0x82   : >> { %1743 = vmatprep.subr.bf16.mxu1 %v1914_v2 }
  0x84   : >> { %1724 = vmatpush3.bf16.msra.mxu0 %v1866_v1 }
  0x85   : >> { %1744 = vmatpush3.bf16.msra.mxu1 %v1867_v3  ;;  %1725 = vmatprep.subr.bf16.mxu0 %v1914_v2 }
  0x86   : >> { %1745 = vmatprep.subr.bf16.mxu1 %v1914_v2 }
  0x88   : >> { %1726 = vmatpush3.bf16.msra.mxu0 %v1868_v4 }
  0x89   : >> { %1746 = vmatpush3.bf16.msra.mxu1 %v1869_v5  ;;  %1727 = vmatprep.subr.bf16.mxu0 %v1914_v2 }
  0x8a   : >> { %1747 = vmatprep.subr.bf16.mxu1 %v1914_v2 }
  0x8c   : >> { %1728 = vmatpush3.bf16.msra.mxu0 %v1870_v6 }
  0x8d   : >> { %1748 = vmatpush3.bf16.msra.mxu1 %v1871_v7  ;;  %1729 = vmatprep.subr.bf16.mxu0 %v1914_v2 }
  0x8e   : >> { %1749 = vmatprep.subr.bf16.mxu1 %v1914_v2 }
  0x90   : >> { %1730 = vmatpush3.bf16.msra.mxu0 %v1872_v8 }
  0x91   : >> { %1750 = vmatpush3.bf16.msra.mxu1 %v1873_v9  ;;  %1755 = vmatprep.subr.bf16.mxu0 %v1914_v2 }
  0x93   : >> { %1732 = vmatmul.mubr.bf16.vlgmr.msra.gmra.mrb[12].mxu0 %v1435_v10 }
  0x94   : >> { %1756 = vmatpush3.bf16.msra.mxu0 %v1874_v11  ;;  %1752 = vmatmul.mubr.bf16.vlgmr.msra.gmra.mrb[12].mxu1 %v1460_v12 }
  0x95   : >> { %1757 = vmatprep.subr.bf16.mxu0 %v1914_v2  ;;  %1771 = vmatprep.mubr.msk.bf16.mxu0 %vm1915_vm0, %v1914_v2 }
  0x98   : >> { %1758 = vmatpush3.bf16.msra.mxu0 %v1875_v13 }
  0x99   : >> { %1759 = vmatprep.subr.bf16.mxu0 %v1914_v2 }
  0x9c   : >> { %1760 = vmatpush3.bf16.msra.mxu0 %v1876_v14 }
  0x9d   : >> { %1761 = vmatprep.subr.bf16.mxu0 %v1914_v2 }
  0xa0   : >> { %1762 = vmatpush3.bf16.msra.mxu0 %v1877_v15 }
  0xa1   : >> { %1763 = vmatprep.subr.bf16.mxu0 %v1914_v2 }
  0xa4   : >> { %1764 = vmatpush3.bf16.msra.mxu0 %v1878_v16 }
  0xa5   : >> { %1765 = vmatprep.subr.bf16.mxu0 %v1914_v2 }
  0xa8   : >> { %1766 = vmatpush3.bf16.msra.mxu0 %v1879_v17 }
  0xa9   : >> { %1767 = vmatprep.subr.bf16.mxu0 %v1914_v2 }
  0xac   : >> { %1768 = vmatpush3.bf16.msra.mxu0 %v1880_v18 }
  0xad   : >> { %1769 = vmatprep.subr.bf16.mxu0 %v1914_v2 }
  0xb0   : >> { %1770 = vmatpush3.bf16.msra.mxu0 %v1881_v19 }
  0xb3   : >> { %1772 = vmatmul.mubr.bf16.vlgmr.msra.gmra.mrb[16].mxu0 %v1485_v20 }
 0x106   : >> { %v334_v21 = vpop.f32.mrb[0].mxu0 }
 0x107   : >> { %v1613_v22 = vpop.f32.mrb[1].mxu0  ;;  %v422_v23 = vpop.f32.mrb[0].mxu1 }
 0x108   : >> { %v423_v24 = vadd.f32 %v422_v23, %v334_v21  ;;  %v337_v25 = vpop.f32.mrb[2].mxu0  ;;  %v1633_v26 = vpop.f32.mrb[1].mxu1 }
 0x109   : >> { %v1614_v27 = vpop.f32.mrb[3].mxu0  ;;  %v425_v28 = vpop.f32.mrb[2].mxu1 }
 0x10a   : >> { %v1634_v29 = vpop.f32.mrb[3].mxu1 }
 0x126   : >> { %v528_v30 = vpop.f32.mrb[4].mxu0 }
 0x127   : >> { %v534_v31 = vadd.f32 %v528_v30, %v423_v24  ;;  %v1653_v32 = vpop.f32.mrb[5].mxu0  ;;  %v639_v33 = vpop.f32.mrb[4].mxu1 }
 0x128   : >> { %v531_v34 = vpop.f32.mrb[6].mxu0  ;;  %v1673_v35 = vpop.f32.mrb[5].mxu1 }
 0x129   : >> { %v645_v36 = vadd.f32 %v639_v33, %v534_v31  ;;  %v1654_v2 = vpop.f32.mrb[7].mxu0  ;;  %v642_v37 = vpop.f32.mrb[6].mxu1 }
 0x12a   : >> { %v1674_v38 = vpop.f32.mrb[7].mxu1 }
 0x146   : >> { %v746_v39 = vpop.f32.mrb[8].mxu0 }
 0x147   : >> { %v752_v40 = vadd.f32 %v746_v39, %v645_v36  ;;  %v1693_v41 = vpop.f32.mrb[9].mxu0  ;;  %v853_v42 = vpop.f32.mrb[8].mxu1 }
 0x148   : >> { %v749_v43 = vpop.f32.mrb[10].mxu0  ;;  %v1713_v44 = vpop.f32.mrb[9].mxu1 }
 0x149   : >> { %v859_v45 = vadd.f32 %v853_v42, %v752_v40  ;;  %v1694_v46 = vpop.f32.mrb[11].mxu0  ;;  %v856_v47 = vpop.f32.mrb[10].mxu1 }
 0x14a   : >> { %v1714_v48 = vpop.f32.mrb[11].mxu1 }
 0x166   : >> { %v964_v49 = vpop.f32.mrb[12].mxu0 }
 0x167   : >> { %v970_v50 = vadd.f32 %v964_v49, %v859_v45  ;;  %v1733_v51 = vpop.f32.mrb[13].mxu0  ;;  %v1071_v52 = vpop.f32.mrb[12].mxu1 }
 0x168   : >> { %v967_v53 = vpop.f32.mrb[14].mxu0  ;;  %v1753_v54 = vpop.f32.mrb[13].mxu1 }
 0x169   : >> { %v1077_v55 = vadd.f32 %v1071_v52, %v970_v50  ;;  %v1734_v56 = vpop.f32.mrb[15].mxu0  ;;  %v1074_v57 = vpop.f32.mrb[14].mxu1 }
 0x16a   : >> { %v1754_v58 = vpop.f32.mrb[15].mxu1 }
 0x186   : >> { %v1178_v59 = vpop.f32.mrb[16].mxu0 }
 0x187   : >> { %v1184_v60 = vadd.f32 %v1178_v59, %v1077_v55  ;;  %v1773_v61 = vpop.f32.mrb[17].mxu0 }
 0x188   : >> { %v1181_v62 = vpop.f32.mrb[18].mxu0 }
 0x189   : >> { %v1191_v63 = vadd.f32 %v1957_v0, %v1184_v60  ;;  %v1774_v1 = vpop.f32.mrb[19].mxu0 }
 0x18a   : > { %212 = sbr.rel (!%p210_p5) target bundleno = 18 (0x12), region = 81 }
 0x18b   : >> { %vm1192_vm1 = vcmp.ge.f32.partialorder %v1191_v63, 0.0  ;;  %v1193_v3 = vmul.f32 0.1, %v1191_v63 }
 0x18d   : >> { %v1194_v4 = vsel %vm1192_vm1, %v1191_v63, %v1193_v3 }
 0x18e   : >> { %v1195_v5 = vpack.c.bf16 %v1194_v4, %v1194_v4 }
 0x190   : >> { %1197 = vst [vmem:[%s1196_s8] sm:$0x1] %v1195_v5 }
 0x191 PF: > { %s13_s14 = sadd.s32 1, %s1908_s14   ;;  %s2312_s12 = smov %s1904_s13 }
 0x192   : > { %p10_p6 = scmp.ge.s32.totalorder %s13_s14, 4   ;;  %s2313_s13 = smov %s2315_s15 }
 0x194   :  { %12 = sbr.rel (!%p10_p6) target bundleno = 2 (0x2), region = 92 }

// kernel: tile.19
= control target key start
LH: loop header
LB: loop body
LE: loop exit
PB: predicated region body
PF: predicated region fallthrough
CT: control target
= control target key end

     0   :  { %vm7_vm0 = vcmask 523264   ;;  %vm13_vm1 = vcmask 1048064   ;;  %s39_s0 = inlined_call_operand.vmem [shape: f32[2,64], index: 0, kind: input, shape index: {}]   ;;  %s40_s1 = inlined_call_operand.vmem [shape: f32[1,128], index: 1, kind: output, shape index: {}]  }
   0x1   :  { %v4_v0 = vld [vmem:[%s39_s0] sm:$0x3]  ;;  %s22_s0 = smov 64  }
   0x2   :  { %5 = vst [vmem:[#allocation1] sm:$0x3] %v4_v0 }
   0x9   :  { %v10_v1 = vld [vmem:[#allocation1 + $0x1] sm:$0x1]   ;;  %v6_v2 = vld [vmem:[#allocation1] sm:$0x1]  }
   0xa   :  { %11 = vrot.lane.b32.xlu0 %v10_v1, %s22_s0  ;;  %8 = vst.msk [vmem:[#allocation0] sm:$0x1] %vm7_vm0, %v6_v2  }
  0x7c   :  { %v12_v3 = vpop.permute.xlu0 %11  }
  0x7d   :  { %14 = vst.msk [vmem:[#allocation0] sm:$0x1] %vm13_vm1, %v12_v3  }
  0x84   :  { %v18_v4 = vld [vmem:[#allocation0] sm:$0x1] }
  0x85   :  { %20 = vst [vmem:[%s40_s1] sm:$0x1] %v18_v4 }

// kernel: _lambda_.25
= control target key start
LH: loop header
LB: loop body
LE: loop exit
PB: predicated region body
PF: predicated region fallthrough
CT: control target
= control target key end

     0   :  { %v214_v0 = vmov 0.0   ;;  %vm215_vm0 = vmmov 0   ;;  %s269_s1 = inlined_call_operand.vmem [shape: bf16[128,128], index: 1, kind: input, shape index: {}]   ;;  %s270_s0 = inlined_call_operand.vmem [shape: bf16[16,128], index: 0, kind: input, shape index: {}]   ;;  %s271_s2 = inlined_call_operand.vmem [shape: f32[1,128], index: 2, kind: input, shape index: {}]   ;;  %s272_s3 = inlined_call_operand.vmem [shape: bf16[16,128], index: 3, kind: output, shape index: {}]  }
   0x1   :  { %183 = vmatprep.subr.bf16.mxu0 %v214_v0  ;;  %v205_v1 = vld [vmem:[%s269_s1] sm:$0xff]   ;;  %199 = vmatprep.mubr.msk.bf16.mxu0 %vm215_vm0, %v214_v0  ;;  %v206_v2 = vld [vmem:[%s269_s1 + $0x8] sm:$0xff]   ;;  %v207_v3 = vld [vmem:[%s269_s1 + $0x10] sm:$0xff]  }
   0x2   :  { %184 = vmatpush3.bf16.msra.mxu0 %v205_v1  ;;  %v208_v4 = vld [vmem:[%s269_s1 + $0x18] sm:$0xff]   ;;  %v209_v5 = vld [vmem:[%s269_s1 + $0x20] sm:$0xff]   ;;  %v210_v6 = vld [vmem:[%s269_s1 + $0x28] sm:$0xff]  }
   0x3   :  { %185 = vmatprep.subr.bf16.mxu0 %v214_v0  ;;  %v211_v7 = vld [vmem:[%s269_s1 + $0x30] sm:$0xff]   ;;  %v212_v8 = vld [vmem:[%s269_s1 + $0x38] sm:$0xff]   ;;  %v213_v9 = vld [vmem:[%s270_s0] sm:$0xff]  }
   0x4   :  { %v155_v10 = vld [vmem:[%s271_s2] ss:$0 sm:$0xff] }
   0x6   :  { %186 = vmatpush3.bf16.msra.mxu0 %v206_v2 }
   0x7   :  { %187 = vmatprep.subr.bf16.mxu0 %v214_v0 }
   0xa   :  { %188 = vmatpush3.bf16.msra.mxu0 %v207_v3 }
   0xb   :  { %189 = vmatprep.subr.bf16.mxu0 %v214_v0 }
   0xe   :  { %190 = vmatpush3.bf16.msra.mxu0 %v208_v4 }
   0xf   :  { %191 = vmatprep.subr.bf16.mxu0 %v214_v0 }
  0x12   :  { %192 = vmatpush3.bf16.msra.mxu0 %v209_v5 }
  0x13   :  { %193 = vmatprep.subr.bf16.mxu0 %v214_v0 }
  0x16   :  { %194 = vmatpush3.bf16.msra.mxu0 %v210_v6 }
  0x17   :  { %195 = vmatprep.subr.bf16.mxu0 %v214_v0 }
  0x1a   :  { %196 = vmatpush3.bf16.msra.mxu0 %v211_v7 }
  0x1b   :  { %197 = vmatprep.subr.bf16.mxu0 %v214_v0 }
  0x1e   :  { %198 = vmatpush3.bf16.msra.mxu0 %v212_v8 }
  0x21   :  { %200 = vmatmul.mubr.bf16.vlgmr.msra.gmra.mrb[0].mxu0 %v213_v9 }
  0xf4   :  { %v128_v11 = vpop.f32.mrb[0].mxu0 }
  0xf5   :  { %v129_v12 = vadd.f32 %v155_v10, %v128_v11  ;;  %v201_v13 = vpop.f32.mrb[1].mxu0 }
  0xf6   :  { %v131_v14 = vpop.f32.mrb[2].mxu0 }
  0xf7   :  { %v137_v15 = vmul.f32 0.1, %v129_v12  ;;  %v132_v16 = vadd.f32 %v155_v10, %v131_v14  ;;  %v202_v17 = vpop.f32.mrb[3].mxu0  ;;  %vm135_vm1 = vcmp.ge.f32.partialorder %v129_v12, 0.0 }
  0xf9   :  { %vm136_vm2 = vcmp.ge.f32.partialorder %v132_v16, 0.0  ;;  %v138_v18 = vmul.f32 0.1, %v132_v16  ;;  %v139_v19 = vsel %vm135_vm1, %v129_v12, %v137_v15 }
  0xfb   :  { %v140_v20 = vsel %vm136_vm2, %v132_v16, %v138_v18 }
  0xfc   :  { %v172_v21 = vpack.c.bf16 %v140_v20, %v139_v19 }
  0xfe   :  { %173 = vst [vmem:[%s272_s3] sm:$0xff] %v172_v21  }

// kernel: _lambda_.26
= control target key start
LH: loop header
LB: loop body
LE: loop exit
PB: predicated region body
PF: predicated region fallthrough
CT: control target
= control target key end

     0   :  { %vm68_vm0 = vcmask 523264   ;;  %s259_s1 = inlined_call_operand.vmem [shape: bf16[64,128], index: 1, kind: input, shape index: {}]   ;;  %s260_s0 = inlined_call_operand.vmem [shape: bf16[32,64], index: 0, kind: input, shape index: {}]   ;;  %s261_s2 = inlined_call_operand.vmem [shape: f32[1,128], index: 2, kind: input, shape index: {}]   ;;  %s262_s3 = inlined_call_operand.vmem [shape: bf16[32,128], index: 3, kind: output, shape index: {}]  }
   0x1   :  { %v206_v0 = vld [vmem:[%s259_s1] sm:$0xff]   ;;  %v207_v1 = vld [vmem:[%s259_s1 + $0x8] sm:$0xff]   ;;  %v208_v2 = vld [vmem:[%s259_s1 + $0x10] sm:$0xff]  }
   0x2   :  { %194 = vmatprep.subr.bf16.mxu0 %v206_v0  ;;  %v210_v3 = vld [vmem:[%s260_s0] sm:$0xff]   ;;  %v209_v4 = vld [vmem:[%s259_s1 + $0x18] sm:$0xff]   ;;  %v211_v5 = vld [vmem:[%s260_s0 + $0x8] sm:$0xff]  }
   0x3   :  { %195 = vmatpush3.bf16.msra.mxu0 %v206_v0  ;;  %202 = vmatprep.mubr.msk.bf16.mxu0 %vm68_vm0, %v210_v3  ;;  %v160_v6 = vld [vmem:[%s261_s2] ss:$0 sm:$0xff] }
   0x4   :  { %196 = vmatprep.subr.bf16.mxu0 %v207_v1 }
   0x7   :  { %197 = vmatpush3.bf16.msra.mxu0 %v207_v1 }
   0x8   :  { %198 = vmatprep.subr.bf16.mxu0 %v208_v2 }
   0xb   :  { %199 = vmatpush3.bf16.msra.mxu0 %v208_v2 }
   0xc   :  { %200 = vmatprep.subr.bf16.mxu0 %v209_v4 }
   0xf   :  { %201 = vmatpush3.bf16.msra.mxu0 %v209_v4 }
  0x12   :  { %203 = vmatmul.mubr.msk.bf16.vlgmr.msra.gmra.mrb[0].mxu0 %vm68_vm0, %v211_v5 }
  0xe5   :  { %v204_v7 = vpop.f32.mrb[0].mxu0 }
  0xe6   :  { %v118_v8 = vadd.f32 %v204_v7, %v160_v6  ;;  %v109_v9 = vpop.f32.mrb[1].mxu0 }
  0xe7   :  { %v110_v10 = vadd.f32 %v160_v6, %v109_v9  ;;  %v205_v11 = vpop.f32.mrb[2].mxu0 }
  0xe8   :  { %v130_v12 = vmul.f32 0.25, %v118_v8  ;;  %v121_v13 = vadd.f32 %v205_v11, %v160_v6  ;;  %v112_v14 = vpop.f32.mrb[3].mxu0  ;;  %vm126_vm1 = vcmp.ge.f32.partialorder %v118_v8, 0.0 }
  0xe9   :  { %v128_v15 = vmul.f32 0.25, %v110_v10  ;;  %v113_v16 = vadd.f32 %v160_v6, %v112_v14  ;;  %vm124_vm2 = vcmp.ge.f32.partialorder %v110_v10, 0.0 }
  0xea   :  { %vm127_vm3 = vcmp.ge.f32.partialorder %v121_v13, 0.0  ;;  %v131_v17 = vmul.f32 0.25, %v121_v13  ;;  %v134_v19 = vsel %vm126_vm1, %v118_v8, %v130_v12 }
  0xeb   :  { %vm125_vm4 = vcmp.ge.f32.partialorder %v113_v16, 0.0  ;;  %v129_v18 = vmul.f32 0.25, %v113_v16  ;;  %v132_v21 = vsel %vm124_vm2, %v110_v10, %v128_v15 }
  0xec   :  { %v135_v20 = vsel %vm127_vm3, %v121_v13, %v131_v17 }
  0xed   :  { %v185_v22 = vpack.c.bf16 %v135_v20, %v134_v19  ;;  %v133_v23 = vsel %vm125_vm4, %v113_v16, %v129_v18 }
  0xee   :  { %v180_v24 = vpack.c.bf16 %v133_v23, %v132_v21 }
  0xef   :  { %187 = vst [vmem:[%s262_s3 + $0x8] sm:$0xff] %v185_v22  }
  0xf0   :  { %181 = vst [vmem:[%s262_s3] sm:$0xff] %v180_v24  }

// kernel: tile.22
= control target key start
LH: loop header
LB: loop body
LE: loop exit
PB: predicated region body
PF: predicated region fallthrough
CT: control target
= control target key end

     0   :  { %s22_s0 = inlined_call_operand.vmem [shape: f32[32], index: 0, kind: input, shape index: {}]   ;;  %s23_s1 = inlined_call_operand.vmem [shape: f32[4,32], index: 1, kind: output, shape index: {}]  }
   0x1   :  { %v4_v0 = vld [vmem:[%s22_s0] ss:$0 sm:$0xff] }
   0x2   :  { %5 = vst [vmem:[%s23_s1] sm:$0xf] %v4_v0 }

// kernel: tile.23
= control target key start
LH: loop header
LB: loop body
LE: loop exit
PB: predicated region body
PF: predicated region fallthrough
CT: control target
= control target key end

     0   :  { %vm7_vm0 = vcmask 261120   ;;  %s37_s8 = smov 32   ;;  %s38_s9 = smov 64   ;;  %vm13_vm1 = vcmask 1048320   ;;  %vm19_vm2 = vcmask 785920   ;;  %vm25_vm3 = vcmask 523520   ;;  %s55_s0 = inlined_call_operand.vmem [shape: f32[4,32], index: 0, kind: input, shape index: {}]   ;;  %s56_s1 = inlined_call_operand.vmem [shape: f32[1,128], index: 1, kind: output, shape index: {}]  }
   0x1   :  { %v4_v0 = vld [vmem:[%s55_s0] sm:$0xf]  ;;  %s36_s0 = smov 96  }
   0x2   :  { %5 = vst [vmem:[#allocation1] sm:$0xf] %v4_v0 }
   0x9   :  { %v10_v1 = vld [vmem:[#allocation1 + $0x3] sm:$0x1]   ;;  %v22_v2 = vld [vmem:[#allocation1 + $0x1] sm:$0x1]   ;;  %v6_v3 = vld [vmem:[#allocation1] sm:$0x1]  }
   0xa   :  { %11 = vrot.lane.b32.xlu0 %v10_v1, %s36_s0  ;;  %23 = vrot.lane.b32.xlu1 %v22_v2, %s37_s8  ;;  %v16_v4 = vld [vmem:[#allocation1 + $0x2] sm:$0x1]   ;;  %8 = vst.msk [vmem:[#allocation0] sm:$0x1] %vm7_vm0, %v6_v3  }
   0xe   :  { %17 = vrot.lane.b32.xlu0 %v16_v4, %s38_s9 }
  0x7c   :  { %v12_v5 = vpop.permute.xlu0 %11   ;;  %v24_v6 = vpop.permute.xlu1 %23  }
  0x7d   :  { %14 = vst.msk [vmem:[#allocation0] sm:$0x1] %vm13_vm1, %v12_v5  }
  0x80   :  { %v18_v7 = vpop.permute.xlu0 %17  }
  0x81   :  { %20 = vst.msk [vmem:[#allocation0] sm:$0x1] %vm19_vm2, %v18_v7  }
  0x82   :  { %26 = vst.msk [vmem:[#allocation0] sm:$0x1] %vm25_vm3, %v24_v6  }
  0x89   :  { %v30_v8 = vld [vmem:[#allocation0] sm:$0x1] }
  0x8a   :  { %32 = vst [vmem:[%s56_s1] sm:$0x1] %v30_v8 }

// kernel: _lambda_.27
= control target key start
LH: loop header
LB: loop body
LE: loop exit
PB: predicated region body
PF: predicated region fallthrough
CT: control target
= control target key end

     0   :  { %s316_s1 = inlined_call_operand.vmem [shape: bf16[128,128], index: 1, kind: input, shape index: {}]   ;;  %s317_s0 = inlined_call_operand.vmem [shape: bf16[32,128], index: 0, kind: input, shape index: {}]   ;;  %s318_s2 = inlined_call_operand.vmem [shape: f32[1,128], index: 2, kind: input, shape index: {}]   ;;  %s319_s3 = inlined_call_operand.vmem [shape: bf16[32,128], index: 3, kind: output, shape index: {}]  }
   0x1   :  { %v247_v0 = vld [vmem:[%s316_s1] sm:$0xff]   ;;  %v248_v1 = vld [vmem:[%s316_s1 + $0x8] sm:$0xff]   ;;  %v249_v2 = vld [vmem:[%s316_s1 + $0x10] sm:$0xff]  }
   0x2   :  { %227 = vmatprep.subr.bf16.mxu0 %v247_v0  ;;  %v250_v3 = vld [vmem:[%s316_s1 + $0x18] sm:$0xff]   ;;  %v255_v4 = vld [vmem:[%s317_s0] sm:$0xff]   ;;  %v252_v6 = vld [vmem:[%s316_s1 + $0x28] sm:$0xff]  }
   0x3   :  { %228 = vmatpush3.bf16.msra.mxu0 %v247_v0  ;;  %243 = vmatprep.mubr.bf16.mxu0 %v255_v4  ;;  %v251_v5 = vld [vmem:[%s316_s1 + $0x20] sm:$0xff]   ;;  %v253_v7 = vld [vmem:[%s316_s1 + $0x30] sm:$0xff]   ;;  %v254_v8 = vld [vmem:[%s316_s1 + $0x38] sm:$0xff]  }
   0x4   :  { %229 = vmatprep.subr.bf16.mxu0 %v248_v1  ;;  %v256_v9 = vld [vmem:[%s317_s0 + $0x8] sm:$0xff]   ;;  %v187_v10 = vld [vmem:[%s318_s2] ss:$0 sm:$0xff] }
   0x7   :  { %230 = vmatpush3.bf16.msra.mxu0 %v248_v1 }
   0x8   :  { %231 = vmatprep.subr.bf16.mxu0 %v249_v2 }
   0xb   :  { %232 = vmatpush3.bf16.msra.mxu0 %v249_v2 }
   0xc   :  { %233 = vmatprep.subr.bf16.mxu0 %v250_v3 }
   0xf   :  { %234 = vmatpush3.bf16.msra.mxu0 %v250_v3 }
  0x10   :  { %235 = vmatprep.subr.bf16.mxu0 %v251_v5 }
  0x13   :  { %236 = vmatpush3.bf16.msra.mxu0 %v251_v5 }
  0x14   :  { %237 = vmatprep.subr.bf16.mxu0 %v252_v6 }
  0x17   :  { %238 = vmatpush3.bf16.msra.mxu0 %v252_v6 }
  0x18   :  { %239 = vmatprep.subr.bf16.mxu0 %v253_v7 }
  0x1b   :  { %240 = vmatpush3.bf16.msra.mxu0 %v253_v7 }
  0x1c   :  { %241 = vmatprep.subr.bf16.mxu0 %v254_v8 }
  0x1f   :  { %242 = vmatpush3.bf16.msra.mxu0 %v254_v8 }
  0x22   :  { %244 = vmatmul.mubr.bf16.vlgmr.msra.gmra.mrb[0].mxu0 %v256_v9 }
  0xf5   :  { %v245_v11 = vpop.f32.mrb[0].mxu0 }
  0xf6   :  { %v145_v12 = vadd.f32 %v245_v11, %v187_v10  ;;  %v136_v13 = vpop.f32.mrb[1].mxu0 }
  0xf7   :  { %v137_v14 = vadd.f32 %v187_v10, %v136_v13  ;;  %v246_v15 = vpop.f32.mrb[2].mxu0 }
  0xf8   :  { %v157_v16 = vmul.f32 0.1, %v145_v12  ;;  %v148_v17 = vadd.f32 %v246_v15, %v187_v10  ;;  %v139_v18 = vpop.f32.mrb[3].mxu0  ;;  %vm153_vm0 = vcmp.ge.f32.partialorder %v145_v12, 0.0 }
  0xf9   :  { %v155_v19 = vmul.f32 0.1, %v137_v14  ;;  %v140_v20 = vadd.f32 %v187_v10, %v139_v18  ;;  %vm151_vm1 = vcmp.ge.f32.partialorder %v137_v14, 0.0 }
  0xfa   :  { %vm154_vm2 = vcmp.ge.f32.partialorder %v148_v17, 0.0  ;;  %v158_v21 = vmul.f32 0.1, %v148_v17  ;;  %v161_v23 = vsel %vm153_vm0, %v145_v12, %v157_v16 }
  0xfb   :  { %vm152_vm3 = vcmp.ge.f32.partialorder %v140_v20, 0.0  ;;  %v156_v22 = vmul.f32 0.1, %v140_v20  ;;  %v159_v25 = vsel %vm151_vm1, %v137_v14, %v155_v19 }
  0xfc   :  { %v162_v24 = vsel %vm154_vm2, %v148_v17, %v158_v21 }
  0xfd   :  { %v214_v26 = vpack.c.bf16 %v162_v24, %v161_v23  ;;  %v160_v27 = vsel %vm152_vm3, %v140_v20, %v156_v22 }
  0xfe   :  { %v209_v28 = vpack.c.bf16 %v160_v27, %v159_v25 }
  0xff   :  { %216 = vst [vmem:[%s319_s3 + $0x8] sm:$0xff] %v214_v26  }
 0x100   :  { %210 = vst [vmem:[%s319_s3] sm:$0xff] %v209_v28  }

// kernel: _lambda_.28
= control target key start
LH: loop header
LB: loop body
LE: loop exit
PB: predicated region body
PF: predicated region fallthrough
CT: control target
= control target key end

     0   :  { %vm82_vm0 = vcmask 523264   ;;  %s385_s1 = inlined_call_operand.vmem [shape: bf16[64,128], index: 1, kind: input, shape index: {}]   ;;  %s386_s0 = inlined_call_operand.vmem [shape: bf16[64,64], index: 0, kind: input, shape index: {}]   ;;  %s387_s2 = inlined_call_operand.vmem [shape: f32[1,128], index: 2, kind: input, shape index: {}]   ;;  %s388_s3 = inlined_call_operand.vmem [shape: bf16[64,128], index: 3, kind: output, shape index: {}]  }
   0x1   :  { %v312_v0 = vld [vmem:[%s385_s1] sm:$0xff]   ;;  %v313_v1 = vld [vmem:[%s385_s1 + $0x8] sm:$0xff]   ;;  %v314_v2 = vld [vmem:[%s385_s1 + $0x10] sm:$0xff]  }
   0x2   :  { %288 = vmatprep.subr.bf16.mxu0 %v312_v0  ;;  %304 = vmatprep.subr.bf16.mxu1 %v312_v0  ;;  %v316_v3 = vld [vmem:[%s386_s0] sm:$0xff]   ;;  %v317_v4 = vld [vmem:[%s386_s0 + $0x10] sm:$0xff]   ;;  %v315_v5 = vld [vmem:[%s385_s1 + $0x18] sm:$0xff]  }
   0x3   :  { %289 = vmatpush3.bf16.msra.mxu0 %v312_v0  ;;  %308 = vmatpush3.bf16.msra.mxu1 %v312_v0  ;;  %v318_v6 = vld [vmem:[%s386_s0 + $0x8] sm:$0xff]   ;;  %v319_v7 = vld [vmem:[%s386_s0 + $0x18] sm:$0xff]   ;;  %v228_v8 = vld [vmem:[%s387_s2] ss:$0 sm:$0xff] }
   0x4   :  { %290 = vmatprep.subr.bf16.mxu0 %v313_v1  ;;  %305 = vmatprep.subr.bf16.mxu1 %v313_v1 }
   0x5   :  { %296 = vmatprep.mubr.msk.bf16.mxu0 %vm82_vm0, %v316_v3  ;;  %300 = vmatprep.mubr.msk.bf16.mxu1 %vm82_vm0, %v317_v4 }
   0x7   :  { %291 = vmatpush3.bf16.msra.mxu0 %v313_v1  ;;  %309 = vmatpush3.bf16.msra.mxu1 %v313_v1 }
   0x8   :  { %292 = vmatprep.subr.bf16.mxu0 %v314_v2  ;;  %306 = vmatprep.subr.bf16.mxu1 %v314_v2 }
   0xb   :  { %293 = vmatpush3.bf16.msra.mxu0 %v314_v2  ;;  %310 = vmatpush3.bf16.msra.mxu1 %v314_v2 }
   0xc   :  { %294 = vmatprep.subr.bf16.mxu0 %v315_v5  ;;  %307 = vmatprep.subr.bf16.mxu1 %v315_v5 }
   0xf   :  { %295 = vmatpush3.bf16.msra.mxu0 %v315_v5  ;;  %311 = vmatpush3.bf16.msra.mxu1 %v315_v5 }
  0x12   :  { %297 = vmatmul.mubr.msk.bf16.vlgmr.msra.gmra.mrb[0].mxu0 %vm82_vm0, %v318_v6  ;;  %301 = vmatmul.mubr.msk.bf16.vlgmr.msra.gmra.mrb[0].mxu1 %vm82_vm0, %v319_v7 }
  0xe5   :  { %v298_v9 = vpop.f32.mrb[0].mxu0  ;;  %v302_v10 = vpop.f32.mrb[0].mxu1 }
  0xe6   :  { %v138_v11 = vadd.f32 %v298_v9, %v228_v8  ;;  %v154_v12 = vadd.f32 %v302_v10, %v228_v8  ;;  %v129_v13 = vpop.f32.mrb[1].mxu0  ;;  %v145_v14 = vpop.f32.mrb[1].mxu1 }
  0xe7   :  { %v130_v15 = vadd.f32 %v228_v8, %v129_v13  ;;  %v146_v16 = vadd.f32 %v228_v8, %v145_v14  ;;  %v299_v17 = vpop.f32.mrb[2].mxu0  ;;  %v303_v18 = vpop.f32.mrb[2].mxu1 }
  0xe8   :  { %vm162_vm1 = vcmp.ge.f32.partialorder %v138_v11, 0.0  ;;  %v170_v19 = vmul.f32 0.25, %v138_v11  ;;  %vm166_vm2 = vcmp.ge.f32.partialorder %v154_v12, 0.0  ;;  %v174_v20 = vmul.f32 0.25, %v154_v12  ;;  %v132_v21 = vpop.f32.mrb[3].mxu0  ;;  %v148_v22 = vpop.f32.mrb[3].mxu1 }
  0xe9   :  { %vm160_vm3 = vcmp.ge.f32.partialorder %v130_v15, 0.0  ;;  %v168_v23 = vmul.f32 0.25, %v130_v15  ;;  %vm164_vm4 = vcmp.ge.f32.partialorder %v146_v16, 0.0  ;;  %v172_v24 = vmul.f32 0.25, %v146_v16 }
  0xea   :  { %v141_v25 = vadd.f32 %v299_v17, %v228_v8  ;;  %v157_v26 = vadd.f32 %v303_v18, %v228_v8  ;;  %v178_v27 = vsel %vm162_vm1, %v138_v11, %v170_v19  ;;  %v182_v28 = vsel %vm166_vm2, %v154_v12, %v174_v20 }
  0xeb   :  { %v133_v29 = vadd.f32 %v228_v8, %v132_v21  ;;  %v149_v30 = vadd.f32 %v228_v8, %v148_v22  ;;  %v176_v35 = vsel %vm160_vm3, %v130_v15, %v168_v23  ;;  %v180_v36 = vsel %vm164_vm4, %v146_v16, %v172_v24 }
  0xec   :  { %vm163_vm5 = vcmp.ge.f32.partialorder %v141_v25, 0.0  ;;  %v171_v31 = vmul.f32 0.25, %v141_v25  ;;  %vm167_vm6 = vcmp.ge.f32.partialorder %v157_v26, 0.0  ;;  %v175_v32 = vmul.f32 0.25, %v157_v26 }
  0xed   :  { %vm161_vm7 = vcmp.ge.f32.partialorder %v133_v29, 0.0  ;;  %v169_v33 = vmul.f32 0.25, %v133_v29  ;;  %vm165_vm8 = vcmp.ge.f32.partialorder %v149_v30, 0.0  ;;  %v173_v34 = vmul.f32 0.25, %v149_v30 }
  0xee   :  { %v179_v37 = vsel %vm163_vm5, %v141_v25, %v171_v31  ;;  %v183_v38 = vsel %vm167_vm6, %v157_v26, %v175_v32 }
  0xef   :  { %v265_v39 = vpack.c.bf16 %v179_v37, %v178_v27  ;;  %v275_v40 = vpack.c.bf16 %v183_v38, %v182_v28  ;;  %v177_v41 = vsel %vm161_vm7, %v133_v29, %v169_v33  ;;  %v181_v42 = vsel %vm165_vm8, %v149_v30, %v173_v34 }
  0xf0   :  { %v260_v43 = vpack.c.bf16 %v177_v41, %v176_v35  ;;  %v270_v44 = vpack.c.bf16 %v181_v42, %v180_v36 }
  0xf1   :  { %277 = vst [vmem:[%s388_s3 + $0x8] sm:$0xff] %v265_v39   ;;  %279 = vst [vmem:[%s388_s3 + $0x18] sm:$0xff] %v275_v40  }
  0xf2   :  { %261 = vst [vmem:[%s388_s3] sm:$0xff] %v260_v43   ;;  %278 = vst [vmem:[%s388_s3 + $0x10] sm:$0xff] %v270_v44  }

// kernel: _lambda_.29
= control target key start
LH: loop header
LB: loop body
LE: loop exit
PB: predicated region body
PF: predicated region fallthrough
CT: control target
= control target key end

     0   :  { %vm110_vm0 = vcmask 523264   ;;  %s633_s1 = inlined_call_operand.vmem [shape: bf16[64,128], index: 1, kind: input, shape index: {}]   ;;  %s634_s0 = inlined_call_operand.vmem [shape: bf16[128,64], index: 0, kind: input, shape index: {}]   ;;  %s635_s2 = inlined_call_operand.vmem [shape: f32[1,128], index: 2, kind: input, shape index: {}]   ;;  %s636_s3 = inlined_call_operand.vmem [shape: bf16[128,128], index: 3, kind: output, shape index: {}]  }
   0x1   :  { %v508_v0 = vld [vmem:[%s633_s1] sm:$0xff]   ;;  %v509_v1 = vld [vmem:[%s633_s1 + $0x8] sm:$0xff]   ;;  %v510_v2 = vld [vmem:[%s633_s1 + $0x10] sm:$0xff]  }
   0x2   :  { %476 = vmatprep.subr.bf16.mxu0 %v508_v0  ;;  %500 = vmatprep.subr.bf16.mxu1 %v508_v0  ;;  %v512_v3 = vld [vmem:[%s634_s0] sm:$0xff]   ;;  %v511_v5 = vld [vmem:[%s633_s1 + $0x18] sm:$0xff]   ;;  %v514_v6 = vld [vmem:[%s634_s0 + $0x8] sm:$0xff]  }
   0x3   :  { %477 = vmatpush3.bf16.msra.mxu0 %v508_v0  ;;  %504 = vmatpush3.bf16.msra.mxu1 %v508_v0  ;;  %v513_v4 = vld [vmem:[%s634_s0 + $0x20] sm:$0xff]   ;;  %v515_v7 = vld [vmem:[%s634_s0 + $0x28] sm:$0xff]   ;;  %v516_v8 = vld [vmem:[%s634_s0 + $0x10] sm:$0xff]  }
   0x4   :  { %478 = vmatprep.subr.bf16.mxu0 %v509_v1  ;;  %501 = vmatprep.subr.bf16.mxu1 %v509_v1  ;;  %v517_v9 = vld [vmem:[%s634_s0 + $0x30] sm:$0xff]   ;;  %v518_v10 = vld [vmem:[%s634_s0 + $0x18] sm:$0xff]   ;;  %v587_v12 = vld [vmem:[%s635_s2] ss:$0 sm:$0xff] }
   0x5   :  { %484 = vmatprep.mubr.msk.bf16.mxu0 %vm110_vm0, %v512_v3  ;;  %492 = vmatprep.mubr.msk.bf16.mxu1 %vm110_vm0, %v513_v4  ;;  %v519_v11 = vld [vmem:[%s634_s0 + $0x38] sm:$0xff]  }
   0x7   :  { %479 = vmatpush3.bf16.msra.mxu0 %v509_v1  ;;  %505 = vmatpush3.bf16.msra.mxu1 %v509_v1 }
   0x8   :  { %480 = vmatprep.subr.bf16.mxu0 %v510_v2  ;;  %502 = vmatprep.subr.bf16.mxu1 %v510_v2 }
   0xb   :  { %481 = vmatpush3.bf16.msra.mxu0 %v510_v2  ;;  %506 = vmatpush3.bf16.msra.mxu1 %v510_v2 }
   0xc   :  { %482 = vmatprep.subr.bf16.mxu0 %v511_v5  ;;  %503 = vmatprep.subr.bf16.mxu1 %v511_v5 }
   0xf   :  { %483 = vmatpush3.bf16.msra.mxu0 %v511_v5  ;;  %507 = vmatpush3.bf16.msra.mxu1 %v511_v5 }
  0x12   :  { %485 = vmatmul.mubr.msk.bf16.vlgmr.msra.gmra.mrb[0].mxu0 %vm110_vm0, %v514_v6  ;;  %493 = vmatmul.mubr.msk.bf16.vlgmr.msra.gmra.mrb[0].mxu1 %vm110_vm0, %v515_v7 }
  0x13   :  { %488 = vmatprep.mubr.msk.bf16.mxu0 %vm110_vm0, %v516_v8  ;;  %496 = vmatprep.mubr.msk.bf16.mxu1 %vm110_vm0, %v517_v9 }
  0x1a   :  { %489 = vmatmul.mubr.msk.bf16.gmra.mrb[4].mxu0 %vm110_vm0, %v518_v10  ;;  %497 = vmatmul.mubr.msk.bf16.gmra.mrb[4].mxu1 %vm110_vm0, %v519_v11 }
  0xe5   :  { %v486_v13 = vpop.f32.mrb[0].mxu0  ;;  %v494_v14 = vpop.f32.mrb[0].mxu1 }
  0xe6   :  { %v178_v15 = vadd.f32 %v486_v13, %v587_v12  ;;  %v210_v16 = vadd.f32 %v494_v14, %v587_v12  ;;  %v169_v17 = vpop.f32.mrb[1].mxu0  ;;  %v201_v18 = vpop.f32.mrb[1].mxu1 }
  0xe7   :  { %v170_v19 = vadd.f32 %v587_v12, %v169_v17  ;;  %v202_v20 = vadd.f32 %v587_v12, %v201_v18  ;;  %v487_v21 = vpop.f32.mrb[2].mxu0  ;;  %v495_v22 = vpop.f32.mrb[2].mxu1 }
  0xe8   :  { %vm234_vm1 = vcmp.ge.f32.partialorder %v178_v15, 0.0  ;;  %v250_v23 = vmul.f32 0.1, %v178_v15  ;;  %vm242_vm2 = vcmp.ge.f32.partialorder %v210_v16, 0.0  ;;  %v258_v24 = vmul.f32 0.1, %v210_v16 }
  0xe9   :  { %vm232_vm3 = vcmp.ge.f32.partialorder %v170_v19, 0.0  ;;  %v248_v25 = vmul.f32 0.1, %v170_v19  ;;  %vm240_vm4 = vcmp.ge.f32.partialorder %v202_v20, 0.0  ;;  %v256_v26 = vmul.f32 0.1, %v202_v20 }
  0xea   :  { %v181_v27 = vadd.f32 %v487_v21, %v587_v12  ;;  %v213_v28 = vadd.f32 %v495_v22, %v587_v12  ;;  %v172_v29 = vpop.f32.mrb[3].mxu0  ;;  %v204_v30 = vpop.f32.mrb[3].mxu1  ;;  %v266_v31 = vsel %vm234_vm1, %v178_v15, %v250_v23  ;;  %v274_v32 = vsel %vm242_vm2, %v210_v16, %v258_v24 }
  0xeb   :  { %v173_v33 = vadd.f32 %v587_v12, %v172_v29  ;;  %v205_v34 = vadd.f32 %v587_v12, %v204_v30  ;;  %v264_v39 = vsel %vm232_vm3, %v170_v19, %v248_v25  ;;  %v272_v40 = vsel %vm240_vm4, %v202_v20, %v256_v26 }
  0xec   :  { %vm235_vm5 = vcmp.ge.f32.partialorder %v181_v27, 0.0  ;;  %v251_v35 = vmul.f32 0.1, %v181_v27  ;;  %vm243_vm6 = vcmp.ge.f32.partialorder %v213_v28, 0.0  ;;  %v259_v36 = vmul.f32 0.1, %v213_v28 }
  0xed   :  { %vm233_vm7 = vcmp.ge.f32.partialorder %v173_v33, 0.0  ;;  %v249_v37 = vmul.f32 0.1, %v173_v33  ;;  %vm241_vm8 = vcmp.ge.f32.partialorder %v205_v34, 0.0  ;;  %v257_v38 = vmul.f32 0.1, %v205_v34 }
  0xee   :  { %v267_v41 = vsel %vm235_vm5, %v181_v27, %v251_v35  ;;  %v275_v42 = vsel %vm243_vm6, %v213_v28, %v259_v36  ;;  %v490_v43 = vpop.f32.mrb[4].mxu0  ;;  %v498_v44 = vpop.f32.mrb[4].mxu1 }
  0xef   :  { %v425_v45 = vpack.c.bf16 %v267_v41, %v266_v31  ;;  %v445_v46 = vpack.c.bf16 %v275_v42, %v274_v32  ;;  %v265_v47 = vsel %vm233_vm7, %v173_v33, %v249_v37  ;;  %v273_v48 = vsel %vm241_vm8, %v205_v34, %v257_v38  ;;  %v185_v49 = vpop.f32.mrb[5].mxu0  ;;  %v217_v50 = vpop.f32.mrb[5].mxu1 }
  0xf0   :  { %v420_v51 = vpack.c.bf16 %v265_v47, %v264_v39  ;;  %v440_v52 = vpack.c.bf16 %v273_v48, %v272_v40  ;;  %v194_v53 = vadd.f32 %v490_v43, %v587_v12  ;;  %v226_v54 = vadd.f32 %v498_v44, %v587_v12  ;;  %v491_v55 = vpop.f32.mrb[6].mxu0  ;;  %v499_v56 = vpop.f32.mrb[6].mxu1 }
  0xf1   :  { %457 = vst [vmem:[%s636_s3 + $0x8] sm:$0xff] %v425_v45   ;;  %461 = vst [vmem:[%s636_s3 + $0x28] sm:$0xff] %v445_v46   ;;  %v186_v57 = vadd.f32 %v587_v12, %v185_v49  ;;  %v218_v58 = vadd.f32 %v587_v12, %v217_v50  ;;  %v197_v59 = vadd.f32 %v491_v55, %v587_v12  ;;  %v188_v61 = vpop.f32.mrb[7].mxu0  ;;  %v220_v62 = vpop.f32.mrb[7].mxu1 }
  0xf2   :  { %v229_v60 = vadd.f32 %v499_v56, %v587_v12  ;;  %421 = vst [vmem:[%s636_s3] sm:$0xff] %v420_v51   ;;  %460 = vst [vmem:[%s636_s3 + $0x20] sm:$0xff] %v440_v52   ;;  %v254_v63 = vmul.f32 0.1, %v194_v53  ;;  %vm238_vm9 = vcmp.ge.f32.partialorder %v194_v53, 0.0  ;;  %v262_v0 = vmul.f32 0.1, %v226_v54 }
  0xf3   :  { %vm246_vm10 = vcmp.ge.f32.partialorder %v226_v54, 0.0  ;;  %vm236_vm11 = vcmp.ge.f32.partialorder %v186_v57, 0.0  ;;  %vm239_vm12 = vcmp.ge.f32.partialorder %v197_v59, 0.0  ;;  %v255_v1 = vmul.f32 0.1, %v197_v59 }
  0xf4   :  { %v252_v2 = vmul.f32 0.1, %v186_v57  ;;  %vm244_vm13 = vcmp.ge.f32.partialorder %v218_v58, 0.0  ;;  %vm247_vm14 = vcmp.ge.f32.partialorder %v229_v60, 0.0  ;;  %v263_v3 = vmul.f32 0.1, %v229_v60 }
  0xf5   :  { %v270_v4 = vsel %vm238_vm9, %v194_v53, %v254_v63  ;;  %v271_v5 = vsel %vm239_vm12, %v197_v59, %v255_v1  ;;  %v189_v6 = vadd.f32 %v587_v12, %v188_v61  ;;  %v221_v7 = vadd.f32 %v587_v12, %v220_v62 }
  0xf6   :  { %v278_v8 = vsel %vm246_vm10, %v226_v54, %v262_v0  ;;  %v260_v9 = vmul.f32 0.1, %v218_v58  ;;  %v435_v10 = vpack.c.bf16 %v271_v5, %v270_v4  ;;  %v279_v11 = vsel %vm247_vm14, %v229_v60, %v263_v3 }
  0xf7   :  { %v455_v13 = vpack.c.bf16 %v279_v11, %v278_v8  ;;  %vm237_vm15 = vcmp.ge.f32.partialorder %v189_v6, 0.0  ;;  %v253_v14 = vmul.f32 0.1, %v189_v6  ;;  %vm245_vm0 = vcmp.ge.f32.partialorder %v221_v7, 0.0 }
  0xf8   :  { %459 = vst [vmem:[%s636_s3 + $0x18] sm:$0xff] %v435_v10   ;;  %v261_v15 = vmul.f32 0.1, %v221_v7  ;;  %v268_v16 = vsel %vm236_vm11, %v186_v57, %v252_v2  ;;  %v276_v17 = vsel %vm244_vm13, %v218_v58, %v260_v9 }
  0xf9   :  { %463 = vst [vmem:[%s636_s3 + $0x38] sm:$0xff] %v455_v13   ;;  %v269_v12 = vsel %vm237_vm15, %v189_v6, %v253_v14 }
  0xfa   :  { %v430_v18 = vpack.c.bf16 %v269_v12, %v268_v16  ;;  %v277_v19 = vsel %vm245_vm0, %v221_v7, %v261_v15 }
  0xfb   :  { %v450_v20 = vpack.c.bf16 %v277_v19, %v276_v17 }
  0xfc   :  { %458 = vst [vmem:[%s636_s3 + $0x10] sm:$0xff] %v430_v18  }
  0xfd   :  { %462 = vst [vmem:[%s636_s3 + $0x30] sm:$0xff] %v450_v20  }

</bundles_post_ra>
